<compile_context>
chip_gen: v6e
topology: v6e:2x2x1
jax: 0.10.0
libtpu: 0.0.40
codegen_flags: <defaults>
</compile_context>

<pallas_src>
import functools
import math

import jax
import jax.numpy as jnp
from jax.experimental import pallas as pl
from jax.experimental.pallas import tpu as pltpu


def _round_up(x, m):
    return (x + m - 1) // m * m


def _halo_plan(L, K, dil, stride, pad):
    """Static plan for an in-kernel zero-padded (haloed) conv.

    Returns (L_out, write_offset, tap_offsets, scratch_rows).  The interior is
    stored at an 8-aligned offset so the store is layout-friendly; tap reads
    start at arbitrary offsets (and arbitrary stride), which is the well
    supported path.
    """
    L_out = (L + 2 * pad - dil * (K - 1) - 1) // stride + 1
    wo = _round_up(max(pad, 1), 8)
    offs = [wo - pad + t * dil for t in range(K)]
    rows = max(wo + L, offs[-1] + stride * (L_out - 1) + 1)
    return L_out, wo, tuple(offs), rows


# --------------------------------------------------------------------------
# Kernel 1: fused stem
#   conv7(s=2,p=3) -> BN -> ReLU -> conv1x1 -> BN -> ReLU -> [Dropout] -> conv5(p=2)
# One grid step per batch sample; padding + stride handled in-kernel.
# --------------------------------------------------------------------------
def _stem_kernel(x_ref, w1_ref, s1_ref, b1_ref, w2_ref, s2_ref, b2_ref,
                 w3_ref, o_ref, xpad, hpad, *,
                 L_in, L1, wo1, offs1, wo3, offs3):
    cp = o_ref.shape[-1]

    # --- conv1: K=7, stride=2, pad=3 (padding via zeroed halo scratch) ---
    xpad[...] = jnp.zeros_like(xpad)
    xpad[wo1:wo1 + L_in, :] = x_ref[0].astype(jnp.float32)
    acc = jnp.zeros((L1, cp), jnp.float32)
    for t in range(7):
        tap = xpad[pl.ds(offs1[t], L1, 2), :]            # strided tap read
        acc = acc + jnp.dot(tap.astype(jnp.bfloat16), w1_ref[t],
                            preferred_element_type=jnp.float32)
    h = jnp.maximum(acc * s1_ref[...] + b1_ref[...], 0.0)

    # --- conv2: 1x1 + BN + ReLU (Dropout: identity in inference mode) ---
    h = jnp.dot(h.astype(jnp.bfloat16), w2_ref[...],
                preferred_element_type=jnp.float32)
    h = jnp.maximum(h * s2_ref[...] + b2_ref[...], 0.0)

    # --- conv3: K=5, stride=1, pad=2 ---
    hpad[...] = jnp.zeros_like(hpad)
    hpad[wo3:wo3 + L1, :] = h
    acc = jnp.zeros((L1, cp), jnp.float32)
    for t in range(5):
        tap = hpad[pl.ds(offs3[t], L1), :]
        acc = acc + jnp.dot(tap.astype(jnp.bfloat16), w3_ref[t],
                            preferred_element_type=jnp.float32)
    o_ref[0] = acc.astype(o_ref.dtype)


def stem_fused(x, p):
    N, L, CP = x.shape
    L1, wo1, offs1, rows1 = _halo_plan(L, 7, 1, 2, 3)
    _, wo3, offs3, rows3 = _halo_plan(L1, 5, 1, 1, 2)

    kernel = functools.partial(_stem_kernel, L_in=L, L1=L1,
                               wo1=wo1, offs1=offs1, wo3=wo3, offs3=offs3)
    vec = lambda: pl.BlockSpec((1, CP), lambda n: (0, 0))
    return pl.pallas_call(
        kernel,
        out_shape=jax.ShapeDtypeStruct((N, L1, CP), jnp.bfloat16),
        grid_spec=pltpu.PrefetchScalarGridSpec(
            num_scalar_prefetch=0,
            grid=(N,),
            in_specs=[
                pl.BlockSpec((1, L, CP), lambda n: (n, 0, 0)),
                pl.BlockSpec((7, CP, CP), lambda n: (0, 0, 0)),
                vec(), vec(),
                pl.BlockSpec((CP, CP), lambda n: (0, 0)),
                vec(), vec(),
                pl.BlockSpec((5, CP, CP), lambda n: (0, 0, 0)),
            ],
            out_specs=pl.BlockSpec((1, L1, CP), lambda n: (n, 0, 0)),
            scratch_shapes=[pltpu.VMEM((rows1, CP), jnp.float32),
                            pltpu.VMEM((rows3, CP), jnp.float32)]),
        compiler_params=pltpu.CompilerParams(
            dimension_semantics=("parallel",)),
    )(x, p["w1"], p["bn1"][0], p["bn1"][1],
      p["w2"], p["bn2"][0], p["bn2"][1], p["w3"])


# --------------------------------------------------------------------------
# Kernel 2: fully fused BasicBlock (+ optional final BN+ReLU epilogue)
#   y = post( cat(branch0(x), branch1(x)) + shortcut(x) )
#   branch_b(x) = conv5_b( [Dropout] relu(bn_b( conv1x1_b( relu(bn_a_b(x)) ))) )
# Branch conv5 weights write disjoint output-channel columns, so the concat is
# just the sum of the two branch accumulators inside VMEM.
# --------------------------------------------------------------------------
def _block_kernel(*refs, K, L_in, L_out, stride, offs0, offs1, wo0, wo1,
                  short_conv, need_xs, has_post):
    i = 0
    x_ref = refs[i]; i += 1
    a0s, a0b, w10, b0s, b0b, w20 = refs[i:i + 6]; i += 6
    a1s, a1b, w11, b1s, b1b, w21 = refs[i:i + 6]; i += 6
    ws_ref = None
    if short_conv:
        ws_ref = refs[i]; i += 1
    ps_ref = pb_ref = None
    if has_post:
        ps_ref, pb_ref = refs[i], refs[i + 1]; i += 2
    o_ref = refs[i]; i += 1
    hpad0, hpad1 = refs[i], refs[i + 1]; i += 2
    xs_ref = refs[i] if need_xs else None

    cp = o_ref.shape[-1]
    xb = x_ref[0].astype(jnp.float32)                       # (L_in, CP)

    def branch(asr, abr, w1r, bsr, bbr, w2r, hpad, wo, offs):
        # pre-activation BN + ReLU prologue, then 1x1 conv, BN + ReLU.
        a = jnp.maximum(xb * asr[...] + abr[...], 0.0)
        h = jnp.dot(a.astype(jnp.bfloat16), w1r[...],
                    preferred_element_type=jnp.float32)
        h = jnp.maximum(h * bsr[...] + bbr[...], 0.0)
        # Dropout: identity in inference mode.
        # zero-padded halo scratch, then K strided tap reads -> MXU dots.
        hpad[...] = jnp.zeros_like(hpad)
        hpad[wo:wo + L_in, :] = h
        acc = jnp.zeros((L_out, cp), jnp.float32)
        for t in range(K):
            sl = (pl.ds(offs[t], L_out) if stride == 1
                  else pl.ds(offs[t], L_out, stride))
            acc = acc + jnp.dot(hpad[sl, :].astype(jnp.bfloat16), w2r[t],
                                preferred_element_type=jnp.float32)
        return acc

    y = branch(a0s, a0b, w10, b0s, b0b, w20, hpad0, wo0, offs0)
    y = y + branch(a1s, a1b, w11, b1s, b1b, w21, hpad1, wo1, offs1)

    if short_conv:
        if stride > 1:
            xs_ref[...] = xb
            xr = xs_ref[pl.ds(0, L_out, stride), :].astype(jnp.bfloat16)
        else:
            xr = x_ref[0]
        y = y + jnp.dot(xr, ws_ref[...], preferred_element_type=jnp.float32)
    else:
        y = y + xb                                           # identity shortcut

    if has_post:                                             # final BN + ReLU
        y = jnp.maximum(y * ps_ref[...] + pb_ref[...], 0.0)
    o_ref[0] = y.astype(o_ref.dtype)


def block_fused(x, bp, stride, dilation, post=None):
    N, L, CP = x.shape
    K = 5
    L_out, wo0, offs0, rows0 = _halo_plan(L, K, 1, stride, (K - 1) // 2)
    _, wo1, offs1, rows1 = _halo_plan(L, K, dilation, stride,
                                      ((K - 1) * dilation) // 2)
    short_conv = bp["shortcut"] is not None
    has_post = post is not None
    need_xs = short_conv and stride > 1

    vec = lambda: pl.BlockSpec((1, CP), lambda n: (0, 0))
    mat = lambda: pl.BlockSpec((CP, CP), lambda n: (0, 0))
    tap = lambda: pl.BlockSpec((K, CP, CP), lambda n: (0, 0, 0))

    inputs = [x,
              bp["bn_a0"][0], bp["bn_a0"][1], bp["w1_0"],
              bp["bn_b0"][0], bp["bn_b0"][1], bp["w2_0"],
              bp["bn_a1"][0], bp["bn_a1"][1], bp["w1_1"],
              bp["bn_b1"][0], bp["bn_b1"][1], bp["w2_1"]]
    in_specs = [pl.BlockSpec((1, L, CP), lambda n: (n, 0, 0)),
                vec(), vec(), mat(), vec(), vec(), tap(),
                vec(), vec(), mat(), vec(), vec(), tap()]
    if short_conv:
        inputs.append(bp["shortcut"]); in_specs.append(mat())
    if has_post:
        inputs += [post[0], post[1]]; in_specs += [vec(), vec()]

    scratch = [pltpu.VMEM((rows0, CP), jnp.float32),
               pltpu.VMEM((rows1, CP), jnp.float32)]
    if need_xs:
        scratch.append(pltpu.VMEM((L, CP), jnp.float32))

    kernel = functools.partial(
        _block_kernel, K=K, L_in=L, L_out=L_out, stride=stride,
        offs0=offs0, offs1=offs1, wo0=wo0, wo1=wo1,
        short_conv=short_conv, need_xs=need_xs, has_post=has_post)

    return pl.pallas_call(
        kernel,
        out_shape=jax.ShapeDtypeStruct((N, L_out, CP), jnp.bfloat16),
        grid_spec=pltpu.PrefetchScalarGridSpec(
            num_scalar_prefetch=0,
            grid=(N,),
            in_specs=in_specs,
            out_specs=pl.BlockSpec((1, L_out, CP), lambda n: (n, 0, 0)),
            scratch_shapes=scratch),
        compiler_params=pltpu.CompilerParams(
            dimension_semantics=("parallel",)),
    )(*inputs)


# --------------------------------------------------------------------------
# Kernel 3: fused FC head  (Linear -> +bias -> ReLU -> [Dropout] -> Linear -> +bias)
# Whole head in one grid step; bf16 operands, f32 accumulation, lane-dense out.
# --------------------------------------------------------------------------
def _fc_head_kernel(a_ref, w1_ref, b1_ref, w2_ref, b2_ref, o_ref):
    h = jnp.dot(a_ref[...], w1_ref[...], preferred_element_type=jnp.float32)
    h = jnp.maximum(h + b1_ref[...], 0.0)
    # Dropout: identity in inference mode.
    o = jnp.dot(h.astype(jnp.bfloat16), w2_ref[...],
                preferred_element_type=jnp.float32) + b2_ref[...]
    o_ref[...] = o.astype(o_ref.dtype)


def fc_head(a, fp, out_dtype=jnp.float32):
    M, Kf = a.shape
    H = fp["w1"].shape[1]
    Nout = fp["w2"].shape[1]
    return pl.pallas_call(
        _fc_head_kernel,
        out_shape=jax.ShapeDtypeStruct((M, Nout), out_dtype),
        grid_spec=pltpu.PrefetchScalarGridSpec(
            num_scalar_prefetch=0,
            grid=(1,),
            in_specs=[pl.BlockSpec((M, Kf), lambda i: (0, 0)),
                      pl.BlockSpec((Kf, H), lambda i: (0, 0)),
                      pl.BlockSpec((1, H), lambda i: (0, 0)),
                      pl.BlockSpec((H, Nout), lambda i: (0, 0)),
                      pl.BlockSpec((1, Nout), lambda i: (0, 0))],
            out_specs=pl.BlockSpec((M, Nout), lambda i: (0, 0))),
    )(a, fp["w1"], fp["b1"], fp["w2"], fp["b2"])


# --------------------------------------------------------------------------
# Parameter packing (padded channels-last layouts, bf16 weights)
# --------------------------------------------------------------------------
def _pack_convk(key, cout, cin, k, cp, col_offset=0):
    w = jax.random.normal(key, (cout, cin, k), jnp.float32) / math.sqrt(cin * k)
    wp = jnp.zeros((k, cp, cp), jnp.float32)
    wp = wp.at[:, :cin, col_offset:col_offset + cout].set(
        jnp.transpose(w, (2, 1, 0)))
    return wp.astype(jnp.bfloat16)


def _pack_conv1(key, cout, cin, cp, col_offset=0):
    return _pack_convk(key, cout, cin, 1, cp, col_offset)[0]       # (cp, cp)


def _bn_params(key, c, cp, eps=1e-5):
    kg, kb = jax.random.split(key)
    gamma = 1.0 + 0.1 * jax.random.normal(kg, (c,), jnp.float32)
    beta = 0.1 * jax.random.normal(kb, (c,), jnp.float32)
    # inference mode: running_mean = 0, running_var = 1
    scale = gamma / jnp.sqrt(1.0 + eps)
    sp = jnp.zeros((1, cp), jnp.float32).at[0, :c].set(scale)
    bp = jnp.zeros((1, cp), jnp.float32).at[0, :c].set(beta)
    return sp, bp


def _pack_fc_in_w(key, C, L, dout, cp):
    # PyTorch flatten order is (c*L + l); our flatten order is (l*cp + c), so
    # permute the weight rows once at init time.
    w = jax.random.normal(key, (C * L, dout), jnp.float32) / math.sqrt(C * L)
    w = w.reshape(C, L, dout).transpose(1, 0, 2)                   # (L, C, dout)
    wp = jnp.zeros((L, cp, dout), jnp.float32).at[:, :C, :].set(w)
    return wp.reshape(L * cp, dout).astype(jnp.bfloat16)


def _pack_fc_out_w(key, din, dout):
    w = jax.random.normal(key, (din, dout), jnp.float32) / math.sqrt(din)
    wp = jnp.zeros((din, _round_up(dout, 128)), jnp.float32).at[:, :dout].set(w)
    return wp.astype(jnp.bfloat16)


def _fc_bias(key, dout):
    b = 0.1 * jax.random.normal(key, (dout,), jnp.float32)
    return jnp.zeros((1, _round_up(dout, 128)), jnp.float32).at[0, :dout].set(b)


def init_model(key, cfg, input_len):
    in_ch = cfg["in_channels"]
    n_grps, Nblk = cfg["n_grps"], cfg["N"]
    num_classes = cfg["num_classes"]
    stride, dilation = cfg["stride"], cfg["dilation"]
    fw = cfg["first_width"] * 2                                    # num_branches = 2

    widths = [fw] + [fw * 2 ** g for g in range(n_grps)]
    cp = _round_up(max(widths + [in_ch, 128]), 128)
    keys = iter(jax.random.split(key, 4096))

    params = {"num_classes": num_classes, "cp": cp}
    params["stem"] = dict(
        w1=_pack_convk(next(keys), fw // 2, in_ch, 7, cp),
        bn1=_bn_params(next(keys), fw // 2, cp),
        w2=_pack_conv1(next(keys), fw, fw // 2, cp),
        bn2=_bn_params(next(keys), fw, cp),
        w3=_pack_convk(next(keys), fw, fw, 5, cp),
    )

    L = (input_len + 2 * 3 - 6 - 1) // 2 + 1                       # after stem conv1
    Ls, Cs = [L], [fw]
    blocks, meta = [], []
    for g in range(n_grps):
        for i in range(Nblk):
            cin = widths[g] if i == 0 else widths[g + 1]
            cout = widths[g + 1]
            s = stride[i]
            half = cout // 2
            bp = dict(
                bn_a0=_bn_params(next(keys), cin, cp),
                w1_0=_pack_conv1(next(keys), half, cin, cp),
                bn_b0=_bn_params(next(keys), half, cp),
                w2_0=_pack_convk(next(keys), half, half, 5, cp, col_offset=0),
                bn_a1=_bn_params(next(keys), cin, cp),
                w1_1=_pack_conv1(next(keys), half, cin, cp),
                bn_b1=_bn_params(next(keys), half, cp),
                # branch 1 writes output-channel columns [half:cout] -> fused concat
                w2_1=_pack_convk(next(keys), half, half, 5, cp, col_offset=half),
                shortcut=(None if (cin == cout and s == 1)
                          else _pack_conv1(next(keys), cout, cin, cp)),
            )
            blocks.append(bp)
            meta.append(dict(stride=s, dilation=dilation))
            Ls.append((Ls[-1] - 1) // s + 1)
            Cs.append(cout)
    params["blocks"] = blocks
    params["block_meta"] = meta
    params["final_bn"] = _bn_params(next(keys), widths[-1], cp)

    nblk = n_grps * Nblk
    aux = nblk // 2
    params["aux_point"] = aux
    C1, L1 = Cs[aux], Ls[aux]
    C2, L2 = Cs[-1], Ls[-1]

    # The PyTorch module hardcodes 20096 / 5120 Linear in-features for one fixed
    # input length; the in-features are derived from the (padded) shapes here.
    params["fc1"] = dict(w1=_pack_fc_in_w(next(keys), C1, L1, 256, cp),
                         b1=_fc_bias(next(keys), 256),
                         w2=_pack_fc_out_w(next(keys), 256, num_classes),
                         b2=_fc_bias(next(keys), num_classes))
    params["fc2"] = dict(w1=_pack_fc_in_w(next(keys), C2, L2, 256, cp),
                         b1=_fc_bias(next(keys), 256),
                         w2=_pack_fc_out_w(next(keys), 256, num_classes),
                         b2=_fc_bias(next(keys), num_classes))
    return params


# --------------------------------------------------------------------------
# Forward pass
# --------------------------------------------------------------------------
def forward(params, x_ncl):
    cp = params["cp"]
    nc = params["num_classes"]
    B, Cin, _ = x_ncl.shape

    # one-time layout change: channels-last, lane-padded to cp (padded lanes are
    # zero and stay zero because every packed weight/BN column there is zero).
    x = jnp.transpose(x_ncl, (0, 2, 1))
    x = jnp.pad(x, ((0, 0), (0, 0), (0, cp - Cin))).astype(jnp.bfloat16)

    x = stem_fused(x, params["stem"])

    aux = params["aux_point"]
    nblk = len(params["blocks"])
    x1 = x if aux == 0 else None
    for idx, (bp, m) in enumerate(zip(params["blocks"], params["block_meta"])):
        # final BatchNorm+ReLU of features2 fused into the last block's epilogue
        post = params["final_bn"] if idx == nblk - 1 else None
        x = block_fused(x, bp, m["stride"], m["dilation"], post=post)
        if idx == aux - 1:
            x1 = x
    x2 = x

    # flatten is a free reshape of contiguous dims (weights pre-permuted at init)
    out1 = fc_head(x1.reshape(B, -1), params["fc1"])
    out2 = fc_head(x2.reshape(B, -1), params["fc2"])
    return out1[:, :nc], out2[:, :nc]


# --------------------------------------------------------------------------
if __name__ == "__main__":
    cfg = dict(in_channels=4, n_grps=2, N=1, num_classes=5, dropout=0.3,
               first_width=8, stride=(2,), dilation=2,
               n_dropout_samples=3, sampling_dropout_rate=0.5)
    batch, L_in = 2, 64

    key = jax.random.PRNGKey(0)
    kp, kx = jax.random.split(key)
    params = init_model(kp, cfg, L_in)
    x = jax.random.normal(kx, (batch, cfg["in_channels"], L_in), jnp.float32)

    fwd = jax.jit(lambda inp: forward(params, inp))
    out1, out2 = fwd(x)
    jax.block_until_ready((out1, out2))

    assert out1.shape == (batch, cfg["num_classes"]), out1.shape
    assert out2.shape == (batch, cfg["num_classes"]), out2.shape
    assert bool(jnp.all(jnp.isfinite(out1))) and bool(jnp.all(jnp.isfinite(out2)))
    print("KERNEL_OK")
</pallas_src>

<mosaic_0001>
module attributes {stable_mosaic.version = 11 : i64} {
  func.func @_stem_kernel(%arg0: i32, %arg1: memref<1x64x128xbf16, #tpu.memory_space<vmem>>, %arg2: memref<7x128x128xbf16, #tpu.memory_space<vmem>>, %arg3: memref<1x128xf32, #tpu.memory_space<vmem>>, %arg4: memref<1x128xf32, #tpu.memory_space<vmem>>, %arg5: memref<128x128xbf16, #tpu.memory_space<vmem>>, %arg6: memref<1x128xf32, #tpu.memory_space<vmem>>, %arg7: memref<1x128xf32, #tpu.memory_space<vmem>>, %arg8: memref<5x128x128xbf16, #tpu.memory_space<vmem>>, %arg9: memref<1x32x128xbf16, #tpu.memory_space<vmem>>, %arg10: memref<74x128xf32, #tpu.memory_space<vmem>>, %arg11: memref<42x128xf32, #tpu.memory_space<vmem>>) attributes {dimension_semantics = [#tpu.dimension_semantics<parallel>], iteration_bounds = array<i64: 2>, scalar_prefetch = 0 : i64, scratch_operands = 2 : i64, tpu.core_type = #tpu.core_type<tc>, window_params = [{transform_indices = @transform_0, window_bounds = array<i64: 1, 64, 128>}, {pipeline_mode = #tpu.pipeline_mode<synchronous>, transform_indices = @transform_1, window_bounds = array<i64: 7, 128, 128>}, {pipeline_mode = #tpu.pipeline_mode<synchronous>, transform_indices = @transform_2, window_bounds = array<i64: 1, 128>}, {pipeline_mode = #tpu.pipeline_mode<synchronous>, transform_indices = @transform_3, window_bounds = array<i64: 1, 128>}, {pipeline_mode = #tpu.pipeline_mode<synchronous>, transform_indices = @transform_4, window_bounds = array<i64: 128, 128>}, {pipeline_mode = #tpu.pipeline_mode<synchronous>, transform_indices = @transform_5, window_bounds = array<i64: 1, 128>}, {pipeline_mode = #tpu.pipeline_mode<synchronous>, transform_indices = @transform_6, window_bounds = array<i64: 1, 128>}, {pipeline_mode = #tpu.pipeline_mode<synchronous>, transform_indices = @transform_7, window_bounds = array<i64: 5, 128, 128>}, {transform_indices = @transform_8, window_bounds = array<i64: 1, 32, 128>}]} {
    %cst = arith.constant 0.000000e+00 : f32
    %0 = vector.broadcast %cst : f32 to vector<74x128xf32>
    %c0 = arith.constant 0 : index
    %c0_0 = arith.constant 0 : index
    %1 = vector.load %arg10[%c0, %c0_0] : memref<74x128xf32, #tpu.memory_space<vmem>>, vector<74x128xf32>
    tpu.vector_store %arg10[%c0, %c0_0], %0 {strides = array<i32>} : memref<74x128xf32, #tpu.memory_space<vmem>>, vector<74x128xf32>,
    %c0_1 = arith.constant 0 : index
    %c0_2 = arith.constant 0 : index
    %c0_3 = arith.constant 0 : index
    %2 = vector.load %arg1[%c0_1, %c0_2, %c0_3] : memref<1x64x128xbf16, #tpu.memory_space<vmem>>, vector<1x64x128xbf16>
    %3 = vector.shape_cast %2 : vector<1x64x128xbf16> to vector<64x128xbf16>
    %4 = arith.extf %3 : vector<64x128xbf16> to vector<64x128xf32>
    %c8 = arith.constant 8 : index
    %c0_4 = arith.constant 0 : index
    %5 = vector.load %arg10[%c8, %c0_4] : memref<74x128xf32, #tpu.memory_space<vmem>>, vector<64x128xf32>
    tpu.vector_store %arg10[%c8, %c0_4], %4 {strides = array<i32>} : memref<74x128xf32, #tpu.memory_space<vmem>>, vector<64x128xf32>,
    %cst_5 = arith.constant 0.000000e+00 : f32
    %6 = vector.broadcast %cst_5 : f32 to vector<32x128xf32>
    %c5 = arith.constant 5 : index
    %c0_6 = arith.constant 0 : index
    %7 = tpu.strided_load %arg10[%c5, %c0_6] {strides = array<i32: 2, 1>} : memref<74x128xf32, #tpu.memory_space<vmem>>, vector<32x128xf32>
    %8 = arith.truncf %7 : vector<32x128xf32> to vector<32x128xbf16>
    %c0_7 = arith.constant 0 : index
    %c0_8 = arith.constant 0 : index
    %c0_9 = arith.constant 0 : index
    %9 = vector.load %arg2[%c0_7, %c0_8, %c0_9] : memref<7x128x128xbf16, #tpu.memory_space<vmem>>, vector<1x128x128xbf16>
    %10 = vector.shape_cast %9 : vector<1x128x128xbf16> to vector<128x128xbf16>
    %cst_10 = arith.constant dense<0.000000e+00> : vector<32x128xf32>
    %11 = tpu.matmul %8, %10, %cst_10 {dimension_numbers = #tpu.dot_dimension_numbers<[1], [0], [0], [1], [0, 0, 1, 1], [], []>} : vector<32x128xbf16>, vector<128x128xbf16>, vector<32x128xf32> -> vector<32x128xf32>
    %12 = arith.addf %6, %11 : vector<32x128xf32>
    %c6 = arith.constant 6 : index
    %c0_11 = arith.constant 0 : index
    %13 = tpu.strided_load %arg10[%c6, %c0_11] {strides = array<i32: 2, 1>} : memref<74x128xf32, #tpu.memory_space<vmem>>, vector<32x128xf32>
    %14 = arith.truncf %13 : vector<32x128xf32> to vector<32x128xbf16>
    %c1 = arith.constant 1 : index
    %c0_12 = arith.constant 0 : index
    %c0_13 = arith.constant 0 : index
    %15 = vector.load %arg2[%c1, %c0_12, %c0_13] : memref<7x128x128xbf16, #tpu.memory_space<vmem>>, vector<1x128x128xbf16>
    %16 = vector.shape_cast %15 : vector<1x128x128xbf16> to vector<128x128xbf16>
    %cst_14 = arith.constant dense<0.000000e+00> : vector<32x128xf32>
    %17 = tpu.matmul %14, %16, %cst_14 {dimension_numbers = #tpu.dot_dimension_numbers<[1], [0], [0], [1], [0, 0, 1, 1], [], []>} : vector<32x128xbf16>, vector<128x128xbf16>, vector<32x128xf32> -> vector<32x128xf32>
    %18 = arith.addf %12, %17 : vector<32x128xf32>
    %c7 = arith.constant 7 : index
    %c0_15 = arith.constant 0 : index
    %19 = tpu.strided_load %arg10[%c7, %c0_15] {strides = array<i32: 2, 1>} : memref<74x128xf32, #tpu.memory_space<vmem>>, vector<32x128xf32>
    %20 = arith.truncf %19 : vector<32x128xf32> to vector<32x128xbf16>
    %c2 = arith.constant 2 : index
    %c0_16 = arith.constant 0 : index
    %c0_17 = arith.constant 0 : index
    %21 = vector.load %arg2[%c2, %c0_16, %c0_17] : memref<7x128x128xbf16, #tpu.memory_space<vmem>>, vector<1x128x128xbf16>
    %22 = vector.shape_cast %21 : vector<1x128x128xbf16> to vector<128x128xbf16>
    %cst_18 = arith.constant dense<0.000000e+00> : vector<32x128xf32>
    %23 = tpu.matmul %20, %22, %cst_18 {dimension_numbers = #tpu.dot_dimension_numbers<[1], [0], [0], [1], [0, 0, 1, 1], [], []>} : vector<32x128xbf16>, vector<128x128xbf16>, vector<32x128xf32> -> vector<32x128xf32>
    %24 = arith.addf %18, %23 : vector<32x128xf32>
    %c8_19 = arith.constant 8 : index
    %c0_20 = arith.constant 0 : index
    %25 = tpu.strided_load %arg10[%c8_19, %c0_20] {strides = array<i32: 2, 1>} : memref<74x128xf32, #tpu.memory_space<vmem>>, vector<32x128xf32>
    %26 = arith.truncf %25 : vector<32x128xf32> to vector<32x128xbf16>
    %c3 = arith.constant 3 : index
    %c0_21 = arith.constant 0 : index
    %c0_22 = arith.constant 0 : index
    %27 = vector.load %arg2[%c3, %c0_21, %c0_22] : memref<7x128x128xbf16, #tpu.memory_space<vmem>>, vector<1x128x128xbf16>
    %28 = vector.shape_cast %27 : vector<1x128x128xbf16> to vector<128x128xbf16>
    %cst_23 = arith.constant dense<0.000000e+00> : vector<32x128xf32>
    %29 = tpu.matmul %26, %28, %cst_23 {dimension_numbers = #tpu.dot_dimension_numbers<[1], [0], [0], [1], [0, 0, 1, 1], [], []>} : vector<32x128xbf16>, vector<128x128xbf16>, vector<32x128xf32> -> vector<32x128xf32>
    %30 = arith.addf %24, %29 : vector<32x128xf32>
    %c9 = arith.constant 9 : index
    %c0_24 = arith.constant 0 : index
    %31 = tpu.strided_load %arg10[%c9, %c0_24] {strides = array<i32: 2, 1>} : memref<74x128xf32, #tpu.memory_space<vmem>>, vector<32x128xf32>
    %32 = arith.truncf %31 : vector<32x128xf32> to vector<32x128xbf16>
    %c4 = arith.constant 4 : index
    %c0_25 = arith.constant 0 : index
    %c0_26 = arith.constant 0 : index
    %33 = vector.load %arg2[%c4, %c0_25, %c0_26] : memref<7x128x128xbf16, #tpu.memory_space<vmem>>, vector<1x128x128xbf16>
    %34 = vector.shape_cast %33 : vector<1x128x128xbf16> to vector<128x128xbf16>
    %cst_27 = arith.constant dense<0.000000e+00> : vector<32x128xf32>
    %35 = tpu.matmul %32, %34, %cst_27 {dimension_numbers = #tpu.dot_dimension_numbers<[1], [0], [0], [1], [0, 0, 1, 1], [], []>} : vector<32x128xbf16>, vector<128x128xbf16>, vector<32x128xf32> -> vector<32x128xf32>
    %36 = arith.addf %30, %35 : vector<32x128xf32>
    %c10 = arith.constant 10 : index
    %c0_28 = arith.constant 0 : index
    %37 = tpu.strided_load %arg10[%c10, %c0_28] {strides = array<i32: 2, 1>} : memref<74x128xf32, #tpu.memory_space<vmem>>, vector<32x128xf32>
    %38 = arith.truncf %37 : vector<32x128xf32> to vector<32x128xbf16>
    %c5_29 = arith.constant 5 : index
    %c0_30 = arith.constant 0 : index
    %c0_31 = arith.constant 0 : index
    %39 = vector.load %arg2[%c5_29, %c0_30, %c0_31] : memref<7x128x128xbf16, #tpu.memory_space<vmem>>, vector<1x128x128xbf16>
    %40 = vector.shape_cast %39 : vector<1x128x128xbf16> to vector<128x128xbf16>
    %cst_32 = arith.constant dense<0.000000e+00> : vector<32x128xf32>
    %41 = tpu.matmul %38, %40, %cst_32 {dimension_numbers = #tpu.dot_dimension_numbers<[1], [0], [0], [1], [0, 0, 1, 1], [], []>} : vector<32x128xbf16>, vector<128x128xbf16>, vector<32x128xf32> -> vector<32x128xf32>
    %42 = arith.addf %36, %41 : vector<32x128xf32>
    %c11 = arith.constant 11 : index
    %c0_33 = arith.constant 0 : index
    %43 = tpu.strided_load %arg10[%c11, %c0_33] {strides = array<i32: 2, 1>} : memref<74x128xf32, #tpu.memory_space<vmem>>, vector<32x128xf32>
    %44 = arith.truncf %43 : vector<32x128xf32> to vector<32x128xbf16>
    %c6_34 = arith.constant 6 : index
    %c0_35 = arith.constant 0 : index
    %c0_36 = arith.constant 0 : index
    %45 = vector.load %arg2[%c6_34, %c0_35, %c0_36] : memref<7x128x128xbf16, #tpu.memory_space<vmem>>, vector<1x128x128xbf16>
    %46 = vector.shape_cast %45 : vector<1x128x128xbf16> to vector<128x128xbf16>
    %cst_37 = arith.constant dense<0.000000e+00> : vector<32x128xf32>
    %47 = tpu.matmul %44, %46, %cst_37 {dimension_numbers = #tpu.dot_dimension_numbers<[1], [0], [0], [1], [0, 0, 1, 1], [], []>} : vector<32x128xbf16>, vector<128x128xbf16>, vector<32x128xf32> -> vector<32x128xf32>
    %48 = arith.addf %42, %47 : vector<32x128xf32>
    %c0_38 = arith.constant 0 : index
    %c0_39 = arith.constant 0 : index
    %49 = vector.load %arg3[%c0_38, %c0_39] : memref<1x128xf32, #tpu.memory_space<vmem>>, vector<1x128xf32>
    %50 = vector.broadcast %49 : vector<1x128xf32> to vector<32x128xf32>
    %51 = arith.mulf %48, %50 : vector<32x128xf32>
    %c0_40 = arith.constant 0 : index
    %c0_41 = arith.constant 0 : index
    %52 = vector.load %arg4[%c0_40, %c0_41] : memref<1x128xf32, #tpu.memory_space<vmem>>, vector<1x128xf32>
    %53 = vector.broadcast %52 : vector<1x128xf32> to vector<32x128xf32>
    %54 = arith.addf %51, %53 : vector<32x128xf32>
    %cst_42 = arith.constant 0.000000e+00 : f32
    %55 = vector.broadcast %cst_42 : f32 to vector<32x128xf32>
    %56 = arith.maximumf %54, %55 : vector<32x128xf32>
    %57 = arith.truncf %56 : vector<32x128xf32> to vector<32x128xbf16>
    %c0_43 = arith.constant 0 : index
    %c0_44 = arith.constant 0 : index
    %58 = vector.load %arg5[%c0_43, %c0_44] : memref<128x128xbf16, #tpu.memory_space<vmem>>, vector<128x128xbf16>
    %cst_45 = arith.constant dense<0.000000e+00> : vector<32x128xf32>
    %59 = tpu.matmul %57, %58, %cst_45 {dimension_numbers = #tpu.dot_dimension_numbers<[1], [0], [0], [1], [0, 0, 1, 1], [], []>} : vector<32x128xbf16>, vector<128x128xbf16>, vector<32x128xf32> -> vector<32x128xf32>
    %c0_46 = arith.constant 0 : index
    %c0_47 = arith.constant 0 : index
    %60 = vector.load %arg6[%c0_46, %c0_47] : memref<1x128xf32, #tpu.memory_space<vmem>>, vector<1x128xf32>
    %61 = vector.broadcast %60 : vector<1x128xf32> to vector<32x128xf32>
    %62 = arith.mulf %59, %61 : vector<32x128xf32>
    %c0_48 = arith.constant 0 : index
    %c0_49 = arith.constant 0 : index
    %63 = vector.load %arg7[%c0_48, %c0_49] : memref<1x128xf32, #tpu.memory_space<vmem>>, vector<1x128xf32>
    %64 = vector.broadcast %63 : vector<1x128xf32> to vector<32x128xf32>
    %65 = arith.addf %62, %64 : vector<32x128xf32>
    %cst_50 = arith.constant 0.000000e+00 : f32
    %66 = vector.broadcast %cst_50 : f32 to vector<32x128xf32>
    %67 = arith.maximumf %65, %66 : vector<32x128xf32>
    %cst_51 = arith.constant 0.000000e+00 : f32
    %68 = vector.broadcast %cst_51 : f32 to vector<42x128xf32>
    %c0_52 = arith.constant 0 : index
    %c0_53 = arith.constant 0 : index
    %69 = vector.load %arg11[%c0_52, %c0_53] : memref<42x128xf32, #tpu.memory_space<vmem>>, vector<42x128xf32>
    tpu.vector_store %arg11[%c0_52, %c0_53], %68 {strides = array<i32>} : memref<42x128xf32, #tpu.memory_space<vmem>>, vector<42x128xf32>,
    %c8_54 = arith.constant 8 : index
    %c0_55 = arith.constant 0 : index
    %70 = vector.load %arg11[%c8_54, %c0_55] : memref<42x128xf32, #tpu.memory_space<vmem>>, vector<32x128xf32>
    tpu.vector_store %arg11[%c8_54, %c0_55], %67 {strides = array<i32>} : memref<42x128xf32, #tpu.memory_space<vmem>>, vector<32x128xf32>,
    %cst_56 = arith.constant 0.000000e+00 : f32
    %71 = vector.broadcast %cst_56 : f32 to vector<32x128xf32>
    %c6_57 = arith.constant 6 : index
    %c0_58 = arith.constant 0 : index
    %72 = vector.load %arg11[%c6_57, %c0_58] : memref<42x128xf32, #tpu.memory_space<vmem>>, vector<32x128xf32>
    %73 = arith.truncf %72 : vector<32x128xf32> to vector<32x128xbf16>
    %c0_59 = arith.constant 0 : index
    %c0_60 = arith.constant 0 : index
    %c0_61 = arith.constant 0 : index
    %74 = vector.load %arg8[%c0_59, %c0_60, %c0_61] : memref<5x128x128xbf16, #tpu.memory_space<vmem>>, vector<1x128x128xbf16>
    %75 = vector.shape_cast %74 : vector<1x128x128xbf16> to vector<128x128xbf16>
    %cst_62 = arith.constant dense<0.000000e+00> : vector<32x128xf32>
    %76 = tpu.matmul %73, %75, %cst_62 {dimension_numbers = #tpu.dot_dimension_numbers<[1], [0], [0], [1], [0, 0, 1, 1], [], []>} : vector<32x128xbf16>, vector<128x128xbf16>, vector<32x128xf32> -> vector<32x128xf32>
    %77 = arith.addf %71, %76 : vector<32x128xf32>
    %c7_63 = arith.constant 7 : index
    %c0_64 = arith.constant 0 : index
    %78 = vector.load %arg11[%c7_63, %c0_64] : memref<42x128xf32, #tpu.memory_space<vmem>>, vector<32x128xf32>
    %79 = arith.truncf %78 : vector<32x128xf32> to vector<32x128xbf16>
    %c1_65 = arith.constant 1 : index
    %c0_66 = arith.constant 0 : index
    %c0_67 = arith.constant 0 : index
    %80 = vector.load %arg8[%c1_65, %c0_66, %c0_67] : memref<5x128x128xbf16, #tpu.memory_space<vmem>>, vector<1x128x128xbf16>
    %81 = vector.shape_cast %80 : vector<1x128x128xbf16> to vector<128x128xbf16>
    %cst_68 = arith.constant dense<0.000000e+00> : vector<32x128xf32>
    %82 = tpu.matmul %79, %81, %cst_68 {dimension_numbers = #tpu.dot_dimension_numbers<[1], [0], [0], [1], [0, 0, 1, 1], [], []>} : vector<32x128xbf16>, vector<128x128xbf16>, vector<32x128xf32> -> vector<32x128xf32>
    %83 = arith.addf %77, %82 : vector<32x128xf32>
    %c8_69 = arith.constant 8 : index
    %c0_70 = arith.constant 0 : index
    %84 = vector.load %arg11[%c8_69, %c0_70] : memref<42x128xf32, #tpu.memory_space<vmem>>, vector<32x128xf32>
    %85 = arith.truncf %84 : vector<32x128xf32> to vector<32x128xbf16>
    %c2_71 = arith.constant 2 : index
    %c0_72 = arith.constant 0 : index
    %c0_73 = arith.constant 0 : index
    %86 = vector.load %arg8[%c2_71, %c0_72, %c0_73] : memref<5x128x128xbf16, #tpu.memory_space<vmem>>, vector<1x128x128xbf16>
    %87 = vector.shape_cast %86 : vector<1x128x128xbf16> to vector<128x128xbf16>
    %cst_74 = arith.constant dense<0.000000e+00> : vector<32x128xf32>
    %88 = tpu.matmul %85, %87, %cst_74 {dimension_numbers = #tpu.dot_dimension_numbers<[1], [0], [0], [1], [0, 0, 1, 1], [], []>} : vector<32x128xbf16>, vector<128x128xbf16>, vector<32x128xf32> -> vector<32x128xf32>
    %89 = arith.addf %83, %88 : vector<32x128xf32>
    %c9_75 = arith.constant 9 : index
    %c0_76 = arith.constant 0 : index
    %90 = vector.load %arg11[%c9_75, %c0_76] : memref<42x128xf32, #tpu.memory_space<vmem>>, vector<32x128xf32>
    %91 = arith.truncf %90 : vector<32x128xf32> to vector<32x128xbf16>
    %c3_77 = arith.constant 3 : index
    %c0_78 = arith.constant 0 : index
    %c0_79 = arith.constant 0 : index
    %92 = vector.load %arg8[%c3_77, %c0_78, %c0_79] : memref<5x128x128xbf16, #tpu.memory_space<vmem>>, vector<1x128x128xbf16>
    %93 = vector.shape_cast %92 : vector<1x128x128xbf16> to vector<128x128xbf16>
    %cst_80 = arith.constant dense<0.000000e+00> : vector<32x128xf32>
    %94 = tpu.matmul %91, %93, %cst_80 {dimension_numbers = #tpu.dot_dimension_numbers<[1], [0], [0], [1], [0, 0, 1, 1], [], []>} : vector<32x128xbf16>, vector<128x128xbf16>, vector<32x128xf32> -> vector<32x128xf32>
    %95 = arith.addf %89, %94 : vector<32x128xf32>
    %c10_81 = arith.constant 10 : index
    %c0_82 = arith.constant 0 : index
    %96 = vector.load %arg11[%c10_81, %c0_82] : memref<42x128xf32, #tpu.memory_space<vmem>>, vector<32x128xf32>
    %97 = arith.truncf %96 : vector<32x128xf32> to vector<32x128xbf16>
    %c4_83 = arith.constant 4 : index
    %c0_84 = arith.constant 0 : index
    %c0_85 = arith.constant 0 : index
    %98 = vector.load %arg8[%c4_83, %c0_84, %c0_85] : memref<5x128x128xbf16, #tpu.memory_space<vmem>>, vector<1x128x128xbf16>
    %99 = vector.shape_cast %98 : vector<1x128x128xbf16> to vector<128x128xbf16>
    %cst_86 = arith.constant dense<0.000000e+00> : vector<32x128xf32>
    %100 = tpu.matmul %97, %99, %cst_86 {dimension_numbers = #tpu.dot_dimension_numbers<[1], [0], [0], [1], [0, 0, 1, 1], [], []>} : vector<32x128xbf16>, vector<128x128xbf16>, vector<32x128xf32> -> vector<32x128xf32>
    %101 = arith.addf %95, %100 : vector<32x128xf32>
    %102 = arith.truncf %101 : vector<32x128xf32> to vector<32x128xbf16>
    %c0_87 = arith.constant 0 : index
    %c0_88 = arith.constant 0 : index
    %c0_89 = arith.constant 0 : index
    %103 = vector.load %arg9[%c0_87, %c0_88, %c0_89] : memref<1x32x128xbf16, #tpu.memory_space<vmem>>, vector<1x32x128xbf16>
    %104 = vector.shape_cast %103 : vector<1x32x128xbf16> to vector<32x128xbf16>
    %105 = vector.shape_cast %102 : vector<32x128xbf16> to vector<1x32x128xbf16>
    tpu.vector_store %arg9[%c0_87, %c0_88, %c0_89], %105 {strides = array<i32>} : memref<1x32x128xbf16, #tpu.memory_space<vmem>>, vector<1x32x128xbf16>,
    return
  }
  func.func @transform_0(%arg0: i32) -> (i32, i32, i32) {
    %c0_i32 = arith.constant 0 : i32
    %c0_i32_0 = arith.constant 0 : i32
    %c0_i32_1 = arith.constant 0 : i32
    return %arg0, %c0_i32, %c0_i32_0 : i32, i32, i32
  }
  func.func @transform_1(%arg0: i32) -> (i32, i32, i32) {
    %c0_i32 = arith.constant 0 : i32
    %c0_i32_0 = arith.constant 0 : i32
    %c0_i32_1 = arith.constant 0 : i32
    %c0_i32_2 = arith.constant 0 : i32
    return %c0_i32, %c0_i32_0, %c0_i32_1 : i32, i32, i32
  }
  func.func @transform_2(%arg0: i32) -> (i32, i32) {
    %c0_i32 = arith.constant 0 : i32
    %c0_i32_0 = arith.constant 0 : i32
    %c0_i32_1 = arith.constant 0 : i32
    return %c0_i32, %c0_i32_0 : i32, i32
  }
  func.func @transform_3(%arg0: i32) -> (i32, i32) {
    %c0_i32 = arith.constant 0 : i32
    %c0_i32_0 = arith.constant 0 : i32
    %c0_i32_1 = arith.constant 0 : i32
    return %c0_i32, %c0_i32_0 : i32, i32
  }
  func.func @transform_4(%arg0: i32) -> (i32, i32) {
    %c0_i32 = arith.constant 0 : i32
    %c0_i32_0 = arith.constant 0 : i32
    %c0_i32_1 = arith.constant 0 : i32
    return %c0_i32, %c0_i32_0 : i32, i32
  }
  func.func @transform_5(%arg0: i32) -> (i32, i32) {
    %c0_i32 = arith.constant 0 : i32
    %c0_i32_0 = arith.constant 0 : i32
    %c0_i32_1 = arith.constant 0 : i32
    return %c0_i32, %c0_i32_0 : i32, i32
  }
  func.func @transform_6(%arg0: i32) -> (i32, i32) {
    %c0_i32 = arith.constant 0 : i32
    %c0_i32_0 = arith.constant 0 : i32
    %c0_i32_1 = arith.constant 0 : i32
    return %c0_i32, %c0_i32_0 : i32, i32
  }
  func.func @transform_7(%arg0: i32) -> (i32, i32, i32) {
    %c0_i32 = arith.constant 0 : i32
    %c0_i32_0 = arith.constant 0 : i32
    %c0_i32_1 = arith.constant 0 : i32
    %c0_i32_2 = arith.constant 0 : i32
    return %c0_i32, %c0_i32_0, %c0_i32_1 : i32, i32, i32
  }
  func.func @transform_8(%arg0: i32) -> (i32, i32, i32) {
    %c0_i32 = arith.constant 0 : i32
    %c0_i32_0 = arith.constant 0 : i32
    %c0_i32_1 = arith.constant 0 : i32
    return %arg0, %c0_i32, %c0_i32_0 : i32, i32, i32
  }
}

module attributes {stable_mosaic.version = 11 : i64} {
  func.func @_block_kernel(%arg0: i32, %arg1: memref<1x16x128xbf16, #tpu.memory_space<vmem>>, %arg2: memref<1x128xf32, #tpu.memory_space<vmem>>, %arg3: memref<1x128xf32, #tpu.memory_space<vmem>>, %arg4: memref<128x128xbf16, #tpu.memory_space<vmem>>, %arg5: memref<1x128xf32, #tpu.memory_space<vmem>>, %arg6: memref<1x128xf32, #tpu.memory_space<vmem>>, %arg7: memref<5x128x128xbf16, #tpu.memory_space<vmem>>, %arg8: memref<1x128xf32, #tpu.memory_space<vmem>>, %arg9: memref<1x128xf32, #tpu.memory_space<vmem>>, %arg10: memref<128x128xbf16, #tpu.memory_space<vmem>>, %arg11: memref<1x128xf32, #tpu.memory_space<vmem>>, %arg12: memref<1x128xf32, #tpu.memory_space<vmem>>, %arg13: memref<5x128x128xbf16, #tpu.memory_space<vmem>>, %arg14: memref<128x128xbf16, #tpu.memory_space<vmem>>, %arg15: memref<1x128xf32, #tpu.memory_space<vmem>>, %arg16: memref<1x128xf32, #tpu.memory_space<vmem>>, %arg17: memref<1x8x128xbf16, #tpu.memory_space<vmem>>, %arg18: memref<25x128xf32, #tpu.memory_space<vmem>>, %arg19: memref<27x128xf32, #tpu.memory_space<vmem>>, %arg20: memref<16x128xf32, #tpu.memory_space<vmem>>) attributes {dimension_semantics = [#tpu.dimension_semantics<parallel>], iteration_bounds = array<i64: 2>, scalar_prefetch = 0 : i64, scratch_operands = 3 : i64, tpu.core_type = #tpu.core_type<tc>, window_params = [{transform_indices = @transform_0, window_bounds = array<i64: 1, 16, 128>}, {pipeline_mode = #tpu.pipeline_mode<synchronous>, transform_indices = @transform_1, window_bounds = array<i64: 1, 128>}, {pipeline_mode = #tpu.pipeline_mode<synchronous>, transform_indices = @transform_2, window_bounds = array<i64: 1, 128>}, {pipeline_mode = #tpu.pipeline_mode<synchronous>, transform_indices = @transform_3, window_bounds = array<i64: 128, 128>}, {pipeline_mode = #tpu.pipeline_mode<synchronous>, transform_indices = @transform_4, window_bounds = array<i64: 1, 128>}, {pipeline_mode = #tpu.pipeline_mode<synchronous>, transform_indices = @transform_5, window_bounds = array<i64: 1, 128>}, {pipeline_mode = #tpu.pipeline_mode<synchronous>, transform_indices = @transform_6, window_bounds = array<i64: 5, 128, 128>}, {pipeline_mode = #tpu.pipeline_mode<synchronous>, transform_indices = @transform_7, window_bounds = array<i64: 1, 128>}, {pipeline_mode = #tpu.pipeline_mode<synchronous>, transform_indices = @transform_8, window_bounds = array<i64: 1, 128>}, {pipeline_mode = #tpu.pipeline_mode<synchronous>, transform_indices = @transform_9, window_bounds = array<i64: 128, 128>}, {pipeline_mode = #tpu.pipeline_mode<synchronous>, transform_indices = @transform_10, window_bounds = array<i64: 1, 128>}, {pipeline_mode = #tpu.pipeline_mode<synchronous>, transform_indices = @transform_11, window_bounds = array<i64: 1, 128>}, {pipeline_mode = #tpu.pipeline_mode<synchronous>, transform_indices = @transform_12, window_bounds = array<i64: 5, 128, 128>}, {pipeline_mode = #tpu.pipeline_mode<synchronous>, transform_indices = @transform_13, window_bounds = array<i64: 128, 128>}, {pipeline_mode = #tpu.pipeline_mode<synchronous>, transform_indices = @transform_14, window_bounds = array<i64: 1, 128>}, {pipeline_mode = #tpu.pipeline_mode<synchronous>, transform_indices = @transform_15, window_bounds = array<i64: 1, 128>}, {transform_indices = @transform_16, window_bounds = array<i64: 1, 8, 128>}]} {
    %c0 = arith.constant 0 : index
    %c0_0 = arith.constant 0 : index
    %c0_1 = arith.constant 0 : index
    %0 = vector.load %arg1[%c0, %c0_0, %c0_1] : memref<1x16x128xbf16, #tpu.memory_space<vmem>>, vector<1x16x128xbf16>
    %1 = vector.shape_cast %0 : vector<1x16x128xbf16> to vector<16x128xbf16>
    %2 = arith.extf %1 : vector<16x128xbf16> to vector<16x128xf32>
    %c0_2 = arith.constant 0 : index
    %c0_3 = arith.constant 0 : index
    %3 = vector.load %arg2[%c0_2, %c0_3] : memref<1x128xf32, #tpu.memory_space<vmem>>, vector<1x128xf32>
    %4 = vector.broadcast %3 : vector<1x128xf32> to vector<16x128xf32>
    %5 = arith.mulf %2, %4 : vector<16x128xf32>
    %c0_4 = arith.constant 0 : index
    %c0_5 = arith.constant 0 : index
    %6 = vector.load %arg3[%c0_4, %c0_5] : memref<1x128xf32, #tpu.memory_space<vmem>>, vector<1x128xf32>
    %7 = vector.broadcast %6 : vector<1x128xf32> to vector<16x128xf32>
    %8 = arith.addf %5, %7 : vector<16x128xf32>
    %cst = arith.constant 0.000000e+00 : f32
    %9 = vector.broadcast %cst : f32 to vector<16x128xf32>
    %10 = arith.maximumf %8, %9 : vector<16x128xf32>
    %11 = arith.truncf %10 : vector<16x128xf32> to vector<16x128xbf16>
    %c0_6 = arith.constant 0 : index
    %c0_7 = arith.constant 0 : index
    %12 = vector.load %arg4[%c0_6, %c0_7] : memref<128x128xbf16, #tpu.memory_space<vmem>>, vector<128x128xbf16>
    %cst_8 = arith.constant dense<0.000000e+00> : vector<16x128xf32>
    %13 = tpu.matmul %11, %12, %cst_8 {dimension_numbers = #tpu.dot_dimension_numbers<[1], [0], [0], [1], [0, 0, 1, 1], [], []>} : vector<16x128xbf16>, vector<128x128xbf16>, vector<16x128xf32> -> vector<16x128xf32>
    %c0_9 = arith.constant 0 : index
    %c0_10 = arith.constant 0 : index
    %14 = vector.load %arg5[%c0_9, %c0_10] : memref<1x128xf32, #tpu.memory_space<vmem>>, vector<1x128xf32>
    %15 = vector.broadcast %14 : vector<1x128xf32> to vector<16x128xf32>
    %16 = arith.mulf %13, %15 : vector<16x128xf32>
    %c0_11 = arith.constant 0 : index
    %c0_12 = arith.constant 0 : index
    %17 = vector.load %arg6[%c0_11, %c0_12] : memref<1x128xf32, #tpu.memory_space<vmem>>, vector<1x128xf32>
    %18 = vector.broadcast %17 : vector<1x128xf32> to vector<16x128xf32>
    %19 = arith.addf %16, %18 : vector<16x128xf32>
    %cst_13 = arith.constant 0.000000e+00 : f32
    %20 = vector.broadcast %cst_13 : f32 to vector<16x128xf32>
    %21 = arith.maximumf %19, %20 : vector<16x128xf32>
    %cst_14 = arith.constant 0.000000e+00 : f32
    %22 = vector.broadcast %cst_14 : f32 to vector<25x128xf32>
    %c0_15 = arith.constant 0 : index
    %c0_16 = arith.constant 0 : index
    %23 = vector.load %arg18[%c0_15, %c0_16] : memref<25x128xf32, #tpu.memory_space<vmem>>, vector<25x128xf32>
    tpu.vector_store %arg18[%c0_15, %c0_16], %22 {strides = array<i32>} : memref<25x128xf32, #tpu.memory_space<vmem>>, vector<25x128xf32>,
    %c8 = arith.constant 8 : index
    %c0_17 = arith.constant 0 : index
    %24 = vector.load %arg18[%c8, %c0_17] : memref<25x128xf32, #tpu.memory_space<vmem>>, vector<16x128xf32>
    tpu.vector_store %arg18[%c8, %c0_17], %21 {strides = array<i32>} : memref<25x128xf32, #tpu.memory_space<vmem>>, vector<16x128xf32>,
    %cst_18 = arith.constant 0.000000e+00 : f32
    %25 = vector.broadcast %cst_18 : f32 to vector<8x128xf32>
    %c6 = arith.constant 6 : index
    %c0_19 = arith.constant 0 : index
    %26 = tpu.strided_load %arg18[%c6, %c0_19] {strides = array<i32: 2, 1>} : memref<25x128xf32, #tpu.memory_space<vmem>>, vector<8x128xf32>
    %27 = arith.truncf %26 : vector<8x128xf32> to vector<8x128xbf16>
    %c0_20 = arith.constant 0 : index
    %c0_21 = arith.constant 0 : index
    %c0_22 = arith.constant 0 : index
    %28 = vector.load %arg7[%c0_20, %c0_21, %c0_22] : memref<5x128x128xbf16, #tpu.memory_space<vmem>>, vector<1x128x128xbf16>
    %29 = vector.shape_cast %28 : vector<1x128x128xbf16> to vector<128x128xbf16>
    %cst_23 = arith.constant dense<0.000000e+00> : vector<8x128xf32>
    %30 = tpu.matmul %27, %29, %cst_23 {dimension_numbers = #tpu.dot_dimension_numbers<[1], [0], [0], [1], [0, 0, 1, 1], [], []>} : vector<8x128xbf16>, vector<128x128xbf16>, vector<8x128xf32> -> vector<8x128xf32>
    %31 = arith.addf %25, %30 : vector<8x128xf32>
    %c7 = arith.constant 7 : index
    %c0_24 = arith.constant 0 : index
    %32 = tpu.strided_load %arg18[%c7, %c0_24] {strides = array<i32: 2, 1>} : memref<25x128xf32, #tpu.memory_space<vmem>>, vector<8x128xf32>
    %33 = arith.truncf %32 : vector<8x128xf32> to vector<8x128xbf16>
    %c1 = arith.constant 1 : index
    %c0_25 = arith.constant 0 : index
    %c0_26 = arith.constant 0 : index
    %34 = vector.load %arg7[%c1, %c0_25, %c0_26] : memref<5x128x128xbf16, #tpu.memory_space<vmem>>, vector<1x128x128xbf16>
    %35 = vector.shape_cast %34 : vector<1x128x128xbf16> to vector<128x128xbf16>
    %cst_27 = arith.constant dense<0.000000e+00> : vector<8x128xf32>
    %36 = tpu.matmul %33, %35, %cst_27 {dimension_numbers = #tpu.dot_dimension_numbers<[1], [0], [0], [1], [0, 0, 1, 1], [], []>} : vector<8x128xbf16>, vector<128x128xbf16>, vector<8x128xf32> -> vector<8x128xf32>
    %37 = arith.addf %31, %36 : vector<8x128xf32>
    %c8_28 = arith.constant 8 : index
    %c0_29 = arith.constant 0 : index
    %38 = tpu.strided_load %arg18[%c8_28, %c0_29] {strides = array<i32: 2, 1>} : memref<25x128xf32, #tpu.memory_space<vmem>>, vector<8x128xf32>
    %39 = arith.truncf %38 : vector<8x128xf32> to vector<8x128xbf16>
    %c2 = arith.constant 2 : index
    %c0_30 = arith.constant 0 : index
    %c0_31 = arith.constant 0 : index
    %40 = vector.load %arg7[%c2, %c0_30, %c0_31] : memref<5x128x128xbf16, #tpu.memory_space<vmem>>, vector<1x128x128xbf16>
    %41 = vector.shape_cast %40 : vector<1x128x128xbf16> to vector<128x128xbf16>
    %cst_32 = arith.constant dense<0.000000e+00> : vector<8x128xf32>
    %42 = tpu.matmul %39, %41, %cst_32 {dimension_numbers = #tpu.dot_dimension_numbers<[1], [0], [0], [1], [0, 0, 1, 1], [], []>} : vector<8x128xbf16>, vector<128x128xbf16>, vector<8x128xf32> -> vector<8x128xf32>
    %43 = arith.addf %37, %42 : vector<8x128xf32>
    %c9 = arith.constant 9 : index
    %c0_33 = arith.constant 0 : index
    %44 = tpu.strided_load %arg18[%c9, %c0_33] {strides = array<i32: 2, 1>} : memref<25x128xf32, #tpu.memory_space<vmem>>, vector<8x128xf32>
    %45 = arith.truncf %44 : vector<8x128xf32> to vector<8x128xbf16>
    %c3 = arith.constant 3 : index
    %c0_34 = arith.constant 0 : index
    %c0_35 = arith.constant 0 : index
    %46 = vector.load %arg7[%c3, %c0_34, %c0_35] : memref<5x128x128xbf16, #tpu.memory_space<vmem>>, vector<1x128x128xbf16>
    %47 = vector.shape_cast %46 : vector<1x128x128xbf16> to vector<128x128xbf16>
    %cst_36 = arith.constant dense<0.000000e+00> : vector<8x128xf32>
    %48 = tpu.matmul %45, %47, %cst_36 {dimension_numbers = #tpu.dot_dimension_numbers<[1], [0], [0], [1], [0, 0, 1, 1], [], []>} : vector<8x128xbf16>, vector<128x128xbf16>, vector<8x128xf32> -> vector<8x128xf32>
    %49 = arith.addf %43, %48 : vector<8x128xf32>
    %c10 = arith.constant 10 : index
    %c0_37 = arith.constant 0 : index
    %50 = tpu.strided_load %arg18[%c10, %c0_37] {strides = array<i32: 2, 1>} : memref<25x128xf32, #tpu.memory_space<vmem>>, vector<8x128xf32>
    %51 = arith.truncf %50 : vector<8x128xf32> to vector<8x128xbf16>
    %c4 = arith.constant 4 : index
    %c0_38 = arith.constant 0 : index
    %c0_39 = arith.constant 0 : index
    %52 = vector.load %arg7[%c4, %c0_38, %c0_39] : memref<5x128x128xbf16, #tpu.memory_space<vmem>>, vector<1x128x128xbf16>
    %53 = vector.shape_cast %52 : vector<1x128x128xbf16> to vector<128x128xbf16>
    %cst_40 = arith.constant dense<0.000000e+00> : vector<8x128xf32>
    %54 = tpu.matmul %51, %53, %cst_40 {dimension_numbers = #tpu.dot_dimension_numbers<[1], [0], [0], [1], [0, 0, 1, 1], [], []>} : vector<8x128xbf16>, vector<128x128xbf16>, vector<8x128xf32> -> vector<8x128xf32>
    %55 = arith.addf %49, %54 : vector<8x128xf32>
    %c0_41 = arith.constant 0 : index
    %c0_42 = arith.constant 0 : index
    %56 = vector.load %arg8[%c0_41, %c0_42] : memref<1x128xf32, #tpu.memory_space<vmem>>, vector<1x128xf32>
    %57 = vector.broadcast %56 : vector<1x128xf32> to vector<16x128xf32>
    %58 = arith.mulf %2, %57 : vector<16x128xf32>
    %c0_43 = arith.constant 0 : index
    %c0_44 = arith.constant 0 : index
    %59 = vector.load %arg9[%c0_43, %c0_44] : memref<1x128xf32, #tpu.memory_space<vmem>>, vector<1x128xf32>
    %60 = vector.broadcast %59 : vector<1x128xf32> to vector<16x128xf32>
    %61 = arith.addf %58, %60 : vector<16x128xf32>
    %cst_45 = arith.constant 0.000000e+00 : f32
    %62 = vector.broadcast %cst_45 : f32 to vector<16x128xf32>
    %63 = arith.maximumf %61, %62 : vector<16x128xf32>
    %64 = arith.truncf %63 : vector<16x128xf32> to vector<16x128xbf16>
    %c0_46 = arith.constant 0 : index
    %c0_47 = arith.constant 0 : index
    %65 = vector.load %arg10[%c0_46, %c0_47] : memref<128x128xbf16, #tpu.memory_space<vmem>>, vector<128x128xbf16>
    %cst_48 = arith.constant dense<0.000000e+00> : vector<16x128xf32>
    %66 = tpu.matmul %64, %65, %cst_48 {dimension_numbers = #tpu.dot_dimension_numbers<[1], [0], [0], [1], [0, 0, 1, 1], [], []>} : vector<16x128xbf16>, vector<128x128xbf16>, vector<16x128xf32> -> vector<16x128xf32>
    %c0_49 = arith.constant 0 : index
    %c0_50 = arith.constant 0 : index
    %67 = vector.load %arg11[%c0_49, %c0_50] : memref<1x128xf32, #tpu.memory_space<vmem>>, vector<1x128xf32>
    %68 = vector.broadcast %67 : vector<1x128xf32> to vector<16x128xf32>
    %69 = arith.mulf %66, %68 : vector<16x128xf32>
    %c0_51 = arith.constant 0 : index
    %c0_52 = arith.constant 0 : index
    %70 = vector.load %arg12[%c0_51, %c0_52] : memref<1x128xf32, #tpu.memory_space<vmem>>, vector<1x128xf32>
    %71 = vector.broadcast %70 : vector<1x128xf32> to vector<16x128xf32>
    %72 = arith.addf %69, %71 : vector<16x128xf32>
    %cst_53 = arith.constant 0.000000e+00 : f32
    %73 = vector.broadcast %cst_53 : f32 to vector<16x128xf32>
    %74 = arith.maximumf %72, %73 : vector<16x128xf32>
    %cst_54 = arith.constant 0.000000e+00 : f32
    %75 = vector.broadcast %cst_54 : f32 to vector<27x128xf32>
    %c0_55 = arith.constant 0 : index
    %c0_56 = arith.constant 0 : index
    %76 = vector.load %arg19[%c0_55, %c0_56] : memref<27x128xf32, #tpu.memory_space<vmem>>, vector<27x128xf32>
    tpu.vector_store %arg19[%c0_55, %c0_56], %75 {strides = array<i32>} : memref<27x128xf32, #tpu.memory_space<vmem>>, vector<27x128xf32>,
    %c8_57 = arith.constant 8 : index
    %c0_58 = arith.constant 0 : index
    %77 = vector.load %arg19[%c8_57, %c0_58] : memref<27x128xf32, #tpu.memory_space<vmem>>, vector<16x128xf32>
    tpu.vector_store %arg19[%c8_57, %c0_58], %74 {strides = array<i32>} : memref<27x128xf32, #tpu.memory_space<vmem>>, vector<16x128xf32>,
    %cst_59 = arith.constant 0.000000e+00 : f32
    %78 = vector.broadcast %cst_59 : f32 to vector<8x128xf32>
    %c4_60 = arith.constant 4 : index
    %c0_61 = arith.constant 0 : index
    %79 = tpu.strided_load %arg19[%c4_60, %c0_61] {strides = array<i32: 2, 1>} : memref<27x128xf32, #tpu.memory_space<vmem>>, vector<8x128xf32>
    %80 = arith.truncf %79 : vector<8x128xf32> to vector<8x128xbf16>
    %c0_62 = arith.constant 0 : index
    %c0_63 = arith.constant 0 : index
    %c0_64 = arith.constant 0 : index
    %81 = vector.load %arg13[%c0_62, %c0_63, %c0_64] : memref<5x128x128xbf16, #tpu.memory_space<vmem>>, vector<1x128x128xbf16>
    %82 = vector.shape_cast %81 : vector<1x128x128xbf16> to vector<128x128xbf16>
    %cst_65 = arith.constant dense<0.000000e+00> : vector<8x128xf32>
    %83 = tpu.matmul %80, %82, %cst_65 {dimension_numbers = #tpu.dot_dimension_numbers<[1], [0], [0], [1], [0, 0, 1, 1], [], []>} : vector<8x128xbf16>, vector<128x128xbf16>, vector<8x128xf32> -> vector<8x128xf32>
    %84 = arith.addf %78, %83 : vector<8x128xf32>
    %c6_66 = arith.constant 6 : index
    %c0_67 = arith.constant 0 : index
    %85 = tpu.strided_load %arg19[%c6_66, %c0_67] {strides = array<i32: 2, 1>} : memref<27x128xf32, #tpu.memory_space<vmem>>, vector<8x128xf32>
    %86 = arith.truncf %85 : vector<8x128xf32> to vector<8x128xbf16>
    %c1_68 = arith.constant 1 : index
    %c0_69 = arith.constant 0 : index
    %c0_70 = arith.constant 0 : index
    %87 = vector.load %arg13[%c1_68, %c0_69, %c0_70] : memref<5x128x128xbf16, #tpu.memory_space<vmem>>, vector<1x128x128xbf16>
    %88 = vector.shape_cast %87 : vector<1x128x128xbf16> to vector<128x128xbf16>
    %cst_71 = arith.constant dense<0.000000e+00> : vector<8x128xf32>
    %89 = tpu.matmul %86, %88, %cst_71 {dimension_numbers = #tpu.dot_dimension_numbers<[1], [0], [0], [1], [0, 0, 1, 1], [], []>} : vector<8x128xbf16>, vector<128x128xbf16>, vector<8x128xf32> -> vector<8x128xf32>
    %90 = arith.addf %84, %89 : vector<8x128xf32>
    %c8_72 = arith.constant 8 : index
    %c0_73 = arith.constant 0 : index
    %91 = tpu.strided_load %arg19[%c8_72, %c0_73] {strides = array<i32: 2, 1>} : memref<27x128xf32, #tpu.memory_space<vmem>>, vector<8x128xf32>
    %92 = arith.truncf %91 : vector<8x128xf32> to vector<8x128xbf16>
    %c2_74 = arith.constant 2 : index
    %c0_75 = arith.constant 0 : index
    %c0_76 = arith.constant 0 : index
    %93 = vector.load %arg13[%c2_74, %c0_75, %c0_76] : memref<5x128x128xbf16, #tpu.memory_space<vmem>>, vector<1x128x128xbf16>
    %94 = vector.shape_cast %93 : vector<1x128x128xbf16> to vector<128x128xbf16>
    %cst_77 = arith.constant dense<0.000000e+00> : vector<8x128xf32>
    %95 = tpu.matmul %92, %94, %cst_77 {dimension_numbers = #tpu.dot_dimension_numbers<[1], [0], [0], [1], [0, 0, 1, 1], [], []>} : vector<8x128xbf16>, vector<128x128xbf16>, vector<8x128xf32> -> vector<8x128xf32>
    %96 = arith.addf %90, %95 : vector<8x128xf32>
    %c10_78 = arith.constant 10 : index
    %c0_79 = arith.constant 0 : index
    %97 = tpu.strided_load %arg19[%c10_78, %c0_79] {strides = array<i32: 2, 1>} : memref<27x128xf32, #tpu.memory_space<vmem>>, vector<8x128xf32>
    %98 = arith.truncf %97 : vector<8x128xf32> to vector<8x128xbf16>
    %c3_80 = arith.constant 3 : index
    %c0_81 = arith.constant 0 : index
    %c0_82 = arith.constant 0 : index
    %99 = vector.load %arg13[%c3_80, %c0_81, %c0_82] : memref<5x128x128xbf16, #tpu.memory_space<vmem>>, vector<1x128x128xbf16>
    %100 = vector.shape_cast %99 : vector<1x128x128xbf16> to vector<128x128xbf16>
    %cst_83 = arith.constant dense<0.000000e+00> : vector<8x128xf32>
    %101 = tpu.matmul %98, %100, %cst_83 {dimension_numbers = #tpu.dot_dimension_numbers<[1], [0], [0], [1], [0, 0, 1, 1], [], []>} : vector<8x128xbf16>, vector<128x128xbf16>, vector<8x128xf32> -> vector<8x128xf32>
    %102 = arith.addf %96, %101 : vector<8x128xf32>
    %c12 = arith.constant 12 : index
    %c0_84 = arith.constant 0 : index
    %103 = tpu.strided_load %arg19[%c12, %c0_84] {strides = array<i32: 2, 1>} : memref<27x128xf32, #tpu.memory_space<vmem>>, vector<8x128xf32>
    %104 = arith.truncf %103 : vector<8x128xf32> to vector<8x128xbf16>
    %c4_85 = arith.constant 4 : index
    %c0_86 = arith.constant 0 : index
    %c0_87 = arith.constant 0 : index
    %105 = vector.load %arg13[%c4_85, %c0_86, %c0_87] : memref<5x128x128xbf16, #tpu.memory_space<vmem>>, vector<1x128x128xbf16>
    %106 = vector.shape_cast %105 : vector<1x128x128xbf16> to vector<128x128xbf16>
    %cst_88 = arith.constant dense<0.000000e+00> : vector<8x128xf32>
    %107 = tpu.matmul %104, %106, %cst_88 {dimension_numbers = #tpu.dot_dimension_numbers<[1], [0], [0], [1], [0, 0, 1, 1], [], []>} : vector<8x128xbf16>, vector<128x128xbf16>, vector<8x128xf32> -> vector<8x128xf32>
    %108 = arith.addf %102, %107 : vector<8x128xf32>
    %109 = arith.addf %55, %108 : vector<8x128xf32>
    %c0_89 = arith.constant 0 : index
    %c0_90 = arith.constant 0 : index
    %110 = vector.load %arg20[%c0_89, %c0_90] : memref<16x128xf32, #tpu.memory_space<vmem>>, vector<16x128xf32>
    tpu.vector_store %arg20[%c0_89, %c0_90], %2 {strides = array<i32>} : memref<16x128xf32, #tpu.memory_space<vmem>>, vector<16x128xf32>,
    %c0_91 = arith.constant 0 : index
    %c0_92 = arith.constant 0 : index
    %111 = tpu.strided_load %arg20[%c0_91, %c0_92] {strides = array<i32: 2, 1>} : memref<16x128xf32, #tpu.memory_space<vmem>>, vector<8x128xf32>
    %112 = arith.truncf %111 : vector<8x128xf32> to vector<8x128xbf16>
    %c0_93 = arith.constant 0 : index
    %c0_94 = arith.constant 0 : index
    %113 = vector.load %arg14[%c0_93, %c0_94] : memref<128x128xbf16, #tpu.memory_space<vmem>>, vector<128x128xbf16>
    %cst_95 = arith.constant dense<0.000000e+00> : vector<8x128xf32>
    %114 = tpu.matmul %112, %113, %cst_95 {dimension_numbers = #tpu.dot_dimension_numbers<[1], [0], [0], [1], [0, 0, 1, 1], [], []>} : vector<8x128xbf16>, vector<128x128xbf16>, vector<8x128xf32> -> vector<8x128xf32>
    %115 = arith.addf %109, %114 : vector<8x128xf32>
    %c0_96 = arith.constant 0 : index
    %c0_97 = arith.constant 0 : index
    %116 = vector.load %arg15[%c0_96, %c0_97] : memref<1x128xf32, #tpu.memory_space<vmem>>, vector<1x128xf32>
    %117 = vector.broadcast %116 : vector<1x128xf32> to vector<8x128xf32>
    %118 = arith.mulf %115, %117 : vector<8x128xf32>
    %c0_98 = arith.constant 0 : index
    %c0_99 = arith.constant 0 : index
    %119 = vector.load %arg16[%c0_98, %c0_99] : memref<1x128xf32, #tpu.memory_space<vmem>>, vector<1x128xf32>
    %120 = vector.broadcast %119 : vector<1x128xf32> to vector<8x128xf32>
    %121 = arith.addf %118, %120 : vector<8x128xf32>
    %cst_100 = arith.constant 0.000000e+00 : f32
    %122 = vector.broadcast %cst_100 : f32 to vector<8x128xf32>
    %123 = arith.maximumf %121, %122 : vector<8x128xf32>
    %124 = arith.truncf %123 : vector<8x128xf32> to vector<8x128xbf16>
    %c0_101 = arith.constant 0 : index
    %c0_102 = arith.constant 0 : index
    %c0_103 = arith.constant 0 : index
    %125 = vector.load %arg17[%c0_101, %c0_102, %c0_103] : memref<1x8x128xbf16, #tpu.memory_space<vmem>>, vector<1x8x128xbf16>
    %126 = vector.shape_cast %125 : vector<1x8x128xbf16> to vector<8x128xbf16>
    %127 = vector.shape_cast %124 : vector<8x128xbf16> to vector<1x8x128xbf16>
    tpu.vector_store %arg17[%c0_101, %c0_102, %c0_103], %127 {strides = array<i32>} : memref<1x8x128xbf16, #tpu.memory_space<vmem>>, vector<1x8x128xbf16>,
    return
  }
  func.func @transform_0(%arg0: i32) -> (i32, i32, i32) {
    %c0_i32 = arith.constant 0 : i32
    %c0_i32_0 = arith.constant 0 : i32
    %c0_i32_1 = arith.constant 0 : i32
    return %arg0, %c0_i32, %c0_i32_0 : i32, i32, i32
  }
  func.func @transform_1(%arg0: i32) -> (i32, i32) {
    %c0_i32 = arith.constant 0 : i32
    %c0_i32_0 = arith.constant 0 : i32
    %c0_i32_1 = arith.constant 0 : i32
    return %c0_i32, %c0_i32_0 : i32, i32
  }
  func.func @transform_2(%arg0: i32) -> (i32, i32) {
    %c0_i32 = arith.constant 0 : i32
    %c0_i32_0 = arith.constant 0 : i32
    %c0_i32_1 = arith.constant 0 : i32
    return %c0_i32, %c0_i32_0 : i32, i32
  }
  func.func @transform_3(%arg0: i32) -> (i32, i32) {
    %c0_i32 = arith.constant 0 : i32
    %c0_i32_0 = arith.constant 0 : i32
    %c0_i32_1 = arith.constant 0 : i32
    return %c0_i32, %c0_i32_0 : i32, i32
  }
  func.func @transform_4(%arg0: i32) -> (i32, i32) {
    %c0_i32 = arith.constant 0 : i32
    %c0_i32_0 = arith.constant 0 : i32
    %c0_i32_1 = arith.constant 0 : i32
    return %c0_i32, %c0_i32_0 : i32, i32
  }
  func.func @transform_5(%arg0: i32) -> (i32, i32) {
    %c0_i32 = arith.constant 0 : i32
    %c0_i32_0 = arith.constant 0 : i32
    %c0_i32_1 = arith.constant 0 : i32
    return %c0_i32, %c0_i32_0 : i32, i32
  }
  func.func @transform_6(%arg0: i32) -> (i32, i32, i32) {
    %c0_i32 = arith.constant 0 : i32
    %c0_i32_0 = arith.constant 0 : i32
    %c0_i32_1 = arith.constant 0 : i32
    %c0_i32_2 = arith.constant 0 : i32
    return %c0_i32, %c0_i32_0, %c0_i32_1 : i32, i32, i32
  }
  func.func @transform_7(%arg0: i32) -> (i32, i32) {
    %c0_i32 = arith.constant 0 : i32
    %c0_i32_0 = arith.constant 0 : i32
    %c0_i32_1 = arith.constant 0 : i32
    return %c0_i32, %c0_i32_0 : i32, i32
  }
  func.func @transform_8(%arg0: i32) -> (i32, i32) {
    %c0_i32 = arith.constant 0 : i32
    %c0_i32_0 = arith.constant 0 : i32
    %c0_i32_1 = arith.constant 0 : i32
    return %c0_i32, %c0_i32_0 : i32, i32
  }
  func.func @transform_9(%arg0: i32) -> (i32, i32) {
    %c0_i32 = arith.constant 0 : i32
    %c0_i32_0 = arith.constant 0 : i32
    %c0_i32_1 = arith.constant 0 : i32
    return %c0_i32, %c0_i32_0 : i32, i32
  }
  func.func @transform_10(%arg0: i32) -> (i32, i32) {
    %c0_i32 = arith.constant 0 : i32
    %c0_i32_0 = arith.constant 0 : i32
    %c0_i32_1 = arith.constant 0 : i32
    return %c0_i32, %c0_i32_0 : i32, i32
  }
  func.func @transform_11(%arg0: i32) -> (i32, i32) {
    %c0_i32 = arith.constant 0 : i32
    %c0_i32_0 = arith.constant 0 : i32
    %c0_i32_1 = arith.constant 0 : i32
    return %c0_i32, %c0_i32_0 : i32, i32
  }
  func.func @transform_12(%arg0: i32) -> (i32, i32, i32) {
    %c0_i32 = arith.constant 0 : i32
    %c0_i32_0 = arith.constant 0 : i32
    %c0_i32_1 = arith.constant 0 : i32
    %c0_i32_2 = arith.constant 0 : i32
    return %c0_i32, %c0_i32_0, %c0_i32_1 : i32, i32, i32
  }
  func.func @transform_13(%arg0: i32) -> (i32, i32) {
    %c0_i32 = arith.constant 0 : i32
    %c0_i32_0 = arith.constant 0 : i32
    %c0_i32_1 = arith.constant 0 : i32
    return %c0_i32, %c0_i32_0 : i32, i32
  }
  func.func @transform_14(%arg0: i32) -> (i32, i32) {
    %c0_i32 = arith.constant 0 : i32
    %c0_i32_0 = arith.constant 0 : i32
    %c0_i32_1 = arith.constant 0 : i32
    return %c0_i32, %c0_i32_0 : i32, i32
  }
  func.func @transform_15(%arg0: i32) -> (i32, i32) {
    %c0_i32 = arith.constant 0 : i32
    %c0_i32_0 = arith.constant 0 : i32
    %c0_i32_1 = arith.constant 0 : i32
    return %c0_i32, %c0_i32_0 : i32, i32
  }
  func.func @transform_16(%arg0: i32) -> (i32, i32, i32) {
    %c0_i32 = arith.constant 0 : i32
    %c0_i32_0 = arith.constant 0 : i32
    %c0_i32_1 = arith.constant 0 : i32
    return %arg0, %c0_i32, %c0_i32_0 : i32, i32, i32
  }
}

module attributes {stable_mosaic.version = 11 : i64} {
  func.func @_block_kernel(%arg0: i32, %arg1: memref<1x32x128xbf16, #tpu.memory_space<vmem>>, %arg2: memref<1x128xf32, #tpu.memory_space<vmem>>, %arg3: memref<1x128xf32, #tpu.memory_space<vmem>>, %arg4: memref<128x128xbf16, #tpu.memory_space<vmem>>, %arg5: memref<1x128xf32, #tpu.memory_space<vmem>>, %arg6: memref<1x128xf32, #tpu.memory_space<vmem>>, %arg7: memref<5x128x128xbf16, #tpu.memory_space<vmem>>, %arg8: memref<1x128xf32, #tpu.memory_space<vmem>>, %arg9: memref<1x128xf32, #tpu.memory_space<vmem>>, %arg10: memref<128x128xbf16, #tpu.memory_space<vmem>>, %arg11: memref<1x128xf32, #tpu.memory_space<vmem>>, %arg12: memref<1x128xf32, #tpu.memory_space<vmem>>, %arg13: memref<5x128x128xbf16, #tpu.memory_space<vmem>>, %arg14: memref<128x128xbf16, #tpu.memory_space<vmem>>, %arg15: memref<1x16x128xbf16, #tpu.memory_space<vmem>>, %arg16: memref<41x128xf32, #tpu.memory_space<vmem>>, %arg17: memref<43x128xf32, #tpu.memory_space<vmem>>, %arg18: memref<32x128xf32, #tpu.memory_space<vmem>>) attributes {dimension_semantics = [#tpu.dimension_semantics<parallel>], iteration_bounds = array<i64: 2>, scalar_prefetch = 0 : i64, scratch_operands = 3 : i64, tpu.core_type = #tpu.core_type<tc>, window_params = [{transform_indices = @transform_0, window_bounds = array<i64: 1, 32, 128>}, {pipeline_mode = #tpu.pipeline_mode<synchronous>, transform_indices = @transform_1, window_bounds = array<i64: 1, 128>}, {pipeline_mode = #tpu.pipeline_mode<synchronous>, transform_indices = @transform_2, window_bounds = array<i64: 1, 128>}, {pipeline_mode = #tpu.pipeline_mode<synchronous>, transform_indices = @transform_3, window_bounds = array<i64: 128, 128>}, {pipeline_mode = #tpu.pipeline_mode<synchronous>, transform_indices = @transform_4, window_bounds = array<i64: 1, 128>}, {pipeline_mode = #tpu.pipeline_mode<synchronous>, transform_indices = @transform_5, window_bounds = array<i64: 1, 128>}, {pipeline_mode = #tpu.pipeline_mode<synchronous>, transform_indices = @transform_6, window_bounds = array<i64: 5, 128, 128>}, {pipeline_mode = #tpu.pipeline_mode<synchronous>, transform_indices = @transform_7, window_bounds = array<i64: 1, 128>}, {pipeline_mode = #tpu.pipeline_mode<synchronous>, transform_indices = @transform_8, window_bounds = array<i64: 1, 128>}, {pipeline_mode = #tpu.pipeline_mode<synchronous>, transform_indices = @transform_9, window_bounds = array<i64: 128, 128>}, {pipeline_mode = #tpu.pipeline_mode<synchronous>, transform_indices = @transform_10, window_bounds = array<i64: 1, 128>}, {pipeline_mode = #tpu.pipeline_mode<synchronous>, transform_indices = @transform_11, window_bounds = array<i64: 1, 128>}, {pipeline_mode = #tpu.pipeline_mode<synchronous>, transform_indices = @transform_12, window_bounds = array<i64: 5, 128, 128>}, {pipeline_mode = #tpu.pipeline_mode<synchronous>, transform_indices = @transform_13, window_bounds = array<i64: 128, 128>}, {transform_indices = @transform_14, window_bounds = array<i64: 1, 16, 128>}]} {
    %c0 = arith.constant 0 : index
    %c0_0 = arith.constant 0 : index
    %c0_1 = arith.constant 0 : index
    %0 = vector.load %arg1[%c0, %c0_0, %c0_1] : memref<1x32x128xbf16, #tpu.memory_space<vmem>>, vector<1x32x128xbf16>
    %1 = vector.shape_cast %0 : vector<1x32x128xbf16> to vector<32x128xbf16>
    %2 = arith.extf %1 : vector<32x128xbf16> to vector<32x128xf32>
    %c0_2 = arith.constant 0 : index
    %c0_3 = arith.constant 0 : index
    %3 = vector.load %arg2[%c0_2, %c0_3] : memref<1x128xf32, #tpu.memory_space<vmem>>, vector<1x128xf32>
    %4 = vector.broadcast %3 : vector<1x128xf32> to vector<32x128xf32>
    %5 = arith.mulf %2, %4 : vector<32x128xf32>
    %c0_4 = arith.constant 0 : index
    %c0_5 = arith.constant 0 : index
    %6 = vector.load %arg3[%c0_4, %c0_5] : memref<1x128xf32, #tpu.memory_space<vmem>>, vector<1x128xf32>
    %7 = vector.broadcast %6 : vector<1x128xf32> to vector<32x128xf32>
    %8 = arith.addf %5, %7 : vector<32x128xf32>
    %cst = arith.constant 0.000000e+00 : f32
    %9 = vector.broadcast %cst : f32 to vector<32x128xf32>
    %10 = arith.maximumf %8, %9 : vector<32x128xf32>
    %11 = arith.truncf %10 : vector<32x128xf32> to vector<32x128xbf16>
    %c0_6 = arith.constant 0 : index
    %c0_7 = arith.constant 0 : index
    %12 = vector.load %arg4[%c0_6, %c0_7] : memref<128x128xbf16, #tpu.memory_space<vmem>>, vector<128x128xbf16>
    %cst_8 = arith.constant dense<0.000000e+00> : vector<32x128xf32>
    %13 = tpu.matmul %11, %12, %cst_8 {dimension_numbers = #tpu.dot_dimension_numbers<[1], [0], [0], [1], [0, 0, 1, 1], [], []>} : vector<32x128xbf16>, vector<128x128xbf16>, vector<32x128xf32> -> vector<32x128xf32>
    %c0_9 = arith.constant 0 : index
    %c0_10 = arith.constant 0 : index
    %14 = vector.load %arg5[%c0_9, %c0_10] : memref<1x128xf32, #tpu.memory_space<vmem>>, vector<1x128xf32>
    %15 = vector.broadcast %14 : vector<1x128xf32> to vector<32x128xf32>
    %16 = arith.mulf %13, %15 : vector<32x128xf32>
    %c0_11 = arith.constant 0 : index
    %c0_12 = arith.constant 0 : index
    %17 = vector.load %arg6[%c0_11, %c0_12] : memref<1x128xf32, #tpu.memory_space<vmem>>, vector<1x128xf32>
    %18 = vector.broadcast %17 : vector<1x128xf32> to vector<32x128xf32>
    %19 = arith.addf %16, %18 : vector<32x128xf32>
    %cst_13 = arith.constant 0.000000e+00 : f32
    %20 = vector.broadcast %cst_13 : f32 to vector<32x128xf32>
    %21 = arith.maximumf %19, %20 : vector<32x128xf32>
    %cst_14 = arith.constant 0.000000e+00 : f32
    %22 = vector.broadcast %cst_14 : f32 to vector<41x128xf32>
    %c0_15 = arith.constant 0 : index
    %c0_16 = arith.constant 0 : index
    %23 = vector.load %arg16[%c0_15, %c0_16] : memref<41x128xf32, #tpu.memory_space<vmem>>, vector<41x128xf32>
    tpu.vector_store %arg16[%c0_15, %c0_16], %22 {strides = array<i32>} : memref<41x128xf32, #tpu.memory_space<vmem>>, vector<41x128xf32>,
    %c8 = arith.constant 8 : index
    %c0_17 = arith.constant 0 : index
    %24 = vector.load %arg16[%c8, %c0_17] : memref<41x128xf32, #tpu.memory_space<vmem>>, vector<32x128xf32>
    tpu.vector_store %arg16[%c8, %c0_17], %21 {strides = array<i32>} : memref<41x128xf32, #tpu.memory_space<vmem>>, vector<32x128xf32>,
    %cst_18 = arith.constant 0.000000e+00 : f32
    %25 = vector.broadcast %cst_18 : f32 to vector<16x128xf32>
    %c6 = arith.constant 6 : index
    %c0_19 = arith.constant 0 : index
    %26 = tpu.strided_load %arg16[%c6, %c0_19] {strides = array<i32: 2, 1>} : memref<41x128xf32, #tpu.memory_space<vmem>>, vector<16x128xf32>
    %27 = arith.truncf %26 : vector<16x128xf32> to vector<16x128xbf16>
    %c0_20 = arith.constant 0 : index
    %c0_21 = arith.constant 0 : index
    %c0_22 = arith.constant 0 : index
    %28 = vector.load %arg7[%c0_20, %c0_21, %c0_22] : memref<5x128x128xbf16, #tpu.memory_space<vmem>>, vector<1x128x128xbf16>
    %29 = vector.shape_cast %28 : vector<1x128x128xbf16> to vector<128x128xbf16>
    %cst_23 = arith.constant dense<0.000000e+00> : vector<16x128xf32>
    %30 = tpu.matmul %27, %29, %cst_23 {dimension_numbers = #tpu.dot_dimension_numbers<[1], [0], [0], [1], [0, 0, 1, 1], [], []>} : vector<16x128xbf16>, vector<128x128xbf16>, vector<16x128xf32> -> vector<16x128xf32>
    %31 = arith.addf %25, %30 : vector<16x128xf32>
    %c7 = arith.constant 7 : index
    %c0_24 = arith.constant 0 : index
    %32 = tpu.strided_load %arg16[%c7, %c0_24] {strides = array<i32: 2, 1>} : memref<41x128xf32, #tpu.memory_space<vmem>>, vector<16x128xf32>
    %33 = arith.truncf %32 : vector<16x128xf32> to vector<16x128xbf16>
    %c1 = arith.constant 1 : index
    %c0_25 = arith.constant 0 : index
    %c0_26 = arith.constant 0 : index
    %34 = vector.load %arg7[%c1, %c0_25, %c0_26] : memref<5x128x128xbf16, #tpu.memory_space<vmem>>, vector<1x128x128xbf16>
    %35 = vector.shape_cast %34 : vector<1x128x128xbf16> to vector<128x128xbf16>
    %cst_27 = arith.constant dense<0.000000e+00> : vector<16x128xf32>
    %36 = tpu.matmul %33, %35, %cst_27 {dimension_numbers = #tpu.dot_dimension_numbers<[1], [0], [0], [1], [0, 0, 1, 1], [], []>} : vector<16x128xbf16>, vector<128x128xbf16>, vector<16x128xf32> -> vector<16x128xf32>
    %37 = arith.addf %31, %36 : vector<16x128xf32>
    %c8_28 = arith.constant 8 : index
    %c0_29 = arith.constant 0 : index
    %38 = tpu.strided_load %arg16[%c8_28, %c0_29] {strides = array<i32: 2, 1>} : memref<41x128xf32, #tpu.memory_space<vmem>>, vector<16x128xf32>
    %39 = arith.truncf %38 : vector<16x128xf32> to vector<16x128xbf16>
    %c2 = arith.constant 2 : index
    %c0_30 = arith.constant 0 : index
    %c0_31 = arith.constant 0 : index
    %40 = vector.load %arg7[%c2, %c0_30, %c0_31] : memref<5x128x128xbf16, #tpu.memory_space<vmem>>, vector<1x128x128xbf16>
    %41 = vector.shape_cast %40 : vector<1x128x128xbf16> to vector<128x128xbf16>
    %cst_32 = arith.constant dense<0.000000e+00> : vector<16x128xf32>
    %42 = tpu.matmul %39, %41, %cst_32 {dimension_numbers = #tpu.dot_dimension_numbers<[1], [0], [0], [1], [0, 0, 1, 1], [], []>} : vector<16x128xbf16>, vector<128x128xbf16>, vector<16x128xf32> -> vector<16x128xf32>
    %43 = arith.addf %37, %42 : vector<16x128xf32>
    %c9 = arith.constant 9 : index
    %c0_33 = arith.constant 0 : index
    %44 = tpu.strided_load %arg16[%c9, %c0_33] {strides = array<i32: 2, 1>} : memref<41x128xf32, #tpu.memory_space<vmem>>, vector<16x128xf32>
    %45 = arith.truncf %44 : vector<16x128xf32> to vector<16x128xbf16>
    %c3 = arith.constant 3 : index
    %c0_34 = arith.constant 0 : index
    %c0_35 = arith.constant 0 : index
    %46 = vector.load %arg7[%c3, %c0_34, %c0_35] : memref<5x128x128xbf16, #tpu.memory_space<vmem>>, vector<1x128x128xbf16>
    %47 = vector.shape_cast %46 : vector<1x128x128xbf16> to vector<128x128xbf16>
    %cst_36 = arith.constant dense<0.000000e+00> : vector<16x128xf32>
    %48 = tpu.matmul %45, %47, %cst_36 {dimension_numbers = #tpu.dot_dimension_numbers<[1], [0], [0], [1], [0, 0, 1, 1], [], []>} : vector<16x128xbf16>, vector<128x128xbf16>, vector<16x128xf32> -> vector<16x128xf32>
    %49 = arith.addf %43, %48 : vector<16x128xf32>
    %c10 = arith.constant 10 : index
    %c0_37 = arith.constant 0 : index
    %50 = tpu.strided_load %arg16[%c10, %c0_37] {strides = array<i32: 2, 1>} : memref<41x128xf32, #tpu.memory_space<vmem>>, vector<16x128xf32>
    %51 = arith.truncf %50 : vector<16x128xf32> to vector<16x128xbf16>
    %c4 = arith.constant 4 : index
    %c0_38 = arith.constant 0 : index
    %c0_39 = arith.constant 0 : index
    %52 = vector.load %arg7[%c4, %c0_38, %c0_39] : memref<5x128x128xbf16, #tpu.memory_space<vmem>>, vector<1x128x128xbf16>
    %53 = vector.shape_cast %52 : vector<1x128x128xbf16> to vector<128x128xbf16>
    %cst_40 = arith.constant dense<0.000000e+00> : vector<16x128xf32>
    %54 = tpu.matmul %51, %53, %cst_40 {dimension_numbers = #tpu.dot_dimension_numbers<[1], [0], [0], [1], [0, 0, 1, 1], [], []>} : vector<16x128xbf16>, vector<128x128xbf16>, vector<16x128xf32> -> vector<16x128xf32>
    %55 = arith.addf %49, %54 : vector<16x128xf32>
    %c0_41 = arith.constant 0 : index
    %c0_42 = arith.constant 0 : index
    %56 = vector.load %arg8[%c0_41, %c0_42] : memref<1x128xf32, #tpu.memory_space<vmem>>, vector<1x128xf32>
    %57 = vector.broadcast %56 : vector<1x128xf32> to vector<32x128xf32>
    %58 = arith.mulf %2, %57 : vector<32x128xf32>
    %c0_43 = arith.constant 0 : index
    %c0_44 = arith.constant 0 : index
    %59 = vector.load %arg9[%c0_43, %c0_44] : memref<1x128xf32, #tpu.memory_space<vmem>>, vector<1x128xf32>
    %60 = vector.broadcast %59 : vector<1x128xf32> to vector<32x128xf32>
    %61 = arith.addf %58, %60 : vector<32x128xf32>
    %cst_45 = arith.constant 0.000000e+00 : f32
    %62 = vector.broadcast %cst_45 : f32 to vector<32x128xf32>
    %63 = arith.maximumf %61, %62 : vector<32x128xf32>
    %64 = arith.truncf %63 : vector<32x128xf32> to vector<32x128xbf16>
    %c0_46 = arith.constant 0 : index
    %c0_47 = arith.constant 0 : index
    %65 = vector.load %arg10[%c0_46, %c0_47] : memref<128x128xbf16, #tpu.memory_space<vmem>>, vector<128x128xbf16>
    %cst_48 = arith.constant dense<0.000000e+00> : vector<32x128xf32>
    %66 = tpu.matmul %64, %65, %cst_48 {dimension_numbers = #tpu.dot_dimension_numbers<[1], [0], [0], [1], [0, 0, 1, 1], [], []>} : vector<32x128xbf16>, vector<128x128xbf16>, vector<32x128xf32> -> vector<32x128xf32>
    %c0_49 = arith.constant 0 : index
    %c0_50 = arith.constant 0 : index
    %67 = vector.load %arg11[%c0_49, %c0_50] : memref<1x128xf32, #tpu.memory_space<vmem>>, vector<1x128xf32>
    %68 = vector.broadcast %67 : vector<1x128xf32> to vector<32x128xf32>
    %69 = arith.mulf %66, %68 : vector<32x128xf32>
    %c0_51 = arith.constant 0 : index
    %c0_52 = arith.constant 0 : index
    %70 = vector.load %arg12[%c0_51, %c0_52] : memref<1x128xf32, #tpu.memory_space<vmem>>, vector<1x128xf32>
    %71 = vector.broadcast %70 : vector<1x128xf32> to vector<32x128xf32>
    %72 = arith.addf %69, %71 : vector<32x128xf32>
    %cst_53 = arith.constant 0.000000e+00 : f32
    %73 = vector.broadcast %cst_53 : f32 to vector<32x128xf32>
    %74 = arith.maximumf %72, %73 : vector<32x128xf32>
    %cst_54 = arith.constant 0.000000e+00 : f32
    %75 = vector.broadcast %cst_54 : f32 to vector<43x128xf32>
    %c0_55 = arith.constant 0 : index
    %c0_56 = arith.constant 0 : index
    %76 = vector.load %arg17[%c0_55, %c0_56] : memref<43x128xf32, #tpu.memory_space<vmem>>, vector<43x128xf32>
    tpu.vector_store %arg17[%c0_55, %c0_56], %75 {strides = array<i32>} : memref<43x128xf32, #tpu.memory_space<vmem>>, vector<43x128xf32>,
    %c8_57 = arith.constant 8 : index
    %c0_58 = arith.constant 0 : index
    %77 = vector.load %arg17[%c8_57, %c0_58] : memref<43x128xf32, #tpu.memory_space<vmem>>, vector<32x128xf32>
    tpu.vector_store %arg17[%c8_57, %c0_58], %74 {strides = array<i32>} : memref<43x128xf32, #tpu.memory_space<vmem>>, vector<32x128xf32>,
    %cst_59 = arith.constant 0.000000e+00 : f32
    %78 = vector.broadcast %cst_59 : f32 to vector<16x128xf32>
    %c4_60 = arith.constant 4 : index
    %c0_61 = arith.constant 0 : index
    %79 = tpu.strided_load %arg17[%c4_60, %c0_61] {strides = array<i32: 2, 1>} : memref<43x128xf32, #tpu.memory_space<vmem>>, vector<16x128xf32>
    %80 = arith.truncf %79 : vector<16x128xf32> to vector<16x128xbf16>
    %c0_62 = arith.constant 0 : index
    %c0_63 = arith.constant 0 : index
    %c0_64 = arith.constant 0 : index
    %81 = vector.load %arg13[%c0_62, %c0_63, %c0_64] : memref<5x128x128xbf16, #tpu.memory_space<vmem>>, vector<1x128x128xbf16>
    %82 = vector.shape_cast %81 : vector<1x128x128xbf16> to vector<128x128xbf16>
    %cst_65 = arith.constant dense<0.000000e+00> : vector<16x128xf32>
    %83 = tpu.matmul %80, %82, %cst_65 {dimension_numbers = #tpu.dot_dimension_numbers<[1], [0], [0], [1], [0, 0, 1, 1], [], []>} : vector<16x128xbf16>, vector<128x128xbf16>, vector<16x128xf32> -> vector<16x128xf32>
    %84 = arith.addf %78, %83 : vector<16x128xf32>
    %c6_66 = arith.constant 6 : index
    %c0_67 = arith.constant 0 : index
    %85 = tpu.strided_load %arg17[%c6_66, %c0_67] {strides = array<i32: 2, 1>} : memref<43x128xf32, #tpu.memory_space<vmem>>, vector<16x128xf32>
    %86 = arith.truncf %85 : vector<16x128xf32> to vector<16x128xbf16>
    %c1_68 = arith.constant 1 : index
    %c0_69 = arith.constant 0 : index
    %c0_70 = arith.constant 0 : index
    %87 = vector.load %arg13[%c1_68, %c0_69, %c0_70] : memref<5x128x128xbf16, #tpu.memory_space<vmem>>, vector<1x128x128xbf16>
    %88 = vector.shape_cast %87 : vector<1x128x128xbf16> to vector<128x128xbf16>
    %cst_71 = arith.constant dense<0.000000e+00> : vector<16x128xf32>
    %89 = tpu.matmul %86, %88, %cst_71 {dimension_numbers = #tpu.dot_dimension_numbers<[1], [0], [0], [1], [0, 0, 1, 1], [], []>} : vector<16x128xbf16>, vector<128x128xbf16>, vector<16x128xf32> -> vector<16x128xf32>
    %90 = arith.addf %84, %89 : vector<16x128xf32>
    %c8_72 = arith.constant 8 : index
    %c0_73 = arith.constant 0 : index
    %91 = tpu.strided_load %arg17[%c8_72, %c0_73] {strides = array<i32: 2, 1>} : memref<43x128xf32, #tpu.memory_space<vmem>>, vector<16x128xf32>
    %92 = arith.truncf %91 : vector<16x128xf32> to vector<16x128xbf16>
    %c2_74 = arith.constant 2 : index
    %c0_75 = arith.constant 0 : index
    %c0_76 = arith.constant 0 : index
    %93 = vector.load %arg13[%c2_74, %c0_75, %c0_76] : memref<5x128x128xbf16, #tpu.memory_space<vmem>>, vector<1x128x128xbf16>
    %94 = vector.shape_cast %93 : vector<1x128x128xbf16> to vector<128x128xbf16>
    %cst_77 = arith.constant dense<0.000000e+00> : vector<16x128xf32>
    %95 = tpu.matmul %92, %94, %cst_77 {dimension_numbers = #tpu.dot_dimension_numbers<[1], [0], [0], [1], [0, 0, 1, 1], [], []>} : vector<16x128xbf16>, vector<128x128xbf16>, vector<16x128xf32> -> vector<16x128xf32>
    %96 = arith.addf %90, %95 : vector<16x128xf32>
    %c10_78 = arith.constant 10 : index
    %c0_79 = arith.constant 0 : index
    %97 = tpu.strided_load %arg17[%c10_78, %c0_79] {strides = array<i32: 2, 1>} : memref<43x128xf32, #tpu.memory_space<vmem>>, vector<16x128xf32>
    %98 = arith.truncf %97 : vector<16x128xf32> to vector<16x128xbf16>
    %c3_80 = arith.constant 3 : index
    %c0_81 = arith.constant 0 : index
    %c0_82 = arith.constant 0 : index
    %99 = vector.load %arg13[%c3_80, %c0_81, %c0_82] : memref<5x128x128xbf16, #tpu.memory_space<vmem>>, vector<1x128x128xbf16>
    %100 = vector.shape_cast %99 : vector<1x128x128xbf16> to vector<128x128xbf16>
    %cst_83 = arith.constant dense<0.000000e+00> : vector<16x128xf32>
    %101 = tpu.matmul %98, %100, %cst_83 {dimension_numbers = #tpu.dot_dimension_numbers<[1], [0], [0], [1], [0, 0, 1, 1], [], []>} : vector<16x128xbf16>, vector<128x128xbf16>, vector<16x128xf32> -> vector<16x128xf32>
    %102 = arith.addf %96, %101 : vector<16x128xf32>
    %c12 = arith.constant 12 : index
    %c0_84 = arith.constant 0 : index
    %103 = tpu.strided_load %arg17[%c12, %c0_84] {strides = array<i32: 2, 1>} : memref<43x128xf32, #tpu.memory_space<vmem>>, vector<16x128xf32>
    %104 = arith.truncf %103 : vector<16x128xf32> to vector<16x128xbf16>
    %c4_85 = arith.constant 4 : index
    %c0_86 = arith.constant 0 : index
    %c0_87 = arith.constant 0 : index
    %105 = vector.load %arg13[%c4_85, %c0_86, %c0_87] : memref<5x128x128xbf16, #tpu.memory_space<vmem>>, vector<1x128x128xbf16>
    %106 = vector.shape_cast %105 : vector<1x128x128xbf16> to vector<128x128xbf16>
    %cst_88 = arith.constant dense<0.000000e+00> : vector<16x128xf32>
    %107 = tpu.matmul %104, %106, %cst_88 {dimension_numbers = #tpu.dot_dimension_numbers<[1], [0], [0], [1], [0, 0, 1, 1], [], []>} : vector<16x128xbf16>, vector<128x128xbf16>, vector<16x128xf32> -> vector<16x128xf32>
    %108 = arith.addf %102, %107 : vector<16x128xf32>
    %109 = arith.addf %55, %108 : vector<16x128xf32>
    %c0_89 = arith.constant 0 : index
    %c0_90 = arith.constant 0 : index
    %110 = vector.load %arg18[%c0_89, %c0_90] : memref<32x128xf32, #tpu.memory_space<vmem>>, vector<32x128xf32>
    tpu.vector_store %arg18[%c0_89, %c0_90], %2 {strides = array<i32>} : memref<32x128xf32, #tpu.memory_space<vmem>>, vector<32x128xf32>,
    %c0_91 = arith.constant 0 : index
    %c0_92 = arith.constant 0 : index
    %111 = tpu.strided_load %arg18[%c0_91, %c0_92] {strides = array<i32: 2, 1>} : memref<32x128xf32, #tpu.memory_space<vmem>>, vector<16x128xf32>
    %112 = arith.truncf %111 : vector<16x128xf32> to vector<16x128xbf16>
    %c0_93 = arith.constant 0 : index
    %c0_94 = arith.constant 0 : index
    %113 = vector.load %arg14[%c0_93, %c0_94] : memref<128x128xbf16, #tpu.memory_space<vmem>>, vector<128x128xbf16>
    %cst_95 = arith.constant dense<0.000000e+00> : vector<16x128xf32>
    %114 = tpu.matmul %112, %113, %cst_95 {dimension_numbers = #tpu.dot_dimension_numbers<[1], [0], [0], [1], [0, 0, 1, 1], [], []>} : vector<16x128xbf16>, vector<128x128xbf16>, vector<16x128xf32> -> vector<16x128xf32>
    %115 = arith.addf %109, %114 : vector<16x128xf32>
    %116 = arith.truncf %115 : vector<16x128xf32> to vector<16x128xbf16>
    %c0_96 = arith.constant 0 : index
    %c0_97 = arith.constant 0 : index
    %c0_98 = arith.constant 0 : index
    %117 = vector.load %arg15[%c0_96, %c0_97, %c0_98] : memref<1x16x128xbf16, #tpu.memory_space<vmem>>, vector<1x16x128xbf16>
    %118 = vector.shape_cast %117 : vector<1x16x128xbf16> to vector<16x128xbf16>
    %119 = vector.shape_cast %116 : vector<16x128xbf16> to vector<1x16x128xbf16>
    tpu.vector_store %arg15[%c0_96, %c0_97, %c0_98], %119 {strides = array<i32>} : memref<1x16x128xbf16, #tpu.memory_space<vmem>>, vector<1x16x128xbf16>,
    return
  }
  func.func @transform_0(%arg0: i32) -> (i32, i32, i32) {
    %c0_i32 = arith.constant 0 : i32
    %c0_i32_0 = arith.constant 0 : i32
    %c0_i32_1 = arith.constant 0 : i32
    return %arg0, %c0_i32, %c0_i32_0 : i32, i32, i32
  }
  func.func @transform_1(%arg0: i32) -> (i32, i32) {
    %c0_i32 = arith.constant 0 : i32
    %c0_i32_0 = arith.constant 0 : i32
    %c0_i32_1 = arith.constant 0 : i32
    return %c0_i32, %c0_i32_0 : i32, i32
  }
  func.func @transform_2(%arg0: i32) -> (i32, i32) {
    %c0_i32 = arith.constant 0 : i32
    %c0_i32_0 = arith.constant 0 : i32
    %c0_i32_1 = arith.constant 0 : i32
    return %c0_i32, %c0_i32_0 : i32, i32
  }
  func.func @transform_3(%arg0: i32) -> (i32, i32) {
    %c0_i32 = arith.constant 0 : i32
    %c0_i32_0 = arith.constant 0 : i32
    %c0_i32_1 = arith.constant 0 : i32
    return %c0_i32, %c0_i32_0 : i32, i32
  }
  func.func @transform_4(%arg0: i32) -> (i32, i32) {
    %c0_i32 = arith.constant 0 : i32
    %c0_i32_0 = arith.constant 0 : i32
    %c0_i32_1 = arith.constant 0 : i32
    return %c0_i32, %c0_i32_0 : i32, i32
  }
  func.func @transform_5(%arg0: i32) -> (i32, i32) {
    %c0_i32 = arith.constant 0 : i32
    %c0_i32_0 = arith.constant 0 : i32
    %c0_i32_1 = arith.constant 0 : i32
    return %c0_i32, %c0_i32_0 : i32, i32
  }
  func.func @transform_6(%arg0: i32) -> (i32, i32, i32) {
    %c0_i32 = arith.constant 0 : i32
    %c0_i32_0 = arith.constant 0 : i32
    %c0_i32_1 = arith.constant 0 : i32
    %c0_i32_2 = arith.constant 0 : i32
    return %c0_i32, %c0_i32_0, %c0_i32_1 : i32, i32, i32
  }
  func.func @transform_7(%arg0: i32) -> (i32, i32) {
    %c0_i32 = arith.constant 0 : i32
    %c0_i32_0 = arith.constant 0 : i32
    %c0_i32_1 = arith.constant 0 : i32
    return %c0_i32, %c0_i32_0 : i32, i32
  }
  func.func @transform_8(%arg0: i32) -> (i32, i32) {
    %c0_i32 = arith.constant 0 : i32
    %c0_i32_0 = arith.constant 0 : i32
    %c0_i32_1 = arith.constant 0 : i32
    return %c0_i32, %c0_i32_0 : i32, i32
  }
  func.func @transform_9(%arg0: i32) -> (i32, i32) {
    %c0_i32 = arith.constant 0 : i32
    %c0_i32_0 = arith.constant 0 : i32
    %c0_i32_1 = arith.constant 0 : i32
    return %c0_i32, %c0_i32_0 : i32, i32
  }
  func.func @transform_10(%arg0: i32) -> (i32, i32) {
    %c0_i32 = arith.constant 0 : i32
    %c0_i32_0 = arith.constant 0 : i32
    %c0_i32_1 = arith.constant 0 : i32
    return %c0_i32, %c0_i32_0 : i32, i32
  }
  func.func @transform_11(%arg0: i32) -> (i32, i32) {
    %c0_i32 = arith.constant 0 : i32
    %c0_i32_0 = arith.constant 0 : i32
    %c0_i32_1 = arith.constant 0 : i32
    return %c0_i32, %c0_i32_0 : i32, i32
  }
  func.func @transform_12(%arg0: i32) -> (i32, i32, i32) {
    %c0_i32 = arith.constant 0 : i32
    %c0_i32_0 = arith.constant 0 : i32
    %c0_i32_1 = arith.constant 0 : i32
    %c0_i32_2 = arith.constant 0 : i32
    return %c0_i32, %c0_i32_0, %c0_i32_1 : i32, i32, i32
  }
  func.func @transform_13(%arg0: i32) -> (i32, i32) {
    %c0_i32 = arith.constant 0 : i32
    %c0_i32_0 = arith.constant 0 : i32
    %c0_i32_1 = arith.constant 0 : i32
    return %c0_i32, %c0_i32_0 : i32, i32
  }
  func.func @transform_14(%arg0: i32) -> (i32, i32, i32) {
    %c0_i32 = arith.constant 0 : i32
    %c0_i32_0 = arith.constant 0 : i32
    %c0_i32_1 = arith.constant 0 : i32
    return %arg0, %c0_i32, %c0_i32_0 : i32, i32, i32
  }
}

module attributes {stable_mosaic.version = 11 : i64} {
  func.func @_fc_head_kernel(%arg0: i32, %arg1: memref<2x1024xbf16, #tpu.memory_space<vmem>>, %arg2: memref<1024x256xbf16, #tpu.memory_space<vmem>>, %arg3: memref<1x256xf32, #tpu.memory_space<vmem>>, %arg4: memref<256x128xbf16, #tpu.memory_space<vmem>>, %arg5: memref<1x128xf32, #tpu.memory_space<vmem>>, %arg6: memref<2x128xf32, #tpu.memory_space<vmem>>) attributes {dimension_semantics = [#tpu.dimension_semantics<arbitrary>], iteration_bounds = array<i64: 1>, scalar_prefetch = 0 : i64, scratch_operands = 0 : i64, tpu.core_type = #tpu.core_type<tc>, window_params = [{pipeline_mode = #tpu.pipeline_mode<synchronous>, transform_indices = @transform_0, window_bounds = array<i64: 2, 1024>}, {pipeline_mode = #tpu.pipeline_mode<synchronous>, transform_indices = @transform_1, window_bounds = array<i64: 1024, 256>}, {pipeline_mode = #tpu.pipeline_mode<synchronous>, transform_indices = @transform_2, window_bounds = array<i64: 1, 256>}, {pipeline_mode = #tpu.pipeline_mode<synchronous>, transform_indices = @transform_3, window_bounds = array<i64: 256, 128>}, {pipeline_mode = #tpu.pipeline_mode<synchronous>, transform_indices = @transform_4, window_bounds = array<i64: 1, 128>}, {pipeline_mode = #tpu.pipeline_mode<synchronous>, transform_indices = @transform_5, window_bounds = array<i64: 2, 128>}]} {
    %c0 = arith.constant 0 : index
    %c0_0 = arith.constant 0 : index
    %0 = vector.load %arg1[%c0, %c0_0] : memref<2x1024xbf16, #tpu.memory_space<vmem>>, vector<2x1024xbf16>
    %c0_1 = arith.constant 0 : index
    %c0_2 = arith.constant 0 : index
    %1 = vector.load %arg2[%c0_1, %c0_2] : memref<1024x256xbf16, #tpu.memory_space<vmem>>, vector<1024x256xbf16>
    %cst = arith.constant dense<0.000000e+00> : vector<2x256xf32>
    %2 = tpu.matmul %0, %1, %cst {dimension_numbers = #tpu.dot_dimension_numbers<[1], [0], [0], [1], [0, 0, 1, 1], [], []>} : vector<2x1024xbf16>, vector<1024x256xbf16>, vector<2x256xf32> -> vector<2x256xf32>
    %c0_3 = arith.constant 0 : index
    %c0_4 = arith.constant 0 : index
    %3 = vector.load %arg3[%c0_3, %c0_4] : memref<1x256xf32, #tpu.memory_space<vmem>>, vector<1x256xf32>
    %4 = vector.broadcast %3 : vector<1x256xf32> to vector<2x256xf32>
    %5 = arith.addf %2, %4 : vector<2x256xf32>
    %cst_5 = arith.constant 0.000000e+00 : f32
    %6 = vector.broadcast %cst_5 : f32 to vector<2x256xf32>
    %7 = arith.maximumf %5, %6 : vector<2x256xf32>
    %8 = arith.truncf %7 : vector<2x256xf32> to vector<2x256xbf16>
    %c0_6 = arith.constant 0 : index
    %c0_7 = arith.constant 0 : index
    %9 = vector.load %arg4[%c0_6, %c0_7] : memref<256x128xbf16, #tpu.memory_space<vmem>>, vector<256x128xbf16>
    %cst_8 = arith.constant dense<0.000000e+00> : vector<2x128xf32>
    %10 = tpu.matmul %8, %9, %cst_8 {dimension_numbers = #tpu.dot_dimension_numbers<[1], [0], [0], [1], [0, 0, 1, 1], [], []>} : vector<2x256xbf16>, vector<256x128xbf16>, vector<2x128xf32> -> vector<2x128xf32>
    %c0_9 = arith.constant 0 : index
    %c0_10 = arith.constant 0 : index
    %11 = vector.load %arg5[%c0_9, %c0_10] : memref<1x128xf32, #tpu.memory_space<vmem>>, vector<1x128xf32>
    %12 = vector.broadcast %11 : vector<1x128xf32> to vector<2x128xf32>
    %13 = arith.addf %10, %12 : vector<2x128xf32>
    %c0_11 = arith.constant 0 : index
    %c0_12 = arith.constant 0 : index
    %14 = vector.load %arg6[%c0_11, %c0_12] : memref<2x128xf32, #tpu.memory_space<vmem>>, vector<2x128xf32>
    tpu.vector_store %arg6[%c0_11, %c0_12], %13 {strides = array<i32>} : memref<2x128xf32, #tpu.memory_space<vmem>>, vector<2x128xf32>,
    return
  }
  func.func @transform_0(%arg0: i32) -> (i32, i32) {
    %c0_i32 = arith.constant 0 : i32
    %c0_i32_0 = arith.constant 0 : i32
    %c0_i32_1 = arith.constant 0 : i32
    return %c0_i32, %c0_i32_0 : i32, i32
  }
  func.func @transform_1(%arg0: i32) -> (i32, i32) {
    %c0_i32 = arith.constant 0 : i32
    %c0_i32_0 = arith.constant 0 : i32
    %c0_i32_1 = arith.constant 0 : i32
    return %c0_i32, %c0_i32_0 : i32, i32
  }
  func.func @transform_2(%arg0: i32) -> (i32, i32) {
    %c0_i32 = arith.constant 0 : i32
    %c0_i32_0 = arith.constant 0 : i32
    %c0_i32_1 = arith.constant 0 : i32
    return %c0_i32, %c0_i32_0 : i32, i32
  }
  func.func @transform_3(%arg0: i32) -> (i32, i32) {
    %c0_i32 = arith.constant 0 : i32
    %c0_i32_0 = arith.constant 0 : i32
    %c0_i32_1 = arith.constant 0 : i32
    return %c0_i32, %c0_i32_0 : i32, i32
  }
  func.func @transform_4(%arg0: i32) -> (i32, i32) {
    %c0_i32 = arith.constant 0 : i32
    %c0_i32_0 = arith.constant 0 : i32
    %c0_i32_1 = arith.constant 0 : i32
    return %c0_i32, %c0_i32_0 : i32, i32
  }
  func.func @transform_5(%arg0: i32) -> (i32, i32) {
    %c0_i32 = arith.constant 0 : i32
    %c0_i32_0 = arith.constant 0 : i32
    %c0_i32_1 = arith.constant 0 : i32
    return %c0_i32, %c0_i32_0 : i32, i32
  }
}

module attributes {stable_mosaic.version = 11 : i64} {
  func.func @_fc_head_kernel(%arg0: i32, %arg1: memref<2x2048xbf16, #tpu.memory_space<vmem>>, %arg2: memref<2048x256xbf16, #tpu.memory_space<vmem>>, %arg3: memref<1x256xf32, #tpu.memory_space<vmem>>, %arg4: memref<256x128xbf16, #tpu.memory_space<vmem>>, %arg5: memref<1x128xf32, #tpu.memory_space<vmem>>, %arg6: memref<2x128xf32, #tpu.memory_space<vmem>>) attributes {dimension_semantics = [#tpu.dimension_semantics<arbitrary>], iteration_bounds = array<i64: 1>, scalar_prefetch = 0 : i64, scratch_operands = 0 : i64, tpu.core_type = #tpu.core_type<tc>, window_params = [{pipeline_mode = #tpu.pipeline_mode<synchronous>, transform_indices = @transform_0, window_bounds = array<i64: 2, 2048>}, {pipeline_mode = #tpu.pipeline_mode<synchronous>, transform_indices = @transform_1, window_bounds = array<i64: 2048, 256>}, {pipeline_mode = #tpu.pipeline_mode<synchronous>, transform_indices = @transform_2, window_bounds = array<i64: 1, 256>}, {pipeline_mode = #tpu.pipeline_mode<synchronous>, transform_indices = @transform_3, window_bounds = array<i64: 256, 128>}, {pipeline_mode = #tpu.pipeline_mode<synchronous>, transform_indices = @transform_4, window_bounds = array<i64: 1, 128>}, {pipeline_mode = #tpu.pipeline_mode<synchronous>, transform_indices = @transform_5, window_bounds = array<i64: 2, 128>}]} {
    %c0 = arith.constant 0 : index
    %c0_0 = arith.constant 0 : index
    %0 = vector.load %arg1[%c0, %c0_0] : memref<2x2048xbf16, #tpu.memory_space<vmem>>, vector<2x2048xbf16>
    %c0_1 = arith.constant 0 : index
    %c0_2 = arith.constant 0 : index
    %1 = vector.load %arg2[%c0_1, %c0_2] : memref<2048x256xbf16, #tpu.memory_space<vmem>>, vector<2048x256xbf16>
    %cst = arith.constant dense<0.000000e+00> : vector<2x256xf32>
    %2 = tpu.matmul %0, %1, %cst {dimension_numbers = #tpu.dot_dimension_numbers<[1], [0], [0], [1], [0, 0, 1, 1], [], []>} : vector<2x2048xbf16>, vector<2048x256xbf16>, vector<2x256xf32> -> vector<2x256xf32>
    %c0_3 = arith.constant 0 : index
    %c0_4 = arith.constant 0 : index
    %3 = vector.load %arg3[%c0_3, %c0_4] : memref<1x256xf32, #tpu.memory_space<vmem>>, vector<1x256xf32>
    %4 = vector.broadcast %3 : vector<1x256xf32> to vector<2x256xf32>
    %5 = arith.addf %2, %4 : vector<2x256xf32>
    %cst_5 = arith.constant 0.000000e+00 : f32
    %6 = vector.broadcast %cst_5 : f32 to vector<2x256xf32>
    %7 = arith.maximumf %5, %6 : vector<2x256xf32>
    %8 = arith.truncf %7 : vector<2x256xf32> to vector<2x256xbf16>
    %c0_6 = arith.constant 0 : index
    %c0_7 = arith.constant 0 : index
    %9 = vector.load %arg4[%c0_6, %c0_7] : memref<256x128xbf16, #tpu.memory_space<vmem>>, vector<256x128xbf16>
    %cst_8 = arith.constant dense<0.000000e+00> : vector<2x128xf32>
    %10 = tpu.matmul %8, %9, %cst_8 {dimension_numbers = #tpu.dot_dimension_numbers<[1], [0], [0], [1], [0, 0, 1, 1], [], []>} : vector<2x256xbf16>, vector<256x128xbf16>, vector<2x128xf32> -> vector<2x128xf32>
    %c0_9 = arith.constant 0 : index
    %c0_10 = arith.constant 0 : index
    %11 = vector.load %arg5[%c0_9, %c0_10] : memref<1x128xf32, #tpu.memory_space<vmem>>, vector<1x128xf32>
    %12 = vector.broadcast %11 : vector<1x128xf32> to vector<2x128xf32>
    %13 = arith.addf %10, %12 : vector<2x128xf32>
    %c0_11 = arith.constant 0 : index
    %c0_12 = arith.constant 0 : index
    %14 = vector.load %arg6[%c0_11, %c0_12] : memref<2x128xf32, #tpu.memory_space<vmem>>, vector<2x128xf32>
    tpu.vector_store %arg6[%c0_11, %c0_12], %13 {strides = array<i32>} : memref<2x128xf32, #tpu.memory_space<vmem>>, vector<2x128xf32>,
    return
  }
  func.func @transform_0(%arg0: i32) -> (i32, i32) {
    %c0_i32 = arith.constant 0 : i32
    %c0_i32_0 = arith.constant 0 : i32
    %c0_i32_1 = arith.constant 0 : i32
    return %c0_i32, %c0_i32_0 : i32, i32
  }
  func.func @transform_1(%arg0: i32) -> (i32, i32) {
    %c0_i32 = arith.constant 0 : i32
    %c0_i32_0 = arith.constant 0 : i32
    %c0_i32_1 = arith.constant 0 : i32
    return %c0_i32, %c0_i32_0 : i32, i32
  }
  func.func @transform_2(%arg0: i32) -> (i32, i32) {
    %c0_i32 = arith.constant 0 : i32
    %c0_i32_0 = arith.constant 0 : i32
    %c0_i32_1 = arith.constant 0 : i32
    return %c0_i32, %c0_i32_0 : i32, i32
  }
  func.func @transform_3(%arg0: i32) -> (i32, i32) {
    %c0_i32 = arith.constant 0 : i32
    %c0_i32_0 = arith.constant 0 : i32
    %c0_i32_1 = arith.constant 0 : i32
    return %c0_i32, %c0_i32_0 : i32, i32
  }
  func.func @transform_4(%arg0: i32) -> (i32, i32) {
    %c0_i32 = arith.constant 0 : i32
    %c0_i32_0 = arith.constant 0 : i32
    %c0_i32_1 = arith.constant 0 : i32
    return %c0_i32, %c0_i32_0 : i32, i32
  }
  func.func @transform_5(%arg0: i32) -> (i32, i32) {
    %c0_i32 = arith.constant 0 : i32
    %c0_i32_0 = arith.constant 0 : i32
    %c0_i32_1 = arith.constant 0 : i32
    return %c0_i32, %c0_i32_0 : i32, i32
  }
}

</mosaic_0001>

<bundles_post_ra>
// kernel: _lambda_.9
= control target key start
LH: loop header
LB: loop body
LE: loop exit
PB: predicated region body
PF: predicated region fallthrough
CT: control target
= control target key end

     0   :  { %10 = vsyncpa [#allocation3], 0  ;;  %s1835_s0 = inlined_call_operand.vmem [shape: bf16[2,1024], index: 0, kind: input, shape index: {}]   ;;  %s1836_s1 = inlined_call_operand.hbm [shape: bf16[1024,256], index: 1, kind: input, shape index: {}]   ;;  %s1837_s2 = inlined_call_operand.hbm [shape: f32[1,256], index: 2, kind: input, shape index: {}]   ;;  %s1838_s3 = inlined_call_operand.hbm [shape: bf16[256,128], index: 3, kind: input, shape index: {}]   ;;  %s1839_s4 = inlined_call_operand.hbm [shape: f32[1,128], index: 4, kind: input, shape index: {}]   ;;  %s1840_s5 = inlined_call_operand.hbm [shape: f32[2,128], index: 5, kind: output, shape index: {}]  }
   0x1   :  { %11 = vsyncpa [#allocation6], 0 }
   0x2   :  { %12 = vsyncpa [#allocation9], 0 }
   0x3   :  { %13 = vsyncpa [#allocation4], 0  ;;  %s1767_s18 = smov [#allocation5]   ;;  %s1768_s20 = smov [#allocation2]  }
   0x4   :  { %s34_s19 = sshll.u32 %s1767_s18, 4  ;;  %s21_s21 = sshll.u32 %s1768_s20, 4  ;;  %s35_s19 = int_to_ptr.vmem [resolvable:$true] %s34_s19  ;;  %s22_s21 = int_to_ptr.vmem [resolvable:$true] %s21_s21 }
   0x5   :  { %s1667_s22 = scalar_lea.vmem %s35_s19, 32  ;;  %p1672_p1 = scmp.lt.s32.totalorder %s35_s19, %s35_s19 }
   0x6   :  { %p1668_p0 = scmp.ne.s32.totalorder %s35_s19, %s1667_s22  ;;  %p1673_p2 = scmp.lt.s32.totalorder %s1667_s22, %s1667_s22 }
   0x8   :  { %p1674_p3 = por %p1673_p2, %p1672_p1 }
   0xa   :  { %p1675_p4 = pnand %p1674_p3, %p1668_p0 }
   0xc   :  { %1678 = shalt.err (!%p1675_p4)
}
   0xd   :  { %37 = dma.hbm_to_vmem [thread:$0]  %s1837_s2, 32, %s35_s19, [#allocation6]  }
   0xe   :  { %s1687_s25 = scalar_lea.vmem %s22_s21, 16384  ;;  %p1692_p6 = scmp.lt.s32.totalorder %s22_s21, %s22_s21 }
   0xf   :  { %p1688_p5 = scmp.ne.s32.totalorder %s22_s21, %s1687_s25  ;;  %p1693_p7 = scmp.lt.s32.totalorder %s1687_s25, %s1687_s25 }
  0x11   :  { %p1694_p8 = por %p1693_p7, %p1692_p6 }
  0x13   :  { %p1695_p9 = pnand %p1694_p8, %p1688_p5 }
  0x15   :  { %1698 = shalt.err (!%p1695_p9)
}
  0x16   :  { %s1769_s26 = smov 128   ;;  %s1770_s27 = smov 8  }
  0x17   :  { %27 = dma.hbm_to_vmem [thread:$0]  %s1836_s1, 16384, %s22_s21, [#allocation3], %s1769_s26, %s1769_s26, %s1770_s27  }
  0x18   :  { %s1771_s30 = smov [#allocation7]  }
  0x19   :  { %s43_s6 = sshll.u32 %s1771_s30, 4  ;;  %s44_s6 = int_to_ptr.vmem [resolvable:$true] %s43_s6 }
  0x1a   :  { %s1707_s7 = scalar_lea.vmem %s44_s6, 2048  ;;  %p1712_p11 = scmp.lt.s32.totalorder %s44_s6, %s44_s6 }
  0x1b   :  { %p1708_p10 = scmp.ne.s32.totalorder %s44_s6, %s1707_s7  ;;  %p1713_p12 = scmp.lt.s32.totalorder %s1707_s7, %s1707_s7 }
  0x1d   :  { %p1714_p13 = por %p1713_p12, %p1712_p11 }
  0x1f   :  { %p1715_p0 = pnand %p1714_p13, %p1708_p10 }
  0x21   :  { %1718 = shalt.err (!%p1715_p0)
}
  0x22   :  { %s1772_s2 = smov 64   ;;  %s1773_s8 = smov 4  }
  0x23   :  { %49 = dma.hbm_to_vmem [thread:$0]  %s1838_s3, 2048, %s44_s6, [#allocation6], %s1772_s2, %s1772_s2, %s1773_s8  }
  0x24   :  { %s1774_s11 = smov [#allocation8]  }
  0x25   :  { %s56_s12 = sshll.u32 %s1774_s11, 4  ;;  %s57_s12 = int_to_ptr.vmem [resolvable:$true] %s56_s12 }
  0x26   :  { %s1727_s1 = scalar_lea.vmem %s57_s12, 16  ;;  %s1731_s13 = scalar_lea.vmem %s57_s12, 32 }
  0x27   :  { %p1728_p1 = scmp.ne.s32.totalorder %s57_s12, %s1727_s1  ;;  %p1732_p2 = scmp.lt.s32.totalorder %s57_s12, %s57_s12 }
  0x28   :  { %p1733_p3 = scmp.lt.s32.totalorder %s1731_s13, %s1727_s1 }
  0x2a   :  { %p1734_p4 = por %p1733_p3, %p1732_p2 }
  0x2c   :  { %p1735_p5 = pnand %p1734_p4, %p1728_p1 }
  0x2e   :  { %1738 = shalt.err (!%p1735_p5)
}
  0x2f   :  { %59 = dma.hbm_to_vmem [thread:$0]  %s1839_s4, 16, %s57_s12, [#allocation9]  }
  0x30   :  { %1759 = dma.done.wait [#allocation3], 16384  }
  0x31   :  { %1760 = vsyncadd [#allocation3], 4294950912 }
  0x32   :  { %1761 = dma.done.wait [#allocation6], 2080  }
  0x33   :  { %1762 = vsyncadd [#allocation6], 4294965216 }
  0x34   :  { %1763 = dma.done.wait [#allocation9], 16  }
  0x35   :  { %1764 = vsyncadd [#allocation9], 4294967280  ;;  %v1450_v0 = vld [vmem:[#allocation2 + $0x74] ss:$8 sps:$4 sm:$0xff]   ;;  %v1454_v2 = vld [vmem:[#allocation2 + $0x70] ss:$8 sps:$4 sm:$0xff]   ;;  %v204_v36 = vlaneseq }
  0x36   :  { %v1452_v1 = vld [vmem:[#allocation2 + $0x174] ss:$8 sps:$4 sm:$0xff]   ;;  %912 = vmatprep.subr.bf16.mxu0 %v1450_v0  ;;  %v1455_v3 = vld [vmem:[#allocation2 + $0x170] ss:$8 sps:$4 sm:$0xff]   ;;  %v1456_v4 = vld [vmem:[#allocation2 + $0x64] ss:$8 sps:$4 sm:$0xff]  }
  0x37   :  { %953 = vmatprep.subr.bf16.mxu1 %v1452_v1  ;;  %913 = vmatpush1.bf16.msra.mxu0 %v1454_v2  ;;  %v1458_v5 = vld [vmem:[#allocation2 + $0x164] ss:$8 sps:$4 sm:$0xff]   ;;  %v1460_v6 = vld [vmem:[#allocation2 + $0x60] ss:$8 sps:$4 sm:$0xff]   ;;  %v1462_v8 = vld [vmem:[#allocation2 + $0x54] ss:$8 sps:$4 sm:$0xff]  }
  0x38   :  { %954 = vmatpush1.bf16.msra.mxu1 %v1455_v3  ;;  %914 = vmatprep.subr.bf16.mxu0 %v1456_v4  ;;  %v1461_v7 = vld [vmem:[#allocation2 + $0x160] ss:$8 sps:$4 sm:$0xff]   ;;  %v1464_v9 = vld [vmem:[#allocation2 + $0x154] ss:$8 sps:$4 sm:$0xff]   ;;  %v1466_v10 = vld [vmem:[#allocation2 + $0x50] ss:$8 sps:$4 sm:$0xff]  }
  0x39   :  { %955 = vmatprep.subr.bf16.mxu1 %v1458_v5  ;;  %v1467_v11 = vld [vmem:[#allocation2 + $0x150] ss:$8 sps:$4 sm:$0xff]   ;;  %v1468_v12 = vld [vmem:[#allocation2 + $0x44] ss:$8 sps:$4 sm:$0xff]   ;;  %v1472_v14 = vld [vmem:[#allocation2 + $0x40] ss:$8 sps:$4 sm:$0xff]  }
  0x3a   :  { %v1470_v13 = vld [vmem:[#allocation2 + $0x144] ss:$8 sps:$4 sm:$0xff]   ;;  %v1473_v15 = vld [vmem:[#allocation2 + $0x140] ss:$8 sps:$4 sm:$0xff]   ;;  %v1474_v16 = vld [vmem:[#allocation2 + $0x34] ss:$8 sps:$4 sm:$0xff]  }
  0x3b   :  { %915 = vmatpush1.bf16.msra.mxu0 %v1460_v6  ;;  %v1476_v17 = vld [vmem:[#allocation2 + $0x134] ss:$8 sps:$4 sm:$0xff]   ;;  %v1478_v18 = vld [vmem:[#allocation2 + $0x30] ss:$8 sps:$4 sm:$0xff]   ;;  %v1480_v20 = vld [vmem:[#allocation2 + $0x24] ss:$8 sps:$4 sm:$0xff]  }
  0x3c   :  { %956 = vmatpush1.bf16.msra.mxu1 %v1461_v7  ;;  %916 = vmatprep.subr.bf16.mxu0 %v1462_v8  ;;  %v1479_v19 = vld [vmem:[#allocation2 + $0x130] ss:$8 sps:$4 sm:$0xff]   ;;  %v1482_v21 = vld [vmem:[#allocation2 + $0x124] ss:$8 sps:$4 sm:$0xff]   ;;  %v1484_v22 = vld [vmem:[#allocation2 + $0x20] ss:$8 sps:$4 sm:$0xff]  }
  0x3d   :  { %957 = vmatprep.subr.bf16.mxu1 %v1464_v9  ;;  %v1485_v23 = vld [vmem:[#allocation2 + $0x120] ss:$8 sps:$4 sm:$0xff]   ;;  %v1486_v24 = vld [vmem:[#allocation2 + $0x14] ss:$8 sps:$4 sm:$0xff]   ;;  %v1490_v26 = vld [vmem:[#allocation2 + $0x10] ss:$8 sps:$4 sm:$0xff]  }
  0x3e   :  { %v1488_v25 = vld [vmem:[#allocation2 + $0x114] ss:$8 sps:$4 sm:$0xff]   ;;  %v1491_v27 = vld [vmem:[#allocation2 + $0x110] ss:$8 sps:$4 sm:$0xff]   ;;  %v1492_v28 = vld [vmem:[#allocation2 + $0x4] ss:$8 sps:$4 sm:$0xff]  }
  0x3f   :  { %917 = vmatpush1.bf16.msra.mxu0 %v1466_v10  ;;  %v1494_v29 = vld [vmem:[#allocation2 + $0x104] ss:$8 sps:$4 sm:$0xff]   ;;  %v1496_v30 = vld [vmem:[#allocation2] ss:$8 sps:$4 sm:$0xff]   ;;  %v1498_v32 = vld [vmem:[#allocation2 + $0xf4] ss:$8 sps:$4 sm:$0xff]  }
  0x40   :  { %958 = vmatpush1.bf16.msra.mxu1 %v1467_v11  ;;  %918 = vmatprep.subr.bf16.mxu0 %v1468_v12  ;;  %v1497_v31 = vld [vmem:[#allocation2 + $0x100] ss:$8 sps:$4 sm:$0xff]   ;;  %v1500_v33 = vld [vmem:[#allocation2 + $0x1f4] ss:$8 sps:$4 sm:$0xff]   ;;  %v1502_v34 = vld [vmem:[#allocation2 + $0xf0] ss:$8 sps:$4 sm:$0xff]  }
  0x41   :  { %959 = vmatprep.subr.bf16.mxu1 %v1470_v13  ;;  %v1503_v35 = vld [vmem:[#allocation2 + $0x1f0] ss:$8 sps:$4 sm:$0xff]   ;;  %v1775_v37 = vmov 1966171168   ;;  %v1504_v39 = vld [vmem:[#allocation2 + $0xe4] ss:$8 sps:$4 sm:$0xff]  }
  0x42   :  { %v217_v38 = vunpack.c.l.s4 %v1775_v37  ;;  %v1506_v40 = vld [vmem:[#allocation2 + $0x1e4] ss:$8 sps:$4 sm:$0xff]   ;;  %v1508_v41 = vld [vmem:[#allocation2 + $0xe0] ss:$8 sps:$4 sm:$0xff]   ;;  %v1819_v42 = vshrl.u32 %v204_v36, 7 }
  0x43   :  { %919 = vmatpush1.bf16.msra.mxu0 %v1472_v14  ;;  %v1509_v44 = vld [vmem:[#allocation2 + $0x1e0] ss:$8 sps:$4 sm:$0xff]   ;;  %v1510_v45 = vld [vmem:[#allocation2 + $0xd4] ss:$8 sps:$4 sm:$0xff]   ;;  %v1514_v47 = vld [vmem:[#allocation2 + $0xd0] ss:$8 sps:$4 sm:$0xff]  }
  0x44   :  { %960 = vmatpush1.bf16.msra.mxu1 %v1473_v15  ;;  %920 = vmatprep.subr.bf16.mxu0 %v1474_v16  ;;  %v218_v43 = vunpack.c.0.s8 %v217_v38  ;;  %v1512_v46 = vld [vmem:[#allocation2 + $0x1d4] ss:$8 sps:$4 sm:$0xff]   ;;  %v1515_v48 = vld [vmem:[#allocation2 + $0x1d0] ss:$8 sps:$4 sm:$0xff]   ;;  %v1516_v50 = vld [vmem:[#allocation2 + $0xc4] ss:$8 sps:$4 sm:$0xff]  }
  0x45   :  { %961 = vmatprep.subr.bf16.mxu1 %v1476_v17  ;;  %v1518_v51 = vld [vmem:[#allocation2 + $0x1c4] ss:$8 sps:$4 sm:$0xff]   ;;  %v1520_v53 = vld [vmem:[#allocation2 + $0xc0] ss:$8 sps:$4 sm:$0xff]   ;;  %v1522_v57 = vld [vmem:[#allocation2 + $0xb4] ss:$8 sps:$4 sm:$0xff]  }
  0x46   :  { %v221_v49 = vsub.s32 %v218_v43, %v1819_v42  ;;  %v73_v52 = vld [vmem:[%s1835_s0] sm:$0xff]  ;;  %v1524_v58 = vld [vmem:[#allocation2 + $0x1b4] ss:$8 sps:$4 sm:$0xff]   ;;  %v1526_v61 = vld [vmem:[#allocation2 + $0xb0] ss:$8 sps:$4 sm:$0xff]   ;;  %s1776_s0 = smov [#allocation10]  }
  0x47   :  { %921 = vmatpush1.bf16.msra.mxu0 %v1478_v18  ;;  %v215_v54 = vcombine.high %v73_v52, %v73_v52  ;;  %v1521_v56 = vld [vmem:[#allocation2 + $0x1c0] ss:$8 sps:$4 sm:$0xff]   ;;  %v1527_v0 = vld [vmem:[#allocation2 + $0x1b0] ss:$8 sps:$4 sm:$0xff]   ;;  %v1528_v1 = vld [vmem:[#allocation2 + $0xa4] ss:$8 sps:$4 sm:$0xff]  }
  0x48   :  { %962 = vmatpush1.bf16.msra.mxu1 %v1479_v19  ;;  %922 = vmatprep.subr.bf16.mxu0 %v1480_v20  ;;  %v222_v55 = vrot.slane %v73_v52, %v221_v49  ;;  %v1530_v2 = vld [vmem:[#allocation2 + $0x1a4] ss:$8 sps:$4 sm:$0xff]   ;;  %v1532_v4 = vld [vmem:[#allocation2 + $0xa0] ss:$8 sps:$4 sm:$0xff]   ;;  %v1534_v6 = vld [vmem:[#allocation2 + $0x94] ss:$8 sps:$4 sm:$0xff]  }
  0x49   :  { %963 = vmatprep.subr.bf16.mxu1 %v1482_v21  ;;  %v229_v60 = vrot.slane %v215_v54, %v221_v49  ;;  %v1533_v5 = vld [vmem:[#allocation2 + $0x1a0] ss:$8 sps:$4 sm:$0xff]   ;;  %v1536_v7 = vld [vmem:[#allocation2 + $0x194] ss:$8 sps:$4 sm:$0xff]   ;;  %v1538_v8 = vld [vmem:[#allocation2 + $0x90] ss:$8 sps:$4 sm:$0xff]  }
  0x4a   :  { %v230_v59 = vcombine.high %v222_v55, %v222_v55  ;;  %v1539_v9 = vld [vmem:[#allocation2 + $0x190] ss:$8 sps:$4 sm:$0xff]   ;;  %v1540_v10 = vld [vmem:[#allocation2 + $0x84] ss:$8 sps:$4 sm:$0xff]   ;;  %v1544_v13 = vld [vmem:[#allocation2 + $0x80] ss:$8 sps:$4 sm:$0xff]   ;;  %v238_v14 = vrot.slane %v222_v55, %v221_v49 }
  0x4b   :  { %923 = vmatpush1.bf16.msra.mxu0 %v1484_v22  ;;  %v1825_v63 = vrot.slane %v229_v60, %v221_v49  ;;  %v1542_v11 = vld [vmem:[#allocation2 + $0x184] ss:$8 sps:$4 sm:$0xff]   ;;  %v231_v12 = vcombine.high %v229_v60, %v229_v60  ;;  %v1545_v15 = vld [vmem:[#allocation2 + $0x180] ss:$8 sps:$4 sm:$0xff]   ;;  %v1549_v16 = vld [vmem:[#allocation2 + $0x274] ss:$8 sps:$4 sm:$0xff]  }
  0x4c   :  { %964 = vmatpush1.bf16.msra.mxu1 %v1485_v23  ;;  %924 = vmatprep.subr.bf16.mxu0 %v1486_v24  ;;  %v252_v62 = vrot.slane %v230_v59, %v221_v49  ;;  %v1552_v17 = vld [vmem:[#allocation2 + $0x374] ss:$8 sps:$4 sm:$0xff]   ;;  %v260_v19 = vcombine.high %v238_v14, %v238_v14  ;;  %v1547_v20 = vld [vmem:[#allocation2 + $0x270] ss:$8 sps:$4 sm:$0xff]   ;;  %v1555_v22 = vld [vmem:[#allocation2 + $0x264] ss:$8 sps:$4 sm:$0xff]  }
  0x4d   :  { %965 = vmatprep.subr.bf16.mxu1 %v1488_v25  ;;  %v259_v18 = vrot.slane %v231_v12, %v221_v49  ;;  %v1550_v21 = vld [vmem:[#allocation2 + $0x370] ss:$8 sps:$4 sm:$0xff]   ;;  %v1558_v23 = vld [vmem:[#allocation2 + $0x364] ss:$8 sps:$4 sm:$0xff]   ;;  %v1553_v25 = vld [vmem:[#allocation2 + $0x260] ss:$8 sps:$4 sm:$0xff]  }
  0x4e   :  { %v262_v3 = vcombine.high %v252_v62, %v252_v62  ;;  %944 = vmatprep.mubr.bf16.mxu0 %v252_v62  ;;  %v1576_v36 = vld [vmem:[#allocation2 + $0x334] ss:$8 sps:$4 sm:$0xff]   ;;  %v1571_v37 = vld [vmem:[#allocation2 + $0x230] ss:$8 sps:$4 sm:$0xff]   ;;  %v1580_v43 = vld [vmem:[#allocation2 + $0x320] ss:$8 sps:$4 sm:$0xff]  }
  0x4f   :  { %925 = vmatpush1.bf16.msra.mxu0 %v1490_v26  ;;  %v263_v24 = vcombine.high %v259_v18, %v259_v18  ;;  %v1556_v26 = vld [vmem:[#allocation2 + $0x360] ss:$8 sps:$4 sm:$0xff]   ;;  %v1574_v38 = vld [vmem:[#allocation2 + $0x330] ss:$8 sps:$4 sm:$0xff]   ;;  %v1594_v49 = vld [vmem:[#allocation2 + $0x304] ss:$8 sps:$4 sm:$0xff]  }
  0x50   :  { %966 = vmatpush1.bf16.msra.mxu1 %v1491_v27  ;;  %926 = vmatprep.subr.bf16.mxu0 %v1492_v28  ;;  %v1561_v27 = vld [vmem:[#allocation2 + $0x254] ss:$8 sps:$4 sm:$0xff]   ;;  %v1595_v54 = vld [vmem:[#allocation2 + $0x2f0] ss:$8 sps:$4 sm:$0xff]   ;;  %v1604_v59 = vld [vmem:[#allocation2 + $0x3e0] ss:$8 sps:$4 sm:$0xff]  }
  0x51   :  { %967 = vmatprep.subr.bf16.mxu1 %v1494_v29  ;;  %985 = vmatprep.mubr.bf16.mxu1 %v262_v3  ;;  %v1564_v28 = vld [vmem:[#allocation2 + $0x354] ss:$8 sps:$4 sm:$0xff]   ;;  %v1559_v29 = vld [vmem:[#allocation2 + $0x250] ss:$8 sps:$4 sm:$0xff]   ;;  %v1613_v3 = vld [vmem:[#allocation2 + $0x2c0] ss:$8 sps:$4 sm:$0xff]  }
  0x52   :  { %v1597_v52 = vld [vmem:[#allocation2 + $0x2f4] ss:$8 sps:$4 sm:$0xff]   ;;  %v1598_v55 = vld [vmem:[#allocation2 + $0x3f0] ss:$8 sps:$4 sm:$0xff]   ;;  %v1628_v12 = vld [vmem:[#allocation2 + $0x3a0] ss:$8 sps:$4 sm:$0xff]  }
  0x53   :  { %927 = vmatpush1.bf16.msra.mxu0 %v1496_v30  ;;  %v1562_v30 = vld [vmem:[#allocation2 + $0x350] ss:$8 sps:$4 sm:$0xff]   ;;  %v1609_v60 = vld [vmem:[#allocation2 + $0x2d4] ss:$8 sps:$4 sm:$0xff]   ;;  %s1262_s16 = sshll.u32 %s1776_s0, 4  ;;  %s1263_s16 = int_to_ptr.vmem [resolvable:$true] %s1262_s16 }
  0x54   :  { %968 = vmatpush1.bf16.msra.mxu1 %v1497_v31  ;;  %928 = vmatprep.subr.bf16.mxu0 %v1498_v32  ;;  %v1567_v31 = vld [vmem:[#allocation2 + $0x244] ss:$8 sps:$4 sm:$0xff]   ;;  %v1607_v62 = vld [vmem:[#allocation2 + $0x2d0] ss:$8 sps:$4 sm:$0xff]   ;;  %s1739_s17 = scalar_lea.vmem %s1263_s16, 32  ;;  %p1744_p7 = scmp.lt.s32.totalorder %s1263_s16, %s1263_s16 }
  0x55   :  { %969 = vmatprep.subr.bf16.mxu1 %v1500_v33  ;;  %v1570_v32 = vld [vmem:[#allocation2 + $0x344] ss:$8 sps:$4 sm:$0xff]   ;;  %v1565_v33 = vld [vmem:[#allocation2 + $0x240] ss:$8 sps:$4 sm:$0xff]   ;;  %p1740_p6 = scmp.ne.s32.totalorder %s1263_s16, %s1739_s17  ;;  %p1745_p8 = scmp.lt.s32.totalorder %s1739_s17, %s1739_s17 }
  0x57   :  { %929 = vmatpush2.bf16.msra.mxu0 %v1502_v34  ;;  %v1568_v34 = vld [vmem:[#allocation2 + $0x340] ss:$8 sps:$4 sm:$0xff]   ;;  %p1746_p9 = por %p1745_p8, %p1744_p7 }
  0x58   :  { %970 = vmatpush2.bf16.msra.mxu1 %v1503_v35  ;;  %930 = vmatprep.subr.bf16.mxu0 %v1504_v39  ;;  %v1573_v35 = vld [vmem:[#allocation2 + $0x234] ss:$8 sps:$4 sm:$0xff]   ;;  %v1579_v39 = vld [vmem:[#allocation2 + $0x224] ss:$8 sps:$4 sm:$0xff]  }
  0x59   :  { %971 = vmatprep.subr.bf16.mxu1 %v1506_v40  ;;  %v1582_v40 = vld [vmem:[#allocation2 + $0x324] ss:$8 sps:$4 sm:$0xff]   ;;  %p1747_p10 = pnand %p1746_p9, %p1740_p6 }
  0x5b   :  { %931 = vmatpush2.bf16.msra.mxu0 %v1508_v41  ;;  %v1577_v41 = vld [vmem:[#allocation2 + $0x220] ss:$8 sps:$4 sm:$0xff]  }
  0x5c   :  { %972 = vmatpush2.bf16.msra.mxu1 %v1509_v44  ;;  %932 = vmatprep.subr.bf16.mxu0 %v1510_v45  ;;  %v1585_v44 = vld [vmem:[#allocation2 + $0x214] ss:$8 sps:$4 sm:$0xff]  }
  0x5d   :  { %973 = vmatprep.subr.bf16.mxu1 %v1512_v46  ;;  %v1588_v45 = vld [vmem:[#allocation2 + $0x314] ss:$8 sps:$4 sm:$0xff]   ;;  %v1583_v46 = vld [vmem:[#allocation2 + $0x210] ss:$8 sps:$4 sm:$0xff]  }
  0x5f   :  { %933 = vmatpush2.bf16.msra.mxu0 %v1514_v47  ;;  %v1586_v47 = vld [vmem:[#allocation2 + $0x310] ss:$8 sps:$4 sm:$0xff]  }
  0x60   :  { %974 = vmatpush2.bf16.msra.mxu1 %v1515_v48  ;;  %934 = vmatprep.subr.bf16.mxu0 %v1516_v50  ;;  %v1591_v48 = vld [vmem:[#allocation2 + $0x204] ss:$8 sps:$4 sm:$0xff]   ;;  %v1589_v50 = vld [vmem:[#allocation2 + $0x200] ss:$8 sps:$4 sm:$0xff]  }
  0x61   :  { %975 = vmatprep.subr.bf16.mxu1 %v1518_v51  ;;  %v1592_v51 = vld [vmem:[#allocation2 + $0x300] ss:$8 sps:$4 sm:$0xff]  }
  0x63   :  { %935 = vmatpush2.bf16.msra.mxu0 %v1520_v53  ;;  %v1600_v53 = vld [vmem:[#allocation2 + $0x3f4] ss:$8 sps:$4 sm:$0xff]  }
  0x64   :  { %976 = vmatpush2.bf16.msra.mxu1 %v1521_v56  ;;  %936 = vmatprep.subr.bf16.mxu0 %v1522_v57  ;;  %v1603_v56 = vld [vmem:[#allocation2 + $0x2e4] ss:$8 sps:$4 sm:$0xff]  }
  0x65   :  { %977 = vmatprep.subr.bf16.mxu1 %v1524_v58  ;;  %v1606_v57 = vld [vmem:[#allocation2 + $0x3e4] ss:$8 sps:$4 sm:$0xff]   ;;  %v1601_v58 = vld [vmem:[#allocation2 + $0x2e0] ss:$8 sps:$4 sm:$0xff]  }
  0x67   :  { %937 = vmatpush2.bf16.msra.mxu0 %v1526_v61  ;;  %v1612_v61 = vld [vmem:[#allocation2 + $0x3d4] ss:$8 sps:$4 sm:$0xff]  }
  0x68   :  { %978 = vmatpush2.bf16.msra.mxu1 %v1527_v0  ;;  %938 = vmatprep.subr.bf16.mxu0 %v1528_v1  ;;  %v1610_v0 = vld [vmem:[#allocation2 + $0x3d0] ss:$8 sps:$4 sm:$0xff]   ;;  %v1615_v1 = vld [vmem:[#allocation2 + $0x2c4] ss:$8 sps:$4 sm:$0xff]  }
  0x69   :  { %979 = vmatprep.subr.bf16.mxu1 %v1530_v2  ;;  %v1618_v2 = vld [vmem:[#allocation2 + $0x3c4] ss:$8 sps:$4 sm:$0xff]  }
  0x6b   :  { %939 = vmatpush2.bf16.msra.mxu0 %v1532_v4  ;;  %v1616_v4 = vld [vmem:[#allocation2 + $0x3c0] ss:$8 sps:$4 sm:$0xff]  }
  0x6c   :  { %980 = vmatpush2.bf16.msra.mxu1 %v1533_v5  ;;  %940 = vmatprep.subr.bf16.mxu0 %v1534_v6  ;;  %v1621_v5 = vld [vmem:[#allocation2 + $0x2b4] ss:$8 sps:$4 sm:$0xff]  }
  0x6d   :  { %981 = vmatprep.subr.bf16.mxu1 %v1536_v7  ;;  %v1624_v6 = vld [vmem:[#allocation2 + $0x3b4] ss:$8 sps:$4 sm:$0xff]   ;;  %v1619_v7 = vld [vmem:[#allocation2 + $0x2b0] ss:$8 sps:$4 sm:$0xff]  }
  0x6f   :  { %941 = vmatpush2.bf16.msra.mxu0 %v1538_v8  ;;  %v1622_v8 = vld [vmem:[#allocation2 + $0x3b0] ss:$8 sps:$4 sm:$0xff]  }
  0x70   :  { %982 = vmatpush2.bf16.msra.mxu1 %v1539_v9  ;;  %942 = vmatprep.subr.bf16.mxu0 %v1540_v10  ;;  %v1627_v9 = vld [vmem:[#allocation2 + $0x2a4] ss:$8 sps:$4 sm:$0xff]  }
  0x71   :  { %983 = vmatprep.subr.bf16.mxu1 %v1542_v11  ;;  %v1630_v10 = vld [vmem:[#allocation2 + $0x3a4] ss:$8 sps:$4 sm:$0xff]   ;;  %v1625_v11 = vld [vmem:[#allocation2 + $0x2a0] ss:$8 sps:$4 sm:$0xff]  }
  0x73   :  { %943 = vmatpush2.bf16.msra.mxu0 %v1544_v13  ;;  %v1633_v13 = vld [vmem:[#allocation2 + $0x294] ss:$8 sps:$4 sm:$0xff]  }
  0x74   :  { %984 = vmatpush2.bf16.msra.mxu1 %v1545_v15  ;;  %994 = vmatprep.subr.bf16.mxu0 %v1549_v16  ;;  %v1631_v15 = vld [vmem:[#allocation2 + $0x290] ss:$8 sps:$4 sm:$0xff]  }
  0x75   :  { %1035 = vmatprep.subr.bf16.mxu1 %v1552_v17  ;;  %v1634_v16 = vld [vmem:[#allocation2 + $0x390] ss:$8 sps:$4 sm:$0xff]   ;;  %v1639_v17 = vld [vmem:[#allocation2 + $0x284] ss:$8 sps:$4 sm:$0xff]  }
  0x76   :  { %945 = vmatmul.mubr.bf16.vlgmr.msra.gmra.mxu0 %v238_v14  ;;  %v1636_v14 = vld [vmem:[#allocation2 + $0x394] ss:$8 sps:$4 sm:$0xff]  }
  0x77   :  { %986 = vmatmul.mubr.bf16.vlgmr.msra.gmra.mxu1 %v260_v19  ;;  %995 = vmatpush1.bf16.msra.mxu0 %v1547_v20  ;;  %v1637_v19 = vld [vmem:[#allocation2 + $0x280] ss:$8 sps:$4 sm:$0xff]  }
  0x78   :  { %1036 = vmatpush1.bf16.msra.mxu1 %v1550_v21  ;;  %996 = vmatprep.subr.bf16.mxu0 %v1555_v22  ;;  %v1640_v20 = vld [vmem:[#allocation2 + $0x380] ss:$8 sps:$4 sm:$0xff]   ;;  %v261_v21 = vcombine.high %v1825_v63, %v1825_v63 }
  0x79   :  { %1037 = vmatprep.subr.bf16.mxu1 %v1558_v23  ;;  %1026 = vmatprep.mubr.bf16.mxu0 %v259_v18  ;;  %v1642_v18 = vld [vmem:[#allocation2 + $0x384] ss:$8 sps:$4 sm:$0xff]   ;;  %v1643_v22 = vld [vmem:[#allocation7 + $0x78] sm:$0xff]  }
  0x7a   :  { %1067 = vmatprep.mubr.bf16.mxu1 %v263_v24  ;;  %v1644_v23 = vld [vmem:[#allocation7 + $0x38] sm:$0xff]   ;;  %v1645_v24 = vld [vmem:[#allocation7 + $0x70] sm:$0xff]  }
  0x7b   :  { %997 = vmatpush1.bf16.msra.mxu0 %v1553_v25  ;;  %v1646_v25 = vld [vmem:[#allocation7 + $0x30] sm:$0xff]  }
  0x7c   :  { %1038 = vmatpush1.bf16.msra.mxu1 %v1556_v26  ;;  %998 = vmatprep.subr.bf16.mxu0 %v1561_v27  ;;  %v1647_v26 = vld [vmem:[#allocation7 + $0x68] sm:$0xff]  }
  0x7d   :  { %1039 = vmatprep.subr.bf16.mxu1 %v1564_v28  ;;  %v1648_v27 = vld [vmem:[#allocation7 + $0x28] sm:$0xff]   ;;  %v1649_v28 = vld [vmem:[#allocation7 + $0x60] sm:$0xff]  }
  0x7f   :  { %999 = vmatpush1.bf16.msra.mxu0 %v1559_v29  ;;  %v1650_v29 = vld [vmem:[#allocation7 + $0x20] sm:$0xff]  }
  0x80   :  { %1040 = vmatpush1.bf16.msra.mxu1 %v1562_v30  ;;  %1000 = vmatprep.subr.bf16.mxu0 %v1567_v31  ;;  %v1651_v30 = vld [vmem:[#allocation7 + $0x58] sm:$0xff]  }
  0x81   :  { %1041 = vmatprep.subr.bf16.mxu1 %v1570_v32  ;;  %v1652_v31 = vld [vmem:[#allocation7 + $0x18] sm:$0xff]   ;;  %v1654_v32 = vld [vmem:[#allocation7 + $0x10] sm:$0xff]  }
  0x83   :  { %1001 = vmatpush1.bf16.msra.mxu0 %v1565_v33  ;;  %v1655_v33 = vld [vmem:[#allocation7 + $0x48] sm:$0xff]  }
  0x84   :  { %1042 = vmatpush1.bf16.msra.mxu1 %v1568_v34  ;;  %1002 = vmatprep.subr.bf16.mxu0 %v1573_v35  ;;  %v1656_v34 = vld [vmem:[#allocation7 + $0x8] sm:$0xff]   ;;  %v1657_v35 = vld [vmem:[#allocation7 + $0x40] sm:$0xff]  }
  0x85   :  { %1043 = vmatprep.subr.bf16.mxu1 %v1576_v36  ;;  %v1658_v36 = vld [vmem:[#allocation7] sm:$0xff]  }
  0x87   :  { %1003 = vmatpush1.bf16.msra.mxu0 %v1571_v37 }
  0x88   :  { %1044 = vmatpush1.bf16.msra.mxu1 %v1574_v38  ;;  %1004 = vmatprep.subr.bf16.mxu0 %v1579_v39 }
  0x89   :  { %1045 = vmatprep.subr.bf16.mxu1 %v1582_v40 }
  0x8b   :  { %1005 = vmatpush1.bf16.msra.mxu0 %v1577_v41 }
  0x8c   :  { %1046 = vmatpush1.bf16.msra.mxu1 %v1580_v43  ;;  %1006 = vmatprep.subr.bf16.mxu0 %v1585_v44 }
  0x8d   :  { %1047 = vmatprep.subr.bf16.mxu1 %v1588_v45 }
  0x8f   :  { %1007 = vmatpush1.bf16.msra.mxu0 %v1583_v46  ;;  %v206_v46 = vsub.s32 0, %v1819_v42 }
  0x90   :  { %1048 = vmatpush1.bf16.msra.mxu1 %v1586_v47  ;;  %1008 = vmatprep.subr.bf16.mxu0 %v1591_v48  ;;  %v202_v47 = vld [vmem:[#allocation5] sm:$0x3]  ;;  %v210_v48 = vsub.s32 1, %v1819_v42 }
  0x91   :  { %1049 = vmatprep.subr.bf16.mxu1 %v1594_v49  ;;  %v207_v49 = vrot.slane %v202_v47, %v206_v46 }
  0x93   :  { %1009 = vmatpush1.bf16.msra.mxu0 %v1589_v50  ;;  %v211_v50 = vrot.slane %v202_v47, %v210_v48 }
  0x94   :  { %1050 = vmatpush1.bf16.msra.mxu1 %v1592_v51  ;;  %1010 = vmatprep.subr.bf16.mxu0 %v1597_v52 }
  0x95   :  { %1051 = vmatprep.subr.bf16.mxu1 %v1600_v53 }
  0x97   :  { %1011 = vmatpush2.bf16.msra.mxu0 %v1595_v54 }
  0x98   :  { %1052 = vmatpush2.bf16.msra.mxu1 %v1598_v55  ;;  %1012 = vmatprep.subr.bf16.mxu0 %v1603_v56 }
  0x99   :  { %1053 = vmatprep.subr.bf16.mxu1 %v1606_v57 }
  0x9b   :  { %1013 = vmatpush2.bf16.msra.mxu0 %v1601_v58 }
  0x9c   :  { %1054 = vmatpush2.bf16.msra.mxu1 %v1604_v59  ;;  %1014 = vmatprep.subr.bf16.mxu0 %v1609_v60 }
  0x9d   :  { %1055 = vmatprep.subr.bf16.mxu1 %v1612_v61 }
  0x9f   :  { %1015 = vmatpush2.bf16.msra.mxu0 %v1607_v62 }
  0xa0   :  { %1056 = vmatpush2.bf16.msra.mxu1 %v1610_v0  ;;  %1016 = vmatprep.subr.bf16.mxu0 %v1615_v1 }
  0xa1   :  { %1057 = vmatprep.subr.bf16.mxu1 %v1618_v2 }
  0xa3   :  { %1017 = vmatpush2.bf16.msra.mxu0 %v1613_v3 }
  0xa4   :  { %1058 = vmatpush2.bf16.msra.mxu1 %v1616_v4  ;;  %1018 = vmatprep.subr.bf16.mxu0 %v1621_v5 }
  0xa5   :  { %1059 = vmatprep.subr.bf16.mxu1 %v1624_v6 }
  0xa7   :  { %1019 = vmatpush2.bf16.msra.mxu0 %v1619_v7 }
  0xa8   :  { %1060 = vmatpush2.bf16.msra.mxu1 %v1622_v8  ;;  %1020 = vmatprep.subr.bf16.mxu0 %v1627_v9  ;;  %v1401_v8 = vld [vmem:[#allocation8] ss:$0 sm:$0xff] }
  0xa9   :  { %1061 = vmatprep.subr.bf16.mxu1 %v1630_v10 }
  0xab   :  { %1021 = vmatpush2.bf16.msra.mxu0 %v1625_v11 }
  0xac   :  { %1062 = vmatpush2.bf16.msra.mxu1 %v1628_v12  ;;  %1022 = vmatprep.subr.bf16.mxu0 %v1633_v13 }
  0xad   :  { %1063 = vmatprep.subr.bf16.mxu1 %v1636_v14 }
  0xaf   :  { %1023 = vmatpush2.bf16.msra.mxu0 %v1631_v15 }
  0xb0   :  { %1064 = vmatpush2.bf16.msra.mxu1 %v1634_v16  ;;  %1024 = vmatprep.subr.bf16.mxu0 %v1639_v17 }
  0xb1   :  { %1065 = vmatprep.subr.bf16.mxu1 %v1642_v18 }
  0xb3   :  { %1025 = vmatpush2.bf16.msra.mxu0 %v1637_v19 }
  0xb4   :  { %1066 = vmatpush2.bf16.msra.mxu1 %v1640_v20  ;;  %1418 = vmatprep.subr.bf16.mxu0 %v1643_v22 }
  0xb6   :  { %1027 = vmatmul.mubr.bf16.vlgmr.msra.gmra.mxu0 %v1825_v63  ;;  %v1653_v63 = vld [vmem:[#allocation7 + $0x50] sm:$0xff]  }
  0xb7   :  { %1068 = vmatmul.mubr.bf16.vlgmr.msra.gmra.mxu1 %v261_v21  ;;  %1419 = vmatpush3.bf16.msra.mxu0 %v1644_v23 }
  0xb8   :  { %1420 = vmatprep.subr.bf16.mxu0 %v1645_v24 }
  0xbb   :  { %1421 = vmatpush3.bf16.msra.mxu0 %v1646_v25 }
  0xbc   :  { %1422 = vmatprep.subr.bf16.mxu0 %v1647_v26 }
  0xbf   :  { %1423 = vmatpush3.bf16.msra.mxu0 %v1648_v27 }
  0xc0   :  { %1424 = vmatprep.subr.bf16.mxu0 %v1649_v28 }
  0xc3   :  { %1425 = vmatpush3.bf16.msra.mxu0 %v1650_v29 }
  0xc4   :  { %1426 = vmatprep.subr.bf16.mxu0 %v1651_v30 }
  0xc7   :  { %1427 = vmatpush3.bf16.msra.mxu0 %v1652_v31 }
  0xc8   :  { %1428 = vmatprep.subr.bf16.mxu0 %v1653_v63 }
  0xcb   :  { %1429 = vmatpush3.bf16.msra.mxu0 %v1654_v32 }
  0xcc   :  { %1430 = vmatprep.subr.bf16.mxu0 %v1655_v33 }
  0xcf   :  { %1431 = vmatpush3.bf16.msra.mxu0 %v1656_v34 }
  0xd0   :  { %1432 = vmatprep.subr.bf16.mxu0 %v1657_v35 }
  0xd3   :  { %1433 = vmatpush3.bf16.msra.mxu0 %v1658_v36 }
 0x136   :  { %v946_v37 = vpop.f32.mrf.mxu0 }
 0x137   :  { %v987_v38 = vpop.f32.mrf.mxu1  ;;  %v947_v51 = vadd.f32 %v946_v37, %v207_v49 }
 0x138   :  { %v948_v39 = vpop.f32.mrf.mxu0 }
 0x139   :  { %v989_v40 = vpop.f32.mrf.mxu1  ;;  %v949_v52 = vadd.f32 %v948_v39, %v211_v50  ;;  %v988_v53 = vadd.f32 %v987_v38, %v947_v51 }
 0x13a   :  { %v950_v41 = vpop.f32.mrf.mxu0 }
 0x13b   :  { %v991_v43 = vpop.f32.mrf.mxu1  ;;  %v990_v56 = vadd.f32 %v989_v40, %v949_v52 }
 0x13c   :  { %v951_v44 = vpop.f32.mrf.mxu0 }
 0x13d   :  { %v992_v45 = vpop.f32.mrf.mxu1 }
 0x176   :  { %v1028_v54 = vpop.f32.mrf.mxu0 }
 0x177   :  { %v1069_v55 = vpop.f32.mrf.mxu1  ;;  %v1029_v57 = vadd.f32 %v1028_v54, %v988_v53 }
 0x178   :  { %v1030_v58 = vpop.f32.mrf.mxu0 }
 0x179   :  { %v1071_v59 = vpop.f32.mrf.mxu1  ;;  %v1070_v60 = vadd.f32 %v1069_v55, %v1029_v57  ;;  %v1031_v61 = vadd.f32 %v1030_v58, %v990_v56 }
 0x17a   :  { %v1032_v62 = vpop.f32.mrf.mxu0 }
 0x17b   :  { %v1073_v0 = vpop.f32.mrf.mxu1  ;;  %v1072_v1 = vadd.f32 %v1071_v59, %v1031_v61  ;;  %v1076_v2 = vmax.f32 %v1070_v60, 0.0 }
 0x17c   :  { %v1033_v3 = vpop.f32.mrf.mxu0 }
 0x17d   :  { %v1074_v4 = vpop.f32.mrf.mxu1  ;;  %v1077_v42 = vmax.f32 %v1072_v1, 0.0  ;;  %v1078_v6 = vpack.c.bf16 %v1076_v2, %v1076_v2 }
 0x17f   :  { %v1079_v5 = vpack.c.bf16 %v1077_v42, %v1077_v42 }
 0x181   :  { %1247 = vmatprep.mubr.bf16.mxu0 %v1079_v5 }
 0x182   :  { %1248 = vmatmul.mubr.bf16.vlgmr.msra.gmra.mxu0 %v1078_v6 }
 0x242   :  { %v1434_v7 = vpop.f32.mrf.mxu0 }
 0x244   :  { %v1435_v9 = vpop.f32.mrf.mxu0 }
 0x245   :  { %v1436_v10 = vadd.f32 %v1435_v9, %v1434_v7 }
 0x246   :  { %v1437_v11 = vpop.f32.mrf.mxu0 }
 0x247   :  { %v1250_v12 = vadd.f32 %v1436_v10, %v1401_v8 }
 0x248   :  { %v1438_v13 = vpop.f32.mrf.mxu0 }
 0x249   :  { %1255 = vst [vmem:[#allocation10] sm:$0x3] %v1250_v12 }
 0x24a   :  { %1750 = shalt.err (!%p1747_p10)
}
 0x24b   :  { %1265 = dma.vmem_to_hbm [thread:$0]  %s1263_s16, 32, %s1840_s5, [#allocation4]  }
 0x24c   :  { %1765 = dma.done.wait [#allocation4], 32  }
 0x24d   :  { %1766 = vsyncadd [#allocation4], 4294967264 }
 0x24e   :  { %1269 = vsyncpa [#allocation3], 1 }
 0x24f   :  { %1270 = vsyncpa [#allocation6], 1 }
 0x250   :  { %1271 = vsyncpa [#allocation9], 1 }
 0x251   :  { %1272 = vsyncpa [#allocation4], 1 }

// kernel: _lambda_.5
= control target key start
LH: loop header
LB: loop body
LE: loop exit
PB: predicated region body
PF: predicated region fallthrough
CT: control target
= control target key end

     0   :  { %13 = vsyncpa [#allocation5], 0  ;;  %s3123_s0 = inlined_call_operand.vmem [shape: bf16[2,64,128], index: 0, kind: input, shape index: {}]   ;;  %s3124_s1 = inlined_call_operand.hbm [shape: bf16[7,128,128], index: 1, kind: input, shape index: {}]   ;;  %s3125_s2 = inlined_call_operand.vmem [shape: f32[1,128], index: 2, kind: input, shape index: {}]   ;;  %s3126_s3 = inlined_call_operand.vmem [shape: f32[1,128], index: 3, kind: input, shape index: {}]   ;;  %s3127_s4 = inlined_call_operand.hbm [shape: bf16[128,128], index: 4, kind: input, shape index: {}]   ;;  %s3128_s5 = inlined_call_operand.vmem [shape: f32[1,128], index: 5, kind: input, shape index: {}]   ;;  %s3129_s6 = inlined_call_operand.vmem [shape: f32[1,128], index: 6, kind: input, shape index: {}]   ;;  %s3130_s7 = inlined_call_operand.hbm [shape: bf16[5,128,128], index: 7, kind: input, shape index: {}]   ;;  %s3131_s8 = inlined_call_operand.vmem [shape: bf16[2,32,128], index: 8, kind: output, shape index: {}]  }
   0x1   :  { %14 = vsyncpa [#allocation7], 0  ;;  %s3012_s27 = smov 0  }
   0x2 LB: > { %s3018_s28 = sadd.s32 4294967295, %s2959_s27   ;;  %p2168_p0 = scmp.ge.s32.totalorder %s2959_s27, 1  ;;  %s2959_s27 = sphi %s3012_s27, %s20_s27  }
   0x3   : > { %p224_p1 = scmp.lt.s32.totalorder %s2959_s27, 3  ;;  %p2743_p2 = scmp.eq.s32.totalorder %s3018_s28, 0 }
   0x4   : > { %s2961_s30 = smov [#allocation6]   ;;  %s2962_s10 = smov [#allocation4]  }
   0x5   : > { %p3023_p3 = pnand %p2168_p0, %p224_p1  ;;  %s255_s9 = sshll.u32 %s2961_s30, 4  ;;  %s256_s9 = int_to_ptr.vmem [resolvable:$true] %s255_s9 }
   0x6   : > { %s236_s11 = sshll.u32 %s2962_s10, 4  ;;  %s2963_s13 = smov [#allocation8]   ;;  %s237_s11 = int_to_ptr.vmem [resolvable:$true] %s236_s11 }
   0x7   : > { %p2733_p4 = pneg %p3023_p3  ;;  %s274_s14 = sshll.u32 %s2963_s13, 4  ;;  %s3035_s14 = int_to_ptr.vmem [resolvable:$true] %s274_s14 }
   0x8   : > { %s2878_s15 = scalar_lea.vmem %s256_s9, 1024  ;;  %p2886_p10 = scmp.lt.s32.totalorder %s256_s9, %s256_s9 }
   0x9   : > { %p3031_p5 = pnand %p2743_p2, %p2733_p4  ;;  %p2879_p7 = scmp.ne.s32.totalorder %s256_s9, %s2878_s15 }
   0xa   : > { %p2887_p11 = scmp.lt.s32.totalorder %s2878_s15, %s2878_s15 }
   0xb   : > { %p2869_p6 = pneg %p3031_p5 }
   0xc   : > { %p2888_p12 = por %p2887_p11, %p2886_p10 }
   0xd   : > { %p2881_p8 = pnand %p2879_p7, %p2869_p6 }
   0xf   : > { %p2882_p9 = pneg %p2881_p8 }
  0x11   : > { %p2889_p13 = pnand %p2888_p12, %p2882_p9 }
  0x13   : > { %2892 = shalt.err (!%p2889_p13)
}
  0x14   : > { %s2964_s16 = smov 64   ;;  %s2965_s17 = smov 4  }
  0x15   : > { %2739 = dma.hbm_to_vmem [thread:$0]  (!%p3031_p5), %s3127_s4, 1024, %s256_s9, [#allocation7], %s2964_s16, %s2964_s16, %s2965_s17  }
  0x16   : > { %s2904_s20 = scalar_lea.vmem %s237_s11, 7168  ;;  %p2912_p7 = scmp.lt.s32.totalorder %s237_s11, %s237_s11 }
  0x17   : > { %p2905_p0 = scmp.ne.s32.totalorder %s237_s11, %s2904_s20  ;;  %p2913_p8 = scmp.lt.s32.totalorder %s2904_s20, %s2904_s20 }
  0x19   : > { %p2907_p1 = pnand %p2905_p0, %p2869_p6  ;;  %p2914_p10 = por %p2913_p8, %p2912_p7 }
  0x1b   : > { %p2908_p4 = pneg %p2907_p1 }
  0x1d   : > { %p2915_p9 = pnand %p2914_p10, %p2908_p4 }
  0x1f   : > { %2918 = shalt.err (!%p2915_p9)
}
  0x20   : > { %2736 = dma.hbm_to_vmem [thread:$0]  (!%p3031_p5), %s3124_s1, 7168, %s237_s11, [#allocation5], %s2964_s16, %s2964_s16, %s2965_s17  }
  0x21   : > { %s2930_s23 = scalar_lea.vmem %s3035_s14, 5120  ;;  %p2938_p0 = scmp.lt.s32.totalorder %s3035_s14, %s3035_s14 }
  0x22   : > { %p2931_p11 = scmp.ne.s32.totalorder %s3035_s14, %s2930_s23  ;;  %p2939_p1 = scmp.lt.s32.totalorder %s2930_s23, %s2930_s23 }
  0x24   : > { %p2933_p12 = pnand %p2931_p11, %p2869_p6  ;;  %p2940_p4 = por %p2939_p1, %p2938_p0 }
  0x26   : > { %p2934_p13 = pneg %p2933_p12 }
  0x28   : > { %p2941_p7 = pnand %p2940_p4, %p2934_p13 }
  0x2a   : > { %2944 = shalt.err (!%p2941_p7)
}
  0x2b   : > { %2742 = dma.hbm_to_vmem [thread:$0]  (!%p3031_p5), %s3130_s7, 5120, %s3035_s14, [#allocation7], %s2964_s16, %s2964_s16, %s2965_s17  }
  0x2c   : > { %298 = sbr.rel (%p3023_p3) target bundleno = 875 (0x36b), region = 52 }
  0x31   : > { %2950 = dma.done.wait (%p2743_p2), [#allocation5], 7168  }
  0x32   : > { %2952 = vsyncadd (%p2743_p2), [#allocation5], 4294960128 }
  0x33   : > { %2954 = dma.done.wait (%p2743_p2), [#allocation7], 6144  }
  0x34   : > { %2956 = vsyncadd (%p2743_p2), [#allocation7], 4294961152  ;;  %v2966_v0 = vmov 0.0   ;;  %v2763_v1 = vld [vmem:[#allocation4 + $0x78] sm:$0xff]   ;;  %v2765_v3 = vld [vmem:[#allocation4 + $0x70] sm:$0xff]   ;;  %p340_p3 = scmp.lt.s32.totalorder %s3018_s28, 1 }
  0x35   : > { %351 = vst [vmem:[#allocation2] sm:$0xff] %v2966_v0  ;;  %360 = vst [vmem:[#allocation2 + $0x48] sm:$0x3] %v2966_v0  ;;  %v2764_v2 = vld [vmem:[#allocation4 + $0x38] sm:$0xff]   ;;  %2461 = vmatprep.subr.bf16.mxu0 %v2763_v1  ;;  %v2766_v4 = vld [vmem:[#allocation4 + $0x30] sm:$0xff]  }
  0x36   : > { %1439 = vst [vmem:[#allocation3] sm:$0xff] %v2966_v0  ;;  %1444 = vst [vmem:[#allocation3 + $0x28] sm:$0x3] %v2966_v0  ;;  %2481 = vmatprep.subr.bf16.mxu1 %v2764_v2  ;;  %2462 = vmatpush3.bf16.msra.mxu0 %v2763_v1  ;;  %v2767_v5 = vld [vmem:[#allocation4 + $0x68] sm:$0xff]   ;;  %s3135_s28 = smov (!%p340_p3, %s3018_s28), 1  ;;  %v2769_v7 = vld [vmem:[#allocation4 + $0x60] sm:$0xff]  }
  0x37   : > { %2482 = vmatpush3.bf16.msra.mxu1 %v2764_v2  ;;  %2463 = vmatprep.subr.bf16.mxu0 %v2765_v3  ;;  %v2768_v6 = vld [vmem:[#allocation4 + $0x28] sm:$0xff]   ;;  %v2770_v8 = vld [vmem:[#allocation4 + $0x20] sm:$0xff]   ;;  %s2295_s26 = sshll.u32 %s3135_s28, 5  ;;  %v2771_v9 = vld [vmem:[#allocation4 + $0x58] sm:$0xff]   ;;  %s2296_s18 = sshll.u32 %s3135_s28, 4 }
  0x38   : > { %2483 = vmatprep.subr.bf16.mxu1 %v2766_v4  ;;  %v2772_v10 = vld [vmem:[#allocation4 + $0x18] sm:$0xff]   ;;  %s344_s9 = scalar_lea.vmem %s3123_s0, %s2295_s26  ;;  %v2773_v11 = vld [vmem:[#allocation4 + $0x50] sm:$0xff]   ;;  %v2775_v25 = vld [vmem:[#allocation4 + $0x48] sm:$0xff]   ;;  %s349_s21 = scalar_lea.vmem %s3131_s8, %s2296_s18 }
  0x39   : > { %v2774_v12 = vld [vmem:[#allocation4 + $0x10] sm:$0xff]   ;;  %v2302_v13 = vld [vmem:[%s344_s9] sm:$0xff]   ;;  %v2327_v14 = vld [vmem:[%s344_s9 + $0x8] sm:$0xff]  }
  0x3a   : > { %2464 = vmatpush3.bf16.msra.mxu0 %v2765_v3  ;;  %v2328_v15 = vld [vmem:[%s344_s9 + $0x10] sm:$0xff]   ;;  %v2303_v16 = vunpack.c.l.bf16 %v2302_v13  ;;  %v2304_v17 = vunpack.c.h.bf16 %v2302_v13  ;;  %v2307_v18 = vunpack.c.l.bf16 %v2327_v14  ;;  %v2308_v19 = vunpack.c.h.bf16 %v2327_v14  ;;  %v2329_v20 = vld [vmem:[%s344_s9 + $0x18] sm:$0xff]   ;;  %v2776_v26 = vld [vmem:[#allocation4 + $0x8] sm:$0xff]  }
  0x3b   : > { %2484 = vmatpush3.bf16.msra.mxu1 %v2766_v4  ;;  %2465 = vmatprep.subr.bf16.mxu0 %v2767_v5  ;;  %v2311_v21 = vunpack.c.l.bf16 %v2328_v15  ;;  %v2312_v22 = vunpack.c.h.bf16 %v2328_v15  ;;  %v2315_v23 = vunpack.c.l.bf16 %v2329_v20  ;;  %v2316_v24 = vunpack.c.h.bf16 %v2329_v20  ;;  %v2777_v27 = vld [vmem:[#allocation4 + $0x40] sm:$0xff]   ;;  %v2779_v39 = vld [vmem:[#allocation4 + $0xb8] sm:$0xff]   ;;  %v2781_v43 = vld [vmem:[#allocation4 + $0xb0] sm:$0xff]  }
  0x3c   : > { %2485 = vmatprep.subr.bf16.mxu1 %v2768_v6  ;;  %377 = vst [vmem:[#allocation2 + $0x8] sm:$0xff] %v2303_v16  ;;  %378 = vst [vmem:[#allocation2 + $0x10] sm:$0xff] %v2304_v17  ;;  %v2778_v28 = vld [vmem:[#allocation4] sm:$0xff]   ;;  %v2780_v40 = vld [vmem:[#allocation4 + $0xf8] sm:$0xff]  }
  0x3d   : > { %379 = vst [vmem:[#allocation2 + $0x18] sm:$0xff] %v2307_v18  ;;  %380 = vst [vmem:[#allocation2 + $0x20] sm:$0xff] %v2308_v19  ;;  %v2782_v44 = vld [vmem:[#allocation4 + $0xf0] sm:$0xff]   ;;  %v2783_v45 = vld [vmem:[#allocation4 + $0xa8] sm:$0xff]  }
  0x3e   : > { %2466 = vmatpush3.bf16.msra.mxu0 %v2767_v5  ;;  %381 = vst [vmem:[#allocation2 + $0x28] sm:$0xff] %v2311_v21  ;;  %382 = vst [vmem:[#allocation2 + $0x30] sm:$0xff] %v2312_v22  ;;  %v2784_v48 = vld [vmem:[#allocation4 + $0xe8] sm:$0xff]   ;;  %v2785_v53 = vld [vmem:[#allocation4 + $0xa0] sm:$0xff]  }
  0x3f   : > { %2486 = vmatpush3.bf16.msra.mxu1 %v2768_v6  ;;  %2467 = vmatprep.subr.bf16.mxu0 %v2769_v7  ;;  %383 = vst [vmem:[#allocation2 + $0x38] sm:$0xff] %v2315_v23  ;;  %384 = vst [vmem:[#allocation2 + $0x40] sm:$0xff] %v2316_v24  ;;  %v2786_v54 = vld [vmem:[#allocation4 + $0xe0] sm:$0xff]   ;;  %v2787_v55 = vld [vmem:[#allocation4 + $0x98] sm:$0xff]  }
  0x40   : > { %2487 = vmatprep.subr.bf16.mxu1 %v2770_v8  ;;  %v2788_v56 = vld [vmem:[#allocation4 + $0xd8] sm:$0xff]   ;;  %v2789_v57 = vld [vmem:[#allocation4 + $0x90] sm:$0xff]   ;;  %v2791_v59 = vld [vmem:[#allocation4 + $0x88] sm:$0xff]  }
  0x41   : > { %v2790_v58 = vld [vmem:[#allocation4 + $0xd0] sm:$0xff]   ;;  %v2792_v60 = vld [vmem:[#allocation4 + $0xc8] sm:$0xff]   ;;  %v2793_v61 = vld [vmem:[#allocation4 + $0x80] sm:$0xff]  }
  0x42   : > { %2468 = vmatpush3.bf16.msra.mxu0 %v2769_v7  ;;  %v2794_v62 = vld [vmem:[#allocation4 + $0xc0] sm:$0xff]   ;;  %v2795_v1 = vld [vmem:[#allocation4 + $0x138] sm:$0xff]   ;;  %v2799_v14 = vld [vmem:[#allocation4 + $0x128] sm:$0xff]  }
  0x43   : > { %2488 = vmatpush3.bf16.msra.mxu1 %v2770_v8  ;;  %2469 = vmatprep.subr.bf16.mxu0 %v2771_v9  ;;  %v412_v29 = vld [vmem:[#allocation2 + $0x6] ss:$2 sm:$0xff]  ;;  %v386_v31 = vld [vmem:[#allocation2 + $0x5] ss:$2 sm:$0xff]  ;;  %v2796_v4 = vld [vmem:[#allocation4 + $0x178] sm:$0xff]  }
  0x44   : > { %2489 = vmatprep.subr.bf16.mxu1 %v2772_v10  ;;  %v414_v30 = vld [vmem:[#allocation2 + $0x16] ss:$2 sm:$0xff]  ;;  %v388_v33 = vld [vmem:[#allocation2 + $0x15] ss:$2 sm:$0xff]  ;;  %v2800_v16 = vld [vmem:[#allocation4 + $0x168] sm:$0xff]  }
  0x45   : > { %v419_v32 = vpack.c.bf16 %v414_v30, %v412_v29  ;;  %v416_v34 = vld [vmem:[#allocation2 + $0x26] ss:$2 sm:$0xff]  ;;  %v393_v36 = vpack.c.bf16 %v388_v33, %v386_v31  ;;  %v390_v37 = vld [vmem:[#allocation2 + $0x25] ss:$2 sm:$0xff]  ;;  %v2803_v19 = vld [vmem:[#allocation4 + $0x118] sm:$0xff]  }
  0x46   : > { %2470 = vmatpush3.bf16.msra.mxu0 %v2771_v9  ;;  %v418_v35 = vld [vmem:[#allocation2 + $0x36] ss:$2 sm:$0xff]  ;;  %v392_v38 = vld [vmem:[#allocation2 + $0x35] ss:$2 sm:$0xff]  ;;  %v2807_v23 = vld [vmem:[#allocation4 + $0x108] sm:$0xff]  }
  0x47   : > { %2490 = vmatpush3.bf16.msra.mxu1 %v2772_v10  ;;  %2471 = vmatprep.subr.bf16.mxu0 %v2773_v11  ;;  %v420_v41 = vpack.c.bf16 %v418_v35, %v416_v34  ;;  %v394_v42 = vpack.c.bf16 %v392_v38, %v390_v37  ;;  %v633_v46 = vld [vmem:[#allocation2 + $0x7] ss:$2 sm:$0xff]  ;;  %v635_v47 = vld [vmem:[#allocation2 + $0x17] ss:$2 sm:$0xff]  ;;  %v761_v50 = vld [vmem:[#allocation2 + $0x8] ss:$2 sm:$0xff] }
  0x48   : > { %2491 = vmatprep.subr.bf16.mxu1 %v2774_v12  ;;  %2477 = vmatprep.mubr.bf16.mxu0 %v419_v32  ;;  %v640_v49 = vpack.c.bf16 %v635_v47, %v633_v46  ;;  %v763_v51 = vld [vmem:[#allocation2 + $0x18] ss:$2 sm:$0xff]  ;;  %v637_v63 = vld [vmem:[#allocation2 + $0x27] ss:$2 sm:$0xff]  ;;  %v639_v0 = vld [vmem:[#allocation2 + $0x37] ss:$2 sm:$0xff] }
  0x49   : > { %2497 = vmatprep.mubr.bf16.mxu1 %v393_v36  ;;  %v768_v52 = vpack.c.bf16 %v763_v51, %v761_v50  ;;  %v765_v2 = vld [vmem:[#allocation2 + $0x28] ss:$2 sm:$0xff]  ;;  %v767_v3 = vld [vmem:[#allocation2 + $0x38] ss:$2 sm:$0xff]  ;;  %v889_v5 = vld [vmem:[#allocation2 + $0x9] ss:$2 sm:$0xff]  ;;  %v641_v7 = vpack.c.bf16 %v639_v0, %v637_v63 }
  0x4a   : > { %2472 = vmatpush3.bf16.msra.mxu0 %v2773_v11  ;;  %v891_v6 = vld [vmem:[#allocation2 + $0x19] ss:$2 sm:$0xff]  ;;  %v1017_v8 = vld [vmem:[#allocation2 + $0xa] ss:$2 sm:$0xff]  ;;  %v769_v9 = vpack.c.bf16 %v767_v3, %v765_v2  ;;  %v1019_v10 = vld [vmem:[#allocation2 + $0x1a] ss:$2 sm:$0xff] }
  0x4b   : > { %2492 = vmatpush3.bf16.msra.mxu1 %v2774_v12  ;;  %2473 = vmatprep.subr.bf16.mxu0 %v2775_v25  ;;  %v2797_v11 = vld [vmem:[#allocation4 + $0x130] sm:$0xff]   ;;  %v896_v13 = vpack.c.bf16 %v891_v6, %v889_v5  ;;  %v1024_v15 = vpack.c.bf16 %v1019_v10, %v1017_v8  ;;  %v2801_v17 = vld [vmem:[#allocation4 + $0x120] sm:$0xff]   ;;  %v2804_v20 = vld [vmem:[#allocation4 + $0x158] sm:$0xff]  }
  0x4c   : > { %2493 = vmatprep.subr.bf16.mxu1 %v2776_v26  ;;  %v2798_v12 = vld [vmem:[#allocation4 + $0x170] sm:$0xff]   ;;  %v2802_v18 = vld [vmem:[#allocation4 + $0x160] sm:$0xff]   ;;  %v2808_v24 = vld [vmem:[#allocation4 + $0x148] sm:$0xff]  }
  0x4d   : > { %v2805_v21 = vld [vmem:[#allocation4 + $0x110] sm:$0xff]   ;;  %v2811_v29 = vld [vmem:[#allocation4 + $0x1b8] sm:$0xff]   ;;  %v2813_v38 = vld [vmem:[#allocation4 + $0x1a8] sm:$0xff]  }
  0x4e   : > { %2474 = vmatpush3.bf16.msra.mxu0 %v2775_v25  ;;  %v2806_v22 = vld [vmem:[#allocation4 + $0x150] sm:$0xff]   ;;  %v2809_v25 = vld [vmem:[#allocation4 + $0x100] sm:$0xff]   ;;  %v2819_v47 = vld [vmem:[#allocation6 + $0x38] sm:$0xff]  }
  0x4f   : > { %2494 = vmatpush3.bf16.msra.mxu1 %v2776_v26  ;;  %2475 = vmatprep.subr.bf16.mxu0 %v2777_v27  ;;  %v2810_v26 = vld [vmem:[#allocation4 + $0x140] sm:$0xff]   ;;  %v1021_v30 = vld [vmem:[#allocation2 + $0x2a] ss:$2 sm:$0xff]  ;;  %v1145_v32 = vld [vmem:[#allocation2 + $0xb] ss:$2 sm:$0xff] }
  0x50   : > { %2495 = vmatprep.subr.bf16.mxu1 %v2778_v28  ;;  %v1023_v31 = vld [vmem:[#allocation2 + $0x3a] ss:$2 sm:$0xff]  ;;  %v1147_v33 = vld [vmem:[#allocation2 + $0x1b] ss:$2 sm:$0xff]  ;;  %v2812_v35 = vld [vmem:[#allocation4 + $0x1b0] sm:$0xff]  }
  0x51   : > { %v1025_v36 = vpack.c.bf16 %v1023_v31, %v1021_v30  ;;  %v1152_v37 = vpack.c.bf16 %v1147_v33, %v1145_v32  ;;  %v2822_v50 = vld [vmem:[#allocation6 + $0x20] sm:$0xff]   ;;  %v2823_v51 = vld [vmem:[#allocation6 + $0x18] sm:$0xff]  }
  0x52   : > { %2476 = vmatpush3.bf16.msra.mxu0 %v2777_v27  ;;  %v893_v27 = vld [vmem:[#allocation2 + $0x29] ss:$2 sm:$0xff] }
  0x53   : > { %2496 = vmatpush3.bf16.msra.mxu1 %v2778_v28  ;;  %2501 = vmatprep.subr.bf16.mxu0 %v2779_v39  ;;  %v895_v28 = vld [vmem:[#allocation2 + $0x39] ss:$2 sm:$0xff] }
  0x54   : > { %2521 = vmatprep.subr.bf16.mxu1 %v2780_v40  ;;  %v897_v34 = vpack.c.bf16 %v895_v28, %v893_v27 }
  0x55   : > { %2478 = vmatmul.mubr.bf16.vlgmr.msra.gmra.mxu0 %v420_v41  ;;  %v2816_v41 = vld [vmem:[#allocation4 + $0x190] sm:$0xff]  }
  0x56   : > { %2498 = vmatmul.mubr.bf16.vlgmr.msra.gmra.mxu1 %v394_v42  ;;  %2502 = vmatpush3.bf16.msra.mxu0 %v2779_v39  ;;  %v2814_v39 = vld [vmem:[#allocation4 + $0x1a0] sm:$0xff]   ;;  %v2817_v42 = vld [vmem:[#allocation4 + $0x188] sm:$0xff]  }
  0x57   : > { %2522 = vmatpush3.bf16.msra.mxu1 %v2780_v40  ;;  %2503 = vmatprep.subr.bf16.mxu0 %v2781_v43  ;;  %v2815_v40 = vld [vmem:[#allocation4 + $0x198] sm:$0xff]  }
  0x58   : > { %2523 = vmatprep.subr.bf16.mxu1 %v2782_v44  ;;  %2517 = vmatprep.mubr.bf16.mxu0 %v640_v49  ;;  %v2821_v49 = vld [vmem:[#allocation6 + $0x28] sm:$0xff]  }
  0x59   : > { %2537 = vmatprep.mubr.bf16.mxu1 %v768_v52  ;;  %v2824_v52 = vld [vmem:[#allocation6 + $0x10] sm:$0xff]  }
  0x5a   : > { %2504 = vmatpush3.bf16.msra.mxu0 %v2781_v43  ;;  %v2818_v43 = vld [vmem:[#allocation4 + $0x180] sm:$0xff]  }
  0x5b   : > { %2524 = vmatpush3.bf16.msra.mxu1 %v2782_v44  ;;  %2505 = vmatprep.subr.bf16.mxu0 %v2783_v45  ;;  %v1149_v44 = vld [vmem:[#allocation2 + $0x2b] ss:$2 sm:$0xff] }
  0x5c   : > { %2525 = vmatprep.subr.bf16.mxu1 %v2784_v48 }
  0x5e   : > { %2506 = vmatpush3.bf16.msra.mxu0 %v2783_v45  ;;  %v1151_v45 = vld [vmem:[#allocation2 + $0x3b] ss:$2 sm:$0xff] }
  0x5f   : > { %2526 = vmatpush3.bf16.msra.mxu1 %v2784_v48  ;;  %2507 = vmatprep.subr.bf16.mxu0 %v2785_v53  ;;  %v1153_v46 = vpack.c.bf16 %v1151_v45, %v1149_v44  ;;  %v2820_v48 = vld [vmem:[#allocation6 + $0x30] sm:$0xff]  }
  0x60   : > { %2527 = vmatprep.subr.bf16.mxu1 %v2786_v54 }
  0x62   : > { %2508 = vmatpush3.bf16.msra.mxu0 %v2785_v53  ;;  %v2825_v53 = vld [vmem:[#allocation6 + $0x8] sm:$0xff]  }
  0x63   : > { %2528 = vmatpush3.bf16.msra.mxu1 %v2786_v54  ;;  %2509 = vmatprep.subr.bf16.mxu0 %v2787_v55  ;;  %v2826_v54 = vld [vmem:[#allocation6] sm:$0xff]  }
  0x64   : > { %2529 = vmatprep.subr.bf16.mxu1 %v2788_v56 }
  0x66   : > { %2510 = vmatpush3.bf16.msra.mxu0 %v2787_v55  ;;  %v2827_v55 = vld [vmem:[#allocation8 + $0x78] sm:$0xff]  }
  0x67   : > { %2530 = vmatpush3.bf16.msra.mxu1 %v2788_v56  ;;  %2511 = vmatprep.subr.bf16.mxu0 %v2789_v57  ;;  %v3086_v56 = vld [vmem:[#allocation8 + $0x38] sm:$0xff]  }
  0x68   : > { %2531 = vmatprep.subr.bf16.mxu1 %v2790_v58 }
  0x6a   : > { %2512 = vmatpush3.bf16.msra.mxu0 %v2789_v57  ;;  %v2829_v57 = vld [vmem:[#allocation8 + $0x70] sm:$0xff]  }
  0x6b   : > { %2532 = vmatpush3.bf16.msra.mxu1 %v2790_v58  ;;  %2513 = vmatprep.subr.bf16.mxu0 %v2791_v59  ;;  %v2831_v58 = vld [vmem:[#allocation8 + $0x68] sm:$0xff]  }
  0x6c   : > { %2533 = vmatprep.subr.bf16.mxu1 %v2792_v60 }
  0x6e   : > { %2514 = vmatpush3.bf16.msra.mxu0 %v2791_v59 }
  0x6f   : > { %2534 = vmatpush3.bf16.msra.mxu1 %v2792_v60  ;;  %2515 = vmatprep.subr.bf16.mxu0 %v2793_v61 }
  0x70   : > { %2535 = vmatprep.subr.bf16.mxu1 %v2794_v62 }
  0x72   : > { %2516 = vmatpush3.bf16.msra.mxu0 %v2793_v61 }
  0x73   : > { %2536 = vmatpush3.bf16.msra.mxu1 %v2794_v62  ;;  %2541 = vmatprep.subr.bf16.mxu0 %v2795_v1 }
  0x74   : > { %2561 = vmatprep.subr.bf16.mxu1 %v2796_v4 }
  0x75   : > { %2518 = vmatmul.mubr.bf16.vlgmr.msra.gmra.mxu0 %v641_v7 }
  0x76   : > { %2542 = vmatpush3.bf16.msra.mxu0 %v2795_v1  ;;  %2538 = vmatmul.mubr.bf16.vlgmr.msra.gmra.mxu1 %v769_v9 }
  0x77   : > { %2562 = vmatpush3.bf16.msra.mxu1 %v2796_v4  ;;  %2543 = vmatprep.subr.bf16.mxu0 %v2797_v11 }
  0x78   : > { %2563 = vmatprep.subr.bf16.mxu1 %v2798_v12  ;;  %2557 = vmatprep.mubr.bf16.mxu0 %v896_v13 }
  0x79   : > { %2577 = vmatprep.mubr.bf16.mxu1 %v1024_v15 }
  0x7a   : > { %2544 = vmatpush3.bf16.msra.mxu0 %v2797_v11 }
  0x7b   : > { %2564 = vmatpush3.bf16.msra.mxu1 %v2798_v12  ;;  %2545 = vmatprep.subr.bf16.mxu0 %v2799_v14 }
  0x7c   : > { %2565 = vmatprep.subr.bf16.mxu1 %v2800_v16 }
  0x7e   : > { %2546 = vmatpush3.bf16.msra.mxu0 %v2799_v14 }
  0x7f   : > { %2566 = vmatpush3.bf16.msra.mxu1 %v2800_v16  ;;  %2547 = vmatprep.subr.bf16.mxu0 %v2801_v17 }
  0x80   : > { %2567 = vmatprep.subr.bf16.mxu1 %v2802_v18 }
  0x82   : > { %2548 = vmatpush3.bf16.msra.mxu0 %v2801_v17 }
  0x83   : > { %2568 = vmatpush3.bf16.msra.mxu1 %v2802_v18  ;;  %2549 = vmatprep.subr.bf16.mxu0 %v2803_v19 }
  0x84   : > { %2569 = vmatprep.subr.bf16.mxu1 %v2804_v20 }
  0x86   : > { %2550 = vmatpush3.bf16.msra.mxu0 %v2803_v19 }
  0x87   : > { %2570 = vmatpush3.bf16.msra.mxu1 %v2804_v20  ;;  %2551 = vmatprep.subr.bf16.mxu0 %v2805_v21 }
  0x88   : > { %2571 = vmatprep.subr.bf16.mxu1 %v2806_v22 }
  0x8a   : > { %2552 = vmatpush3.bf16.msra.mxu0 %v2805_v21 }
  0x8b   : > { %2572 = vmatpush3.bf16.msra.mxu1 %v2806_v22  ;;  %2553 = vmatprep.subr.bf16.mxu0 %v2807_v23 }
  0x8c   : > { %2573 = vmatprep.subr.bf16.mxu1 %v2808_v24 }
  0x8e   : > { %2554 = vmatpush3.bf16.msra.mxu0 %v2807_v23 }
  0x8f   : > { %2574 = vmatpush3.bf16.msra.mxu1 %v2808_v24  ;;  %2555 = vmatprep.subr.bf16.mxu0 %v2809_v25 }
  0x90   : > { %2575 = vmatprep.subr.bf16.mxu1 %v2810_v26 }
  0x92   : > { %2556 = vmatpush3.bf16.msra.mxu0 %v2809_v25 }
  0x93   : > { %2576 = vmatpush3.bf16.msra.mxu1 %v2810_v26  ;;  %2581 = vmatprep.subr.bf16.mxu0 %v2811_v29 }
  0x94   : > { %2601 = vmatprep.subr.bf16.mxu1 %v2819_v47 }
  0x95   : > { %2558 = vmatmul.mubr.bf16.vlgmr.msra.gmra.mxu0 %v897_v34 }
  0x96   : > { %2582 = vmatpush3.bf16.msra.mxu0 %v2811_v29  ;;  %2578 = vmatmul.mubr.bf16.vlgmr.msra.gmra.mxu1 %v1025_v36 }
  0x97   : > { %2583 = vmatprep.subr.bf16.mxu0 %v2812_v35  ;;  %2597 = vmatprep.mubr.bf16.mxu0 %v1152_v37 }
  0x98   : > { %2602 = vmatpush3.bf16.msra.mxu1 %v2819_v47 }
  0x99   : > { %2603 = vmatprep.subr.bf16.mxu1 %v2820_v48 }
  0x9a   : > { %2584 = vmatpush3.bf16.msra.mxu0 %v2812_v35 }
  0x9b   : > { %2585 = vmatprep.subr.bf16.mxu0 %v2813_v38 }
  0x9c   : > { %2604 = vmatpush3.bf16.msra.mxu1 %v2820_v48 }
  0x9d   : > { %2605 = vmatprep.subr.bf16.mxu1 %v2821_v49 }
  0x9e   : > { %2586 = vmatpush3.bf16.msra.mxu0 %v2813_v38 }
  0x9f   : > { %2587 = vmatprep.subr.bf16.mxu0 %v2814_v39 }
  0xa0   : > { %2606 = vmatpush3.bf16.msra.mxu1 %v2821_v49  ;;  %v2238_v49 = vld [vmem:[%s3126_s3] ss:$0 sm:$0xff] }
  0xa1   : > { %2607 = vmatprep.subr.bf16.mxu1 %v2822_v50 }
  0xa2   : > { %2588 = vmatpush3.bf16.msra.mxu0 %v2814_v39 }
  0xa3   : > { %2589 = vmatprep.subr.bf16.mxu0 %v2815_v40 }
  0xa4   : > { %2608 = vmatpush3.bf16.msra.mxu1 %v2822_v50 }
  0xa5   : > { %2609 = vmatprep.subr.bf16.mxu1 %v2823_v51 }
  0xa6   : > { %2590 = vmatpush3.bf16.msra.mxu0 %v2815_v40 }
  0xa7   : > { %2591 = vmatprep.subr.bf16.mxu0 %v2816_v41 }
  0xa8   : > { %2610 = vmatpush3.bf16.msra.mxu1 %v2823_v51 }
  0xa9   : > { %2611 = vmatprep.subr.bf16.mxu1 %v2824_v52 }
  0xaa   : > { %2592 = vmatpush3.bf16.msra.mxu0 %v2816_v41  ;;  %v2237_v41 = vld [vmem:[%s3125_s2] ss:$0 sm:$0xff] }
  0xab   : > { %2593 = vmatprep.subr.bf16.mxu0 %v2817_v42 }
  0xac   : > { %2612 = vmatpush3.bf16.msra.mxu1 %v2824_v52 }
  0xad   : > { %2613 = vmatprep.subr.bf16.mxu1 %v2825_v53 }
  0xae   : > { %2594 = vmatpush3.bf16.msra.mxu0 %v2817_v42 }
  0xaf   : > { %2595 = vmatprep.subr.bf16.mxu0 %v2818_v43 }
  0xb0   : > { %2614 = vmatpush3.bf16.msra.mxu1 %v2825_v53 }
  0xb1   : > { %2615 = vmatprep.subr.bf16.mxu1 %v2826_v54 }
  0xb2   : > { %2596 = vmatpush3.bf16.msra.mxu0 %v2818_v43 }
  0xb3   : > { %2621 = vmatprep.subr.bf16.mxu0 %v2827_v55 }
  0xb4   : > { %2616 = vmatpush3.bf16.msra.mxu1 %v2826_v54 }
  0xb5   : > { %2598 = vmatmul.mubr.bf16.vlgmr.msra.gmra.mxu0 %v1153_v46  ;;  %2641 = vmatprep.subr.bf16.mxu1 %v3086_v56 }
  0xb6   : > { %2622 = vmatpush3.bf16.msra.mxu0 %v2827_v55 }
  0xb7   : > { %2623 = vmatprep.subr.bf16.mxu0 %v2829_v57 }
  0xba   : > { %2624 = vmatpush3.bf16.msra.mxu0 %v2829_v57 }
  0xbb   : > { %2625 = vmatprep.subr.bf16.mxu0 %v2831_v58 }
  0xbe   : > { %2626 = vmatpush3.bf16.msra.mxu0 %v2831_v58 }
 0x115   : > { %v2479_v59 = vpop.f32.mrf.mxu0 }
 0x116   : > { %v2499_v60 = vpop.f32.mrf.mxu1 }
 0x117   : > { %v520_v61 = vpop.f32.mrf.mxu0  ;;  %v626_v11 = vadd.f32 %v2499_v60, %v2479_v59 }
 0x118   : > { %v617_v62 = vpop.f32.mrf.mxu1 }
 0x119   : > { %v2480_v63 = vpop.f32.mrf.mxu0  ;;  %v618_v13 = vadd.f32 %v617_v62, %v520_v61 }
 0x11a   : > { %v2500_v0 = vpop.f32.mrf.mxu1 }
 0x11b   : > { %v523_v1 = vpop.f32.mrf.mxu0  ;;  %v629_v17 = vadd.f32 %v2500_v0, %v2480_v63  ;;  %v2830_v0 = vld [vmem:[#allocation8 + $0x30] sm:$0xff]  }
 0x11c   : > { %v620_v3 = vpop.f32.mrf.mxu1 }
 0x11d   : > { %v621_v19 = vadd.f32 %v620_v3, %v523_v1  ;;  %v2832_v1 = vld [vmem:[#allocation8 + $0x28] sm:$0xff]   ;;  %v2834_v3 = vld [vmem:[#allocation8 + $0x20] sm:$0xff]  }
 0x135   : > { %v2519_v2 = vpop.f32.mrf.mxu0 }
 0x136   : > { %v2539_v5 = vpop.f32.mrf.mxu1  ;;  %v758_v14 = vadd.f32 %v2519_v2, %v626_v11  ;;  %v2833_v2 = vld [vmem:[#allocation8 + $0x60] sm:$0xff]   ;;  %v2843_v11 = vld [vmem:[#allocation8 + $0xb8] sm:$0xff]  }
 0x137   : > { %v741_v4 = vpop.f32.mrf.mxu0  ;;  %2627 = vmatprep.subr.bf16.mxu0 %v2833_v2 }
 0x138   : > { %v869_v7 = vpop.f32.mrf.mxu1  ;;  %v756_v18 = vadd.f32 %v741_v4, %v618_v13  ;;  %v886_v21 = vadd.f32 %v2539_v5, %v758_v14  ;;  %2628 = vmatpush3.bf16.msra.mxu0 %v2833_v2  ;;  %v2835_v4 = vld [vmem:[#allocation8 + $0x58] sm:$0xff]   ;;  %v2247_v13 = vld [vmem:[%s3128_s5] ss:$0 sm:$0xff] }
 0x139   : > { %v2520_v6 = vpop.f32.mrf.mxu0  ;;  %v2836_v5 = vld [vmem:[#allocation8 + $0x18] sm:$0xff]   ;;  %2629 = vmatprep.subr.bf16.mxu0 %v2835_v4 }
 0x13a   : > { %v2540_v9 = vpop.f32.mrf.mxu1  ;;  %v759_v20 = vadd.f32 %v2520_v6, %v629_v17  ;;  %v884_v24 = vadd.f32 %v869_v7, %v756_v18  ;;  %v2837_v6 = vld [vmem:[#allocation8 + $0x50] sm:$0xff]  }
 0x13b   : > { %v744_v8 = vpop.f32.mrf.mxu0  ;;  %v2838_v7 = vld [vmem:[#allocation8 + $0x10] sm:$0xff]  }
 0x13c   : > { %v872_v12 = vpop.f32.mrf.mxu1  ;;  %v757_v25 = vadd.f32 %v744_v8, %v621_v19  ;;  %v887_v27 = vadd.f32 %v2540_v9, %v759_v20  ;;  %2630 = vmatpush3.bf16.msra.mxu0 %v2835_v4  ;;  %v2840_v8 = vld [vmem:[#allocation8 + $0x8] sm:$0xff]   ;;  %v2841_v9 = vld [vmem:[#allocation8 + $0x40] sm:$0xff]  }
 0x13d   : > { %2631 = vmatprep.subr.bf16.mxu0 %v2837_v6 }
 0x13e   : > { %v885_v31 = vadd.f32 %v872_v12, %v757_v25  ;;  %v2844_v12 = vld [vmem:[#allocation8 + $0xf8] sm:$0xff]  }
 0x140   : > { %2632 = vmatpush3.bf16.msra.mxu0 %v2837_v6 }
 0x155   : > { %v2559_v10 = vpop.f32.mrf.mxu0 }
 0x156   : > { %v2579_v16 = vpop.f32.mrf.mxu1  ;;  %v1014_v26 = vadd.f32 %v2559_v10, %v886_v21  ;;  %v2842_v10 = vld [vmem:[#allocation8] sm:$0xff]  }
 0x157   : > { %v997_v15 = vpop.f32.mrf.mxu0 }
 0x158   : > { %v1125_v23 = vpop.f32.mrf.mxu1  ;;  %v1012_v28 = vadd.f32 %v997_v15, %v884_v24  ;;  %v1142_v33 = vadd.f32 %v2579_v16, %v1014_v26  ;;  %v2248_v15 = vld [vmem:[%s3129_s6] ss:$0 sm:$0xff] }
 0x159   : > { %v2560_v22 = vpop.f32.mrf.mxu0 }
 0x15a   : > { %v2580_v30 = vpop.f32.mrf.mxu1  ;;  %v1015_v32 = vadd.f32 %v2560_v22, %v887_v27  ;;  %v1140_v35 = vadd.f32 %v1125_v23, %v1012_v28 }
 0x15b   : > { %v1000_v29 = vpop.f32.mrf.mxu0 }
 0x15c   : > { %v1013_v36 = vadd.f32 %v1000_v29, %v885_v31  ;;  %v1128_v37 = vpop.f32.mrf.mxu1  ;;  %v1143_v40 = vadd.f32 %v2580_v30, %v1015_v32 }
 0x15e   : > { %v1141_v44 = vadd.f32 %v1128_v37, %v1013_v36 }
 0x175   : > { %v2599_v34 = vpop.f32.mrf.mxu0 }
 0x176   : > { %v1270_v38 = vadd.f32 %v2599_v34, %v1142_v33 }
 0x177   : > { %v1253_v39 = vpop.f32.mrf.mxu0 }
 0x178   : > { %v1268_v42 = vadd.f32 %v1253_v39, %v1140_v35  ;;  %v1281_v47 = vmul.f32 %v2237_v41, %v1270_v38 }
 0x179   : > { %v2600_v43 = vpop.f32.mrf.mxu0 }
 0x17a   : > { %v1279_v45 = vmul.f32 %v2237_v41, %v1268_v42  ;;  %v1271_v46 = vadd.f32 %v2600_v43, %v1143_v40  ;;  %v1292_v55 = vadd.f32 %v2238_v49, %v1281_v47 }
 0x17b   : > { %v1256_v48 = vpop.f32.mrf.mxu0 }
 0x17c   : > { %v1282_v50 = vmul.f32 %v2237_v41, %v1271_v46  ;;  %v1269_v51 = vadd.f32 %v1256_v48, %v1141_v44  ;;  %v1290_v52 = vadd.f32 %v2238_v49, %v1279_v45  ;;  %v1296_v61 = vmax.f32 %v1292_v55, 0.0  ;;  %v2845_v45 = vld [vmem:[#allocation8 + $0xb0] sm:$0xff]  }
 0x17d   : > { %v2846_v46 = vld [vmem:[#allocation8 + $0xf0] sm:$0xff]  }
 0x17e   : > { %v1293_v53 = vadd.f32 %v2238_v49, %v1282_v50  ;;  %v1280_v54 = vmul.f32 %v2237_v41, %v1269_v51  ;;  %v1294_v59 = vmax.f32 %v1290_v52, 0.0  ;;  %v2848_v50 = vld [vmem:[#allocation8 + $0xe8] sm:$0xff]   ;;  %v2849_v51 = vld [vmem:[#allocation8 + $0xa0] sm:$0xff]   ;;  %v2853_v55 = vld [vmem:[#allocation8 + $0x90] sm:$0xff]  }
 0x17f   : > { %v2850_v52 = vld [vmem:[#allocation8 + $0xe0] sm:$0xff]  }
 0x180   : > { %v1291_v57 = vadd.f32 %v2238_v49, %v1280_v54  ;;  %v1297_v58 = vmax.f32 %v1293_v53, 0.0  ;;  %v2847_v49 = vld [vmem:[#allocation8 + $0xa8] sm:$0xff]   ;;  %v2851_v53 = vld [vmem:[#allocation8 + $0x98] sm:$0xff]  }
 0x181   : > { %v2852_v54 = vld [vmem:[#allocation8 + $0xd8] sm:$0xff]  }
 0x182   : > { %v1295_v60 = vmax.f32 %v1291_v57, 0.0  ;;  %v1299_v63 = vpack.c.bf16 %v1297_v58, %v1296_v61  ;;  %v2854_v57 = vld [vmem:[#allocation8 + $0xd0] sm:$0xff]   ;;  %v2855_v58 = vld [vmem:[#allocation8 + $0x88] sm:$0xff]   ;;  %v2858_v61 = vld [vmem:[#allocation8 + $0xc0] sm:$0xff]  }
 0x184   : > { %v1298_v62 = vpack.c.bf16 %v1295_v60, %v1294_v59  ;;  %v2856_v59 = vld [vmem:[#allocation8 + $0xc8] sm:$0xff]   ;;  %v2857_v60 = vld [vmem:[#allocation8 + $0x80] sm:$0xff]  }
 0x186   : > { %2617 = vmatprep.mubr.bf16.mxu1 %v1298_v62  ;;  %v2859_v62 = vld [vmem:[#allocation8 + $0x138] sm:$0xff]  }
 0x187   : > { %2618 = vmatmul.mubr.bf16.vlgmr.msra.gmra.mxu1 %v1299_v63 }
 0x188   : > { %2642 = vmatpush3.bf16.msra.mxu1 %v3086_v56  ;;  %v2839_v56 = vld [vmem:[#allocation8 + $0x48] sm:$0xff]  }
 0x189   : > { %2643 = vmatprep.subr.bf16.mxu1 %v2830_v0  ;;  %2633 = vmatprep.subr.bf16.mxu0 %v2839_v56 }
 0x18a   : > { %2634 = vmatpush3.bf16.msra.mxu0 %v2839_v56  ;;  %v2862_v56 = vld [vmem:[#allocation8 + $0x120] sm:$0xff]  }
 0x18b   : > { %2635 = vmatprep.subr.bf16.mxu0 %v2841_v9 }
 0x18c   : > { %2644 = vmatpush3.bf16.msra.mxu1 %v2830_v0 }
 0x18d   : > { %2645 = vmatprep.subr.bf16.mxu1 %v2832_v1 }
 0x18e   : > { %2636 = vmatpush3.bf16.msra.mxu0 %v2841_v9  ;;  %v2864_v9 = vld [vmem:[#allocation8 + $0x110] sm:$0xff]  }
 0x18f   : > { %2661 = vmatprep.subr.bf16.mxu0 %v2843_v11 }
 0x190   : > { %2646 = vmatpush3.bf16.msra.mxu1 %v2832_v1 }
 0x191   : > { %2647 = vmatprep.subr.bf16.mxu1 %v2834_v3 }
 0x194   : > { %2648 = vmatpush3.bf16.msra.mxu1 %v2834_v3 }
 0x195   : > { %2649 = vmatprep.subr.bf16.mxu1 %v2836_v5 }
 0x198   : > { %2650 = vmatpush3.bf16.msra.mxu1 %v2836_v5  ;;  %v2860_v5 = vld [vmem:[#allocation8 + $0x130] sm:$0xff]  }
 0x199   : > { %2651 = vmatprep.subr.bf16.mxu1 %v2838_v7 }
 0x19c   : > { %2652 = vmatpush3.bf16.msra.mxu1 %v2838_v7  ;;  %v2861_v7 = vld [vmem:[#allocation8 + $0x128] sm:$0xff]  }
 0x19d   : > { %2653 = vmatprep.subr.bf16.mxu1 %v2840_v8 }
 0x1a0   : > { %2654 = vmatpush3.bf16.msra.mxu1 %v2840_v8  ;;  %v2863_v8 = vld [vmem:[#allocation8 + $0x118] sm:$0xff]  }
 0x1a1   : > { %2655 = vmatprep.subr.bf16.mxu1 %v2842_v10 }
 0x1a4   : > { %2656 = vmatpush3.bf16.msra.mxu1 %v2842_v10  ;;  %v2865_v10 = vld [vmem:[#allocation8 + $0x108] sm:$0xff]  }
 0x1a5   : > { %2681 = vmatprep.subr.bf16.mxu1 %v2844_v12 }
 0x247   : > { %v2619_v14 = vpop.f32.mrf.mxu1 }
 0x248   : > { %v1422_v16 = vmul.f32 %v2619_v14, %v2247_v13 }
 0x249   : > { %v1398_v17 = vpop.f32.mrf.mxu1 }
 0x24a   : > { %v3102_v18 = vadd.f32 %v2248_v15, %v1422_v16  ;;  %v1420_v19 = vmul.f32 %v2247_v13, %v1398_v17 }
 0x24b   : > { %v2620_v20 = vpop.f32.mrf.mxu1 }
 0x24c   : > { %v1437_v21 = vmax.f32 %v3102_v18, 0.0  ;;  %v1431_v22 = vadd.f32 %v2248_v15, %v1420_v19  ;;  %v1423_v23 = vmul.f32 %v2620_v20, %v2247_v13 }
 0x24d   : > { %v1401_v24 = vpop.f32.mrf.mxu1 }
 0x24e   : > { %1447 = vst [vmem:[#allocation3 + $0x18] sm:$0xff] %v1437_v21  ;;  %v1435_v25 = vmax.f32 %v1431_v22, 0.0  ;;  %v3107_v26 = vadd.f32 %v2248_v15, %v1423_v23  ;;  %v1421_v27 = vmul.f32 %v2247_v13, %v1401_v24 }
 0x250   : > { %1445 = vst [vmem:[#allocation3 + $0x8] sm:$0xff] %v1435_v25  ;;  %v1438_v28 = vmax.f32 %v3107_v26, 0.0  ;;  %v1432_v29 = vadd.f32 %v2248_v15, %v1421_v27 }
 0x252   : > { %1448 = vst [vmem:[#allocation3 + $0x20] sm:$0xff] %v1438_v28  ;;  %v1436_v30 = vmax.f32 %v1432_v29, 0.0  ;;  %v1693_v3 = vpack.c.bf16 %v1438_v28, %v1437_v21 }
 0x254   : > { %1446 = vst [vmem:[#allocation3 + $0x10] sm:$0xff] %v1436_v30  ;;  %v1692_v47 = vpack.c.bf16 %v1436_v30, %v1435_v25 }
 0x257   : > { %v1471_v31 = vld [vmem:[#allocation3 + $0x7] sm:$0xff] }
 0x258   : > { %v1449_v32 = vld [vmem:[#allocation3 + $0x6] sm:$0xff] }
 0x259   : > { %v1474_v33 = vld [vmem:[#allocation3 + $0x1f] sm:$0xff] }
 0x25a   : > { %v1452_v34 = vld [vmem:[#allocation3 + $0x1e] sm:$0xff] }
 0x25b   : > { %v1472_v35 = vld [vmem:[#allocation3 + $0xf] sm:$0xff]  ;;  %v1473_v37 = vld [vmem:[#allocation3 + $0x17] sm:$0xff]  ;;  %v1815_v0 = vld [vmem:[#allocation3 + $0x21] sm:$0xff] }
 0x25c   : > { %v1450_v36 = vld [vmem:[#allocation3 + $0xe] sm:$0xff]  ;;  %v1475_v38 = vpack.c.bf16 %v1472_v35, %v1471_v31  ;;  %v1476_v40 = vpack.c.bf16 %v1474_v33, %v1473_v37  ;;  %v1451_v41 = vld [vmem:[#allocation3 + $0x16] sm:$0xff]  ;;  %v1939_v13 = vld [vmem:[#allocation3 + $0x22] sm:$0xff] }
 0x25d   : > { %v1453_v39 = vpack.c.bf16 %v1450_v36, %v1449_v32  ;;  %v1812_v42 = vld [vmem:[#allocation3 + $0x9] sm:$0xff]  ;;  %v1813_v43 = vld [vmem:[#allocation3 + $0x11] sm:$0xff]  ;;  %v1454_v44 = vpack.c.bf16 %v1452_v34, %v1451_v41  ;;  %v1814_v63 = vld [vmem:[#allocation3 + $0x19] sm:$0xff] }
 0x25e   : > { %2637 = vmatprep.mubr.bf16.mxu0 %v1475_v38  ;;  %v1816_v48 = vpack.c.bf16 %v1813_v43, %v1812_v42  ;;  %v1936_v1 = vld [vmem:[#allocation3 + $0xa] sm:$0xff]  ;;  %v1937_v2 = vld [vmem:[#allocation3 + $0x12] sm:$0xff]  ;;  %v1817_v4 = vpack.c.bf16 %v1815_v0, %v1814_v63 }
 0x25f   : > { %2657 = vmatprep.mubr.bf16.mxu1 %v1453_v39  ;;  %2638 = vmatmul.mubr.bf16.vlgmr.msra.gmra.mxu0 %v1476_v40  ;;  %v1940_v6 = vpack.c.bf16 %v1937_v2, %v1936_v1 }
 0x260   : > { %2658 = vmatmul.mubr.bf16.vlgmr.msra.gmra.mxu1 %v1454_v44  ;;  %2662 = vmatpush3.bf16.msra.mxu0 %v2843_v11  ;;  %v2866_v11 = vld [vmem:[#allocation8 + $0x100] sm:$0xff]  }
 0x261   : > { %2682 = vmatpush3.bf16.msra.mxu1 %v2844_v12  ;;  %2677 = vmatprep.mubr.bf16.mxu0 %v1692_v47  ;;  %v1938_v12 = vld [vmem:[#allocation3 + $0x1a] sm:$0xff] }
 0x262   : > { %2697 = vmatprep.mubr.bf16.mxu1 %v1816_v48  ;;  %2663 = vmatprep.subr.bf16.mxu0 %v2845_v45  ;;  %v1941_v14 = vpack.c.bf16 %v1939_v13, %v1938_v12 }
 0x263   : > { %2683 = vmatprep.subr.bf16.mxu1 %v2846_v46 }
 0x264   : > { %2664 = vmatpush3.bf16.msra.mxu0 %v2845_v45 }
 0x265   : > { %2684 = vmatpush3.bf16.msra.mxu1 %v2846_v46  ;;  %2665 = vmatprep.subr.bf16.mxu0 %v2847_v49 }
 0x266   : > { %2685 = vmatprep.subr.bf16.mxu1 %v2848_v50 }
 0x268   : > { %2666 = vmatpush3.bf16.msra.mxu0 %v2847_v49 }
 0x269   : > { %2686 = vmatpush3.bf16.msra.mxu1 %v2848_v50  ;;  %2667 = vmatprep.subr.bf16.mxu0 %v2849_v51 }
 0x26a   : > { %2687 = vmatprep.subr.bf16.mxu1 %v2850_v52 }
 0x26c   : > { %2668 = vmatpush3.bf16.msra.mxu0 %v2849_v51 }
 0x26d   : > { %2688 = vmatpush3.bf16.msra.mxu1 %v2850_v52  ;;  %2669 = vmatprep.subr.bf16.mxu0 %v2851_v53 }
 0x26e   : > { %2689 = vmatprep.subr.bf16.mxu1 %v2852_v54 }
 0x270   : > { %2670 = vmatpush3.bf16.msra.mxu0 %v2851_v53 }
 0x271   : > { %2690 = vmatpush3.bf16.msra.mxu1 %v2852_v54  ;;  %2671 = vmatprep.subr.bf16.mxu0 %v2853_v55 }
 0x272   : > { %2691 = vmatprep.subr.bf16.mxu1 %v2854_v57 }
 0x274   : > { %2672 = vmatpush3.bf16.msra.mxu0 %v2853_v55 }
 0x275   : > { %2692 = vmatpush3.bf16.msra.mxu1 %v2854_v57  ;;  %2673 = vmatprep.subr.bf16.mxu0 %v2855_v58 }
 0x276   : > { %2693 = vmatprep.subr.bf16.mxu1 %v2856_v59 }
 0x278   : > { %2674 = vmatpush3.bf16.msra.mxu0 %v2855_v58 }
 0x279   : > { %2694 = vmatpush3.bf16.msra.mxu1 %v2856_v59  ;;  %2675 = vmatprep.subr.bf16.mxu0 %v2857_v60 }
 0x27a   : > { %2695 = vmatprep.subr.bf16.mxu1 %v2858_v61 }
 0x27c   : > { %2676 = vmatpush3.bf16.msra.mxu0 %v2857_v60 }
 0x27d   : > { %2696 = vmatpush3.bf16.msra.mxu1 %v2858_v61  ;;  %2701 = vmatprep.subr.bf16.mxu0 %v2859_v62 }
 0x27f   : > { %2678 = vmatmul.mubr.bf16.vlgmr.msra.gmra.mxu0 %v1693_v3 }
 0x280   : > { %2698 = vmatmul.mubr.bf16.vlgmr.msra.gmra.mxu1 %v1817_v4  ;;  %2702 = vmatpush3.bf16.msra.mxu0 %v2859_v62 }
 0x281   : > { %2717 = vmatprep.mubr.bf16.mxu0 %v1940_v6  ;;  %2703 = vmatprep.subr.bf16.mxu0 %v2860_v5 }
 0x284   : > { %2704 = vmatpush3.bf16.msra.mxu0 %v2860_v5 }
 0x285   : > { %2705 = vmatprep.subr.bf16.mxu0 %v2861_v7 }
 0x288   : > { %2706 = vmatpush3.bf16.msra.mxu0 %v2861_v7 }
 0x289   : > { %2707 = vmatprep.subr.bf16.mxu0 %v2862_v56 }
 0x28c   : > { %2708 = vmatpush3.bf16.msra.mxu0 %v2862_v56 }
 0x28d   : > { %2709 = vmatprep.subr.bf16.mxu0 %v2863_v8 }
 0x290   : > { %2710 = vmatpush3.bf16.msra.mxu0 %v2863_v8 }
 0x291   : > { %2711 = vmatprep.subr.bf16.mxu0 %v2864_v9 }
 0x294   : > { %2712 = vmatpush3.bf16.msra.mxu0 %v2864_v9 }
 0x295   : > { %2713 = vmatprep.subr.bf16.mxu0 %v2865_v10 }
 0x298   : > { %2714 = vmatpush3.bf16.msra.mxu0 %v2865_v10 }
 0x299   : > { %2715 = vmatprep.subr.bf16.mxu0 %v2866_v11 }
 0x29c   : > { %2716 = vmatpush3.bf16.msra.mxu0 %v2866_v11 }
 0x29f   : > { %2718 = vmatmul.mubr.bf16.vlgmr.msra.gmra.mxu0 %v1941_v14 }
 0x31f   : > { %v2639_v15 = vpop.f32.mrf.mxu0 }
 0x320   : > { %v2659_v17 = vpop.f32.mrf.mxu1 }
 0x321   : > { %v1576_v16 = vpop.f32.mrf.mxu0  ;;  %v1682_v28 = vadd.f32 %v2659_v17, %v2639_v15 }
 0x322   : > { %v1673_v19 = vpop.f32.mrf.mxu1 }
 0x323   : > { %v2640_v18 = vpop.f32.mrf.mxu0  ;;  %v1674_v31 = vadd.f32 %v1673_v19, %v1576_v16 }
 0x324   : > { %v2660_v21 = vpop.f32.mrf.mxu1 }
 0x325   : > { %v1579_v20 = vpop.f32.mrf.mxu0  ;;  %v1685_v29 = vadd.f32 %v2660_v21, %v2640_v18 }
 0x326   : > { %v1676_v23 = vpop.f32.mrf.mxu1 }
 0x327   : > { %v1677_v32 = vadd.f32 %v1676_v23, %v1579_v20 }
 0x33f   : > { %v2679_v22 = vpop.f32.mrf.mxu0 }
 0x340   : > { %v2699_v25 = vpop.f32.mrf.mxu1  ;;  %v1810_v33 = vadd.f32 %v2679_v22, %v1682_v28 }
 0x341   : > { %v1793_v24 = vpop.f32.mrf.mxu0 }
 0x342   : > { %v1917_v27 = vpop.f32.mrf.mxu1  ;;  %v1808_v37 = vadd.f32 %v1793_v24, %v1674_v31  ;;  %v1934_v40 = vadd.f32 %v2699_v25, %v1810_v33 }
 0x343   : > { %v2680_v26 = vpop.f32.mrf.mxu0 }
 0x344   : > { %v1811_v34 = vadd.f32 %v2680_v26, %v1685_v29  ;;  %v2700_v35 = vpop.f32.mrf.mxu1  ;;  %v1932_v44 = vadd.f32 %v1917_v27, %v1808_v37 }
 0x345   : > { %v1796_v30 = vpop.f32.mrf.mxu0 }
 0x346   : > { %v1809_v38 = vadd.f32 %v1796_v30, %v1677_v32  ;;  %v1935_v41 = vadd.f32 %v2700_v35, %v1811_v34  ;;  %v1920_v42 = vpop.f32.mrf.mxu1 }
 0x348   : > { %v1933_v45 = vadd.f32 %v1920_v42, %v1809_v38 }
 0x35f   : > { %v2719_v36 = vpop.f32.mrf.mxu0 }
 0x360   : > { %v2058_v46 = vadd.f32 %v2719_v36, %v1934_v40 }
 0x361   : > { %v2041_v39 = vpop.f32.mrf.mxu0 }
 0x362   : > { %v2056_v49 = vadd.f32 %v2041_v39, %v1932_v44 }
 0x363   : > { %v2720_v43 = vpop.f32.mrf.mxu0 }
 0x364   : > { %v2059_v47 = vadd.f32 %v2720_v43, %v1935_v41 }
 0x365   : > { %v2044_v48 = vpop.f32.mrf.mxu0 }
 0x366   : > { %v2325_v50 = vpack.c.bf16 %v2059_v47, %v2058_v46  ;;  %v2057_v51 = vadd.f32 %v2044_v48, %v1933_v45 }
 0x368   : > { %2330 = vst [vmem:[%s349_s21 + $0x8] sm:$0xff] %v2325_v50   ;;  %v2320_v52 = vpack.c.bf16 %v2057_v51, %v2056_v49 }
 0x36a   : > { %2321 = vst [vmem:[%s349_s21] sm:$0xff] %v2320_v52  }
 0x36b PF: > { %s20_s27 = sadd.s32 1, %s2959_s27  }
 0x36c   : > { %p17_p2 = scmp.ge.s32.totalorder %s20_s27, 4  }
 0x36e   :  { %19 = sbr.rel (!%p17_p2) target bundleno = 2 (0x2), region = 133 }
 0x373   :  { %2101 = vsyncpa [#allocation5], 1 }
 0x374   :  { %2103 = vsyncpa [#allocation5 + $0x1], 1 }
 0x375   :  { %2104 = vsyncpa [#allocation7], 1 }

// kernel: _lambda_.7
= control target key start
LH: loop header
LB: loop body
LE: loop exit
PB: predicated region body
PF: predicated region fallthrough
CT: control target
= control target key end

     0   :  { %s3977_s0 = inlined_call_operand.vmem [shape: bf16[2,16,128], index: 0, kind: input, shape index: {}]   ;;  %s3978_s1 = inlined_call_operand.hbm [shape: f32[1,128], index: 1, kind: input, shape index: {}]   ;;  %s3979_s2 = inlined_call_operand.hbm [shape: f32[1,128], index: 2, kind: input, shape index: {}]   ;;  %s3980_s3 = inlined_call_operand.hbm [shape: bf16[128,128], index: 3, kind: input, shape index: {}]   ;;  %s3981_s4 = inlined_call_operand.hbm [shape: f32[1,128], index: 4, kind: input, shape index: {}]   ;;  %s3982_s5 = inlined_call_operand.hbm [shape: f32[1,128], index: 5, kind: input, shape index: {}]   ;;  %s3983_s6 = inlined_call_operand.hbm [shape: bf16[5,128,128], index: 6, kind: input, shape index: {}]   ;;  %s3984_s7 = inlined_call_operand.hbm [shape: f32[1,128], index: 7, kind: input, shape index: {}]   ;;  %s3985_s8 = inlined_call_operand.hbm [shape: f32[1,128], index: 8, kind: input, shape index: {}]   ;;  %s3986_s9 = inlined_call_operand.hbm [shape: bf16[128,128], index: 9, kind: input, shape index: {}]   ;;  %s3987_s10 = inlined_call_operand.vmem [shape: f32[1,128], index: 10, kind: input, shape index: {}]   ;;  %s3988_s11 = inlined_call_operand.vmem [shape: f32[1,128], index: 11, kind: input, shape index: {}]   ;;  %s3989_s12 = inlined_call_operand.vmem [shape: bf16[5,128,128], index: 12, kind: input, shape index: {}]   ;;  %s3990_s13 = inlined_call_operand.hbm [shape: bf16[128,128], index: 13, kind: input, shape index: {}]   ;;  %s3991_s14 = inlined_call_operand.vmem [shape: f32[1,128], index: 14, kind: input, shape index: {}]   ;;  %s3992_s15 = inlined_call_operand.vmem [shape: f32[1,128], index: 15, kind: input, shape index: {}]   ;;  %s3993_s16 = inlined_call_operand.vmem [shape: bf16[2,8,128], index: 16, kind: output, shape index: {}]  }
   0x1   :  { %4000 = sst [smem:[#allocation27_spill]] %s3977_s0 }
   0x2   :  { %4001 = sst [smem:[#allocation28_spill]] %s3978_s1 }
   0x3   :  { %4002 = sst [smem:[#allocation29_spill]] %s3979_s2 }
   0x4   :  { %21 = vsyncpa [#allocation6], 0 }
   0x5   :  { %22 = vsyncpa [#allocation8], 0 }
   0x6   :  { %23 = vsyncpa [#allocation11], 0 }
   0x7   :  { %24 = vsyncpa [#allocation14], 0 }
   0x8   :  { %25 = vsyncpa [#allocation17], 0 }
   0x9   :  { %26 = vsyncpa [#allocation20], 0  ;;  %s3526_s21 = smov 0  }
   0xa LB: > { %s3427_s22 = smov [#allocation7]   ;;  %s3532_s24 = sadd.s32 4294967295, %s3425_s21   ;;  %s3425_s21 = sphi %s3526_s21, %s32_s21  }
   0xb   : > { %s428_s23 = sshll.u32 %s3427_s22, 4  ;;  %p2329_p0 = scmp.ge.s32.totalorder %s3425_s21, 1  ;;  %s429_s23 = int_to_ptr.vmem [resolvable:$true] %s428_s23 }
   0xc   : > { %p404_p1 = scmp.lt.s32.totalorder %s3425_s21, 3  ;;  %p3998_p2 = scmp.eq.s32.totalorder %s3532_s24, 0 }
   0xd   : > { %s3428_s26 = smov [#allocation10]   ;;  %s3429_s29 = smov [#allocation13]  }
   0xe   : > { %p3537_p3 = pnand %p2329_p0, %p404_p1  ;;  %s452_s27 = sshll.u32 %s3428_s26, 4  ;;  %s3543_s27 = int_to_ptr.vmem [resolvable:$true] %s452_s27 }
   0xf   : > { %s473_s30 = sshll.u32 %s3429_s29, 4  ;;  %s3430_s0 = smov [#allocation16]   ;;  %s3551_s30 = int_to_ptr.vmem [resolvable:$true] %s473_s30 }
  0x10   : > { %s4003_s25 = scalar_select %p3537_p3, 1, 0 }
  0x11   : > { %p2957_p4 = pneg %p3537_p3  ;;  %s3553_s17 = sshll.u32 %s3430_s0, 4  ;;  %s499_s17 = int_to_ptr.vmem [resolvable:$true] %s3553_s17 }
  0x12   : > { %s3146_s19 = scalar_lea.vmem %s429_s23, 16  ;;  %s3153_s20 = scalar_lea.vmem %s429_s23, 32 }
  0x13   : > { %p3547_p5 = pnand %p3998_p2, %p2957_p4  ;;  %p3147_p7 = scmp.ne.s32.totalorder %s429_s23, %s3146_s19 }
  0x14   : > { %p3154_p10 = scmp.lt.s32.totalorder %s429_s23, %s429_s23  ;;  %p3155_p11 = scmp.lt.s32.totalorder %s3153_s20, %s3146_s19 }
  0x15   : > { %p3557_p6 = pneg %p3547_p5 }
  0x16   : > { %p3156_p12 = por %p3155_p11, %p3154_p10 }
  0x17   : > { %p3149_p8 = pnand %p3147_p7, %p3557_p6 }
  0x19   : > { %p3150_p9 = pneg %p3149_p8 }
  0x1b   : > { %p3157_p13 = pnand %p3156_p12, %p3150_p9 }
  0x1d   : > { %3160 = shalt.err (!%p3157_p13)
}
  0x1e   : > { %s4006_s2 = sld [smem:[#allocation29_spill]]  ;;  %s3172_s29 = scalar_lea.vmem %s3543_s27, 16 }
  0x1f   : > { %p3173_p0 = scmp.ne.s32.totalorder %s3543_s27, %s3172_s29  ;;  %s3179_s0 = scalar_lea.vmem %s3543_s27, 32 }
  0x20   : > { %p3180_p7 = scmp.lt.s32.totalorder %s3543_s27, %s3543_s27  ;;  %p3181_p8 = scmp.lt.s32.totalorder %s3179_s0, %s3172_s29 }
  0x21   : > { %p3175_p1 = pnand %p3173_p0, %p3557_p6 }
  0x22   : > { %p3182_p9 = por %p3181_p8, %p3180_p7 }
  0x23   : > { %p3176_p4 = pneg %p3175_p1 }
  0x24   : > { %2963 = dma.hbm_to_vmem [thread:$0]  (!%p3547_p5), %s4006_s2, 16, %s429_s23, [#allocation8]  }
  0x25   : > { %p3183_p10 = pnand %p3182_p9, %p3176_p4 }
  0x27   : > { %3186 = shalt.err (!%p3183_p10)
}
  0x28   : > { %2969 = dma.hbm_to_vmem [thread:$0]  (!%p3547_p5), %s3981_s4, 16, %s3543_s27, [#allocation11]  }
  0x29   : > { %s3198_s23 = scalar_lea.vmem %s3551_s30, 5120  ;;  %p3206_p0 = scmp.lt.s32.totalorder %s3551_s30, %s3551_s30 }
  0x2a   : > { %p3199_p11 = scmp.ne.s32.totalorder %s3551_s30, %s3198_s23  ;;  %p3207_p1 = scmp.lt.s32.totalorder %s3198_s23, %s3198_s23 }
  0x2c   : > { %p3201_p12 = pnand %p3199_p11, %p3557_p6  ;;  %p3208_p4 = por %p3207_p1, %p3206_p0 }
  0x2e   : > { %p3202_p13 = pneg %p3201_p12 }
  0x30   : > { %p3209_p7 = pnand %p3208_p4, %p3202_p13 }
  0x32   : > { %3212 = shalt.err (!%p3209_p7)
}
  0x33   : > { %s3994_s22 = smov 64   ;;  %s3996_s26 = smov 4  }
  0x34   : > { %2975 = dma.hbm_to_vmem [thread:$0]  (!%p3547_p5), %s3983_s6, 5120, %s3551_s30, [#allocation14], %s3994_s22, %s3994_s22, %s3996_s26  }
  0x35   : > { %s3224_s0 = scalar_lea.vmem %s499_s17, 16  ;;  %s3231_s19 = scalar_lea.vmem %s499_s17, 32 }
  0x36   : > { %p3225_p8 = scmp.ne.s32.totalorder %s499_s17, %s3224_s0  ;;  %p3232_p11 = scmp.lt.s32.totalorder %s499_s17, %s499_s17 }
  0x37   : > { %p3233_p12 = scmp.lt.s32.totalorder %s3231_s19, %s3224_s0 }
  0x38   : > { %p3227_p9 = pnand %p3225_p8, %p3557_p6 }
  0x39   : > { %p3234_p13 = por %p3233_p12, %p3232_p11 }
  0x3a   : > { %p3228_p10 = pneg %p3227_p9 }
  0x3c   : > { %p3235_p0 = pnand %p3234_p13, %p3228_p10 }
  0x3e   : > { %3238 = shalt.err (!%p3235_p0)
}
  0x3f   : > { %2981 = dma.hbm_to_vmem [thread:$0]  (!%p3547_p5), %s3985_s8, 16, %s499_s17, [#allocation17]  }
  0x40   : > { %s3433_s30 = smov [#allocation5]   ;;  %s3434_s29 = smov [#allocation9]  }
  0x41   : > { %s417_s27 = sshll.u32 %s3433_s30, 4  ;;  %s438_s22 = sshll.u32 %s3434_s29, 4  ;;  %s418_s27 = int_to_ptr.vmem [resolvable:$true] %s417_s27  ;;  %s439_s22 = int_to_ptr.vmem [resolvable:$true] %s438_s22 }
  0x42   : > { %s3250_s26 = scalar_lea.vmem %s418_s27, 16  ;;  %s3257_s0 = scalar_lea.vmem %s418_s27, 32 }
  0x43   : > { %p3251_p1 = scmp.ne.s32.totalorder %s418_s27, %s3250_s26  ;;  %p3258_p8 = scmp.lt.s32.totalorder %s418_s27, %s418_s27 }
  0x44   : > { %p3259_p9 = scmp.lt.s32.totalorder %s3257_s0, %s3250_s26 }
  0x45   : > { %p3253_p4 = pnand %p3251_p1, %p3557_p6 }
  0x46   : > { %p3260_p10 = por %p3259_p9, %p3258_p8 }
  0x47   : > { %p3254_p7 = pneg %p3253_p4 }
  0x49   : > { %p3261_p11 = pnand %p3260_p10, %p3254_p7 }
  0x4b   : > { %3264 = shalt.err (!%p3261_p11)
}
  0x4c   : > { %s4007_s1 = sld [smem:[#allocation28_spill]]  ;;  %s3276_s20 = scalar_lea.vmem %s439_s22, 1024 }
  0x4d   : > { %p3277_p12 = scmp.ne.s32.totalorder %s439_s22, %s3276_s20  ;;  %p3284_p1 = scmp.lt.s32.totalorder %s439_s22, %s439_s22 }
  0x4e   : > { %p3285_p4 = scmp.lt.s32.totalorder %s3276_s20, %s3276_s20 }
  0x4f   : > { %p3279_p13 = pnand %p3277_p12, %p3557_p6 }
  0x50   : > { %p3286_p2 = por %p3285_p4, %p3284_p1 }
  0x51   : > { %p3280_p0 = pneg %p3279_p13 }
  0x52   : > { %2960 = dma.hbm_to_vmem [thread:$0]  (!%p3547_p5), %s4007_s1, 16, %s418_s27, [#allocation6]  }
  0x53   : > { %p3287_p3 = pnand %p3286_p2, %p3280_p0 }
  0x55   : > { %3290 = shalt.err (!%p3287_p3)
}
  0x56   : > { %s4008_s26 = smov 4   ;;  %s4009_s23 = smov 64  }
  0x57   : > { %2966 = dma.hbm_to_vmem [thread:$0]  (!%p3547_p5), %s3980_s3, 1024, %s439_s22, [#allocation8], %s4009_s23, %s4009_s23, %s4008_s26  }
  0x58   : > { %s3435_s27 = smov [#allocation12]   ;;  %s3436_s19 = smov [#allocation15]  }
  0x59   : > { %s463_s0 = sshll.u32 %s3435_s27, 4  ;;  %s487_s17 = sshll.u32 %s3436_s19, 4  ;;  %s464_s0 = int_to_ptr.vmem [resolvable:$true] %s463_s0  ;;  %s488_s17 = int_to_ptr.vmem [resolvable:$true] %s487_s17 }
  0x5a   : > { %s3302_s1 = scalar_lea.vmem %s464_s0, 16  ;;  %s3309_s20 = scalar_lea.vmem %s464_s0, 32 }
  0x5b   : > { %p3303_p7 = scmp.ne.s32.totalorder %s464_s0, %s3302_s1  ;;  %p3310_p8 = scmp.lt.s32.totalorder %s464_s0, %s464_s0 }
  0x5c   : > { %p3311_p9 = scmp.lt.s32.totalorder %s3309_s20, %s3302_s1 }
  0x5d   : > { %p3305_p2 = pnand %p3303_p7, %p3557_p6 }
  0x5e   : > { %p3312_p10 = por %p3311_p9, %p3310_p8 }
  0x5f   : > { %p3306_p3 = pneg %p3305_p2 }
  0x61   : > { %p3313_p11 = pnand %p3312_p10, %p3306_p3 }
  0x63   : > { %3316 = shalt.err (!%p3313_p11)
}
  0x64   : > { %2972 = dma.hbm_to_vmem [thread:$0]  (!%p3547_p5), %s3982_s5, 16, %s464_s0, [#allocation11]  }
  0x65   : > { %s3328_s29 = scalar_lea.vmem %s488_s17, 16  ;;  %s3335_s27 = scalar_lea.vmem %s488_s17, 32 }
  0x66   : > { %p3329_p12 = scmp.ne.s32.totalorder %s488_s17, %s3328_s29  ;;  %p3336_p1 = scmp.lt.s32.totalorder %s488_s17, %s488_s17 }
  0x67   : > { %p3337_p4 = scmp.lt.s32.totalorder %s3335_s27, %s3328_s29 }
  0x68   : > { %p3331_p13 = pnand %p3329_p12, %p3557_p6 }
  0x69   : > { %p3338_p7 = por %p3337_p4, %p3336_p1 }
  0x6a   : > { %p3332_p0 = pneg %p3331_p13 }
  0x6c   : > { %p3339_p2 = pnand %p3338_p7, %p3332_p0 }
  0x6e   : > { %3342 = shalt.err (!%p3339_p2)
}
  0x6f   : > { %2978 = dma.hbm_to_vmem [thread:$0]  (!%p3547_p5), %s3984_s7, 16, %s488_s17, [#allocation14]  }
  0x70   : > { %s3437_s0 = smov [#allocation18]   ;;  %s3438_s30 = smov [#allocation19]  }
  0x71   : > { %s508_s20 = sshll.u32 %s3437_s0, 4  ;;  %s530_s22 = sshll.u32 %s3438_s30, 4  ;;  %s509_s20 = int_to_ptr.vmem [resolvable:$true] %s508_s20  ;;  %s531_s22 = int_to_ptr.vmem [resolvable:$true] %s530_s22 }
  0x72   : > { %s3354_s2 = scalar_lea.vmem %s509_s20, 1024  ;;  %p3362_p10 = scmp.lt.s32.totalorder %s509_s20, %s509_s20 }
  0x73   : > { %p3355_p3 = scmp.ne.s32.totalorder %s509_s20, %s3354_s2  ;;  %p3363_p11 = scmp.lt.s32.totalorder %s3354_s2, %s3354_s2 }
  0x75   : > { %p3357_p8 = pnand %p3355_p3, %p3557_p6  ;;  %p3364_p12 = por %p3363_p11, %p3362_p10 }
  0x77   : > { %p3358_p9 = pneg %p3357_p8 }
  0x79   : > { %p3365_p13 = pnand %p3364_p12, %p3358_p9 }
  0x7b   : > { %3368 = shalt.err (!%p3365_p13)
}
  0x7c   : > { %2984 = dma.hbm_to_vmem [thread:$0]  (!%p3547_p5), %s3986_s9, 1024, %s509_s20, [#allocation17], %s4009_s23, %s4009_s23, %s4008_s26  }
  0x7d   : > { %s3380_s27 = scalar_lea.vmem %s531_s22, 1024  ;;  %p3388_p7 = scmp.lt.s32.totalorder %s531_s22, %s531_s22 }
  0x7e   : > { %p3381_p0 = scmp.ne.s32.totalorder %s531_s22, %s3380_s27  ;;  %p3389_p2 = scmp.lt.s32.totalorder %s3380_s27, %s3380_s27 }
  0x80   : > { %p3383_p1 = pnand %p3381_p0, %p3557_p6  ;;  %p3390_p3 = por %p3389_p2, %p3388_p7 }
  0x82   : > { %p3384_p4 = pneg %p3383_p1 }
  0x84   : > { %p3391_p8 = pnand %p3390_p3, %p3384_p4 }
  0x86   : > { %3394 = shalt.err (!%p3391_p8)
}
  0x87   : > { %2987 = dma.hbm_to_vmem [thread:$0]  (!%p3547_p5), %s3990_s13, 1024, %s531_s22, [#allocation20], %s4009_s23, %s4009_s23, %s4008_s26  }
  0x88   : > { %p4010_p9 = scmp.ne.s32.totalorder %s4003_s25, 0 }
  0x89   : > { %p4011_p6 = scmp.eq.s32.totalorder (!%p4010_p9), %s3532_s24, 0 }
  0x8a   : > { %560 = sbr.rel (%p4010_p9) target bundleno = 956 (0x3bc), region = 84 }
  0x8f   : > { %3400 = dma.done.wait (%p4011_p6), [#allocation6], 16   ;;  %p4012_p10 = pmov %p4011_p6 }
  0x90   : > { %p4013_p11 = pmov %p4011_p6 }
  0x91   : > { %3402 = vsyncadd (%p4012_p10), [#allocation6], 4294967280 }
  0x92   : > { %3404 = dma.done.wait (%p4013_p11), [#allocation8], 1040   ;;  %p4014_p12 = pmov %p4011_p6 }
  0x93   : > { %p4015_p13 = pmov %p4011_p6 }
  0x94   : > { %3406 = vsyncadd (%p4014_p12), [#allocation8], 4294966256 }
  0x95   : > { %3408 = dma.done.wait (%p4015_p13), [#allocation11], 32   ;;  %p4016_p5 = pmov %p4011_p6 }
  0x97   : > { %3410 = vsyncadd (%p4016_p5), [#allocation11], 4294967264  ;;  %p4017_p0 = pmov %p4016_p5 }
  0x99   : > { %3412 = dma.done.wait (%p4017_p0), [#allocation14], 5136   ;;  %p4018_p1 = pmov %p4017_p0 }
  0x9a   : > { %p4019_p4 = pmov %p4017_p0 }
  0x9b   : > { %3414 = vsyncadd (%p4018_p1), [#allocation14], 4294962160 }
  0x9c   : > { %3416 = dma.done.wait (%p4019_p4), [#allocation17], 1040   ;;  %p4020_p7 = pmov %p4017_p0 }
  0x9d   : > { %p4021_p2 = pmov %p4017_p0 }
  0x9e   : > { %3418 = vsyncadd (%p4020_p7), [#allocation17], 4294966256 }
  0x9f   : > { %3420 = dma.done.wait (%p4021_p2), [#allocation20], 1024   ;;  %p4022_p3 = pmov %p4017_p0 }
  0xa0   : > { %v3439_v0 = vmov 0.0   ;;  %vm3440_vm0 = vmmov 0   ;;  %p645_p8 = scmp.lt.s32.totalorder %s3532_s24, 1  ;;  %v3030_v1 = vld [vmem:[#allocation9 + $0x38] sm:$0xff]   ;;  %v3031_v2 = vld [vmem:[#allocation9 + $0x30] sm:$0xff]   ;;  %s4023_s26 = sld [smem:[#allocation27_spill]] }
  0xa1   : > { %3422 = vsyncadd (%p4022_p3), [#allocation20], 4294966272  ;;  %2657 = vmatprep.subr.bf16.mxu0 %v3439_v0  ;;  %805 = vst [vmem:[#allocation2] sm:$0xff] %v3439_v0  ;;  %2673 = vmatprep.mubr.msk.bf16.mxu0 %vm3440_vm0, %v3439_v0  ;;  %v3032_v3 = vld [vmem:[#allocation9 + $0x28] sm:$0xff]   ;;  %v3033_v4 = vld [vmem:[#allocation9 + $0x20] sm:$0xff]  }
  0xa2   : > { %808 = vst [vmem:[#allocation2 + $0x18] sm:$0x1] %v3439_v0  ;;  %1499 = vst [vmem:[#allocation3] sm:$0xff] %v3439_v0  ;;  %2677 = vmatprep.subr.bf16.mxu1 %v3439_v0  ;;  %2693 = vmatprep.mubr.msk.bf16.mxu1 %vm3440_vm0, %v3439_v0  ;;  %s4025_s24 = smov (!%p645_p8, %s3532_s24), 1  ;;  %v2355_v6 = vld [vmem:[#allocation5] ss:$0 sm:$0xff] }
  0xa3   : > { %1502 = vst [vmem:[#allocation3 + $0x18] sm:$0x7] %v3439_v0  ;;  %2658 = vmatpush3.bf16.msra.mxu0 %v3030_v1  ;;  %s2535_s25 = sshll.u32 %s4025_s24, 3  ;;  %v3038_v9 = vld [vmem:[#allocation13 + $0x78] sm:$0xff]   ;;  %v3040_v13 = vld [vmem:[#allocation13 + $0x70] sm:$0xff]   ;;  %v3042_v17 = vld [vmem:[#allocation13 + $0x68] sm:$0xff]  }
  0xa4   : > { %2659 = vmatprep.subr.bf16.mxu0 %v3439_v0  ;;  %v2356_v10 = vld [vmem:[#allocation7] ss:$0 sm:$0xff]  ;;  %2678 = vmatpush3.bf16.msra.mxu1 %v3038_v9  ;;  %v3035_v20 = vld [vmem:[#allocation9 + $0x10] sm:$0xff]   ;;  %v3036_v21 = vld [vmem:[#allocation9 + $0x8] sm:$0xff]  }
  0xa5   : > { %2679 = vmatprep.subr.bf16.mxu1 %v3439_v0  ;;  %v3034_v14 = vld [vmem:[#allocation9 + $0x18] sm:$0xff]   ;;  %v3037_v22 = vld [vmem:[#allocation9] sm:$0xff]   ;;  %v3043_v26 = vld [vmem:[#allocation13 + $0x28] sm:$0xff]  }
  0xa6   : > { %s649_s23 = scalar_lea.vmem %s4023_s26, %s2535_s25  ;;  %v3039_v23 = vld [vmem:[#allocation13 + $0x38] sm:$0xff]   ;;  %v3041_v25 = vld [vmem:[#allocation13 + $0x30] sm:$0xff]   ;;  %v3044_v27 = vld [vmem:[#allocation13 + $0x60] sm:$0xff]   ;;  %s2354_s26 = sshll.u32 %s4025_s24, 2 }
  0xa7   : > { %2660 = vmatpush3.bf16.msra.mxu0 %v3031_v2  ;;  %v2537_v5 = vld [vmem:[%s649_s23] sm:$0xff]   ;;  %v3045_v28 = vld [vmem:[#allocation13 + $0x20] sm:$0xff]   ;;  %v3046_v29 = vld [vmem:[#allocation13 + $0x58] sm:$0xff]   ;;  %s653_s0 = scalar_lea.vmem %s3993_s16, %s2354_s26 }
  0xa8   : > { %2661 = vmatprep.subr.bf16.mxu0 %v3439_v0  ;;  %v3701_v7 = vunpack.c.l.bf16 %v2537_v5  ;;  %v3703_v8 = vunpack.c.h.bf16 %v2537_v5  ;;  %2680 = vmatpush3.bf16.msra.mxu1 %v3040_v13  ;;  %v3047_v30 = vld [vmem:[#allocation13 + $0x18] sm:$0xff]   ;;  %v3048_v31 = vld [vmem:[#allocation13 + $0x50] sm:$0xff]   ;;  %v3050_v33 = vld [vmem:[#allocation13 + $0x48] sm:$0xff]  }
  0xa9   : > { %2681 = vmatprep.subr.bf16.mxu1 %v3439_v0  ;;  %v3049_v32 = vld [vmem:[#allocation13 + $0x10] sm:$0xff]   ;;  %v3051_v34 = vld [vmem:[#allocation13 + $0x8] sm:$0xff]   ;;  %v3052_v35 = vld [vmem:[#allocation13 + $0x40] sm:$0xff]  }
  0xaa   : > { %v666_v11 = vmul.f32 %v3701_v7, %v2355_v6  ;;  %v667_v12 = vmul.f32 %v3703_v8, %v2355_v6  ;;  %2048 = vst [vmem:[#allocation4] sm:$0xff] %v3701_v7  ;;  %2049 = vst [vmem:[#allocation4 + $0x8] sm:$0xff] %v3703_v8  ;;  %v3053_v36 = vld [vmem:[#allocation13] sm:$0xff]   ;;  %v2365_v37 = vld [vmem:[#allocation10] ss:$0 sm:$0xff] }
  0xab   : > { %2662 = vmatpush3.bf16.msra.mxu0 %v3032_v3  ;;  %v2366_v39 = vld [vmem:[#allocation12] ss:$0 sm:$0xff]  ;;  %v3056_v55 = vld [vmem:[#allocation13 + $0xb0] sm:$0xff]   ;;  %v3058_v57 = vld [vmem:[#allocation13 + $0xa8] sm:$0xff]  }
  0xac   : > { %2663 = vmatprep.subr.bf16.mxu0 %v3439_v0  ;;  %v675_v15 = vadd.f32 %v2356_v10, %v666_v11  ;;  %v676_v16 = vadd.f32 %v2356_v10, %v667_v12  ;;  %2682 = vmatpush3.bf16.msra.mxu1 %v3042_v17  ;;  %v3054_v49 = vld [vmem:[#allocation13 + $0xb8] sm:$0xff]   ;;  %v3057_v56 = vld [vmem:[#allocation13 + $0xf0] sm:$0xff]   ;;  %v3059_v58 = vld [vmem:[#allocation13 + $0xe8] sm:$0xff]  }
  0xad   : > { %2683 = vmatprep.subr.bf16.mxu1 %v3439_v0  ;;  %v3055_v52 = vld [vmem:[#allocation13 + $0xf8] sm:$0xff]   ;;  %v3060_v59 = vld [vmem:[#allocation13 + $0xa0] sm:$0xff]   ;;  %v3064_v63 = vld [vmem:[#allocation13 + $0x90] sm:$0xff]  }
  0xae   : > { %v677_v18 = vmax.f32 %v675_v15, 0.0  ;;  %v678_v19 = vmax.f32 %v676_v16, 0.0  ;;  %v3061_v60 = vld [vmem:[#allocation13 + $0xe0] sm:$0xff]   ;;  %v3062_v61 = vld [vmem:[#allocation13 + $0x98] sm:$0xff]   ;;  %v3065_v1 = vld [vmem:[#allocation13 + $0xd0] sm:$0xff]  }
  0xaf   : > { %2664 = vmatpush3.bf16.msra.mxu0 %v3033_v4  ;;  %v3063_v62 = vld [vmem:[#allocation13 + $0xd8] sm:$0xff]   ;;  %v3066_v2 = vld [vmem:[#allocation13 + $0x88] sm:$0xff]   ;;  %v3068_v4 = vld [vmem:[#allocation13 + $0x80] sm:$0xff]  }
  0xb0   : > { %2665 = vmatprep.subr.bf16.mxu0 %v3439_v0  ;;  %v679_v24 = vpack.c.bf16 %v678_v19, %v677_v18  ;;  %2684 = vmatpush3.bf16.msra.mxu1 %v3044_v27  ;;  %v3067_v3 = vld [vmem:[#allocation13 + $0xc8] sm:$0xff]   ;;  %v3069_v5 = vld [vmem:[#allocation13 + $0xc0] sm:$0xff]   ;;  %v3070_v10 = vld [vmem:[#allocation13 + $0x138] sm:$0xff]  }
  0xb1   : > { %2685 = vmatprep.subr.bf16.mxu1 %v3439_v0  ;;  %v3071_v11 = vld [vmem:[#allocation18 + $0x38] sm:$0xff]   ;;  %v3073_v15 = vld [vmem:[#allocation18 + $0x30] sm:$0xff]   ;;  %v3074_v16 = vld [vmem:[#allocation13 + $0x128] sm:$0xff]  }
  0xb2   : > { %v3075_v17 = vld [vmem:[#allocation18 + $0x28] sm:$0xff]   ;;  %v3076_v18 = vld [vmem:[#allocation13 + $0x120] sm:$0xff]  }
  0xb3   : > { %2666 = vmatpush3.bf16.msra.mxu0 %v3034_v14  ;;  %v3072_v14 = vld [vmem:[#allocation13 + $0x130] sm:$0xff]   ;;  %v3077_v19 = vld [vmem:[#allocation18 + $0x20] sm:$0xff]   ;;  %v2408_v27 = vld [vmem:[#allocation16] ss:$0 sm:$0xff] }
  0xb4   : > { %2667 = vmatprep.subr.bf16.mxu0 %v3439_v0  ;;  %2686 = vmatpush3.bf16.msra.mxu1 %v3046_v29 }
  0xb5   : > { %2687 = vmatprep.subr.bf16.mxu1 %v3439_v0 }
  0xb7   : > { %2668 = vmatpush3.bf16.msra.mxu0 %v3035_v20  ;;  %v3078_v20 = vld [vmem:[#allocation13 + $0x118] sm:$0xff]  }
  0xb8   : > { %2669 = vmatprep.subr.bf16.mxu0 %v3439_v0  ;;  %2688 = vmatpush3.bf16.msra.mxu1 %v3048_v31  ;;  %v3083_v31 = vld [vmem:[#allocation18 + $0x8] sm:$0xff]  }
  0xb9   : > { %2689 = vmatprep.subr.bf16.mxu1 %v3439_v0 }
  0xbb   : > { %2670 = vmatpush3.bf16.msra.mxu0 %v3036_v21  ;;  %v3079_v21 = vld [vmem:[#allocation18 + $0x18] sm:$0xff]  }
  0xbc   : > { %2671 = vmatprep.subr.bf16.mxu0 %v3439_v0  ;;  %2690 = vmatpush3.bf16.msra.mxu1 %v3050_v33  ;;  %v3085_v33 = vld [vmem:[#allocation18] sm:$0xff]  }
  0xbd   : > { %2691 = vmatprep.subr.bf16.mxu1 %v3439_v0 }
  0xbf   : > { %2672 = vmatpush3.bf16.msra.mxu0 %v3037_v22  ;;  %v2407_v22 = vld [vmem:[#allocation15] ss:$0 sm:$0xff] }
  0xc0   : > { %2697 = vmatprep.subr.bf16.mxu0 %v3439_v0  ;;  %2692 = vmatpush3.bf16.msra.mxu1 %v3052_v35 }
  0xc1   : > { %2717 = vmatprep.subr.bf16.mxu1 %v3439_v0 }
  0xc2   : > { %2674 = vmatmul.mubr.bf16.vlgmr.msra.gmra.mxu0 %v679_v24  ;;  %v1361_v24 = vmul.f32 %v3703_v8, %v2407_v22 }
  0xc3   : > { %2698 = vmatpush3.bf16.msra.mxu0 %v3039_v23  ;;  %2713 = vmatprep.mubr.msk.bf16.mxu0 %vm3440_vm0, %v3439_v0  ;;  %v1360_v23 = vmul.f32 %v3701_v7, %v2407_v22 }
  0xc4   : > { %2699 = vmatprep.subr.bf16.mxu0 %v3439_v0  ;;  %v1370_v29 = vadd.f32 %v2408_v27, %v1361_v24 }
  0xc6   : > { %v1372_v8 = vmax.f32 %v1370_v29, 0.0 }
  0xc7   : > { %2700 = vmatpush3.bf16.msra.mxu0 %v3041_v25  ;;  %v3080_v25 = vld [vmem:[#allocation13 + $0x110] sm:$0xff]  }
  0xc8   : > { %2701 = vmatprep.subr.bf16.mxu0 %v3439_v0 }
  0xcb   : > { %2702 = vmatpush3.bf16.msra.mxu0 %v3043_v26  ;;  %v3081_v26 = vld [vmem:[#allocation18 + $0x10] sm:$0xff]  }
  0xcc   : > { %2703 = vmatprep.subr.bf16.mxu0 %v3439_v0 }
  0xcf   : > { %2704 = vmatpush3.bf16.msra.mxu0 %v3045_v28  ;;  %v1369_v28 = vadd.f32 %v2408_v27, %v1360_v23  ;;  %v3102_v27 = vld [vmem:[%s3989_s12 + $0xb8] sm:$0xff]  }
  0xd0   : > { %2705 = vmatprep.subr.bf16.mxu0 %v3439_v0 }
  0xd1   : > { %v1371_v7 = vmax.f32 %v1369_v28, 0.0 }
  0xd3   : > { %2706 = vmatpush3.bf16.msra.mxu0 %v3047_v30  ;;  %v3082_v30 = vld [vmem:[#allocation13 + $0x108] sm:$0xff]   ;;  %v1373_v35 = vpack.c.bf16 %v1372_v8, %v1371_v7  ;;  %v3104_v8 = vld [vmem:[%s3989_s12 + $0xb0] sm:$0xff]  }
  0xd4   : > { %2707 = vmatprep.subr.bf16.mxu0 %v3439_v0 }
  0xd7   : > { %2708 = vmatpush3.bf16.msra.mxu0 %v3049_v32  ;;  %v3084_v32 = vld [vmem:[#allocation13 + $0x100] sm:$0xff]  }
  0xd8   : > { %2709 = vmatprep.subr.bf16.mxu0 %v3439_v0 }
  0xdb   : > { %2710 = vmatpush3.bf16.msra.mxu0 %v3051_v34 }
  0xdc   : > { %2711 = vmatprep.subr.bf16.mxu0 %v3439_v0 }
  0xdf   : > { %2712 = vmatpush3.bf16.msra.mxu0 %v3053_v36 }
  0xe0   : > { %2737 = vmatprep.subr.bf16.mxu0 %v3439_v0 }
 0x182   : > { %v778_v38 = vpop.f32.mrf.mxu0 }
 0x183   : > { %v792_v40 = vmul.f32 %v2365_v37, %v778_v38  ;;  %v3087_v38 = vld [vmem:[%s3989_s12 + $0x38] sm:$0xff]  }
 0x184   : > { %v2675_v41 = vpop.f32.mrf.mxu0 }
 0x185   : > { %v801_v42 = vadd.f32 %v2366_v39, %v792_v40  ;;  %v3089_v40 = vld [vmem:[%s3989_s12 + $0x30] sm:$0xff]   ;;  %v3090_v41 = vld [vmem:[%s3989_s12 + $0x68] sm:$0xff]  }
 0x186   : > { %v781_v43 = vpop.f32.mrf.mxu0 }
 0x187   : > { %v803_v44 = vmax.f32 %v801_v42, 0.0  ;;  %v793_v45 = vmul.f32 %v2365_v37, %v781_v43  ;;  %v3086_v37 = vld [vmem:[%s3989_s12 + $0x78] sm:$0xff]   ;;  %v3091_v42 = vld [vmem:[%s3989_s12 + $0x28] sm:$0xff]   ;;  %v3092_v43 = vld [vmem:[%s3989_s12 + $0x60] sm:$0xff]  }
 0x188   : > { %v2676_v46 = vpop.f32.mrf.mxu0 }
 0x189   : > { %809 = vst [vmem:[#allocation2 + $0x8] sm:$0xff] %v803_v44  ;;  %v802_v47 = vadd.f32 %v2366_v39, %v793_v45  ;;  %v3088_v39 = vld [vmem:[%s3989_s12 + $0x70] sm:$0xff]   ;;  %v3093_v44 = vld [vmem:[%s3989_s12 + $0x20] sm:$0xff]   ;;  %v3094_v45 = vld [vmem:[%s3989_s12 + $0x58] sm:$0xff]  }
 0x18a   : > { %v3095_v46 = vld [vmem:[%s3989_s12 + $0x18] sm:$0xff]  }
 0x18b   : > { %v804_v48 = vmax.f32 %v802_v47, 0.0  ;;  %v3096_v47 = vld [vmem:[%s3989_s12 + $0x50] sm:$0xff]  }
 0x18d   : > { %810 = vst [vmem:[#allocation2 + $0x10] sm:$0xff] %v804_v48  ;;  %v3097_v48 = vld [vmem:[%s3989_s12 + $0x10] sm:$0xff]  }
 0x194   : > { %v831_v50 = vld [vmem:[#allocation2 + $0x7] ss:$2 sm:$0xff]  ;;  %v812_v51 = vld [vmem:[#allocation2 + $0x6] ss:$2 sm:$0xff] }
 0x195   : > { %v832_v53 = vpack.c.bf16 %v831_v50, %v831_v50  ;;  %v813_v54 = vpack.c.bf16 %v812_v51, %v812_v51  ;;  %v1027_v6 = vld [vmem:[#allocation2 + $0x8] ss:$2 sm:$0xff]  ;;  %v1136_v9 = vld [vmem:[#allocation2 + $0x9] ss:$2 sm:$0xff]  ;;  %v3100_v51 = vld [vmem:[%s3989_s12 + $0x40] sm:$0xff]  }
 0x196   : > { %v1028_v12 = vpack.c.bf16 %v1027_v6, %v1027_v6  ;;  %v1137_v13 = vpack.c.bf16 %v1136_v9, %v1136_v9  ;;  %v1245_v34 = vld [vmem:[#allocation2 + $0xa] ss:$2 sm:$0xff] }
 0x197   : > { %2694 = vmatmul.mubr.bf16.vlgmr.msra.gmra.mxu1 %v832_v53  ;;  %2714 = vmatmul.mubr.bf16.vlgmr.msra.gmra.mxu0 %v813_v54  ;;  %v1246_v36 = vpack.c.bf16 %v1245_v34, %v1245_v34  ;;  %v3099_v50 = vld [vmem:[%s3989_s12 + $0x8] sm:$0xff]  }
 0x198   : > { %2718 = vmatpush3.bf16.msra.mxu1 %v3054_v49  ;;  %2738 = vmatpush3.bf16.msra.mxu0 %v3055_v52  ;;  %v3098_v49 = vld [vmem:[%s3989_s12 + $0x48] sm:$0xff]   ;;  %v3101_v52 = vld [vmem:[%s3989_s12] sm:$0xff]  }
 0x199   : > { %2719 = vmatprep.subr.bf16.mxu1 %v3439_v0  ;;  %2739 = vmatprep.subr.bf16.mxu0 %v3439_v0  ;;  %v3106_v34 = vld [vmem:[%s3989_s12 + $0xa8] sm:$0xff]  }
 0x19a   : > { %2733 = vmatprep.mubr.msk.bf16.mxu1 %vm3440_vm0, %v3439_v0  ;;  %2753 = vmatprep.mubr.msk.bf16.mxu0 %vm3440_vm0, %v3439_v0 }
 0x19c   : > { %2720 = vmatpush3.bf16.msra.mxu1 %v3056_v55  ;;  %2740 = vmatpush3.bf16.msra.mxu0 %v3057_v56 }
 0x19d   : > { %2721 = vmatprep.subr.bf16.mxu1 %v3439_v0  ;;  %2741 = vmatprep.subr.bf16.mxu0 %v3439_v0 }
 0x1a0   : > { %2722 = vmatpush3.bf16.msra.mxu1 %v3058_v57  ;;  %2742 = vmatpush3.bf16.msra.mxu0 %v3059_v58 }
 0x1a1   : > { %2723 = vmatprep.subr.bf16.mxu1 %v3439_v0  ;;  %2743 = vmatprep.subr.bf16.mxu0 %v3439_v0 }
 0x1a4   : > { %2724 = vmatpush3.bf16.msra.mxu1 %v3060_v59  ;;  %2744 = vmatpush3.bf16.msra.mxu0 %v3061_v60 }
 0x1a5   : > { %2725 = vmatprep.subr.bf16.mxu1 %v3439_v0  ;;  %2745 = vmatprep.subr.bf16.mxu0 %v3439_v0 }
 0x1a8   : > { %2726 = vmatpush3.bf16.msra.mxu1 %v3062_v61  ;;  %2746 = vmatpush3.bf16.msra.mxu0 %v3063_v62 }
 0x1a9   : > { %2727 = vmatprep.subr.bf16.mxu1 %v3439_v0  ;;  %2747 = vmatprep.subr.bf16.mxu0 %v3439_v0 }
 0x1ac   : > { %2728 = vmatpush3.bf16.msra.mxu1 %v3064_v63  ;;  %2748 = vmatpush3.bf16.msra.mxu0 %v3065_v1 }
 0x1ad   : > { %2729 = vmatprep.subr.bf16.mxu1 %v3439_v0  ;;  %2749 = vmatprep.subr.bf16.mxu0 %v3439_v0 }
 0x1b0   : > { %2730 = vmatpush3.bf16.msra.mxu1 %v3066_v2  ;;  %2750 = vmatpush3.bf16.msra.mxu0 %v3067_v3 }
 0x1b1   : > { %2731 = vmatprep.subr.bf16.mxu1 %v3439_v0  ;;  %2751 = vmatprep.subr.bf16.mxu0 %v3439_v0 }
 0x1b4   : > { %2732 = vmatpush3.bf16.msra.mxu1 %v3068_v4  ;;  %2752 = vmatpush3.bf16.msra.mxu0 %v3069_v5 }
 0x1b5   : > { %2757 = vmatprep.subr.bf16.mxu1 %v3439_v0  ;;  %2777 = vmatprep.subr.bf16.mxu0 %v3439_v0 }
 0x1b7   : > { %2734 = vmatmul.mubr.bf16.vlgmr.msra.gmra.mxu1 %v1028_v12  ;;  %2754 = vmatmul.mubr.bf16.vlgmr.msra.gmra.mxu0 %v1137_v13  ;;  %v2418_v13 = vld [vmem:[%s3988_s11] ss:$0 sm:$0xff] }
 0x1b8   : > { %2758 = vmatpush3.bf16.msra.mxu1 %v3070_v10  ;;  %2778 = vmatpush3.bf16.msra.mxu0 %v3071_v11 }
 0x1b9   : > { %2759 = vmatprep.subr.bf16.mxu1 %v3439_v0  ;;  %2779 = vmatprep.subr.bf16.mxu0 %v3439_v0 }
 0x1ba   : > { %2773 = vmatprep.mubr.msk.bf16.mxu1 %vm3440_vm0, %v3439_v0  ;;  %2793 = vmatprep.mubr.msk.bf16.mxu0 %vm3440_vm0, %v3439_v0 }
 0x1bc   : > { %2760 = vmatpush3.bf16.msra.mxu1 %v3072_v14  ;;  %2780 = vmatpush3.bf16.msra.mxu0 %v3073_v15 }
 0x1bd   : > { %2761 = vmatprep.subr.bf16.mxu1 %v3439_v0  ;;  %2781 = vmatprep.subr.bf16.mxu0 %v3439_v0 }
 0x1c0   : > { %2762 = vmatpush3.bf16.msra.mxu1 %v3074_v16  ;;  %2782 = vmatpush3.bf16.msra.mxu0 %v3075_v17 }
 0x1c1   : > { %2763 = vmatprep.subr.bf16.mxu1 %v3439_v0  ;;  %2783 = vmatprep.subr.bf16.mxu0 %v3439_v0 }
 0x1c4   : > { %2764 = vmatpush3.bf16.msra.mxu1 %v3076_v18  ;;  %2784 = vmatpush3.bf16.msra.mxu0 %v3077_v19 }
 0x1c5   : > { %2765 = vmatprep.subr.bf16.mxu1 %v3439_v0  ;;  %2785 = vmatprep.subr.bf16.mxu0 %v3439_v0 }
 0x1c8   : > { %2766 = vmatpush3.bf16.msra.mxu1 %v3078_v20  ;;  %2786 = vmatpush3.bf16.msra.mxu0 %v3079_v21 }
 0x1c9   : > { %2767 = vmatprep.subr.bf16.mxu1 %v3439_v0  ;;  %2787 = vmatprep.subr.bf16.mxu0 %v3439_v0 }
 0x1cc   : > { %2768 = vmatpush3.bf16.msra.mxu1 %v3080_v25  ;;  %2788 = vmatpush3.bf16.msra.mxu0 %v3081_v26 }
 0x1cd   : > { %2769 = vmatprep.subr.bf16.mxu1 %v3439_v0  ;;  %2789 = vmatprep.subr.bf16.mxu0 %v3439_v0 }
 0x1d0   : > { %2770 = vmatpush3.bf16.msra.mxu1 %v3082_v30  ;;  %2790 = vmatpush3.bf16.msra.mxu0 %v3083_v31  ;;  %v3103_v30 = vld [vmem:[%s3989_s12 + $0xf8] sm:$0xff]  }
 0x1d1   : > { %2771 = vmatprep.subr.bf16.mxu1 %v3439_v0  ;;  %2791 = vmatprep.subr.bf16.mxu0 %v3439_v0 }
 0x1d4   : > { %2772 = vmatpush3.bf16.msra.mxu1 %v3084_v32  ;;  %2792 = vmatpush3.bf16.msra.mxu0 %v3085_v33  ;;  %v3105_v32 = vld [vmem:[%s3989_s12 + $0xf0] sm:$0xff]   ;;  %v3863_v33 = vld [vmem:[#allocation2] sm:$0xff] }
 0x1d5   : > { %2797 = vmatprep.subr.bf16.mxu1 %v3439_v0  ;;  %2817 = vmatprep.subr.bf16.mxu0 %v3439_v0 }
 0x1d7   : > { %2774 = vmatmul.mubr.bf16.vlgmr.msra.gmra.mxu1 %v1246_v36  ;;  %2794 = vmatmul.mubr.bf16.vlgmr.msra.gmra.mxu0 %v1373_v35  ;;  %v3107_v35 = vld [vmem:[%s3989_s12 + $0xe8] sm:$0xff]   ;;  %v3108_v36 = vld [vmem:[%s3989_s12 + $0xa0] sm:$0xff]  }
 0x1d8   : > { %2813 = vmatprep.mubr.msk.bf16.mxu1 %vm3440_vm0, %v3439_v0  ;;  %2833 = vmatprep.mubr.msk.bf16.mxu0 %vm3440_vm0, %v3439_v0 }
 0x1d9   : > { %2798 = vmatpush3.bf16.msra.mxu1 %v3086_v37  ;;  %2818 = vmatpush3.bf16.msra.mxu0 %v3087_v38  ;;  %v3109_v37 = vld [vmem:[%s3989_s12 + $0xe0] sm:$0xff]   ;;  %v3110_v38 = vld [vmem:[%s3989_s12 + $0x98] sm:$0xff]  }
 0x1da   : > { %2799 = vmatprep.subr.bf16.mxu1 %v3439_v0  ;;  %2819 = vmatprep.subr.bf16.mxu0 %v3439_v0 }
 0x1dd   : > { %2800 = vmatpush3.bf16.msra.mxu1 %v3088_v39  ;;  %2820 = vmatpush3.bf16.msra.mxu0 %v3089_v40  ;;  %v3111_v39 = vld [vmem:[%s3989_s12 + $0xd8] sm:$0xff]   ;;  %v3112_v40 = vld [vmem:[%s3989_s12 + $0x90] sm:$0xff]  }
 0x1de   : > { %2801 = vmatprep.subr.bf16.mxu1 %v3439_v0  ;;  %2821 = vmatprep.subr.bf16.mxu0 %v3439_v0 }
 0x1e1   : > { %2802 = vmatpush3.bf16.msra.mxu1 %v3090_v41  ;;  %2822 = vmatpush3.bf16.msra.mxu0 %v3091_v42  ;;  %v3113_v41 = vld [vmem:[%s3989_s12 + $0xd0] sm:$0xff]   ;;  %v3114_v42 = vld [vmem:[%s3989_s12 + $0x88] sm:$0xff]  }
 0x1e2   : > { %2803 = vmatprep.subr.bf16.mxu1 %v3439_v0  ;;  %2823 = vmatprep.subr.bf16.mxu0 %v3439_v0 }
 0x1e5   : > { %2804 = vmatpush3.bf16.msra.mxu1 %v3092_v43  ;;  %2824 = vmatpush3.bf16.msra.mxu0 %v3093_v44  ;;  %v3115_v43 = vld [vmem:[%s3989_s12 + $0xc8] sm:$0xff]   ;;  %v3116_v44 = vld [vmem:[%s3989_s12 + $0x80] sm:$0xff]  }
 0x1e6   : > { %2805 = vmatprep.subr.bf16.mxu1 %v3439_v0  ;;  %2825 = vmatprep.subr.bf16.mxu0 %v3439_v0 }
 0x1e9   : > { %2806 = vmatpush3.bf16.msra.mxu1 %v3094_v45  ;;  %2826 = vmatpush3.bf16.msra.mxu0 %v3095_v46  ;;  %v3117_v45 = vld [vmem:[%s3989_s12 + $0xc0] sm:$0xff]  }
 0x1ea   : > { %2807 = vmatprep.subr.bf16.mxu1 %v3439_v0  ;;  %2827 = vmatprep.subr.bf16.mxu0 %v3439_v0 }
 0x1ed   : > { %2808 = vmatpush3.bf16.msra.mxu1 %v3096_v47  ;;  %2828 = vmatpush3.bf16.msra.mxu0 %v3097_v48  ;;  %v3118_v48 = vld [vmem:[%s3989_s12 + $0x138] sm:$0xff]  }
 0x1ee   : > { %2809 = vmatprep.subr.bf16.mxu1 %v3439_v0  ;;  %2829 = vmatprep.subr.bf16.mxu0 %v3439_v0 }
 0x1f1   : > { %2810 = vmatpush3.bf16.msra.mxu1 %v3098_v49  ;;  %2830 = vmatpush3.bf16.msra.mxu0 %v3099_v50  ;;  %v3119_v49 = vld [vmem:[#allocation19 + $0x38] sm:$0xff]  }
 0x1f2   : > { %2811 = vmatprep.subr.bf16.mxu1 %v3439_v0  ;;  %2831 = vmatprep.subr.bf16.mxu0 %v3439_v0 }
 0x1f5   : > { %2812 = vmatpush3.bf16.msra.mxu1 %v3100_v51  ;;  %2832 = vmatpush3.bf16.msra.mxu0 %v3101_v52  ;;  %v3120_v52 = vld [vmem:[%s3989_s12 + $0x130] sm:$0xff]  }
 0x1f6   : > { %2837 = vmatprep.subr.bf16.mxu1 %v3439_v0  ;;  %2857 = vmatprep.subr.bf16.mxu0 %v3439_v0  ;;  %v2417_v0 = vld [vmem:[%s3987_s10] ss:$0 sm:$0xff] }
 0x257   : > { %v932_v53 = vpop.f32.mrf.mxu1  ;;  %v1020_v54 = vpop.f32.mrf.mxu0 }
 0x258   : > { %v1021_v55 = vadd.f32 %v1020_v54, %v932_v53  ;;  %v3121_v53 = vld [vmem:[#allocation19 + $0x30] sm:$0xff]  }
 0x259   : > { %v2695_v56 = vpop.f32.mrf.mxu1  ;;  %v2715_v57 = vpop.f32.mrf.mxu0  ;;  %v3122_v54 = vld [vmem:[%s3989_s12 + $0x128] sm:$0xff]  }
 0x25a   : > { %v3124_v56 = vld [vmem:[%s3989_s12 + $0x120] sm:$0xff]  }
 0x25b   : > { %v935_v58 = vpop.f32.mrf.mxu1  ;;  %v1023_v59 = vpop.f32.mrf.mxu0  ;;  %v3125_v57 = vld [vmem:[#allocation19 + $0x20] sm:$0xff]  }
 0x25c   : > { %v3126_v58 = vld [vmem:[%s3989_s12 + $0x118] sm:$0xff]  }
 0x25d   : > { %v2696_v60 = vpop.f32.mrf.mxu1  ;;  %v2716_v61 = vpop.f32.mrf.mxu0  ;;  %v3127_v59 = vld [vmem:[#allocation19 + $0x18] sm:$0xff]  }
 0x25e   : > { %v3128_v60 = vld [vmem:[%s3989_s12 + $0x110] sm:$0xff]  }
 0x25f   : > { %v3129_v61 = vld [vmem:[#allocation19 + $0x10] sm:$0xff]  }
 0x277   : > { %v1128_v62 = vpop.f32.mrf.mxu1  ;;  %v1237_v63 = vpop.f32.mrf.mxu0 }
 0x278   : > { %v1134_v1 = vadd.f32 %v1128_v62, %v1021_v55  ;;  %v3123_v55 = vld [vmem:[#allocation19 + $0x28] sm:$0xff]  }
 0x279   : > { %v2735_v2 = vpop.f32.mrf.mxu1  ;;  %v2755_v3 = vpop.f32.mrf.mxu0  ;;  %v3130_v62 = vld [vmem:[%s3989_s12 + $0x108] sm:$0xff]  }
 0x27a   : > { %v1243_v4 = vadd.f32 %v1237_v63, %v1134_v1  ;;  %v3131_v63 = vld [vmem:[#allocation19 + $0x8] sm:$0xff]   ;;  %v3133_v2 = vld [vmem:[#allocation19] sm:$0xff]  }
 0x27b   : > { %v1131_v5 = vpop.f32.mrf.mxu1  ;;  %v1240_v6 = vpop.f32.mrf.mxu0  ;;  %v3132_v1 = vld [vmem:[%s3989_s12 + $0x100] sm:$0xff]  }
 0x27c   : > { %v2050_v3 = vld [vmem:[#allocation4] ss:$2 sm:$0xff] }
 0x27d   : > { %v2736_v9 = vpop.f32.mrf.mxu1  ;;  %v2756_v10 = vpop.f32.mrf.mxu0  ;;  %v2051_v5 = vpack.c.bf16 %v2050_v3, %v2050_v3 }
 0x297   : > { %v1346_v11 = vpop.f32.mrf.mxu1  ;;  %v1472_v12 = vpop.f32.mrf.mxu0 }
 0x298   : > { %v3849_v14 = vadd.f32 %v1346_v11, %v1243_v4  ;;  %v1486_v15 = vmul.f32 %v2417_v0, %v1472_v12 }
 0x299   : > { %v2775_v16 = vpop.f32.mrf.mxu1  ;;  %v2795_v17 = vpop.f32.mrf.mxu0 }
 0x29a   : > { %v1495_v18 = vadd.f32 %v2418_v13, %v1486_v15 }
 0x29b   : > { %v1349_v19 = vpop.f32.mrf.mxu1  ;;  %v1475_v20 = vpop.f32.mrf.mxu0 }
 0x29c   : > { %v1497_v21 = vmax.f32 %v1495_v18, 0.0  ;;  %v1487_v22 = vmul.f32 %v2417_v0, %v1475_v20 }
 0x29d   : > { %v2776_v23 = vpop.f32.mrf.mxu1  ;;  %v2796_v24 = vpop.f32.mrf.mxu0 }
 0x29e   : > { %1503 = vst [vmem:[#allocation3 + $0x8] sm:$0xff] %v1497_v21  ;;  %v1496_v25 = vadd.f32 %v2418_v13, %v1487_v22 }
 0x2a0   : > { %v1498_v26 = vmax.f32 %v1496_v25, 0.0 }
 0x2a2   : > { %1504 = vst [vmem:[#allocation3 + $0x10] sm:$0xff] %v1498_v26 }
 0x2a9   : > { %v1525_v28 = vld [vmem:[#allocation3 + $0x6] ss:$2 sm:$0xff] }
 0x2aa   : > { %v1506_v29 = vld [vmem:[#allocation3 + $0x4] ss:$2 sm:$0xff]  ;;  %v1526_v31 = vpack.c.bf16 %v1525_v28, %v1525_v28 }
 0x2ab   : > { %v1507_v7 = vpack.c.bf16 %v1506_v29, %v1506_v29  ;;  %v1721_v46 = vld [vmem:[#allocation3 + $0x8] ss:$2 sm:$0xff] }
 0x2ac   : > { %2814 = vmatmul.mubr.bf16.vlgmr.msra.gmra.mxu1 %v1526_v31  ;;  %v1830_v47 = vld [vmem:[#allocation3 + $0xa] ss:$2 sm:$0xff]  ;;  %v1722_v50 = vpack.c.bf16 %v1721_v46, %v1721_v46 }
 0x2ad   : > { %2834 = vmatmul.mubr.bf16.vlgmr.msra.gmra.mxu0 %v1507_v7  ;;  %2838 = vmatpush3.bf16.msra.mxu1 %v3102_v27  ;;  %v1831_v51 = vpack.c.bf16 %v1830_v47, %v1830_v47  ;;  %v1939_v4 = vld [vmem:[#allocation3 + $0xc] ss:$2 sm:$0xff] }
 0x2ae   : > { %2858 = vmatpush3.bf16.msra.mxu0 %v3103_v30  ;;  %2839 = vmatprep.subr.bf16.mxu1 %v3863_v33  ;;  %v1940_v6 = vpack.c.bf16 %v1939_v4, %v1939_v4 }
 0x2af   : > { %2859 = vmatprep.subr.bf16.mxu0 %v3863_v33  ;;  %2853 = vmatprep.mubr.msk.bf16.mxu1 %vm3440_vm0, %v3863_v33 }
 0x2b0   : > { %2873 = vmatprep.mubr.msk.bf16.mxu0 %vm3440_vm0, %v3863_v33 }
 0x2b1   : > { %2840 = vmatpush3.bf16.msra.mxu1 %v3104_v8 }
 0x2b2   : > { %2860 = vmatpush3.bf16.msra.mxu0 %v3105_v32  ;;  %2841 = vmatprep.subr.bf16.mxu1 %v3863_v33  ;;  %v2531_v32 = vld [vmem:[%s3991_s14] ss:$0 sm:$0xff] }
 0x2b3   : > { %2861 = vmatprep.subr.bf16.mxu0 %v3863_v33 }
 0x2b5   : > { %2842 = vmatpush3.bf16.msra.mxu1 %v3106_v34 }
 0x2b6   : > { %2862 = vmatpush3.bf16.msra.mxu0 %v3107_v35  ;;  %2843 = vmatprep.subr.bf16.mxu1 %v3863_v33 }
 0x2b7   : > { %2863 = vmatprep.subr.bf16.mxu0 %v3863_v33 }
 0x2b9   : > { %2844 = vmatpush3.bf16.msra.mxu1 %v3108_v36  ;;  %v2532_v36 = vld [vmem:[%s3992_s15] ss:$0 sm:$0xff] }
 0x2ba   : > { %2864 = vmatpush3.bf16.msra.mxu0 %v3109_v37  ;;  %2845 = vmatprep.subr.bf16.mxu1 %v3863_v33 }
 0x2bb   : > { %2865 = vmatprep.subr.bf16.mxu0 %v3863_v33 }
 0x2bd   : > { %2846 = vmatpush3.bf16.msra.mxu1 %v3110_v38 }
 0x2be   : > { %2866 = vmatpush3.bf16.msra.mxu0 %v3111_v39  ;;  %2847 = vmatprep.subr.bf16.mxu1 %v3863_v33 }
 0x2bf   : > { %2867 = vmatprep.subr.bf16.mxu0 %v3863_v33 }
 0x2c1   : > { %2848 = vmatpush3.bf16.msra.mxu1 %v3112_v40 }
 0x2c2   : > { %2868 = vmatpush3.bf16.msra.mxu0 %v3113_v41  ;;  %2849 = vmatprep.subr.bf16.mxu1 %v3863_v33 }
 0x2c3   : > { %2869 = vmatprep.subr.bf16.mxu0 %v3863_v33 }
 0x2c5   : > { %2850 = vmatpush3.bf16.msra.mxu1 %v3114_v42 }
 0x2c6   : > { %2870 = vmatpush3.bf16.msra.mxu0 %v3115_v43  ;;  %2851 = vmatprep.subr.bf16.mxu1 %v3863_v33 }
 0x2c7   : > { %2871 = vmatprep.subr.bf16.mxu0 %v3863_v33 }
 0x2c9   : > { %2852 = vmatpush3.bf16.msra.mxu1 %v3116_v44 }
 0x2ca   : > { %2872 = vmatpush3.bf16.msra.mxu0 %v3117_v45  ;;  %2877 = vmatprep.subr.bf16.mxu1 %v3863_v33 }
 0x2cb   : > { %2897 = vmatprep.subr.bf16.mxu0 %v3863_v33 }
 0x2cc   : > { %2854 = vmatmul.mubr.bf16.vlgmr.msra.gmra.mxu1 %v1722_v50 }
 0x2cd   : > { %2874 = vmatmul.mubr.bf16.vlgmr.msra.gmra.mxu0 %v1831_v51  ;;  %2878 = vmatpush3.bf16.msra.mxu1 %v3118_v48 }
 0x2ce   : > { %2898 = vmatpush3.bf16.msra.mxu0 %v3119_v49  ;;  %2879 = vmatprep.subr.bf16.mxu1 %v3863_v33 }
 0x2cf   : > { %2899 = vmatprep.subr.bf16.mxu0 %v3863_v33  ;;  %2893 = vmatprep.mubr.msk.bf16.mxu1 %vm3440_vm0, %v3863_v33 }
 0x2d0   : > { %2913 = vmatprep.mubr.msk.bf16.mxu0 %vm3440_vm0, %v3863_v33 }
 0x2d1   : > { %2880 = vmatpush3.bf16.msra.mxu1 %v3120_v52 }
 0x2d2   : > { %2900 = vmatpush3.bf16.msra.mxu0 %v3121_v53  ;;  %2881 = vmatprep.subr.bf16.mxu1 %v3863_v33 }
 0x2d3   : > { %2901 = vmatprep.subr.bf16.mxu0 %v3863_v33 }
 0x2d5   : > { %2882 = vmatpush3.bf16.msra.mxu1 %v3122_v54 }
 0x2d6   : > { %2902 = vmatpush3.bf16.msra.mxu0 %v3123_v55  ;;  %2883 = vmatprep.subr.bf16.mxu1 %v3863_v33 }
 0x2d7   : > { %2903 = vmatprep.subr.bf16.mxu0 %v3863_v33 }
 0x2d9   : > { %2884 = vmatpush3.bf16.msra.mxu1 %v3124_v56 }
 0x2da   : > { %2904 = vmatpush3.bf16.msra.mxu0 %v3125_v57  ;;  %2885 = vmatprep.subr.bf16.mxu1 %v3863_v33 }
 0x2db   : > { %2905 = vmatprep.subr.bf16.mxu0 %v3863_v33 }
 0x2dd   : > { %2886 = vmatpush3.bf16.msra.mxu1 %v3126_v58 }
 0x2de   : > { %2906 = vmatpush3.bf16.msra.mxu0 %v3127_v59  ;;  %2887 = vmatprep.subr.bf16.mxu1 %v3863_v33 }
 0x2df   : > { %2907 = vmatprep.subr.bf16.mxu0 %v3863_v33 }
 0x2e1   : > { %2888 = vmatpush3.bf16.msra.mxu1 %v3128_v60 }
 0x2e2   : > { %2908 = vmatpush3.bf16.msra.mxu0 %v3129_v61  ;;  %2889 = vmatprep.subr.bf16.mxu1 %v3863_v33 }
 0x2e3   : > { %2909 = vmatprep.subr.bf16.mxu0 %v3863_v33 }
 0x2e5   : > { %2890 = vmatpush3.bf16.msra.mxu1 %v3130_v62 }
 0x2e6   : > { %2910 = vmatpush3.bf16.msra.mxu0 %v3131_v63  ;;  %2891 = vmatprep.subr.bf16.mxu1 %v3863_v33 }
 0x2e7   : > { %2911 = vmatprep.subr.bf16.mxu0 %v3863_v33 }
 0x2e9   : > { %2892 = vmatpush3.bf16.msra.mxu1 %v3132_v1 }
 0x2ea   : > { %2912 = vmatpush3.bf16.msra.mxu0 %v3133_v2 }
 0x2ec   : > { %2894 = vmatmul.mubr.bf16.vlgmr.msra.gmra.mxu1 %v1940_v6 }
 0x2ed   : > { %2914 = vmatmul.mubr.bf16.vlgmr.msra.gmra.mxu0 %v2051_v5 }
 0x36c   : > { %v1626_v9 = vpop.f32.mrf.mxu1 }
 0x36d   : > { %v1714_v10 = vpop.f32.mrf.mxu0 }
 0x36e   : > { %v2815_v0 = vpop.f32.mrf.mxu1  ;;  %v1715_v25 = vadd.f32 %v1714_v10, %v1626_v9 }
 0x36f   : > { %v2835_v11 = vpop.f32.mrf.mxu0 }
 0x370   : > { %v1629_v12 = vpop.f32.mrf.mxu1 }
 0x371   : > { %v1717_v13 = vpop.f32.mrf.mxu0 }
 0x372   : > { %v2816_v15 = vpop.f32.mrf.mxu1 }
 0x373   : > { %v2836_v16 = vpop.f32.mrf.mxu0 }
 0x38c   : > { %v1822_v17 = vpop.f32.mrf.mxu1 }
 0x38d   : > { %v1931_v18 = vpop.f32.mrf.mxu0  ;;  %v1828_v26 = vadd.f32 %v1822_v17, %v1715_v25 }
 0x38e   : > { %v2855_v19 = vpop.f32.mrf.mxu1 }
 0x38f   : > { %v2875_v20 = vpop.f32.mrf.mxu0  ;;  %v1937_v27 = vadd.f32 %v1931_v18, %v1828_v26 }
 0x390   : > { %v1825_v21 = vpop.f32.mrf.mxu1 }
 0x391   : > { %v1934_v22 = vpop.f32.mrf.mxu0 }
 0x392   : > { %v2856_v23 = vpop.f32.mrf.mxu1 }
 0x393   : > { %v2876_v24 = vpop.f32.mrf.mxu0 }
 0x3ac   : > { %v2040_v28 = vpop.f32.mrf.mxu1 }
 0x3ad   : > { %v2150_v29 = vpop.f32.mrf.mxu0  ;;  %v2046_v30 = vadd.f32 %v2040_v28, %v1937_v27 }
 0x3ae   : > { %v2895_v31 = vpop.f32.mrf.mxu1 }
 0x3af   : > { %v2915_v7 = vpop.f32.mrf.mxu0  ;;  %v2047_v8 = vadd.f32 %v2046_v30, %v3849_v14 }
 0x3b0   : > { %v2043_v33 = vpop.f32.mrf.mxu1 }
 0x3b1   : > { %v2153_v34 = vpop.f32.mrf.mxu0  ;;  %v2156_v35 = vadd.f32 %v2150_v29, %v2047_v8 }
 0x3b2   : > { %v2896_v37 = vpop.f32.mrf.mxu1 }
 0x3b3   : > { %v2916_v38 = vpop.f32.mrf.mxu0  ;;  %v2164_v39 = vmul.f32 %v2531_v32, %v2156_v35 }
 0x3b5   : > { %v2172_v40 = vadd.f32 %v2532_v36, %v2164_v39 }
 0x3b7   : > { %v2173_v41 = vmax.f32 %v2172_v40, 0.0 }
 0x3b9   : > { %v2174_v14 = vpack.c.bf16 %v2173_v41, %v2173_v41 }
 0x3bb   : > { %2175 = vst [vmem:[%s653_s0] sm:$0xf] %v2174_v14 }
 0x3bc PF: > { %s32_s21 = sadd.s32 1, %s3425_s21  }
 0x3bd   : > { %p29_p9 = scmp.ge.s32.totalorder %s32_s21, 4  }
 0x3bf   :  { %31 = sbr.rel (!%p29_p9) target bundleno = 10 (0xa), region = 173 }
 0x3c4   :  { %2195 = vsyncpa [#allocation6], 1 }
 0x3c5   :  { %2197 = vsyncpa [#allocation6 + $0x1], 1 }
 0x3c6   :  { %2198 = vsyncpa [#allocation8], 1 }
 0x3c7   :  { %2199 = vsyncpa [#allocation11], 1 }
 0x3c8   :  { %2200 = vsyncpa [#allocation14], 1 }
 0x3c9   :  { %2201 = vsyncpa [#allocation17], 1 }
 0x3ca   :  { %2202 = vsyncpa [#allocation20], 1 }

// kernel: _lambda_.6
= control target key start
LH: loop header
LB: loop body
LE: loop exit
PB: predicated region body
PF: predicated region fallthrough
CT: control target
= control target key end

     0   :  { %s2983_s29 = smov 0   ;;  %s3494_s0 = inlined_call_operand.vmem [shape: bf16[2,32,128], index: 0, kind: input, shape index: {}]   ;;  %s3495_s1 = inlined_call_operand.vmem [shape: f32[1,128], index: 1, kind: input, shape index: {}]   ;;  %s3496_s2 = inlined_call_operand.vmem [shape: f32[1,128], index: 2, kind: input, shape index: {}]   ;;  %s3497_s3 = inlined_call_operand.vmem [shape: bf16[128,128], index: 3, kind: input, shape index: {}]   ;;  %s3498_s4 = inlined_call_operand.vmem [shape: f32[1,128], index: 4, kind: input, shape index: {}]   ;;  %s3499_s5 = inlined_call_operand.vmem [shape: f32[1,128], index: 5, kind: input, shape index: {}]   ;;  %s3500_s6 = inlined_call_operand.vmem [shape: bf16[5,128,128], index: 6, kind: input, shape index: {}]   ;;  %s3501_s7 = inlined_call_operand.vmem [shape: f32[1,128], index: 7, kind: input, shape index: {}]   ;;  %s3502_s8 = inlined_call_operand.vmem [shape: f32[1,128], index: 8, kind: input, shape index: {}]   ;;  %s3503_s9 = inlined_call_operand.vmem [shape: bf16[128,128], index: 9, kind: input, shape index: {}]   ;;  %s3504_s10 = inlined_call_operand.vmem [shape: f32[1,128], index: 10, kind: input, shape index: {}]   ;;  %s3505_s11 = inlined_call_operand.vmem [shape: f32[1,128], index: 11, kind: input, shape index: {}]   ;;  %s3506_s12 = inlined_call_operand.vmem [shape: bf16[5,128,128], index: 12, kind: input, shape index: {}]   ;;  %s3507_s13 = inlined_call_operand.vmem [shape: bf16[128,128], index: 13, kind: input, shape index: {}]   ;;  %s3508_s14 = inlined_call_operand.vmem [shape: bf16[2,16,128], index: 14, kind: output, shape index: {}]  }
   0x1 LB: > { %s2133_s30 = sadd.s32 4294967295, %s2904_s29   ;;  %p2137_p0 = scmp.ge.s32.totalorder %s2904_s29, 1  ;;  %s2904_s29 = sphi %s2983_s29, %s24_s29  }
   0x2   : > { %p412_p1 = scmp.lt.s32.totalorder %s2904_s29, 3 }
   0x4   : > { %p413_p2 = pnand %p2137_p0, %p412_p1 }
   0x5   : > { %p458_p3 = scmp.lt.s32.totalorder (!%p413_p2), %s2133_s30, 1 }
   0x6   : > { %416 = sbr.rel (%p413_p2) target bundleno = 809 (0x329), region = 76 }
   0xb   : > { %v2793_v0 = vld [vmem:[%s3497_s3 + $0x38] sm:$0xff]   ;;  %v2794_v1 = vld [vmem:[%s3497_s3 + $0x30] sm:$0xff]   ;;  %s3510_s30 = smov (!%p458_p3, %s2133_s30), 1  ;;  %v2906_v2 = vmov 0.0   ;;  %v2795_v3 = vld [vmem:[%s3497_s3 + $0x28] sm:$0xff]   ;;  %vm2907_vm0 = vmmov 0  }
   0xc   : > { %2523 = vmatprep.subr.bf16.mxu0 %v2793_v0  ;;  %2543 = vmatprep.subr.bf16.mxu1 %v2906_v2  ;;  %644 = vst [vmem:[#allocation2] sm:$0xff] %v2906_v2  ;;  %649 = vst [vmem:[#allocation2 + $0x28] sm:$0x1] %v2906_v2  ;;  %s2386_s21 = sshll.u32 %s3510_s30, 4  ;;  %v2796_v4 = vld [vmem:[%s3497_s3 + $0x20] sm:$0xff]   ;;  %v2801_v13 = vld [vmem:[%s3500_s6 + $0x78] sm:$0xff]  }
   0xd   : > { %1381 = vst [vmem:[#allocation3] sm:$0xff] %v2906_v2  ;;  %1386 = vst [vmem:[#allocation3 + $0x28] sm:$0x7] %v2906_v2  ;;  %2524 = vmatpush3.bf16.msra.mxu0 %v2793_v0  ;;  %s462_s24 = scalar_lea.vmem %s3494_s0, %s2386_s21  ;;  %v2142_v7 = vld [vmem:[%s3495_s1] ss:$0 sm:$0xff]  ;;  %v2797_v14 = vld [vmem:[%s3497_s3 + $0x18] sm:$0xff]   ;;  %2544 = vmatpush3.bf16.msra.mxu1 %v2801_v13 }
   0xe   : > { %2525 = vmatprep.subr.bf16.mxu0 %v2794_v1  ;;  %v2391_v5 = vld [vmem:[%s462_s24] sm:$0xff]   ;;  %v2403_v6 = vld [vmem:[%s462_s24 + $0x8] sm:$0xff]   ;;  %v2803_v19 = vld [vmem:[%s3500_s6 + $0x70] sm:$0xff]   ;;  %2545 = vmatprep.subr.bf16.mxu1 %v2906_v2  ;;  %s2387_s19 = sshll.u32 %s3510_s30, 3 }
   0xf   : > { %v3017_v8 = vunpack.c.l.bf16 %v2391_v5  ;;  %v3019_v9 = vunpack.c.h.bf16 %v2391_v5  ;;  %v2143_v10 = vld [vmem:[%s3496_s2] ss:$0 sm:$0xff]  ;;  %v3024_v11 = vunpack.c.l.bf16 %v2403_v6  ;;  %v3026_v12 = vunpack.c.h.bf16 %v2403_v6  ;;  %v2798_v24 = vld [vmem:[%s3497_s3 + $0x10] sm:$0xff]   ;;  %v2805_v29 = vld [vmem:[%s3500_s6 + $0x68] sm:$0xff]   ;;  %2559 = vmatprep.mubr.msk.bf16.mxu1 %vm2907_vm0, %v2906_v2  ;;  %s467_s22 = scalar_lea.vmem %s3508_s14, %s2387_s19 }
  0x10   : > { %v2799_v31 = vld [vmem:[%s3497_s3 + $0x8] sm:$0xff]   ;;  %v2800_v32 = vld [vmem:[%s3497_s3] sm:$0xff]   ;;  %v2802_v33 = vld [vmem:[%s3500_s6 + $0x38] sm:$0xff]  }
  0x11   : > { %2526 = vmatpush3.bf16.msra.mxu0 %v2794_v1  ;;  %v484_v15 = vmul.f32 %v3017_v8, %v2142_v7  ;;  %v485_v16 = vmul.f32 %v3019_v9, %v2142_v7  ;;  %1953 = vst [vmem:[#allocation4] sm:$0xff] %v3017_v8  ;;  %1954 = vst [vmem:[#allocation4 + $0x8] sm:$0xff] %v3019_v9  ;;  %v486_v17 = vmul.f32 %v3024_v11, %v2142_v7  ;;  %v2804_v35 = vld [vmem:[%s3500_s6 + $0x30] sm:$0xff]   ;;  %v2806_v36 = vld [vmem:[%s3500_s6 + $0x28] sm:$0xff]  }
  0x12   : > { %2527 = vmatprep.subr.bf16.mxu0 %v2795_v3  ;;  %v487_v18 = vmul.f32 %v3026_v12, %v2142_v7  ;;  %1955 = vst [vmem:[#allocation4 + $0x10] sm:$0xff] %v3024_v11  ;;  %1956 = vst [vmem:[#allocation4 + $0x18] sm:$0xff] %v3026_v12  ;;  %2546 = vmatpush3.bf16.msra.mxu1 %v2803_v19  ;;  %v2807_v37 = vld [vmem:[%s3500_s6 + $0x60] sm:$0xff]   ;;  %v2809_v39 = vld [vmem:[%s3500_s6 + $0x58] sm:$0xff]  }
  0x13   : > { %v495_v20 = vadd.f32 %v2143_v10, %v484_v15  ;;  %v496_v21 = vadd.f32 %v2143_v10, %v485_v16  ;;  %v497_v22 = vadd.f32 %v2143_v10, %v486_v17  ;;  %2547 = vmatprep.subr.bf16.mxu1 %v2906_v2  ;;  %v2808_v38 = vld [vmem:[%s3500_s6 + $0x20] sm:$0xff]   ;;  %v2810_v40 = vld [vmem:[%s3500_s6 + $0x18] sm:$0xff]   ;;  %v2811_v41 = vld [vmem:[%s3500_s6 + $0x50] sm:$0xff]  }
  0x14   : > { %v498_v23 = vadd.f32 %v2143_v10, %v487_v18  ;;  %v2812_v42 = vld [vmem:[%s3500_s6 + $0x10] sm:$0xff]   ;;  %v2813_v43 = vld [vmem:[%s3500_s6 + $0x48] sm:$0xff]   ;;  %v2815_v45 = vld [vmem:[%s3500_s6 + $0x40] sm:$0xff]  }
  0x15   : > { %2528 = vmatpush3.bf16.msra.mxu0 %v2795_v3  ;;  %v499_v25 = vmax.f32 %v495_v20, 0.0  ;;  %v500_v26 = vmax.f32 %v496_v21, 0.0  ;;  %v501_v27 = vmax.f32 %v497_v22, 0.0  ;;  %v2814_v44 = vld [vmem:[%s3500_s6 + $0x8] sm:$0xff]   ;;  %v2816_v46 = vld [vmem:[%s3500_s6] sm:$0xff]   ;;  %v2817_v1 = vld [vmem:[%s3500_s6 + $0xb8] sm:$0xff]  }
  0x16   : > { %2529 = vmatprep.subr.bf16.mxu0 %v2796_v4  ;;  %v502_v28 = vmax.f32 %v498_v23, 0.0  ;;  %2548 = vmatpush3.bf16.msra.mxu1 %v2805_v29  ;;  %v2152_v47 = vld [vmem:[%s3498_s4] ss:$0 sm:$0xff]  ;;  %v2818_v10 = vld [vmem:[%s3500_s6 + $0xf8] sm:$0xff]   ;;  %v2820_v15 = vld [vmem:[%s3500_s6 + $0xf0] sm:$0xff]  }
  0x17   : > { %v503_v30 = vpack.c.bf16 %v500_v26, %v499_v25  ;;  %2549 = vmatprep.subr.bf16.mxu1 %v2906_v2  ;;  %v2153_v49 = vld [vmem:[%s3499_s5] ss:$0 sm:$0xff]  ;;  %v2821_v16 = vld [vmem:[%s3500_s6 + $0xa8] sm:$0xff]   ;;  %v2825_v20 = vld [vmem:[%s3500_s6 + $0x98] sm:$0xff]  }
  0x18   : > { %v504_v34 = vpack.c.bf16 %v502_v28, %v501_v27  ;;  %v2822_v17 = vld [vmem:[%s3500_s6 + $0xe8] sm:$0xff]   ;;  %v2823_v18 = vld [vmem:[%s3500_s6 + $0xa0] sm:$0xff]   ;;  %v2826_v21 = vld [vmem:[%s3500_s6 + $0xd8] sm:$0xff]  }
  0x19   : > { %2530 = vmatpush3.bf16.msra.mxu0 %v2796_v4  ;;  %2539 = vmatprep.mubr.bf16.mxu0 %v503_v30  ;;  %v2824_v19 = vld [vmem:[%s3500_s6 + $0xe0] sm:$0xff]   ;;  %v2827_v22 = vld [vmem:[%s3500_s6 + $0x90] sm:$0xff]   ;;  %v2829_v27 = vld [vmem:[%s3500_s6 + $0x88] sm:$0xff]  }
  0x1a   : > { %2531 = vmatprep.subr.bf16.mxu0 %v2797_v14  ;;  %2550 = vmatpush3.bf16.msra.mxu1 %v2807_v37  ;;  %v3171_v23 = vld [vmem:[%s3501_s7] ss:$0 sm:$0xff] }
  0x1b   : > { %2551 = vmatprep.subr.bf16.mxu1 %v2906_v2  ;;  %v1221_v25 = vmul.f32 %v3017_v8, %v3171_v23  ;;  %v1222_v26 = vmul.f32 %v3019_v9, %v3171_v23  ;;  %v3188_v28 = vld [vmem:[%s3502_s8] ss:$0 sm:$0xff]  ;;  %v2830_v8 = vld [vmem:[%s3500_s6 + $0xc8] sm:$0xff]  }
  0x1c   : > { %v2831_v30 = vld [vmem:[%s3500_s6 + $0x80] sm:$0xff]  }
  0x1d   : > { %2532 = vmatpush3.bf16.msra.mxu0 %v2797_v14  ;;  %v2819_v14 = vld [vmem:[%s3500_s6 + $0xb0] sm:$0xff]   ;;  %v1232_v9 = vadd.f32 %v3188_v28, %v1221_v25  ;;  %v1233_v29 = vadd.f32 %v3188_v28, %v1222_v26 }
  0x1e   : > { %2533 = vmatprep.subr.bf16.mxu0 %v2798_v24  ;;  %2552 = vmatpush3.bf16.msra.mxu1 %v2809_v39 }
  0x1f   : > { %2553 = vmatprep.subr.bf16.mxu1 %v2906_v2 }
  0x21   : > { %2534 = vmatpush3.bf16.msra.mxu0 %v2798_v24  ;;  %v2828_v24 = vld [vmem:[%s3500_s6 + $0xd0] sm:$0xff]  }
  0x22   : > { %2535 = vmatprep.subr.bf16.mxu0 %v2799_v31  ;;  %2554 = vmatpush3.bf16.msra.mxu1 %v2811_v41 }
  0x23   : > { %2555 = vmatprep.subr.bf16.mxu1 %v2906_v2 }
  0x25   : > { %2536 = vmatpush3.bf16.msra.mxu0 %v2799_v31  ;;  %v2832_v31 = vld [vmem:[%s3500_s6 + $0xc0] sm:$0xff]  }
  0x26   : > { %2537 = vmatprep.subr.bf16.mxu0 %v2800_v32  ;;  %2556 = vmatpush3.bf16.msra.mxu1 %v2813_v43 }
  0x27   : > { %2557 = vmatprep.subr.bf16.mxu1 %v2906_v2 }
  0x29   : > { %2538 = vmatpush3.bf16.msra.mxu0 %v2800_v32 }
  0x2a   : > { %2563 = vmatprep.subr.bf16.mxu0 %v2906_v2  ;;  %2558 = vmatpush3.bf16.msra.mxu1 %v2815_v45  ;;  %v2837_v45 = vld [vmem:[%s3503_s9 + $0x28] sm:$0xff]  }
  0x2b   : > { %2583 = vmatprep.subr.bf16.mxu1 %v2906_v2 }
  0x2c   : > { %2540 = vmatmul.mubr.bf16.vlgmr.msra.gmra.mxu0 %v504_v34 }
  0x2d   : > { %2564 = vmatpush3.bf16.msra.mxu0 %v2802_v33  ;;  %2579 = vmatprep.mubr.msk.bf16.mxu0 %vm2907_vm0, %v2906_v2  ;;  %v2833_v33 = vld [vmem:[%s3503_s9 + $0x38] sm:$0xff]  }
  0x2e   : > { %2565 = vmatprep.subr.bf16.mxu0 %v2906_v2 }
  0x31   : > { %2566 = vmatpush3.bf16.msra.mxu0 %v2804_v35  ;;  %v1236_v35 = vmax.f32 %v1232_v9, 0.0 }
  0x32   : > { %2567 = vmatprep.subr.bf16.mxu0 %v2906_v2 }
  0x35   : > { %2568 = vmatpush3.bf16.msra.mxu0 %v2806_v36  ;;  %v1237_v36 = vmax.f32 %v1233_v29, 0.0 }
  0x36   : > { %2569 = vmatprep.subr.bf16.mxu0 %v2906_v2 }
  0x37   : > { %v1240_v43 = vpack.c.bf16 %v1237_v36, %v1236_v35 }
  0x39   : > { %2570 = vmatpush3.bf16.msra.mxu0 %v2808_v38  ;;  %v2834_v38 = vld [vmem:[%s3500_s6 + $0x138] sm:$0xff]  }
  0x3a   : > { %2571 = vmatprep.subr.bf16.mxu0 %v2906_v2 }
  0x3d   : > { %2572 = vmatpush3.bf16.msra.mxu0 %v2810_v40 }
  0x3e   : > { %2573 = vmatprep.subr.bf16.mxu0 %v2906_v2 }
  0x41   : > { %2574 = vmatpush3.bf16.msra.mxu0 %v2812_v42  ;;  %v2835_v42 = vld [vmem:[%s3503_s9 + $0x30] sm:$0xff]  }
  0x42   : > { %2575 = vmatprep.subr.bf16.mxu0 %v2906_v2 }
  0x45   : > { %2576 = vmatpush3.bf16.msra.mxu0 %v2814_v44  ;;  %v2836_v44 = vld [vmem:[%s3500_s6 + $0x130] sm:$0xff]  }
  0x46   : > { %2577 = vmatprep.subr.bf16.mxu0 %v2906_v2 }
  0x49   : > { %2578 = vmatpush3.bf16.msra.mxu0 %v2816_v46  ;;  %v2838_v46 = vld [vmem:[%s3500_s6 + $0x128] sm:$0xff]  }
  0x4a   : > { %2603 = vmatprep.subr.bf16.mxu0 %v2906_v2 }
  0xec   : > { %v2541_v48 = vpop.f32.mrf.mxu0 }
  0xed   : > { %v627_v50 = vmul.f32 %v2541_v48, %v2152_v47  ;;  %v2840_v48 = vld [vmem:[%s3500_s6 + $0x120] sm:$0xff]  }
  0xee   : > { %v603_v51 = vpop.f32.mrf.mxu0 }
  0xef   : > { %v638_v52 = vadd.f32 %v2153_v49, %v627_v50  ;;  %v625_v53 = vmul.f32 %v2152_v47, %v603_v51  ;;  %v2842_v50 = vld [vmem:[%s3500_s6 + $0x118] sm:$0xff]   ;;  %v2843_v51 = vld [vmem:[%s3503_s9 + $0x10] sm:$0xff]  }
  0xf0   : > { %v2542_v54 = vpop.f32.mrf.mxu0 }
  0xf1   : > { %v642_v55 = vmax.f32 %v638_v52, 0.0  ;;  %v636_v56 = vadd.f32 %v2153_v49, %v625_v53  ;;  %v628_v57 = vmul.f32 %v2542_v54, %v2152_v47  ;;  %v2844_v52 = vld [vmem:[%s3500_s6 + $0x110] sm:$0xff]   ;;  %v1223_v53 = vmul.f32 %v3024_v11, %v3171_v23 }
  0xf2   : > { %v606_v58 = vpop.f32.mrf.mxu0  ;;  %v1224_v54 = vmul.f32 %v3026_v12, %v3171_v23  ;;  %v2847_v12 = vld [vmem:[%s3503_s9] sm:$0xff]  }
  0xf3   : > { %652 = vst [vmem:[#allocation2 + $0x18] sm:$0xff] %v642_v55  ;;  %v640_v59 = vmax.f32 %v636_v56, 0.0  ;;  %v639_v60 = vadd.f32 %v2153_v49, %v628_v57  ;;  %v626_v61 = vmul.f32 %v2152_v47, %v606_v58  ;;  %v2839_v47 = vld [vmem:[%s3503_s9 + $0x20] sm:$0xff]   ;;  %v2845_v55 = vld [vmem:[%s3503_s9 + $0x8] sm:$0xff]   ;;  %v1234_v57 = vadd.f32 %v3188_v28, %v1223_v53 }
  0xf4   : > { %v2846_v56 = vld [vmem:[%s3500_s6 + $0x108] sm:$0xff]   ;;  %v1235_v11 = vadd.f32 %v3188_v28, %v1224_v54  ;;  %v2848_v58 = vld [vmem:[%s3500_s6 + $0x100] sm:$0xff]  }
  0xf5   : > { %650 = vst [vmem:[#allocation2 + $0x8] sm:$0xff] %v640_v59  ;;  %v643_v62 = vmax.f32 %v639_v60, 0.0  ;;  %v637_v63 = vadd.f32 %v2153_v49, %v626_v61  ;;  %v2841_v49 = vld [vmem:[%s3503_s9 + $0x18] sm:$0xff]   ;;  %v1238_v59 = vmax.f32 %v1234_v57, 0.0 }
  0xf6   : > { %v1239_v60 = vmax.f32 %v1235_v11, 0.0 }
  0xf7   : > { %653 = vst [vmem:[#allocation2 + $0x20] sm:$0xff] %v643_v62  ;;  %v641_v0 = vmax.f32 %v637_v63, 0.0 }
  0xf8   : > { %v1241_v63 = vpack.c.bf16 %v1239_v60, %v1238_v59 }
  0xf9   : > { %651 = vst [vmem:[#allocation2 + $0x10] sm:$0xff] %v641_v0 }
  0xfe   : > { %v878_v37 = vld [vmem:[#allocation2 + $0x18] ss:$2 sm:$0xff]  ;;  %v991_v40 = vld [vmem:[#allocation2 + $0x19] ss:$2 sm:$0xff] }
  0xff   : > { %v1104_v62 = vld [vmem:[#allocation2 + $0x1a] ss:$2 sm:$0xff] }
 0x100   : > { %v676_v3 = vld [vmem:[#allocation2 + $0x7] ss:$2 sm:$0xff]  ;;  %v678_v4 = vld [vmem:[#allocation2 + $0x17] ss:$2 sm:$0xff]  ;;  %v655_v5 = vld [vmem:[#allocation2 + $0x6] ss:$2 sm:$0xff] }
 0x101   : > { %v679_v6 = vpack.c.bf16 %v678_v4, %v676_v3  ;;  %v657_v7 = vld [vmem:[#allocation2 + $0x16] ss:$2 sm:$0xff]  ;;  %v989_v34 = vld [vmem:[#allocation2 + $0x9] ss:$2 sm:$0xff] }
 0x102   : > { %v658_v13 = vpack.c.bf16 %v657_v7, %v655_v5  ;;  %v876_v32 = vld [vmem:[#allocation2 + $0x8] ss:$2 sm:$0xff]  ;;  %v992_v41 = vpack.c.bf16 %v991_v40, %v989_v34  ;;  %v2850_v3 = vld [vmem:[%s3506_s12 + $0x38] sm:$0xff]  }
 0x103   : > { %2560 = vmatmul.mubr.bf16.vlgmr.msra.gmra.mxu1 %v679_v6  ;;  %v879_v39 = vpack.c.bf16 %v878_v37, %v876_v32  ;;  %v1102_v61 = vld [vmem:[#allocation2 + $0xa] ss:$2 sm:$0xff] }
 0x104   : > { %2580 = vmatmul.mubr.bf16.vlgmr.msra.gmra.mxu0 %v658_v13  ;;  %2584 = vmatpush3.bf16.msra.mxu1 %v2817_v1  ;;  %v1105_v0 = vpack.c.bf16 %v1104_v62, %v1102_v61  ;;  %v2849_v1 = vld [vmem:[%s3506_s12 + $0x78] sm:$0xff]   ;;  %v2851_v4 = vld [vmem:[%s3506_s12 + $0x70] sm:$0xff]   ;;  %v2853_v6 = vld [vmem:[%s3506_s12 + $0x68] sm:$0xff]  }
 0x105   : > { %2604 = vmatpush3.bf16.msra.mxu0 %v2818_v10  ;;  %2585 = vmatprep.subr.bf16.mxu1 %v2906_v2  ;;  %v2852_v5 = vld [vmem:[%s3506_s12 + $0x30] sm:$0xff]   ;;  %v2854_v7 = vld [vmem:[%s3506_s12 + $0x28] sm:$0xff]   ;;  %v2855_v10 = vld [vmem:[%s3506_s12 + $0x60] sm:$0xff]  }
 0x106   : > { %2605 = vmatprep.subr.bf16.mxu0 %v2906_v2  ;;  %2599 = vmatprep.mubr.msk.bf16.mxu1 %vm2907_vm0, %v2906_v2  ;;  %v2856_v13 = vld [vmem:[%s3506_s12 + $0x20] sm:$0xff]  }
 0x107   : > { %2619 = vmatprep.mubr.msk.bf16.mxu0 %vm2907_vm0, %v2906_v2 }
 0x108   : > { %2586 = vmatpush3.bf16.msra.mxu1 %v2819_v14  ;;  %v2857_v14 = vld [vmem:[%s3506_s12 + $0x58] sm:$0xff]  }
 0x109   : > { %2606 = vmatpush3.bf16.msra.mxu0 %v2820_v15  ;;  %2587 = vmatprep.subr.bf16.mxu1 %v2906_v2  ;;  %v2858_v15 = vld [vmem:[%s3506_s12 + $0x18] sm:$0xff]  }
 0x10a   : > { %2607 = vmatprep.subr.bf16.mxu0 %v2906_v2 }
 0x10c   : > { %2588 = vmatpush3.bf16.msra.mxu1 %v2821_v16  ;;  %v2859_v16 = vld [vmem:[%s3506_s12 + $0x50] sm:$0xff]  }
 0x10d   : > { %2608 = vmatpush3.bf16.msra.mxu0 %v2822_v17  ;;  %2589 = vmatprep.subr.bf16.mxu1 %v2906_v2  ;;  %v2860_v17 = vld [vmem:[%s3506_s12 + $0x10] sm:$0xff]  }
 0x10e   : > { %2609 = vmatprep.subr.bf16.mxu0 %v2906_v2 }
 0x110   : > { %2590 = vmatpush3.bf16.msra.mxu1 %v2823_v18  ;;  %v2861_v18 = vld [vmem:[%s3506_s12 + $0x48] sm:$0xff]  }
 0x111   : > { %2610 = vmatpush3.bf16.msra.mxu0 %v2824_v19  ;;  %2591 = vmatprep.subr.bf16.mxu1 %v2906_v2  ;;  %v2862_v19 = vld [vmem:[%s3506_s12 + $0x8] sm:$0xff]  }
 0x112   : > { %2611 = vmatprep.subr.bf16.mxu0 %v2906_v2 }
 0x114   : > { %2592 = vmatpush3.bf16.msra.mxu1 %v2825_v20  ;;  %v2863_v20 = vld [vmem:[%s3506_s12 + $0x40] sm:$0xff]  }
 0x115   : > { %2612 = vmatpush3.bf16.msra.mxu0 %v2826_v21  ;;  %2593 = vmatprep.subr.bf16.mxu1 %v2906_v2  ;;  %v2864_v21 = vld [vmem:[%s3506_s12] sm:$0xff]  }
 0x116   : > { %2613 = vmatprep.subr.bf16.mxu0 %v2906_v2 }
 0x118   : > { %2594 = vmatpush3.bf16.msra.mxu1 %v2827_v22  ;;  %v3335_v22 = vld [vmem:[#allocation2] sm:$0xff] }
 0x119   : > { %2614 = vmatpush3.bf16.msra.mxu0 %v2828_v24  ;;  %2595 = vmatprep.subr.bf16.mxu1 %v2906_v2 }
 0x11a   : > { %2615 = vmatprep.subr.bf16.mxu0 %v2906_v2 }
 0x11c   : > { %2596 = vmatpush3.bf16.msra.mxu1 %v2829_v27 }
 0x11d   : > { %2616 = vmatpush3.bf16.msra.mxu0 %v2830_v8  ;;  %2597 = vmatprep.subr.bf16.mxu1 %v2906_v2 }
 0x11e   : > { %2617 = vmatprep.subr.bf16.mxu0 %v2906_v2 }
 0x120   : > { %2598 = vmatpush3.bf16.msra.mxu1 %v2831_v30 }
 0x121   : > { %2618 = vmatpush3.bf16.msra.mxu0 %v2832_v31  ;;  %2623 = vmatprep.subr.bf16.mxu1 %v2906_v2 }
 0x122   : > { %2643 = vmatprep.subr.bf16.mxu0 %v2833_v33 }
 0x123   : > { %2600 = vmatmul.mubr.bf16.vlgmr.msra.gmra.mxu1 %v879_v39 }
 0x124   : > { %2620 = vmatmul.mubr.bf16.vlgmr.msra.gmra.mxu0 %v992_v41  ;;  %2624 = vmatpush3.bf16.msra.mxu1 %v2834_v38 }
 0x125   : > { %2644 = vmatpush3.bf16.msra.mxu0 %v2833_v33  ;;  %2625 = vmatprep.subr.bf16.mxu1 %v2906_v2 }
 0x126   : > { %2645 = vmatprep.subr.bf16.mxu0 %v2835_v42  ;;  %2639 = vmatprep.mubr.msk.bf16.mxu1 %vm2907_vm0, %v2906_v2 }
 0x127   : > { %2659 = vmatprep.mubr.bf16.mxu0 %v1240_v43 }
 0x128   : > { %2626 = vmatpush3.bf16.msra.mxu1 %v2836_v44 }
 0x129   : > { %2646 = vmatpush3.bf16.msra.mxu0 %v2835_v42  ;;  %2627 = vmatprep.subr.bf16.mxu1 %v2906_v2  ;;  %v2268_v42 = vld [vmem:[%s3504_s10] ss:$0 sm:$0xff] }
 0x12a   : > { %2647 = vmatprep.subr.bf16.mxu0 %v2837_v45 }
 0x12c   : > { %2628 = vmatpush3.bf16.msra.mxu1 %v2838_v46  ;;  %v2269_v46 = vld [vmem:[%s3505_s11] ss:$0 sm:$0xff] }
 0x12d   : > { %2648 = vmatpush3.bf16.msra.mxu0 %v2837_v45  ;;  %2629 = vmatprep.subr.bf16.mxu1 %v2906_v2 }
 0x12e   : > { %2649 = vmatprep.subr.bf16.mxu0 %v2839_v47 }
 0x130   : > { %2630 = vmatpush3.bf16.msra.mxu1 %v2840_v48 }
 0x131   : > { %2650 = vmatpush3.bf16.msra.mxu0 %v2839_v47  ;;  %2631 = vmatprep.subr.bf16.mxu1 %v2906_v2 }
 0x132   : > { %2651 = vmatprep.subr.bf16.mxu0 %v2841_v49 }
 0x134   : > { %2632 = vmatpush3.bf16.msra.mxu1 %v2842_v50 }
 0x135   : > { %2652 = vmatpush3.bf16.msra.mxu0 %v2841_v49  ;;  %2633 = vmatprep.subr.bf16.mxu1 %v2906_v2 }
 0x136   : > { %2653 = vmatprep.subr.bf16.mxu0 %v2843_v51 }
 0x138   : > { %2634 = vmatpush3.bf16.msra.mxu1 %v2844_v52 }
 0x139   : > { %2654 = vmatpush3.bf16.msra.mxu0 %v2843_v51  ;;  %2635 = vmatprep.subr.bf16.mxu1 %v2906_v2 }
 0x13a   : > { %2655 = vmatprep.subr.bf16.mxu0 %v2845_v55 }
 0x13c   : > { %2636 = vmatpush3.bf16.msra.mxu1 %v2846_v56 }
 0x13d   : > { %2656 = vmatpush3.bf16.msra.mxu0 %v2845_v55  ;;  %2637 = vmatprep.subr.bf16.mxu1 %v2906_v2 }
 0x13e   : > { %2657 = vmatprep.subr.bf16.mxu0 %v2847_v12 }
 0x140   : > { %2638 = vmatpush3.bf16.msra.mxu1 %v2848_v58 }
 0x141   : > { %2658 = vmatpush3.bf16.msra.mxu0 %v2847_v12  ;;  %2663 = vmatprep.subr.bf16.mxu1 %v2906_v2 }
 0x142   : > { %2683 = vmatprep.subr.bf16.mxu0 %v2906_v2 }
 0x143   : > { %2640 = vmatmul.mubr.bf16.vlgmr.msra.gmra.mxu1 %v1105_v0  ;;  %v2865_v0 = vld [vmem:[%s3506_s12 + $0xb8] sm:$0xff]  }
 0x144   : > { %2660 = vmatmul.mubr.bf16.vlgmr.msra.gmra.mxu0 %v1241_v63  ;;  %2679 = vmatprep.mubr.msk.bf16.mxu1 %vm2907_vm0, %v2906_v2 }
 0x145   : > { %2699 = vmatprep.mubr.msk.bf16.mxu0 %vm2907_vm0, %v2906_v2  ;;  %2664 = vmatpush3.bf16.msra.mxu1 %v2849_v1 }
 0x146   : > { %2684 = vmatpush3.bf16.msra.mxu0 %v2850_v3  ;;  %2665 = vmatprep.subr.bf16.mxu1 %v2906_v2 }
 0x147   : > { %2685 = vmatprep.subr.bf16.mxu0 %v2906_v2 }
 0x149   : > { %2666 = vmatpush3.bf16.msra.mxu1 %v2851_v4 }
 0x14a   : > { %2686 = vmatpush3.bf16.msra.mxu0 %v2852_v5  ;;  %2667 = vmatprep.subr.bf16.mxu1 %v2906_v2 }
 0x14b   : > { %2687 = vmatprep.subr.bf16.mxu0 %v2906_v2 }
 0x14d   : > { %2668 = vmatpush3.bf16.msra.mxu1 %v2853_v6 }
 0x14e   : > { %2688 = vmatpush3.bf16.msra.mxu0 %v2854_v7  ;;  %2669 = vmatprep.subr.bf16.mxu1 %v2906_v2  ;;  %v2866_v7 = vld [vmem:[%s3506_s12 + $0xf8] sm:$0xff]  }
 0x14f   : > { %2689 = vmatprep.subr.bf16.mxu0 %v2906_v2 }
 0x151   : > { %2670 = vmatpush3.bf16.msra.mxu1 %v2855_v10 }
 0x152   : > { %2690 = vmatpush3.bf16.msra.mxu0 %v2856_v13  ;;  %2671 = vmatprep.subr.bf16.mxu1 %v2906_v2  ;;  %v2867_v13 = vld [vmem:[%s3506_s12 + $0xb0] sm:$0xff]  }
 0x153   : > { %2691 = vmatprep.subr.bf16.mxu0 %v2906_v2 }
 0x155   : > { %2672 = vmatpush3.bf16.msra.mxu1 %v2857_v14  ;;  %v2868_v14 = vld [vmem:[%s3506_s12 + $0xf0] sm:$0xff]  }
 0x156   : > { %2692 = vmatpush3.bf16.msra.mxu0 %v2858_v15  ;;  %2673 = vmatprep.subr.bf16.mxu1 %v2906_v2  ;;  %v2869_v15 = vld [vmem:[%s3506_s12 + $0xa8] sm:$0xff]  }
 0x157   : > { %2693 = vmatprep.subr.bf16.mxu0 %v2906_v2 }
 0x159   : > { %2674 = vmatpush3.bf16.msra.mxu1 %v2859_v16  ;;  %v2870_v16 = vld [vmem:[%s3506_s12 + $0xe8] sm:$0xff]  }
 0x15a   : > { %2694 = vmatpush3.bf16.msra.mxu0 %v2860_v17  ;;  %2675 = vmatprep.subr.bf16.mxu1 %v2906_v2  ;;  %v2871_v17 = vld [vmem:[%s3506_s12 + $0xa0] sm:$0xff]  }
 0x15b   : > { %2695 = vmatprep.subr.bf16.mxu0 %v2906_v2 }
 0x15d   : > { %2676 = vmatpush3.bf16.msra.mxu1 %v2861_v18  ;;  %v2872_v18 = vld [vmem:[%s3506_s12 + $0xe0] sm:$0xff]  }
 0x15e   : > { %2696 = vmatpush3.bf16.msra.mxu0 %v2862_v19  ;;  %2677 = vmatprep.subr.bf16.mxu1 %v3335_v22  ;;  %v2873_v19 = vld [vmem:[%s3506_s12 + $0x98] sm:$0xff]  }
 0x15f   : > { %2697 = vmatprep.subr.bf16.mxu0 %v3335_v22 }
 0x161   : > { %2678 = vmatpush3.bf16.msra.mxu1 %v2863_v20  ;;  %v2874_v20 = vld [vmem:[%s3506_s12 + $0xd8] sm:$0xff]  }
 0x162   : > { %2698 = vmatpush3.bf16.msra.mxu0 %v2864_v21  ;;  %2703 = vmatprep.subr.bf16.mxu1 %v3335_v22  ;;  %v2875_v21 = vld [vmem:[%s3506_s12 + $0x90] sm:$0xff]  }
 0x163   : > { %2723 = vmatprep.subr.bf16.mxu0 %v3335_v22 }
 0x1c3   : > { %v779_v2 = vpop.f32.mrf.mxu1 }
 0x1c4   : > { %v868_v23 = vpop.f32.mrf.mxu0 }
 0x1c5   : > { %v869_v24 = vadd.f32 %v868_v23, %v779_v2  ;;  %v2561_v25 = vpop.f32.mrf.mxu1  ;;  %v2876_v2 = vld [vmem:[%s3506_s12 + $0xd0] sm:$0xff]   ;;  %v2877_v23 = vld [vmem:[%s3506_s12 + $0x88] sm:$0xff]  }
 0x1c6   : > { %v2581_v26 = vpop.f32.mrf.mxu0  ;;  %v2879_v25 = vld [vmem:[%s3506_s12 + $0x80] sm:$0xff]  }
 0x1c7   : > { %v782_v27 = vpop.f32.mrf.mxu1  ;;  %v2880_v26 = vld [vmem:[%s3506_s12 + $0xc0] sm:$0xff]  }
 0x1c8   : > { %v871_v28 = vpop.f32.mrf.mxu0 }
 0x1c9   : > { %v872_v8 = vadd.f32 %v871_v28, %v782_v27  ;;  %v2562_v9 = vpop.f32.mrf.mxu1 }
 0x1ca   : > { %v2582_v29 = vpop.f32.mrf.mxu0  ;;  %v2881_v9 = vld [vmem:[%s3506_s12 + $0x138] sm:$0xff]  }
 0x1e3   : > { %v979_v30 = vpop.f32.mrf.mxu1 }
 0x1e4   : > { %v986_v31 = vadd.f32 %v979_v30, %v869_v24  ;;  %v1092_v32 = vpop.f32.mrf.mxu0  ;;  %v2878_v24 = vld [vmem:[%s3506_s12 + $0xc8] sm:$0xff]  }
 0x1e5   : > { %v2601_v33 = vpop.f32.mrf.mxu1 }
 0x1e6   : > { %v1099_v34 = vadd.f32 %v1092_v32, %v986_v31  ;;  %v2621_v35 = vpop.f32.mrf.mxu0  ;;  %v2882_v31 = vld [vmem:[%s3507_s13 + $0x38] sm:$0xff]   ;;  %v2883_v33 = vld [vmem:[%s3506_s12 + $0x130] sm:$0xff]  }
 0x1e7   : > { %v982_v36 = vpop.f32.mrf.mxu1  ;;  %v2885_v35 = vld [vmem:[%s3506_s12 + $0x128] sm:$0xff]  }
 0x1e8   : > { %v987_v37 = vadd.f32 %v982_v36, %v872_v8  ;;  %v1095_v38 = vpop.f32.mrf.mxu0  ;;  %v2886_v36 = vld [vmem:[%s3507_s13 + $0x28] sm:$0xff]  }
 0x1e9   : > { %v2602_v39 = vpop.f32.mrf.mxu1 }
 0x1ea   : > { %v1100_v40 = vadd.f32 %v1095_v38, %v987_v37  ;;  %v2622_v41 = vpop.f32.mrf.mxu0  ;;  %v2887_v37 = vld [vmem:[%s3506_s12 + $0x120] sm:$0xff]   ;;  %v2889_v39 = vld [vmem:[%s3506_s12 + $0x118] sm:$0xff]  }
 0x1eb   : > { %v2888_v38 = vld [vmem:[%s3507_s13 + $0x20] sm:$0xff]   ;;  %v2891_v41 = vld [vmem:[%s3506_s12 + $0x110] sm:$0xff]  }
 0x203   : > { %v1205_v43 = vpop.f32.mrf.mxu1 }
 0x204   : > { %v3344_v44 = vadd.f32 %v1205_v43, %v1099_v34  ;;  %v2661_v45 = vpop.f32.mrf.mxu0  ;;  %v2884_v34 = vld [vmem:[%s3507_s13 + $0x30] sm:$0xff]   ;;  %v2893_v43 = vld [vmem:[%s3506_s12 + $0x108] sm:$0xff]  }
 0x205   : > { %v1364_v47 = vmul.f32 %v2661_v45, %v2268_v42  ;;  %v2641_v48 = vpop.f32.mrf.mxu1  ;;  %v2894_v45 = vld [vmem:[%s3507_s13 + $0x8] sm:$0xff]  }
 0x206   : > { %v1340_v49 = vpop.f32.mrf.mxu0  ;;  %v1957_v48 = vld [vmem:[#allocation4] ss:$2 sm:$0xff] }
 0x207   : > { %v1375_v50 = vadd.f32 %v2269_v46, %v1364_v47  ;;  %v1362_v51 = vmul.f32 %v2268_v42, %v1340_v49  ;;  %v1208_v52 = vpop.f32.mrf.mxu1  ;;  %v2896_v47 = vld [vmem:[%s3507_s13] sm:$0xff]   ;;  %v1959_v49 = vld [vmem:[#allocation4 + $0x10] ss:$2 sm:$0xff] }
 0x208   : > { %v3349_v53 = vadd.f32 %v1208_v52, %v1100_v40  ;;  %v2662_v54 = vpop.f32.mrf.mxu0  ;;  %v2890_v40 = vld [vmem:[%s3507_s13 + $0x18] sm:$0xff]   ;;  %v1960_v52 = vpack.c.bf16 %v1959_v49, %v1957_v48 }
 0x209   : > { %v1379_v55 = vmax.f32 %v1375_v50, 0.0  ;;  %v1373_v56 = vadd.f32 %v2269_v46, %v1362_v51  ;;  %v1365_v57 = vmul.f32 %v2662_v54, %v2268_v42  ;;  %v2642_v11 = vpop.f32.mrf.mxu1 }
 0x20a   : > { %v1343_v12 = vpop.f32.mrf.mxu0 }
 0x20b   : > { %1389 = vst [vmem:[#allocation3 + $0x18] sm:$0xff] %v1379_v55  ;;  %v1377_v58 = vmax.f32 %v1373_v56, 0.0  ;;  %v1376_v59 = vadd.f32 %v2269_v46, %v1365_v57  ;;  %v1363_v60 = vmul.f32 %v2268_v42, %v1343_v12  ;;  %v2892_v42 = vld [vmem:[%s3507_s13 + $0x10] sm:$0xff]  }
 0x20d   : > { %1387 = vst [vmem:[#allocation3 + $0x8] sm:$0xff] %v1377_v58  ;;  %v1380_v61 = vmax.f32 %v1376_v59, 0.0  ;;  %v1374_v62 = vadd.f32 %v2269_v46, %v1363_v60  ;;  %v2895_v46 = vld [vmem:[%s3506_s12 + $0x100] sm:$0xff]  }
 0x20f   : > { %1390 = vst [vmem:[#allocation3 + $0x20] sm:$0xff] %v1380_v61  ;;  %v1378_v63 = vmax.f32 %v1374_v62, 0.0 }
 0x211   : > { %1388 = vst [vmem:[#allocation3 + $0x10] sm:$0xff] %v1378_v63 }
 0x216   : > { %v1615_v8 = vld [vmem:[#allocation3 + $0x18] ss:$2 sm:$0xff] }
 0x217   : > { %v1728_v30 = vld [vmem:[#allocation3 + $0x1a] ss:$2 sm:$0xff] }
 0x218   : > { %v1413_v1 = vld [vmem:[#allocation3 + $0x6] ss:$2 sm:$0xff]  ;;  %v1415_v3 = vld [vmem:[#allocation3 + $0x16] ss:$2 sm:$0xff] }
 0x219   : > { %v1392_v4 = vld [vmem:[#allocation3 + $0x4] ss:$2 sm:$0xff]  ;;  %v1416_v5 = vpack.c.bf16 %v1415_v3, %v1413_v1  ;;  %v1394_v6 = vld [vmem:[#allocation3 + $0x14] ss:$2 sm:$0xff] }
 0x21a   : > { %v1395_v10 = vpack.c.bf16 %v1394_v6, %v1392_v4  ;;  %v1613_v27 = vld [vmem:[#allocation3 + $0x8] ss:$2 sm:$0xff] }
 0x21b   : > { %2680 = vmatmul.mubr.bf16.vlgmr.msra.gmra.mxu1 %v1416_v5  ;;  %v1726_v28 = vld [vmem:[#allocation3 + $0xa] ss:$2 sm:$0xff]  ;;  %v1616_v29 = vpack.c.bf16 %v1615_v8, %v1613_v27 }
 0x21c   : > { %2700 = vmatmul.mubr.bf16.vlgmr.msra.gmra.mxu0 %v1395_v10  ;;  %2704 = vmatpush3.bf16.msra.mxu1 %v2865_v0  ;;  %v1729_v32 = vpack.c.bf16 %v1728_v30, %v1726_v28  ;;  %v1839_v50 = vld [vmem:[#allocation3 + $0xc] ss:$2 sm:$0xff]  ;;  %v1841_v51 = vld [vmem:[#allocation3 + $0x1c] ss:$2 sm:$0xff] }
 0x21d   : > { %2724 = vmatpush3.bf16.msra.mxu0 %v2866_v7  ;;  %2705 = vmatprep.subr.bf16.mxu1 %v3335_v22  ;;  %v1842_v54 = vpack.c.bf16 %v1841_v51, %v1839_v50 }
 0x21e   : > { %2725 = vmatprep.subr.bf16.mxu0 %v3335_v22  ;;  %2719 = vmatprep.mubr.msk.bf16.mxu1 %vm2907_vm0, %v3335_v22 }
 0x21f   : > { %2739 = vmatprep.mubr.msk.bf16.mxu0 %vm2907_vm0, %v3335_v22 }
 0x220   : > { %2706 = vmatpush3.bf16.msra.mxu1 %v2867_v13 }
 0x221   : > { %2726 = vmatpush3.bf16.msra.mxu0 %v2868_v14  ;;  %2707 = vmatprep.subr.bf16.mxu1 %v3335_v22 }
 0x222   : > { %2727 = vmatprep.subr.bf16.mxu0 %v3335_v22 }
 0x224   : > { %2708 = vmatpush3.bf16.msra.mxu1 %v2869_v15 }
 0x225   : > { %2728 = vmatpush3.bf16.msra.mxu0 %v2870_v16  ;;  %2709 = vmatprep.subr.bf16.mxu1 %v3335_v22 }
 0x226   : > { %2729 = vmatprep.subr.bf16.mxu0 %v3335_v22 }
 0x228   : > { %2710 = vmatpush3.bf16.msra.mxu1 %v2871_v17 }
 0x229   : > { %2730 = vmatpush3.bf16.msra.mxu0 %v2872_v18  ;;  %2711 = vmatprep.subr.bf16.mxu1 %v3335_v22 }
 0x22a   : > { %2731 = vmatprep.subr.bf16.mxu0 %v3335_v22 }
 0x22c   : > { %2712 = vmatpush3.bf16.msra.mxu1 %v2873_v19 }
 0x22d   : > { %2732 = vmatpush3.bf16.msra.mxu0 %v2874_v20  ;;  %2713 = vmatprep.subr.bf16.mxu1 %v3335_v22 }
 0x22e   : > { %2733 = vmatprep.subr.bf16.mxu0 %v3335_v22 }
 0x230   : > { %2714 = vmatpush3.bf16.msra.mxu1 %v2875_v21 }
 0x231   : > { %2734 = vmatpush3.bf16.msra.mxu0 %v2876_v2  ;;  %2715 = vmatprep.subr.bf16.mxu1 %v3335_v22 }
 0x232   : > { %2735 = vmatprep.subr.bf16.mxu0 %v3335_v22 }
 0x234   : > { %2716 = vmatpush3.bf16.msra.mxu1 %v2877_v23 }
 0x235   : > { %2736 = vmatpush3.bf16.msra.mxu0 %v2878_v24  ;;  %2717 = vmatprep.subr.bf16.mxu1 %v3335_v22 }
 0x236   : > { %2737 = vmatprep.subr.bf16.mxu0 %v3335_v22 }
 0x238   : > { %2718 = vmatpush3.bf16.msra.mxu1 %v2879_v25 }
 0x239   : > { %2738 = vmatpush3.bf16.msra.mxu0 %v2880_v26  ;;  %2743 = vmatprep.subr.bf16.mxu1 %v3335_v22 }
 0x23a   : > { %2763 = vmatprep.subr.bf16.mxu0 %v3335_v22 }
 0x23b   : > { %2720 = vmatmul.mubr.bf16.vlgmr.msra.gmra.mxu1 %v1616_v29 }
 0x23c   : > { %2740 = vmatmul.mubr.bf16.vlgmr.msra.gmra.mxu0 %v1729_v32  ;;  %2744 = vmatpush3.bf16.msra.mxu1 %v2881_v9 }
 0x23d   : > { %2764 = vmatpush3.bf16.msra.mxu0 %v2882_v31  ;;  %2745 = vmatprep.subr.bf16.mxu1 %v3335_v22 }
 0x23e   : > { %2765 = vmatprep.subr.bf16.mxu0 %v3335_v22  ;;  %2759 = vmatprep.mubr.msk.bf16.mxu1 %vm2907_vm0, %v3335_v22 }
 0x23f   : > { %2779 = vmatprep.mubr.msk.bf16.mxu0 %vm2907_vm0, %v3335_v22 }
 0x240   : > { %2746 = vmatpush3.bf16.msra.mxu1 %v2883_v33 }
 0x241   : > { %2766 = vmatpush3.bf16.msra.mxu0 %v2884_v34  ;;  %2747 = vmatprep.subr.bf16.mxu1 %v3335_v22 }
 0x242   : > { %2767 = vmatprep.subr.bf16.mxu0 %v3335_v22 }
 0x244   : > { %2748 = vmatpush3.bf16.msra.mxu1 %v2885_v35 }
 0x245   : > { %2768 = vmatpush3.bf16.msra.mxu0 %v2886_v36  ;;  %2749 = vmatprep.subr.bf16.mxu1 %v3335_v22 }
 0x246   : > { %2769 = vmatprep.subr.bf16.mxu0 %v3335_v22 }
 0x248   : > { %2750 = vmatpush3.bf16.msra.mxu1 %v2887_v37 }
 0x249   : > { %2770 = vmatpush3.bf16.msra.mxu0 %v2888_v38  ;;  %2751 = vmatprep.subr.bf16.mxu1 %v3335_v22 }
 0x24a   : > { %2771 = vmatprep.subr.bf16.mxu0 %v3335_v22 }
 0x24c   : > { %2752 = vmatpush3.bf16.msra.mxu1 %v2889_v39 }
 0x24d   : > { %2772 = vmatpush3.bf16.msra.mxu0 %v2890_v40  ;;  %2753 = vmatprep.subr.bf16.mxu1 %v3335_v22 }
 0x24e   : > { %2773 = vmatprep.subr.bf16.mxu0 %v3335_v22 }
 0x250   : > { %2754 = vmatpush3.bf16.msra.mxu1 %v2891_v41 }
 0x251   : > { %2774 = vmatpush3.bf16.msra.mxu0 %v2892_v42  ;;  %2755 = vmatprep.subr.bf16.mxu1 %v3335_v22 }
 0x252   : > { %2775 = vmatprep.subr.bf16.mxu0 %v3335_v22 }
 0x254   : > { %2756 = vmatpush3.bf16.msra.mxu1 %v2893_v43 }
 0x255   : > { %2776 = vmatpush3.bf16.msra.mxu0 %v2894_v45  ;;  %2757 = vmatprep.subr.bf16.mxu1 %v3335_v22 }
 0x256   : > { %2777 = vmatprep.subr.bf16.mxu0 %v3335_v22 }
 0x258   : > { %2758 = vmatpush3.bf16.msra.mxu1 %v2895_v46 }
 0x259   : > { %2778 = vmatpush3.bf16.msra.mxu0 %v2896_v47 }
 0x25b   : > { %2760 = vmatmul.mubr.bf16.vlgmr.msra.gmra.mxu1 %v1842_v54 }
 0x25c   : > { %2780 = vmatmul.mubr.bf16.vlgmr.msra.gmra.mxu0 %v1960_v52 }
 0x2db   : > { %v1516_v55 = vpop.f32.mrf.mxu1 }
 0x2dc   : > { %v1605_v56 = vpop.f32.mrf.mxu0 }
 0x2dd   : > { %v2681_v57 = vpop.f32.mrf.mxu1  ;;  %v1606_v5 = vadd.f32 %v1605_v56, %v1516_v55 }
 0x2de   : > { %v2701_v11 = vpop.f32.mrf.mxu0 }
 0x2df   : > { %v1519_v12 = vpop.f32.mrf.mxu1 }
 0x2e0   : > { %v1608_v58 = vpop.f32.mrf.mxu0 }
 0x2e1   : > { %v2682_v59 = vpop.f32.mrf.mxu1  ;;  %v1609_v7 = vadd.f32 %v1608_v58, %v1519_v12 }
 0x2e2   : > { %v2702_v60 = vpop.f32.mrf.mxu0 }
 0x2fb   : > { %v1716_v61 = vpop.f32.mrf.mxu1 }
 0x2fc   : > { %v1829_v62 = vpop.f32.mrf.mxu0  ;;  %v1723_v6 = vadd.f32 %v1716_v61, %v1606_v5 }
 0x2fd   : > { %v2721_v63 = vpop.f32.mrf.mxu1 }
 0x2fe   : > { %v2741_v22 = vpop.f32.mrf.mxu0  ;;  %v1836_v10 = vadd.f32 %v1829_v62, %v1723_v6 }
 0x2ff   : > { %v1719_v0 = vpop.f32.mrf.mxu1 }
 0x300   : > { %v1832_v1 = vpop.f32.mrf.mxu0  ;;  %v1724_v13 = vadd.f32 %v1719_v0, %v1609_v7 }
 0x301   : > { %v2722_v3 = vpop.f32.mrf.mxu1 }
 0x302   : > { %v2742_v4 = vpop.f32.mrf.mxu0  ;;  %v1837_v18 = vadd.f32 %v1832_v1, %v1724_v13 }
 0x31b   : > { %v1942_v14 = vpop.f32.mrf.mxu1 }
 0x31c   : > { %v1949_v15 = vadd.f32 %v1942_v14, %v1836_v10  ;;  %v2059_v16 = vpop.f32.mrf.mxu0 }
 0x31d   : > { %v2761_v17 = vpop.f32.mrf.mxu1 }
 0x31e   : > { %v2781_v19 = vpop.f32.mrf.mxu0  ;;  %v1951_v21 = vadd.f32 %v1949_v15, %v3344_v44 }
 0x31f   : > { %v1945_v20 = vpop.f32.mrf.mxu1 }
 0x320   : > { %v1950_v2 = vadd.f32 %v1945_v20, %v1837_v18  ;;  %v2062_v23 = vpop.f32.mrf.mxu0  ;;  %v2066_v27 = vadd.f32 %v2059_v16, %v1951_v21 }
 0x321   : > { %v2762_v24 = vpop.f32.mrf.mxu1 }
 0x322   : > { %v1952_v25 = vadd.f32 %v1950_v2, %v3349_v53  ;;  %v2782_v26 = vpop.f32.mrf.mxu0 }
 0x324   : > { %v2067_v28 = vadd.f32 %v2062_v23, %v1952_v25 }
 0x326   : > { %v2401_v8 = vpack.c.bf16 %v2067_v28, %v2066_v27 }
 0x328   : > { %2402 = vst [vmem:[%s467_s22] sm:$0xff] %v2401_v8  }
 0x329 PF: > { %s24_s29 = sadd.s32 1, %s2904_s29  }
 0x32a   : > { %p21_p4 = scmp.ge.s32.totalorder %s24_s29, 4  }
 0x32c   :  { %23 = sbr.rel (!%p21_p4) target bundleno = 1 (0x1), region = 135 }

// kernel: _lambda_.8
= control target key start
LH: loop header
LB: loop body
LE: loop exit
PB: predicated region body
PF: predicated region fallthrough
CT: control target
= control target key end

     0   :  { %v282_v36 = vlaneseq  ;;  %v2931_v37 = vmov 1966171168   ;;  %s3833_s0 = inlined_call_operand.vmem [shape: bf16[2,2048], index: 0, kind: input, shape index: {}]   ;;  %s3834_s1 = inlined_call_operand.vmem [shape: bf16[2048,256], index: 1, kind: input, shape index: {}]   ;;  %s3835_s2 = inlined_call_operand.vmem [shape: f32[1,256], index: 2, kind: input, shape index: {}]   ;;  %s3836_s3 = inlined_call_operand.vmem [shape: bf16[256,128], index: 3, kind: input, shape index: {}]   ;;  %s3837_s4 = inlined_call_operand.vmem [shape: f32[1,128], index: 4, kind: input, shape index: {}]   ;;  %s3838_s5 = inlined_call_operand.hbm [shape: f32[2,128], index: 5, kind: output, shape index: {}]  }
   0x1   :  { %v2507_v0 = vld [vmem:[%s3834_s1 + $0x74] ss:$8 sps:$4 sm:$0xff]   ;;  %v2511_v2 = vld [vmem:[%s3834_s1 + $0x70] ss:$8 sps:$4 sm:$0xff]   ;;  %v2513_v4 = vld [vmem:[%s3834_s1 + $0x64] ss:$8 sps:$4 sm:$0xff]   ;;  %v296_v38 = vunpack.c.l.s4 %v2931_v37 }
   0x2   :  { %v2509_v1 = vld [vmem:[%s3834_s1 + $0x174] ss:$8 sps:$4 sm:$0xff]   ;;  %1688 = vmatprep.subr.bf16.mxu0 %v2507_v0  ;;  %v2512_v3 = vld [vmem:[%s3834_s1 + $0x170] ss:$8 sps:$4 sm:$0xff]   ;;  %v2515_v5 = vld [vmem:[%s3834_s1 + $0x164] ss:$8 sps:$4 sm:$0xff]  }
   0x3   :  { %1729 = vmatprep.subr.bf16.mxu1 %v2509_v1  ;;  %1689 = vmatpush1.bf16.msra.mxu0 %v2511_v2  ;;  %v2517_v6 = vld [vmem:[%s3834_s1 + $0x60] ss:$8 sps:$4 sm:$0xff]   ;;  %v2519_v8 = vld [vmem:[%s3834_s1 + $0x54] ss:$8 sps:$4 sm:$0xff]   ;;  %v2523_v10 = vld [vmem:[%s3834_s1 + $0x50] ss:$8 sps:$4 sm:$0xff]   ;;  %v297_v43 = vunpack.c.0.s8 %v296_v38 }
   0x4   :  { %1730 = vmatpush1.bf16.msra.mxu1 %v2512_v3  ;;  %1690 = vmatprep.subr.bf16.mxu0 %v2513_v4  ;;  %v2518_v7 = vld [vmem:[%s3834_s1 + $0x160] ss:$8 sps:$4 sm:$0xff]   ;;  %v2521_v9 = vld [vmem:[%s3834_s1 + $0x154] ss:$8 sps:$4 sm:$0xff]   ;;  %v2524_v11 = vld [vmem:[%s3834_s1 + $0x150] ss:$8 sps:$4 sm:$0xff]  }
   0x5   :  { %1731 = vmatprep.subr.bf16.mxu1 %v2515_v5  ;;  %v2525_v12 = vld [vmem:[%s3834_s1 + $0x44] ss:$8 sps:$4 sm:$0xff]   ;;  %v2529_v14 = vld [vmem:[%s3834_s1 + $0x40] ss:$8 sps:$4 sm:$0xff]   ;;  %v2531_v16 = vld [vmem:[%s3834_s1 + $0x34] ss:$8 sps:$4 sm:$0xff]  }
   0x6   :  { %v2527_v13 = vld [vmem:[%s3834_s1 + $0x144] ss:$8 sps:$4 sm:$0xff]   ;;  %v2530_v15 = vld [vmem:[%s3834_s1 + $0x140] ss:$8 sps:$4 sm:$0xff]   ;;  %v2533_v17 = vld [vmem:[%s3834_s1 + $0x134] ss:$8 sps:$4 sm:$0xff]  }
   0x7   :  { %1691 = vmatpush1.bf16.msra.mxu0 %v2517_v6  ;;  %v2535_v18 = vld [vmem:[%s3834_s1 + $0x30] ss:$8 sps:$4 sm:$0xff]   ;;  %v2537_v20 = vld [vmem:[%s3834_s1 + $0x24] ss:$8 sps:$4 sm:$0xff]   ;;  %v2541_v22 = vld [vmem:[%s3834_s1 + $0x20] ss:$8 sps:$4 sm:$0xff]  }
   0x8   :  { %1732 = vmatpush1.bf16.msra.mxu1 %v2518_v7  ;;  %1692 = vmatprep.subr.bf16.mxu0 %v2519_v8  ;;  %v2536_v19 = vld [vmem:[%s3834_s1 + $0x130] ss:$8 sps:$4 sm:$0xff]   ;;  %v2539_v21 = vld [vmem:[%s3834_s1 + $0x124] ss:$8 sps:$4 sm:$0xff]   ;;  %v2542_v23 = vld [vmem:[%s3834_s1 + $0x120] ss:$8 sps:$4 sm:$0xff]  }
   0x9   :  { %1733 = vmatprep.subr.bf16.mxu1 %v2521_v9  ;;  %v2543_v24 = vld [vmem:[%s3834_s1 + $0x14] ss:$8 sps:$4 sm:$0xff]   ;;  %v2547_v26 = vld [vmem:[%s3834_s1 + $0x10] ss:$8 sps:$4 sm:$0xff]   ;;  %v2549_v28 = vld [vmem:[%s3834_s1 + $0x4] ss:$8 sps:$4 sm:$0xff]  }
   0xa   :  { %v2545_v25 = vld [vmem:[%s3834_s1 + $0x114] ss:$8 sps:$4 sm:$0xff]   ;;  %v2548_v27 = vld [vmem:[%s3834_s1 + $0x110] ss:$8 sps:$4 sm:$0xff]   ;;  %v2551_v29 = vld [vmem:[%s3834_s1 + $0x104] ss:$8 sps:$4 sm:$0xff]  }
   0xb   :  { %1693 = vmatpush1.bf16.msra.mxu0 %v2523_v10  ;;  %v2553_v30 = vld [vmem:[%s3834_s1] ss:$8 sps:$4 sm:$0xff]   ;;  %v2555_v32 = vld [vmem:[%s3834_s1 + $0xf4] ss:$8 sps:$4 sm:$0xff]   ;;  %v2559_v34 = vld [vmem:[%s3834_s1 + $0xf0] ss:$8 sps:$4 sm:$0xff]  }
   0xc   :  { %1734 = vmatpush1.bf16.msra.mxu1 %v2524_v11  ;;  %1694 = vmatprep.subr.bf16.mxu0 %v2525_v12  ;;  %v2554_v31 = vld [vmem:[%s3834_s1 + $0x100] ss:$8 sps:$4 sm:$0xff]   ;;  %v2557_v33 = vld [vmem:[%s3834_s1 + $0x1f4] ss:$8 sps:$4 sm:$0xff]   ;;  %v2560_v35 = vld [vmem:[%s3834_s1 + $0x1f0] ss:$8 sps:$4 sm:$0xff]  }
   0xd   :  { %1735 = vmatprep.subr.bf16.mxu1 %v2527_v13  ;;  %v2561_v39 = vld [vmem:[%s3834_s1 + $0xe4] ss:$8 sps:$4 sm:$0xff]   ;;  %v2565_v41 = vld [vmem:[%s3834_s1 + $0xe0] ss:$8 sps:$4 sm:$0xff]   ;;  %v3080_v42 = vshrl.u32 %v282_v36, 7 }
   0xe   :  { %v2563_v40 = vld [vmem:[%s3834_s1 + $0x1e4] ss:$8 sps:$4 sm:$0xff]   ;;  %v2566_v44 = vld [vmem:[%s3834_s1 + $0x1e0] ss:$8 sps:$4 sm:$0xff]   ;;  %v2567_v45 = vld [vmem:[%s3834_s1 + $0xd4] ss:$8 sps:$4 sm:$0xff]  }
   0xf   :  { %1695 = vmatpush1.bf16.msra.mxu0 %v2529_v14  ;;  %v2569_v46 = vld [vmem:[%s3834_s1 + $0x1d4] ss:$8 sps:$4 sm:$0xff]   ;;  %v2571_v47 = vld [vmem:[%s3834_s1 + $0xd0] ss:$8 sps:$4 sm:$0xff]   ;;  %v3098_v49 = vsub.s32 %v297_v43, %v3080_v42  ;;  %v2573_v50 = vld [vmem:[%s3834_s1 + $0xc4] ss:$8 sps:$4 sm:$0xff]  }
  0x10   :  { %1736 = vmatpush1.bf16.msra.mxu1 %v2530_v15  ;;  %1696 = vmatprep.subr.bf16.mxu0 %v2531_v16  ;;  %v2572_v48 = vld [vmem:[%s3834_s1 + $0x1d0] ss:$8 sps:$4 sm:$0xff]   ;;  %v2575_v51 = vld [vmem:[%s3834_s1 + $0x1c4] ss:$8 sps:$4 sm:$0xff]   ;;  %v2577_v53 = vld [vmem:[%s3834_s1 + $0xc0] ss:$8 sps:$4 sm:$0xff]  }
  0x11   :  { %1737 = vmatprep.subr.bf16.mxu1 %v2533_v17  ;;  %v22_v52 = vld [vmem:[%s3833_s0] sm:$0xff]  ;;  %v2579_v56 = vld [vmem:[%s3834_s1 + $0xb4] ss:$8 sps:$4 sm:$0xff]   ;;  %v2583_v59 = vld [vmem:[%s3834_s1 + $0xb0] ss:$8 sps:$4 sm:$0xff]  }
  0x12   :  { %v301_v54 = vrot.slane %v22_v52, %v3098_v49  ;;  %v2578_v55 = vld [vmem:[%s3834_s1 + $0x1c0] ss:$8 sps:$4 sm:$0xff]   ;;  %v2581_v57 = vld [vmem:[%s3834_s1 + $0x1b4] ss:$8 sps:$4 sm:$0xff]   ;;  %v2584_v61 = vld [vmem:[%s3834_s1 + $0x1b0] ss:$8 sps:$4 sm:$0xff]   ;;  %v294_v1 = vcombine.high %v22_v52, %v22_v52 }
  0x13   :  { %1697 = vmatpush1.bf16.msra.mxu0 %v2535_v18  ;;  %v2585_v62 = vld [vmem:[%s3834_s1 + $0xa4] ss:$8 sps:$4 sm:$0xff]   ;;  %v2589_v2 = vld [vmem:[%s3834_s1 + $0xa0] ss:$8 sps:$4 sm:$0xff]   ;;  %v2591_v4 = vld [vmem:[%s3834_s1 + $0x94] ss:$8 sps:$4 sm:$0xff]  }
  0x14   :  { %1738 = vmatpush1.bf16.msra.mxu1 %v2536_v19  ;;  %1698 = vmatprep.subr.bf16.mxu0 %v2537_v20  ;;  %v309_v58 = vcombine.high %v301_v54, %v301_v54  ;;  %v2587_v63 = vld [vmem:[%s3834_s1 + $0x1a4] ss:$8 sps:$4 sm:$0xff]   ;;  %v2590_v3 = vld [vmem:[%s3834_s1 + $0x1a0] ss:$8 sps:$4 sm:$0xff]   ;;  %v2593_v5 = vld [vmem:[%s3834_s1 + $0x194] ss:$8 sps:$4 sm:$0xff]   ;;  %v3148_v6 = vrot.slane %v294_v1, %v3098_v49  ;;  %v317_v13 = vrot.slane %v301_v54, %v3098_v49 }
  0x15   :  { %1739 = vmatprep.subr.bf16.mxu1 %v2539_v21  ;;  %v2595_v7 = vld [vmem:[%s3834_s1 + $0x90] ss:$8 sps:$4 sm:$0xff]   ;;  %v2597_v9 = vld [vmem:[%s3834_s1 + $0x84] ss:$8 sps:$4 sm:$0xff]   ;;  %v2601_v12 = vld [vmem:[%s3834_s1 + $0x80] ss:$8 sps:$4 sm:$0xff]  }
  0x16   :  { %v331_v60 = vrot.slane %v309_v58, %v3098_v49  ;;  %v2596_v8 = vld [vmem:[%s3834_s1 + $0x190] ss:$8 sps:$4 sm:$0xff]   ;;  %v2599_v10 = vld [vmem:[%s3834_s1 + $0x184] ss:$8 sps:$4 sm:$0xff]   ;;  %v310_v11 = vcombine.high %v3148_v6, %v3148_v6  ;;  %v2602_v14 = vld [vmem:[%s3834_s1 + $0x180] ss:$8 sps:$4 sm:$0xff]   ;;  %v339_v18 = vcombine.high %v317_v13, %v317_v13 }
  0x17   :  { %1699 = vmatpush1.bf16.msra.mxu0 %v2541_v22  ;;  %v2606_v15 = vld [vmem:[%s3834_s1 + $0x274] ss:$8 sps:$4 sm:$0xff]   ;;  %v2604_v19 = vld [vmem:[%s3834_s1 + $0x270] ss:$8 sps:$4 sm:$0xff]   ;;  %v2612_v21 = vld [vmem:[%s3834_s1 + $0x264] ss:$8 sps:$4 sm:$0xff]  }
  0x18   :  { %1740 = vmatpush1.bf16.msra.mxu1 %v2542_v23  ;;  %1700 = vmatprep.subr.bf16.mxu0 %v2543_v24  ;;  %v341_v0 = vcombine.high %v331_v60, %v331_v60  ;;  %v2609_v16 = vld [vmem:[%s3834_s1 + $0x374] ss:$8 sps:$4 sm:$0xff]   ;;  %v338_v17 = vrot.slane %v310_v11, %v3098_v49  ;;  %v2607_v20 = vld [vmem:[%s3834_s1 + $0x370] ss:$8 sps:$4 sm:$0xff]   ;;  %v2615_v22 = vld [vmem:[%s3834_s1 + $0x364] ss:$8 sps:$4 sm:$0xff]  }
  0x19   :  { %1741 = vmatprep.subr.bf16.mxu1 %v2545_v25  ;;  %1720 = vmatprep.mubr.bf16.mxu0 %v331_v60  ;;  %v2610_v24 = vld [vmem:[%s3834_s1 + $0x260] ss:$8 sps:$4 sm:$0xff]   ;;  %v2628_v36 = vld [vmem:[%s3834_s1 + $0x230] ss:$8 sps:$4 sm:$0xff]   ;;  %v2636_v38 = vld [vmem:[%s3834_s1 + $0x224] ss:$8 sps:$4 sm:$0xff]  }
  0x1a   :  { %1761 = vmatprep.mubr.bf16.mxu1 %v341_v0  ;;  %v342_v23 = vcombine.high %v338_v17, %v338_v17  ;;  %v2613_v25 = vld [vmem:[%s3834_s1 + $0x360] ss:$8 sps:$4 sm:$0xff]   ;;  %v2631_v37 = vld [vmem:[%s3834_s1 + $0x330] ss:$8 sps:$4 sm:$0xff]   ;;  %v2642_v43 = vld [vmem:[%s3834_s1 + $0x214] ss:$8 sps:$4 sm:$0xff]  }
  0x1b   :  { %1701 = vmatpush1.bf16.msra.mxu0 %v2547_v26  ;;  %v2618_v26 = vld [vmem:[%s3834_s1 + $0x254] ss:$8 sps:$4 sm:$0xff]   ;;  %v2652_v54 = vld [vmem:[%s3834_s1 + $0x2f0] ss:$8 sps:$4 sm:$0xff]   ;;  %v2658_v58 = vld [vmem:[%s3834_s1 + $0x2e0] ss:$8 sps:$4 sm:$0xff]  }
  0x1c   :  { %1742 = vmatpush1.bf16.msra.mxu1 %v2548_v27  ;;  %1702 = vmatprep.subr.bf16.mxu0 %v2549_v28  ;;  %v2621_v27 = vld [vmem:[%s3834_s1 + $0x354] ss:$8 sps:$4 sm:$0xff]   ;;  %v2616_v28 = vld [vmem:[%s3834_s1 + $0x250] ss:$8 sps:$4 sm:$0xff]   ;;  %v2672_v0 = vld [vmem:[%s3834_s1 + $0x2c4] ss:$8 sps:$4 sm:$0xff]  }
  0x1d   :  { %1743 = vmatprep.subr.bf16.mxu1 %v2551_v29  ;;  %v2619_v29 = vld [vmem:[%s3834_s1 + $0x350] ss:$8 sps:$4 sm:$0xff]   ;;  %v2654_v52 = vld [vmem:[%s3834_s1 + $0x2f4] ss:$8 sps:$4 sm:$0xff]   ;;  %v2675_v1 = vld [vmem:[%s3834_s1 + $0x3c4] ss:$8 sps:$4 sm:$0xff]  }
  0x1e   :  { %v2666_v60 = vld [vmem:[%s3834_s1 + $0x2d4] ss:$8 sps:$4 sm:$0xff]   ;;  %v2682_v11 = vld [vmem:[%s3834_s1 + $0x2a0] ss:$8 sps:$4 sm:$0xff]  }
  0x1f   :  { %1703 = vmatpush1.bf16.msra.mxu0 %v2553_v30  ;;  %v2624_v30 = vld [vmem:[%s3834_s1 + $0x244] ss:$8 sps:$4 sm:$0xff]  }
  0x20   :  { %1744 = vmatpush1.bf16.msra.mxu1 %v2554_v31  ;;  %1704 = vmatprep.subr.bf16.mxu0 %v2555_v32  ;;  %v2627_v31 = vld [vmem:[%s3834_s1 + $0x344] ss:$8 sps:$4 sm:$0xff]   ;;  %v2622_v32 = vld [vmem:[%s3834_s1 + $0x240] ss:$8 sps:$4 sm:$0xff]  }
  0x21   :  { %1745 = vmatprep.subr.bf16.mxu1 %v2557_v33  ;;  %v2625_v33 = vld [vmem:[%s3834_s1 + $0x340] ss:$8 sps:$4 sm:$0xff]  }
  0x23   :  { %1705 = vmatpush2.bf16.msra.mxu0 %v2559_v34  ;;  %v2630_v34 = vld [vmem:[%s3834_s1 + $0x234] ss:$8 sps:$4 sm:$0xff]  }
  0x24   :  { %1746 = vmatpush2.bf16.msra.mxu1 %v2560_v35  ;;  %1706 = vmatprep.subr.bf16.mxu0 %v2561_v39  ;;  %v2633_v35 = vld [vmem:[%s3834_s1 + $0x334] ss:$8 sps:$4 sm:$0xff]   ;;  %v2639_v39 = vld [vmem:[%s3834_s1 + $0x324] ss:$8 sps:$4 sm:$0xff]  }
  0x25   :  { %1747 = vmatprep.subr.bf16.mxu1 %v2563_v40  ;;  %v2634_v40 = vld [vmem:[%s3834_s1 + $0x220] ss:$8 sps:$4 sm:$0xff]  }
  0x27   :  { %1707 = vmatpush2.bf16.msra.mxu0 %v2565_v41  ;;  %v2637_v41 = vld [vmem:[%s3834_s1 + $0x320] ss:$8 sps:$4 sm:$0xff]  }
  0x28   :  { %1748 = vmatpush2.bf16.msra.mxu1 %v2566_v44  ;;  %1708 = vmatprep.subr.bf16.mxu0 %v2567_v45  ;;  %v2645_v44 = vld [vmem:[%s3834_s1 + $0x314] ss:$8 sps:$4 sm:$0xff]   ;;  %v2640_v45 = vld [vmem:[%s3834_s1 + $0x210] ss:$8 sps:$4 sm:$0xff]  }
  0x29   :  { %1749 = vmatprep.subr.bf16.mxu1 %v2569_v46  ;;  %v2643_v46 = vld [vmem:[%s3834_s1 + $0x310] ss:$8 sps:$4 sm:$0xff]  }
  0x2b   :  { %1709 = vmatpush2.bf16.msra.mxu0 %v2571_v47  ;;  %v2648_v47 = vld [vmem:[%s3834_s1 + $0x204] ss:$8 sps:$4 sm:$0xff]  }
  0x2c   :  { %1750 = vmatpush2.bf16.msra.mxu1 %v2572_v48  ;;  %1710 = vmatprep.subr.bf16.mxu0 %v2573_v50  ;;  %v2651_v48 = vld [vmem:[%s3834_s1 + $0x304] ss:$8 sps:$4 sm:$0xff]   ;;  %v2646_v50 = vld [vmem:[%s3834_s1 + $0x200] ss:$8 sps:$4 sm:$0xff]  }
  0x2d   :  { %1751 = vmatprep.subr.bf16.mxu1 %v2575_v51  ;;  %v2649_v51 = vld [vmem:[%s3834_s1 + $0x300] ss:$8 sps:$4 sm:$0xff]  }
  0x2f   :  { %1711 = vmatpush2.bf16.msra.mxu0 %v2577_v53  ;;  %v2657_v53 = vld [vmem:[%s3834_s1 + $0x3f4] ss:$8 sps:$4 sm:$0xff]  }
  0x30   :  { %1752 = vmatpush2.bf16.msra.mxu1 %v2578_v55  ;;  %1712 = vmatprep.subr.bf16.mxu0 %v2579_v56  ;;  %v2655_v55 = vld [vmem:[%s3834_s1 + $0x3f0] ss:$8 sps:$4 sm:$0xff]   ;;  %v2660_v56 = vld [vmem:[%s3834_s1 + $0x2e4] ss:$8 sps:$4 sm:$0xff]  }
  0x31   :  { %1753 = vmatprep.subr.bf16.mxu1 %v2581_v57  ;;  %v2663_v57 = vld [vmem:[%s3834_s1 + $0x3e4] ss:$8 sps:$4 sm:$0xff]  }
  0x33   :  { %1713 = vmatpush2.bf16.msra.mxu0 %v2583_v59  ;;  %v2661_v59 = vld [vmem:[%s3834_s1 + $0x3e0] ss:$8 sps:$4 sm:$0xff]  }
  0x34   :  { %1754 = vmatpush2.bf16.msra.mxu1 %v2584_v61  ;;  %1714 = vmatprep.subr.bf16.mxu0 %v2585_v62  ;;  %v2669_v61 = vld [vmem:[%s3834_s1 + $0x3d4] ss:$8 sps:$4 sm:$0xff]   ;;  %v2664_v62 = vld [vmem:[%s3834_s1 + $0x2d0] ss:$8 sps:$4 sm:$0xff]  }
  0x35   :  { %1755 = vmatprep.subr.bf16.mxu1 %v2587_v63  ;;  %v2667_v63 = vld [vmem:[%s3834_s1 + $0x3d0] ss:$8 sps:$4 sm:$0xff]  }
  0x37   :  { %1715 = vmatpush2.bf16.msra.mxu0 %v2589_v2  ;;  %v2670_v2 = vld [vmem:[%s3834_s1 + $0x2c0] ss:$8 sps:$4 sm:$0xff]  }
  0x38   :  { %1756 = vmatpush2.bf16.msra.mxu1 %v2590_v3  ;;  %1716 = vmatprep.subr.bf16.mxu0 %v2591_v4  ;;  %v2673_v3 = vld [vmem:[%s3834_s1 + $0x3c0] ss:$8 sps:$4 sm:$0xff]   ;;  %v2678_v4 = vld [vmem:[%s3834_s1 + $0x2b4] ss:$8 sps:$4 sm:$0xff]  }
  0x39   :  { %1757 = vmatprep.subr.bf16.mxu1 %v2593_v5  ;;  %v2681_v5 = vld [vmem:[%s3834_s1 + $0x3b4] ss:$8 sps:$4 sm:$0xff]  }
  0x3b   :  { %1717 = vmatpush2.bf16.msra.mxu0 %v2595_v7  ;;  %v2676_v7 = vld [vmem:[%s3834_s1 + $0x2b0] ss:$8 sps:$4 sm:$0xff]  }
  0x3c   :  { %1758 = vmatpush2.bf16.msra.mxu1 %v2596_v8  ;;  %1718 = vmatprep.subr.bf16.mxu0 %v2597_v9  ;;  %v2679_v8 = vld [vmem:[%s3834_s1 + $0x3b0] ss:$8 sps:$4 sm:$0xff]   ;;  %v2684_v9 = vld [vmem:[%s3834_s1 + $0x2a4] ss:$8 sps:$4 sm:$0xff]  }
  0x3d   :  { %1759 = vmatprep.subr.bf16.mxu1 %v2599_v10  ;;  %v2687_v10 = vld [vmem:[%s3834_s1 + $0x3a4] ss:$8 sps:$4 sm:$0xff]  }
  0x3f   :  { %1719 = vmatpush2.bf16.msra.mxu0 %v2601_v12  ;;  %v2685_v12 = vld [vmem:[%s3834_s1 + $0x3a0] ss:$8 sps:$4 sm:$0xff]  }
  0x40   :  { %1760 = vmatpush2.bf16.msra.mxu1 %v2602_v14  ;;  %1770 = vmatprep.subr.bf16.mxu0 %v2606_v15  ;;  %v2693_v14 = vld [vmem:[%s3834_s1 + $0x394] ss:$8 sps:$4 sm:$0xff]   ;;  %v2688_v15 = vld [vmem:[%s3834_s1 + $0x290] ss:$8 sps:$4 sm:$0xff]  }
  0x41   :  { %1811 = vmatprep.subr.bf16.mxu1 %v2609_v16  ;;  %v2691_v16 = vld [vmem:[%s3834_s1 + $0x390] ss:$8 sps:$4 sm:$0xff]  }
  0x42   :  { %1721 = vmatmul.mubr.bf16.vlgmr.msra.gmra.mxu0 %v317_v13  ;;  %v2690_v13 = vld [vmem:[%s3834_s1 + $0x294] ss:$8 sps:$4 sm:$0xff]  }
  0x43   :  { %1762 = vmatmul.mubr.bf16.vlgmr.msra.gmra.mxu1 %v339_v18  ;;  %1771 = vmatpush1.bf16.msra.mxu0 %v2604_v19  ;;  %v2699_v18 = vld [vmem:[%s3834_s1 + $0x384] ss:$8 sps:$4 sm:$0xff]   ;;  %v2694_v19 = vld [vmem:[%s3834_s1 + $0x280] ss:$8 sps:$4 sm:$0xff]  }
  0x44   :  { %1812 = vmatpush1.bf16.msra.mxu1 %v2607_v20  ;;  %1772 = vmatprep.subr.bf16.mxu0 %v2612_v21  ;;  %v324_v20 = vrot.slane %v3148_v6, %v3098_v49  ;;  %v2697_v21 = vld [vmem:[%s3834_s1 + $0x380] ss:$8 sps:$4 sm:$0xff]   ;;  %v2700_v6 = vld [vmem:[%s3834_s1 + $0x470] ss:$8 sps:$4 sm:$0xff]  }
  0x45   :  { %1813 = vmatprep.subr.bf16.mxu1 %v2615_v22  ;;  %1802 = vmatprep.mubr.bf16.mxu0 %v338_v17  ;;  %v2696_v17 = vld [vmem:[%s3834_s1 + $0x284] ss:$8 sps:$4 sm:$0xff]   ;;  %v2702_v22 = vld [vmem:[%s3834_s1 + $0x474] ss:$8 sps:$4 sm:$0xff]  }
  0x46   :  { %1843 = vmatprep.mubr.bf16.mxu1 %v342_v23  ;;  %v2705_v23 = vld [vmem:[%s3834_s1 + $0x574] ss:$8 sps:$4 sm:$0xff]  }
  0x47   :  { %1773 = vmatpush1.bf16.msra.mxu0 %v2610_v24  ;;  %v340_v24 = vcombine.high %v324_v20, %v324_v20 }
  0x48   :  { %1814 = vmatpush1.bf16.msra.mxu1 %v2613_v25  ;;  %1774 = vmatprep.subr.bf16.mxu0 %v2618_v26  ;;  %v2703_v25 = vld [vmem:[%s3834_s1 + $0x570] ss:$8 sps:$4 sm:$0xff]   ;;  %v3381_v26 = vld [vmem:[%s3833_s0 + $0x8] sm:$0xff] }
  0x49   :  { %1815 = vmatprep.subr.bf16.mxu1 %v2621_v27  ;;  %v2708_v27 = vld [vmem:[%s3834_s1 + $0x464] ss:$8 sps:$4 sm:$0xff]  }
  0x4b   :  { %1775 = vmatpush1.bf16.msra.mxu0 %v2616_v28  ;;  %v2711_v28 = vld [vmem:[%s3834_s1 + $0x564] ss:$8 sps:$4 sm:$0xff]  }
  0x4c   :  { %1816 = vmatpush1.bf16.msra.mxu1 %v2619_v29  ;;  %1776 = vmatprep.subr.bf16.mxu0 %v2624_v30  ;;  %v3391_v29 = vrot.slane %v3381_v26, %v3098_v49 }
  0x4d   :  { %1817 = vmatprep.subr.bf16.mxu1 %v2627_v31  ;;  %v2706_v31 = vld [vmem:[%s3834_s1 + $0x460] ss:$8 sps:$4 sm:$0xff]  }
  0x4e   :  { %v358_v30 = vcombine.high %v3391_v29, %v3391_v29 }
  0x4f   :  { %1777 = vmatpush1.bf16.msra.mxu0 %v2622_v32  ;;  %v2709_v32 = vld [vmem:[%s3834_s1 + $0x560] ss:$8 sps:$4 sm:$0xff]  }
  0x50   :  { %1818 = vmatpush1.bf16.msra.mxu1 %v2625_v33  ;;  %1778 = vmatprep.subr.bf16.mxu0 %v2630_v34  ;;  %v2714_v33 = vld [vmem:[%s3834_s1 + $0x454] ss:$8 sps:$4 sm:$0xff]  }
  0x51   :  { %1819 = vmatprep.subr.bf16.mxu1 %v2633_v35  ;;  %v2717_v34 = vld [vmem:[%s3834_s1 + $0x554] ss:$8 sps:$4 sm:$0xff]   ;;  %v380_v35 = vrot.slane %v358_v30, %v3098_v49 }
  0x53   :  { %1779 = vmatpush1.bf16.msra.mxu0 %v2628_v36  ;;  %v390_v36 = vcombine.high %v380_v35, %v380_v35 }
  0x54   :  { %1820 = vmatpush1.bf16.msra.mxu1 %v2631_v37  ;;  %1780 = vmatprep.subr.bf16.mxu0 %v2636_v38  ;;  %v2712_v37 = vld [vmem:[%s3834_s1 + $0x450] ss:$8 sps:$4 sm:$0xff]  }
  0x55   :  { %1821 = vmatprep.subr.bf16.mxu1 %v2639_v39  ;;  %v2715_v38 = vld [vmem:[%s3834_s1 + $0x550] ss:$8 sps:$4 sm:$0xff]   ;;  %v2720_v39 = vld [vmem:[%s3834_s1 + $0x444] ss:$8 sps:$4 sm:$0xff]  }
  0x57   :  { %1781 = vmatpush1.bf16.msra.mxu0 %v2634_v40  ;;  %v2723_v40 = vld [vmem:[%s3834_s1 + $0x544] ss:$8 sps:$4 sm:$0xff]  }
  0x58   :  { %1822 = vmatpush1.bf16.msra.mxu1 %v2637_v41  ;;  %1782 = vmatprep.subr.bf16.mxu0 %v2642_v43  ;;  %v2718_v41 = vld [vmem:[%s3834_s1 + $0x440] ss:$8 sps:$4 sm:$0xff]  }
  0x59   :  { %1823 = vmatprep.subr.bf16.mxu1 %v2645_v44  ;;  %v2721_v43 = vld [vmem:[%s3834_s1 + $0x540] ss:$8 sps:$4 sm:$0xff]   ;;  %v2726_v44 = vld [vmem:[%s3834_s1 + $0x434] ss:$8 sps:$4 sm:$0xff]  }
  0x5b   :  { %1783 = vmatpush1.bf16.msra.mxu0 %v2640_v45  ;;  %v2729_v45 = vld [vmem:[%s3834_s1 + $0x534] ss:$8 sps:$4 sm:$0xff]  }
  0x5c   :  { %1824 = vmatpush1.bf16.msra.mxu1 %v2643_v46  ;;  %1784 = vmatprep.subr.bf16.mxu0 %v2648_v47  ;;  %v2724_v46 = vld [vmem:[%s3834_s1 + $0x430] ss:$8 sps:$4 sm:$0xff]  }
  0x5d   :  { %1825 = vmatprep.subr.bf16.mxu1 %v2651_v48  ;;  %v2727_v47 = vld [vmem:[%s3834_s1 + $0x530] ss:$8 sps:$4 sm:$0xff]   ;;  %v2732_v48 = vld [vmem:[%s3834_s1 + $0x424] ss:$8 sps:$4 sm:$0xff]  }
  0x5f   :  { %1785 = vmatpush1.bf16.msra.mxu0 %v2646_v50  ;;  %v2735_v50 = vld [vmem:[%s3834_s1 + $0x524] ss:$8 sps:$4 sm:$0xff]  }
  0x60   :  { %1826 = vmatpush1.bf16.msra.mxu1 %v2649_v51  ;;  %1786 = vmatprep.subr.bf16.mxu0 %v2654_v52  ;;  %v2730_v51 = vld [vmem:[%s3834_s1 + $0x420] ss:$8 sps:$4 sm:$0xff]  }
  0x61   :  { %1827 = vmatprep.subr.bf16.mxu1 %v2657_v53  ;;  %v2733_v52 = vld [vmem:[%s3834_s1 + $0x520] ss:$8 sps:$4 sm:$0xff]   ;;  %v2738_v53 = vld [vmem:[%s3834_s1 + $0x414] ss:$8 sps:$4 sm:$0xff]  }
  0x63   :  { %1787 = vmatpush2.bf16.msra.mxu0 %v2652_v54  ;;  %v2741_v54 = vld [vmem:[%s3834_s1 + $0x514] ss:$8 sps:$4 sm:$0xff]  }
  0x64   :  { %1828 = vmatpush2.bf16.msra.mxu1 %v2655_v55  ;;  %1788 = vmatprep.subr.bf16.mxu0 %v2660_v56  ;;  %v2736_v55 = vld [vmem:[%s3834_s1 + $0x410] ss:$8 sps:$4 sm:$0xff]  }
  0x65   :  { %1829 = vmatprep.subr.bf16.mxu1 %v2663_v57  ;;  %v2739_v56 = vld [vmem:[%s3834_s1 + $0x510] ss:$8 sps:$4 sm:$0xff]   ;;  %v2744_v57 = vld [vmem:[%s3834_s1 + $0x404] ss:$8 sps:$4 sm:$0xff]  }
  0x67   :  { %1789 = vmatpush2.bf16.msra.mxu0 %v2658_v58  ;;  %v2747_v58 = vld [vmem:[%s3834_s1 + $0x504] ss:$8 sps:$4 sm:$0xff]  }
  0x68   :  { %1830 = vmatpush2.bf16.msra.mxu1 %v2661_v59  ;;  %1790 = vmatprep.subr.bf16.mxu0 %v2666_v60  ;;  %v2742_v59 = vld [vmem:[%s3834_s1 + $0x400] ss:$8 sps:$4 sm:$0xff]  }
  0x69   :  { %1831 = vmatprep.subr.bf16.mxu1 %v2669_v61  ;;  %v2745_v60 = vld [vmem:[%s3834_s1 + $0x500] ss:$8 sps:$4 sm:$0xff]   ;;  %v2750_v61 = vld [vmem:[%s3834_s1 + $0x4f4] ss:$8 sps:$4 sm:$0xff]  }
  0x6b   :  { %1791 = vmatpush2.bf16.msra.mxu0 %v2664_v62  ;;  %v2753_v62 = vld [vmem:[%s3834_s1 + $0x5f4] ss:$8 sps:$4 sm:$0xff]  }
  0x6c   :  { %1832 = vmatpush2.bf16.msra.mxu1 %v2667_v63  ;;  %1792 = vmatprep.subr.bf16.mxu0 %v2672_v0  ;;  %v2748_v63 = vld [vmem:[%s3834_s1 + $0x4f0] ss:$8 sps:$4 sm:$0xff]  }
  0x6d   :  { %1833 = vmatprep.subr.bf16.mxu1 %v2675_v1  ;;  %v2751_v0 = vld [vmem:[%s3834_s1 + $0x5f0] ss:$8 sps:$4 sm:$0xff]   ;;  %v2756_v1 = vld [vmem:[%s3834_s1 + $0x4e4] ss:$8 sps:$4 sm:$0xff]  }
  0x6f   :  { %1793 = vmatpush2.bf16.msra.mxu0 %v2670_v2  ;;  %v2759_v2 = vld [vmem:[%s3834_s1 + $0x5e4] ss:$8 sps:$4 sm:$0xff]  }
  0x70   :  { %1834 = vmatpush2.bf16.msra.mxu1 %v2673_v3  ;;  %1794 = vmatprep.subr.bf16.mxu0 %v2678_v4  ;;  %v2754_v3 = vld [vmem:[%s3834_s1 + $0x4e0] ss:$8 sps:$4 sm:$0xff]  }
  0x71   :  { %1835 = vmatprep.subr.bf16.mxu1 %v2681_v5  ;;  %v2757_v4 = vld [vmem:[%s3834_s1 + $0x5e0] ss:$8 sps:$4 sm:$0xff]   ;;  %v2762_v5 = vld [vmem:[%s3834_s1 + $0x4d4] ss:$8 sps:$4 sm:$0xff]  }
  0x73   :  { %1795 = vmatpush2.bf16.msra.mxu0 %v2676_v7  ;;  %v2765_v7 = vld [vmem:[%s3834_s1 + $0x5d4] ss:$8 sps:$4 sm:$0xff]  }
  0x74   :  { %1836 = vmatpush2.bf16.msra.mxu1 %v2679_v8  ;;  %1796 = vmatprep.subr.bf16.mxu0 %v2684_v9  ;;  %v2760_v8 = vld [vmem:[%s3834_s1 + $0x4d0] ss:$8 sps:$4 sm:$0xff]  }
  0x75   :  { %1837 = vmatprep.subr.bf16.mxu1 %v2687_v10  ;;  %v2763_v9 = vld [vmem:[%s3834_s1 + $0x5d0] ss:$8 sps:$4 sm:$0xff]   ;;  %v2768_v10 = vld [vmem:[%s3834_s1 + $0x4c4] ss:$8 sps:$4 sm:$0xff]  }
  0x77   :  { %1797 = vmatpush2.bf16.msra.mxu0 %v2682_v11  ;;  %v2771_v11 = vld [vmem:[%s3834_s1 + $0x5c4] ss:$8 sps:$4 sm:$0xff]  }
  0x78   :  { %1838 = vmatpush2.bf16.msra.mxu1 %v2685_v12  ;;  %1798 = vmatprep.subr.bf16.mxu0 %v2690_v13  ;;  %v2766_v12 = vld [vmem:[%s3834_s1 + $0x4c0] ss:$8 sps:$4 sm:$0xff]  }
  0x79   :  { %1839 = vmatprep.subr.bf16.mxu1 %v2693_v14  ;;  %v2769_v13 = vld [vmem:[%s3834_s1 + $0x5c0] ss:$8 sps:$4 sm:$0xff]   ;;  %v2774_v14 = vld [vmem:[%s3834_s1 + $0x4b4] ss:$8 sps:$4 sm:$0xff]  }
  0x7b   :  { %1799 = vmatpush2.bf16.msra.mxu0 %v2688_v15  ;;  %v2777_v15 = vld [vmem:[%s3834_s1 + $0x5b4] ss:$8 sps:$4 sm:$0xff]  }
  0x7c   :  { %1840 = vmatpush2.bf16.msra.mxu1 %v2691_v16  ;;  %1800 = vmatprep.subr.bf16.mxu0 %v2696_v17  ;;  %v2772_v16 = vld [vmem:[%s3834_s1 + $0x4b0] ss:$8 sps:$4 sm:$0xff]  }
  0x7d   :  { %1841 = vmatprep.subr.bf16.mxu1 %v2699_v18  ;;  %v2775_v17 = vld [vmem:[%s3834_s1 + $0x5b0] ss:$8 sps:$4 sm:$0xff]   ;;  %v2780_v18 = vld [vmem:[%s3834_s1 + $0x4a4] ss:$8 sps:$4 sm:$0xff]  }
  0x7f   :  { %1801 = vmatpush2.bf16.msra.mxu0 %v2694_v19  ;;  %v2783_v19 = vld [vmem:[%s3834_s1 + $0x5a4] ss:$8 sps:$4 sm:$0xff]  }
  0x80   :  { %1842 = vmatpush2.bf16.msra.mxu1 %v2697_v21  ;;  %1852 = vmatprep.subr.bf16.mxu0 %v2702_v22  ;;  %v2781_v21 = vld [vmem:[%s3834_s1 + $0x5a0] ss:$8 sps:$4 sm:$0xff]   ;;  %v343_v22 = vcombine.high %v3381_v26, %v3381_v26 }
  0x81   :  { %1893 = vmatprep.subr.bf16.mxu1 %v2705_v23  ;;  %v2786_v23 = vld [vmem:[%s3834_s1 + $0x494] ss:$8 sps:$4 sm:$0xff]  }
  0x82   :  { %1803 = vmatmul.mubr.bf16.vlgmr.msra.gmra.mxu0 %v324_v20  ;;  %v2778_v20 = vld [vmem:[%s3834_s1 + $0x4a0] ss:$8 sps:$4 sm:$0xff]  }
  0x83   :  { %1844 = vmatmul.mubr.bf16.vlgmr.msra.gmra.mxu1 %v340_v24  ;;  %1853 = vmatpush1.bf16.msra.mxu0 %v2700_v6  ;;  %v2789_v24 = vld [vmem:[%s3834_s1 + $0x594] ss:$8 sps:$4 sm:$0xff]   ;;  %v3555_v6 = vrot.slane %v343_v22, %v3098_v49 }
  0x84   :  { %1894 = vmatpush1.bf16.msra.mxu1 %v2703_v25  ;;  %1854 = vmatprep.subr.bf16.mxu0 %v2708_v27 }
  0x85   :  { %1895 = vmatprep.subr.bf16.mxu1 %v2711_v28  ;;  %1884 = vmatprep.mubr.bf16.mxu0 %v380_v35 }
  0x86   :  { %1925 = vmatprep.mubr.bf16.mxu1 %v390_v36 }
  0x87   :  { %1855 = vmatpush1.bf16.msra.mxu0 %v2706_v31 }
  0x88   :  { %1896 = vmatpush1.bf16.msra.mxu1 %v2709_v32  ;;  %1856 = vmatprep.subr.bf16.mxu0 %v2714_v33 }
  0x89   :  { %1897 = vmatprep.subr.bf16.mxu1 %v2717_v34 }
  0x8b   :  { %1857 = vmatpush1.bf16.msra.mxu0 %v2712_v37 }
  0x8c   :  { %1898 = vmatpush1.bf16.msra.mxu1 %v2715_v38  ;;  %1858 = vmatprep.subr.bf16.mxu0 %v2720_v39 }
  0x8d   :  { %1899 = vmatprep.subr.bf16.mxu1 %v2723_v40 }
  0x8f   :  { %1859 = vmatpush1.bf16.msra.mxu0 %v2718_v41 }
  0x90   :  { %1900 = vmatpush1.bf16.msra.mxu1 %v2721_v43  ;;  %1860 = vmatprep.subr.bf16.mxu0 %v2726_v44 }
  0x91   :  { %1901 = vmatprep.subr.bf16.mxu1 %v2729_v45 }
  0x93   :  { %1861 = vmatpush1.bf16.msra.mxu0 %v2724_v46 }
  0x94   :  { %1902 = vmatpush1.bf16.msra.mxu1 %v2727_v47  ;;  %1862 = vmatprep.subr.bf16.mxu0 %v2732_v48 }
  0x95   :  { %1903 = vmatprep.subr.bf16.mxu1 %v2735_v50 }
  0x97   :  { %1863 = vmatpush1.bf16.msra.mxu0 %v2730_v51 }
  0x98   :  { %1904 = vmatpush1.bf16.msra.mxu1 %v2733_v52  ;;  %1864 = vmatprep.subr.bf16.mxu0 %v2738_v53 }
  0x99   :  { %1905 = vmatprep.subr.bf16.mxu1 %v2741_v54 }
  0x9b   :  { %1865 = vmatpush1.bf16.msra.mxu0 %v2736_v55 }
  0x9c   :  { %1906 = vmatpush1.bf16.msra.mxu1 %v2739_v56  ;;  %1866 = vmatprep.subr.bf16.mxu0 %v2744_v57 }
  0x9d   :  { %1907 = vmatprep.subr.bf16.mxu1 %v2747_v58 }
  0x9f   :  { %1867 = vmatpush1.bf16.msra.mxu0 %v2742_v59 }
  0xa0   :  { %1908 = vmatpush1.bf16.msra.mxu1 %v2745_v60  ;;  %1868 = vmatprep.subr.bf16.mxu0 %v2750_v61 }
  0xa1   :  { %1909 = vmatprep.subr.bf16.mxu1 %v2753_v62 }
  0xa3   :  { %1869 = vmatpush2.bf16.msra.mxu0 %v2748_v63 }
  0xa4   :  { %1910 = vmatpush2.bf16.msra.mxu1 %v2751_v0  ;;  %1870 = vmatprep.subr.bf16.mxu0 %v2756_v1 }
  0xa5   :  { %1911 = vmatprep.subr.bf16.mxu1 %v2759_v2 }
  0xa7   :  { %1871 = vmatpush2.bf16.msra.mxu0 %v2754_v3 }
  0xa8   :  { %1912 = vmatpush2.bf16.msra.mxu1 %v2757_v4  ;;  %1872 = vmatprep.subr.bf16.mxu0 %v2762_v5 }
  0xa9   :  { %1913 = vmatprep.subr.bf16.mxu1 %v2765_v7 }
  0xab   :  { %1873 = vmatpush2.bf16.msra.mxu0 %v2760_v8 }
  0xac   :  { %1914 = vmatpush2.bf16.msra.mxu1 %v2763_v9  ;;  %1874 = vmatprep.subr.bf16.mxu0 %v2768_v10 }
  0xad   :  { %1915 = vmatprep.subr.bf16.mxu1 %v2771_v11 }
  0xaf   :  { %1875 = vmatpush2.bf16.msra.mxu0 %v2766_v12 }
  0xb0   :  { %1916 = vmatpush2.bf16.msra.mxu1 %v2769_v13  ;;  %1876 = vmatprep.subr.bf16.mxu0 %v2774_v14 }
  0xb1   :  { %1917 = vmatprep.subr.bf16.mxu1 %v2777_v15 }
  0xb3   :  { %1877 = vmatpush2.bf16.msra.mxu0 %v2772_v16 }
  0xb4   :  { %1918 = vmatpush2.bf16.msra.mxu1 %v2775_v17  ;;  %1878 = vmatprep.subr.bf16.mxu0 %v2780_v18 }
  0xb5   :  { %1919 = vmatprep.subr.bf16.mxu1 %v2783_v19 }
  0xb6   :  { %10 = vsyncpa [#allocation3], 0  ;;  %v2784_v25 = vld [vmem:[%s3834_s1 + $0x490] ss:$8 sps:$4 sm:$0xff]   ;;  %v2792_v27 = vld [vmem:[%s3834_s1 + $0x484] ss:$8 sps:$4 sm:$0xff]   ;;  %v359_v30 = vcombine.high %v3555_v6, %v3555_v6  ;;  %v366_v31 = vrot.slane %v3391_v29, %v3098_v49 }
  0xb7   :  { %1879 = vmatpush2.bf16.msra.mxu0 %v2778_v20  ;;  %v2787_v26 = vld [vmem:[%s3834_s1 + $0x590] ss:$8 sps:$4 sm:$0xff]   ;;  %v2795_v28 = vld [vmem:[%s3834_s1 + $0x584] ss:$8 sps:$4 sm:$0xff]   ;;  %v2790_v32 = vld [vmem:[%s3834_s1 + $0x480] ss:$8 sps:$4 sm:$0xff]  }
  0xb8   :  { %1920 = vmatpush2.bf16.msra.mxu1 %v2781_v21  ;;  %1880 = vmatprep.subr.bf16.mxu0 %v2786_v23  ;;  %v2793_v33 = vld [vmem:[%s3834_s1 + $0x580] ss:$8 sps:$4 sm:$0xff]   ;;  %v2798_v34 = vld [vmem:[%s3834_s1 + $0x674] ss:$8 sps:$4 sm:$0xff]   ;;  %v387_v35 = vrot.slane %v359_v30, %v3098_v49  ;;  %v388_v36 = vcombine.high %v366_v31, %v366_v31  ;;  %v2796_v37 = vld [vmem:[%s3834_s1 + $0x670] ss:$8 sps:$4 sm:$0xff]  }
  0xb9   :  { %1921 = vmatprep.subr.bf16.mxu1 %v2789_v24  ;;  %v2801_v29 = vld [vmem:[%s3834_s1 + $0x774] ss:$8 sps:$4 sm:$0xff]   ;;  %v2799_v38 = vld [vmem:[%s3834_s1 + $0x770] ss:$8 sps:$4 sm:$0xff]   ;;  %v2804_v39 = vld [vmem:[%s3834_s1 + $0x664] ss:$8 sps:$4 sm:$0xff]  }
  0xba   :  { %v2807_v40 = vld [vmem:[%s3834_s1 + $0x764] ss:$8 sps:$4 sm:$0xff]   ;;  %v391_v41 = vcombine.high %v387_v35, %v387_v35  ;;  %v2802_v43 = vld [vmem:[%s3834_s1 + $0x660] ss:$8 sps:$4 sm:$0xff]   ;;  %v2810_v45 = vld [vmem:[%s3834_s1 + $0x654] ss:$8 sps:$4 sm:$0xff]  }
  0xbb   :  { %1881 = vmatpush2.bf16.msra.mxu0 %v2784_v25  ;;  %v2805_v44 = vld [vmem:[%s3834_s1 + $0x760] ss:$8 sps:$4 sm:$0xff]   ;;  %v2813_v46 = vld [vmem:[%s3834_s1 + $0x754] ss:$8 sps:$4 sm:$0xff]   ;;  %v2808_v47 = vld [vmem:[%s3834_s1 + $0x650] ss:$8 sps:$4 sm:$0xff]  }
  0xbc   :  { %1922 = vmatpush2.bf16.msra.mxu1 %v2787_v26  ;;  %1882 = vmatprep.subr.bf16.mxu0 %v2792_v27  ;;  %v2811_v48 = vld [vmem:[%s3834_s1 + $0x750] ss:$8 sps:$4 sm:$0xff]   ;;  %v2816_v50 = vld [vmem:[%s3834_s1 + $0x644] ss:$8 sps:$4 sm:$0xff]   ;;  %v2814_v52 = vld [vmem:[%s3834_s1 + $0x640] ss:$8 sps:$4 sm:$0xff]  }
  0xbd   :  { %1923 = vmatprep.subr.bf16.mxu1 %v2795_v28  ;;  %v2819_v51 = vld [vmem:[%s3834_s1 + $0x744] ss:$8 sps:$4 sm:$0xff]   ;;  %v2817_v53 = vld [vmem:[%s3834_s1 + $0x740] ss:$8 sps:$4 sm:$0xff]   ;;  %v2822_v54 = vld [vmem:[%s3834_s1 + $0x634] ss:$8 sps:$4 sm:$0xff]  }
  0xbe   :  { %v2825_v55 = vld [vmem:[%s3834_s1 + $0x734] ss:$8 sps:$4 sm:$0xff]   ;;  %v2820_v56 = vld [vmem:[%s3834_s1 + $0x630] ss:$8 sps:$4 sm:$0xff]   ;;  %v2828_v58 = vld [vmem:[%s3834_s1 + $0x624] ss:$8 sps:$4 sm:$0xff]  }
  0xbf   :  { %1883 = vmatpush2.bf16.msra.mxu0 %v2790_v32  ;;  %v2823_v57 = vld [vmem:[%s3834_s1 + $0x730] ss:$8 sps:$4 sm:$0xff]   ;;  %v2831_v59 = vld [vmem:[%s3834_s1 + $0x724] ss:$8 sps:$4 sm:$0xff]   ;;  %v2826_v60 = vld [vmem:[%s3834_s1 + $0x620] ss:$8 sps:$4 sm:$0xff]  }
  0xc0   :  { %1924 = vmatpush2.bf16.msra.mxu1 %v2793_v33  ;;  %1934 = vmatprep.subr.bf16.mxu0 %v2798_v34  ;;  %v2829_v61 = vld [vmem:[%s3834_s1 + $0x720] ss:$8 sps:$4 sm:$0xff]   ;;  %v2834_v62 = vld [vmem:[%s3834_s1 + $0x614] ss:$8 sps:$4 sm:$0xff]   ;;  %v2832_v0 = vld [vmem:[%s3834_s1 + $0x610] ss:$8 sps:$4 sm:$0xff]  }
  0xc1   :  { %1975 = vmatprep.subr.bf16.mxu1 %v2801_v29  ;;  %v2837_v63 = vld [vmem:[%s3834_s1 + $0x714] ss:$8 sps:$4 sm:$0xff]   ;;  %v2835_v1 = vld [vmem:[%s3834_s1 + $0x710] ss:$8 sps:$4 sm:$0xff]   ;;  %v2840_v2 = vld [vmem:[%s3834_s1 + $0x604] ss:$8 sps:$4 sm:$0xff]  }
  0xc2   :  { %1885 = vmatmul.mubr.bf16.vlgmr.msra.gmra.mxu0 %v366_v31  ;;  %v2843_v3 = vld [vmem:[%s3834_s1 + $0x704] ss:$8 sps:$4 sm:$0xff]   ;;  %v2838_v4 = vld [vmem:[%s3834_s1 + $0x600] ss:$8 sps:$4 sm:$0xff]   ;;  %v2846_v7 = vld [vmem:[%s3834_s1 + $0x6f4] ss:$8 sps:$4 sm:$0xff]  }
  0xc3   :  { %1926 = vmatmul.mubr.bf16.vlgmr.msra.gmra.mxu1 %v388_v36  ;;  %1935 = vmatpush1.bf16.msra.mxu0 %v2796_v37  ;;  %v2841_v5 = vld [vmem:[%s3834_s1 + $0x700] ss:$8 sps:$4 sm:$0xff]   ;;  %v2849_v8 = vld [vmem:[%s3834_s1 + $0x7f4] ss:$8 sps:$4 sm:$0xff]   ;;  %v2844_v9 = vld [vmem:[%s3834_s1 + $0x6f0] ss:$8 sps:$4 sm:$0xff]   ;;  %v373_v37 = vrot.slane %v3555_v6, %v3098_v49 }
  0xc4   :  { %1976 = vmatpush1.bf16.msra.mxu1 %v2799_v38  ;;  %1936 = vmatprep.subr.bf16.mxu0 %v2804_v39  ;;  %v2847_v10 = vld [vmem:[%s3834_s1 + $0x7f0] ss:$8 sps:$4 sm:$0xff]   ;;  %v2852_v11 = vld [vmem:[%s3834_s1 + $0x6e4] ss:$8 sps:$4 sm:$0xff]   ;;  %v2850_v13 = vld [vmem:[%s3834_s1 + $0x6e0] ss:$8 sps:$4 sm:$0xff]  }
  0xc5   :  { %1977 = vmatprep.subr.bf16.mxu1 %v2807_v40  ;;  %1966 = vmatprep.mubr.bf16.mxu0 %v387_v35  ;;  %v2855_v12 = vld [vmem:[%s3834_s1 + $0x7e4] ss:$8 sps:$4 sm:$0xff]   ;;  %v2853_v14 = vld [vmem:[%s3834_s1 + $0x7e0] ss:$8 sps:$4 sm:$0xff]   ;;  %v2858_v15 = vld [vmem:[%s3834_s1 + $0x6d4] ss:$8 sps:$4 sm:$0xff]   ;;  %v389_v6 = vcombine.high %v373_v37, %v373_v37 }
  0xc6   :  { %2007 = vmatprep.mubr.bf16.mxu1 %v391_v41  ;;  %v2861_v16 = vld [vmem:[%s3834_s1 + $0x7d4] ss:$8 sps:$4 sm:$0xff]   ;;  %v2856_v17 = vld [vmem:[%s3834_s1 + $0x6d0] ss:$8 sps:$4 sm:$0xff]   ;;  %v2864_v19 = vld [vmem:[%s3834_s1 + $0x6c4] ss:$8 sps:$4 sm:$0xff]  }
  0xc7   :  { %1937 = vmatpush1.bf16.msra.mxu0 %v2802_v43  ;;  %v2859_v18 = vld [vmem:[%s3834_s1 + $0x7d0] ss:$8 sps:$4 sm:$0xff]   ;;  %v2867_v20 = vld [vmem:[%s3834_s1 + $0x7c4] ss:$8 sps:$4 sm:$0xff]   ;;  %v2862_v21 = vld [vmem:[%s3834_s1 + $0x6c0] ss:$8 sps:$4 sm:$0xff]  }
  0xc8   :  { %1978 = vmatpush1.bf16.msra.mxu1 %v2805_v44  ;;  %1938 = vmatprep.subr.bf16.mxu0 %v2810_v45  ;;  %v2865_v22 = vld [vmem:[%s3834_s1 + $0x7c0] ss:$8 sps:$4 sm:$0xff]   ;;  %v2870_v23 = vld [vmem:[%s3834_s1 + $0x6b4] ss:$8 sps:$4 sm:$0xff]   ;;  %v2868_v25 = vld [vmem:[%s3834_s1 + $0x6b0] ss:$8 sps:$4 sm:$0xff]  }
  0xc9   :  { %1979 = vmatprep.subr.bf16.mxu1 %v2813_v46  ;;  %v2873_v24 = vld [vmem:[%s3834_s1 + $0x7b4] ss:$8 sps:$4 sm:$0xff]   ;;  %v2871_v26 = vld [vmem:[%s3834_s1 + $0x7b0] ss:$8 sps:$4 sm:$0xff]   ;;  %v2876_v27 = vld [vmem:[%s3834_s1 + $0x6a4] ss:$8 sps:$4 sm:$0xff]  }
  0xca   :  { %v2879_v28 = vld [vmem:[%s3834_s1 + $0x7a4] ss:$8 sps:$4 sm:$0xff]   ;;  %v2874_v30 = vld [vmem:[%s3834_s1 + $0x6a0] ss:$8 sps:$4 sm:$0xff]   ;;  %v2882_v32 = vld [vmem:[%s3834_s1 + $0x694] ss:$8 sps:$4 sm:$0xff]  }
  0xcb   :  { %1939 = vmatpush1.bf16.msra.mxu0 %v2808_v47  ;;  %v2877_v31 = vld [vmem:[%s3834_s1 + $0x7a0] ss:$8 sps:$4 sm:$0xff]   ;;  %v2885_v33 = vld [vmem:[%s3834_s1 + $0x794] ss:$8 sps:$4 sm:$0xff]   ;;  %v2880_v34 = vld [vmem:[%s3834_s1 + $0x690] ss:$8 sps:$4 sm:$0xff]  }
  0xcc   :  { %1980 = vmatpush1.bf16.msra.mxu1 %v2811_v48  ;;  %1940 = vmatprep.subr.bf16.mxu0 %v2816_v50  ;;  %v2883_v29 = vld [vmem:[%s3834_s1 + $0x790] ss:$8 sps:$4 sm:$0xff]   ;;  %v2888_v35 = vld [vmem:[%s3834_s1 + $0x684] ss:$8 sps:$4 sm:$0xff]   ;;  %v2886_v38 = vld [vmem:[%s3834_s1 + $0x680] ss:$8 sps:$4 sm:$0xff]  }
  0xcd   :  { %1981 = vmatprep.subr.bf16.mxu1 %v2819_v51  ;;  %v2891_v36 = vld [vmem:[%s3834_s1 + $0x784] ss:$8 sps:$4 sm:$0xff]   ;;  %v2889_v39 = vld [vmem:[%s3834_s1 + $0x780] ss:$8 sps:$4 sm:$0xff]   ;;  %v284_v40 = vsub.s32 0, %v3080_v42  ;;  %v288_v49 = vsub.s32 1, %v3080_v42 }
  0xce   :  { %v280_v41 = vld [vmem:[%s3835_s2] sm:$0x3]  ;;  %v2893_v42 = vld [vmem:[%s3836_s3 + $0x78] sm:$0xff]   ;;  %s2932_s29 = smov [#allocation2]  }
  0xcf   :  { %1941 = vmatpush1.bf16.msra.mxu0 %v2814_v52  ;;  %v285_v43 = vrot.slane %v280_v41, %v284_v40  ;;  %v289_v44 = vrot.slane %v280_v41, %v288_v49  ;;  %s2202_s30 = sshll.u32 %s2932_s29, 4  ;;  %s2203_s30 = int_to_ptr.vmem [resolvable:$true] %s2202_s30 }
  0xd0   :  { %1982 = vmatpush1.bf16.msra.mxu1 %v2817_v53  ;;  %1942 = vmatprep.subr.bf16.mxu0 %v2822_v54  ;;  %s2909_s6 = scalar_lea.vmem %s2203_s30, 32  ;;  %p2914_p1 = scmp.lt.s32.totalorder %s2203_s30, %s2203_s30 }
  0xd1   :  { %1983 = vmatprep.subr.bf16.mxu1 %v2825_v55  ;;  %p2910_p0 = scmp.ne.s32.totalorder %s2203_s30, %s2909_s6  ;;  %p2915_p2 = scmp.lt.s32.totalorder %s2909_s6, %s2909_s6 }
  0xd3   :  { %1943 = vmatpush1.bf16.msra.mxu0 %v2820_v56  ;;  %p2916_p3 = por %p2915_p2, %p2914_p1 }
  0xd4   :  { %1984 = vmatpush1.bf16.msra.mxu1 %v2823_v57  ;;  %1944 = vmatprep.subr.bf16.mxu0 %v2828_v58  ;;  %v2894_v58 = vld [vmem:[%s3836_s3 + $0x38] sm:$0xff]  }
  0xd5   :  { %1985 = vmatprep.subr.bf16.mxu1 %v2831_v59  ;;  %v2895_v59 = vld [vmem:[%s3836_s3 + $0x70] sm:$0xff]   ;;  %p2917_p4 = pnand %p2916_p3, %p2910_p0 }
  0xd7   :  { %1945 = vmatpush1.bf16.msra.mxu0 %v2826_v60  ;;  %v2896_v60 = vld [vmem:[%s3836_s3 + $0x30] sm:$0xff]  }
  0xd8   :  { %1986 = vmatpush1.bf16.msra.mxu1 %v2829_v61  ;;  %1946 = vmatprep.subr.bf16.mxu0 %v2834_v62  ;;  %v2897_v61 = vld [vmem:[%s3836_s3 + $0x68] sm:$0xff]  }
  0xd9   :  { %1987 = vmatprep.subr.bf16.mxu1 %v2837_v63  ;;  %v2898_v62 = vld [vmem:[%s3836_s3 + $0x28] sm:$0xff]   ;;  %v2899_v63 = vld [vmem:[%s3836_s3 + $0x60] sm:$0xff]  }
  0xdb   :  { %1947 = vmatpush1.bf16.msra.mxu0 %v2832_v0  ;;  %v2900_v0 = vld [vmem:[%s3836_s3 + $0x20] sm:$0xff]  }
  0xdc   :  { %1988 = vmatpush1.bf16.msra.mxu1 %v2835_v1  ;;  %1948 = vmatprep.subr.bf16.mxu0 %v2840_v2  ;;  %v2901_v1 = vld [vmem:[%s3836_s3 + $0x58] sm:$0xff]  }
  0xdd   :  { %1989 = vmatprep.subr.bf16.mxu1 %v2843_v3  ;;  %v2902_v2 = vld [vmem:[%s3836_s3 + $0x18] sm:$0xff]   ;;  %v2903_v3 = vld [vmem:[%s3836_s3 + $0x50] sm:$0xff]  }
  0xdf   :  { %1949 = vmatpush1.bf16.msra.mxu0 %v2838_v4  ;;  %v2904_v4 = vld [vmem:[%s3836_s3 + $0x10] sm:$0xff]  }
  0xe0   :  { %1990 = vmatpush1.bf16.msra.mxu1 %v2841_v5  ;;  %1950 = vmatprep.subr.bf16.mxu0 %v2846_v7 }
  0xe1   :  { %1991 = vmatprep.subr.bf16.mxu1 %v2849_v8 }
  0xe3   :  { %1951 = vmatpush2.bf16.msra.mxu0 %v2844_v9 }
  0xe4   :  { %1992 = vmatpush2.bf16.msra.mxu1 %v2847_v10  ;;  %1952 = vmatprep.subr.bf16.mxu0 %v2852_v11  ;;  %v2905_v11 = vld [vmem:[%s3836_s3 + $0x48] sm:$0xff]  }
  0xe5   :  { %1993 = vmatprep.subr.bf16.mxu1 %v2855_v12 }
  0xe7   :  { %1953 = vmatpush2.bf16.msra.mxu0 %v2850_v13 }
  0xe8   :  { %1994 = vmatpush2.bf16.msra.mxu1 %v2853_v14  ;;  %1954 = vmatprep.subr.bf16.mxu0 %v2858_v15  ;;  %v2906_v14 = vld [vmem:[%s3836_s3 + $0x8] sm:$0xff]  }
  0xe9   :  { %1995 = vmatprep.subr.bf16.mxu1 %v2861_v16 }
  0xeb   :  { %1955 = vmatpush2.bf16.msra.mxu0 %v2856_v17 }
  0xec   :  { %1996 = vmatpush2.bf16.msra.mxu1 %v2859_v18  ;;  %1956 = vmatprep.subr.bf16.mxu0 %v2864_v19 }
  0xed   :  { %1997 = vmatprep.subr.bf16.mxu1 %v2867_v20  ;;  %v2907_v20 = vld [vmem:[%s3836_s3 + $0x40] sm:$0xff]  }
  0xef   :  { %1957 = vmatpush2.bf16.msra.mxu0 %v2862_v21  ;;  %v2908_v21 = vld [vmem:[%s3836_s3] sm:$0xff]  }
  0xf0   :  { %1998 = vmatpush2.bf16.msra.mxu1 %v2865_v22  ;;  %1958 = vmatprep.subr.bf16.mxu0 %v2870_v23 }
  0xf1   :  { %1999 = vmatprep.subr.bf16.mxu1 %v2873_v24 }
  0xf3   :  { %1959 = vmatpush2.bf16.msra.mxu0 %v2868_v25 }
  0xf4   :  { %2000 = vmatpush2.bf16.msra.mxu1 %v2871_v26  ;;  %1960 = vmatprep.subr.bf16.mxu0 %v2876_v27 }
  0xf5   :  { %2001 = vmatprep.subr.bf16.mxu1 %v2879_v28 }
  0xf7   :  { %1961 = vmatpush2.bf16.msra.mxu0 %v2874_v30 }
  0xf8   :  { %2002 = vmatpush2.bf16.msra.mxu1 %v2877_v31  ;;  %1962 = vmatprep.subr.bf16.mxu0 %v2882_v32 }
  0xf9   :  { %2003 = vmatprep.subr.bf16.mxu1 %v2885_v33 }
  0xfb   :  { %1963 = vmatpush2.bf16.msra.mxu0 %v2880_v34 }
  0xfc   :  { %2004 = vmatpush2.bf16.msra.mxu1 %v2883_v29  ;;  %1964 = vmatprep.subr.bf16.mxu0 %v2888_v35 }
  0xfd   :  { %2005 = vmatprep.subr.bf16.mxu1 %v2891_v36 }
  0xff   :  { %1965 = vmatpush2.bf16.msra.mxu0 %v2886_v38 }
 0x100   :  { %2006 = vmatpush2.bf16.msra.mxu1 %v2889_v39  ;;  %2483 = vmatprep.subr.bf16.mxu0 %v2893_v42 }
 0x102   :  { %v1722_v45 = vpop.f32.mrf.mxu0  ;;  %1967 = vmatmul.mubr.bf16.vlgmr.msra.gmra.mxu0 %v373_v37 }
 0x103   :  { %v1763_v46 = vpop.f32.mrf.mxu1  ;;  %2008 = vmatmul.mubr.bf16.vlgmr.msra.gmra.mxu1 %v389_v6  ;;  %v1723_v47 = vadd.f32 %v1722_v45, %v285_v43  ;;  %2484 = vmatpush3.bf16.msra.mxu0 %v2894_v58 }
 0x104   :  { %v1724_v48 = vpop.f32.mrf.mxu0  ;;  %2485 = vmatprep.subr.bf16.mxu0 %v2895_v59 }
 0x105   :  { %v1765_v50 = vpop.f32.mrf.mxu1  ;;  %v1764_v51 = vadd.f32 %v1763_v46, %v1723_v47  ;;  %v1725_v52 = vadd.f32 %v1724_v48, %v289_v44 }
 0x106   :  { %v1726_v53 = vpop.f32.mrf.mxu0 }
 0x107   :  { %v1767_v54 = vpop.f32.mrf.mxu1  ;;  %v1766_v55 = vadd.f32 %v1765_v50, %v1725_v52  ;;  %2486 = vmatpush3.bf16.msra.mxu0 %v2896_v60  ;;  %v2466_v52 = vld [vmem:[%s3837_s4] ss:$0 sm:$0xff] }
 0x108   :  { %v1727_v56 = vpop.f32.mrf.mxu0  ;;  %2487 = vmatprep.subr.bf16.mxu0 %v2897_v61 }
 0x109   :  { %v1768_v57 = vpop.f32.mrf.mxu1 }
 0x10b   :  { %2488 = vmatpush3.bf16.msra.mxu0 %v2898_v62 }
 0x10c   :  { %2489 = vmatprep.subr.bf16.mxu0 %v2899_v63 }
 0x10f   :  { %2490 = vmatpush3.bf16.msra.mxu0 %v2900_v0 }
 0x110   :  { %2491 = vmatprep.subr.bf16.mxu0 %v2901_v1 }
 0x113   :  { %2492 = vmatpush3.bf16.msra.mxu0 %v2902_v2 }
 0x114   :  { %2493 = vmatprep.subr.bf16.mxu0 %v2903_v3 }
 0x117   :  { %2494 = vmatpush3.bf16.msra.mxu0 %v2904_v4 }
 0x118   :  { %2495 = vmatprep.subr.bf16.mxu0 %v2905_v11 }
 0x11b   :  { %2496 = vmatpush3.bf16.msra.mxu0 %v2906_v14 }
 0x11c   :  { %2497 = vmatprep.subr.bf16.mxu0 %v2907_v20 }
 0x11f   :  { %2498 = vmatpush3.bf16.msra.mxu0 %v2908_v21 }
 0x142   :  { %v1804_v5 = vpop.f32.mrf.mxu0 }
 0x143   :  { %v1845_v7 = vpop.f32.mrf.mxu1  ;;  %v1805_v8 = vadd.f32 %v1804_v5, %v1764_v51 }
 0x144   :  { %v1806_v9 = vpop.f32.mrf.mxu0 }
 0x145   :  { %v1847_v10 = vpop.f32.mrf.mxu1  ;;  %v1846_v12 = vadd.f32 %v1845_v7, %v1805_v8  ;;  %v1807_v13 = vadd.f32 %v1806_v9, %v1766_v55 }
 0x146   :  { %v1808_v15 = vpop.f32.mrf.mxu0 }
 0x147   :  { %v1849_v16 = vpop.f32.mrf.mxu1  ;;  %v1848_v17 = vadd.f32 %v1847_v10, %v1807_v13 }
 0x148   :  { %v1809_v18 = vpop.f32.mrf.mxu0 }
 0x149   :  { %v1850_v19 = vpop.f32.mrf.mxu1 }
 0x182   :  { %v1886_v22 = vpop.f32.mrf.mxu0 }
 0x183   :  { %v1927_v23 = vpop.f32.mrf.mxu1  ;;  %v1887_v24 = vadd.f32 %v1886_v22, %v1846_v12 }
 0x184   :  { %v1888_v25 = vpop.f32.mrf.mxu0 }
 0x185   :  { %v1929_v26 = vpop.f32.mrf.mxu1  ;;  %v1928_v27 = vadd.f32 %v1927_v23, %v1887_v24  ;;  %v1889_v33 = vadd.f32 %v1888_v25, %v1848_v17 }
 0x186   :  { %v1890_v28 = vpop.f32.mrf.mxu0 }
 0x187   :  { %v1931_v30 = vpop.f32.mrf.mxu1  ;;  %v1930_v35 = vadd.f32 %v1929_v26, %v1889_v33 }
 0x188   :  { %v1891_v31 = vpop.f32.mrf.mxu0 }
 0x189   :  { %v1932_v32 = vpop.f32.mrf.mxu1 }
 0x1c2   :  { %v1968_v34 = vpop.f32.mrf.mxu0 }
 0x1c3   :  { %v2009_v29 = vpop.f32.mrf.mxu1  ;;  %v1969_v36 = vadd.f32 %v1968_v34, %v1928_v27 }
 0x1c4   :  { %v1970_v37 = vpop.f32.mrf.mxu0 }
 0x1c5   :  { %v2011_v38 = vpop.f32.mrf.mxu1  ;;  %v2010_v39 = vadd.f32 %v2009_v29, %v1969_v36  ;;  %v1971_v40 = vadd.f32 %v1970_v37, %v1930_v35 }
 0x1c6   :  { %v1972_v41 = vpop.f32.mrf.mxu0 }
 0x1c7   :  { %v2013_v49 = vpop.f32.mrf.mxu1  ;;  %v2012_v6 = vadd.f32 %v2011_v38, %v1971_v40  ;;  %v2016_v43 = vmax.f32 %v2010_v39, 0.0 }
 0x1c8   :  { %v1973_v44 = vpop.f32.mrf.mxu0 }
 0x1c9   :  { %v2014_v45 = vpop.f32.mrf.mxu1  ;;  %v2017_v46 = vmax.f32 %v2012_v6, 0.0  ;;  %v2018_v48 = vpack.c.bf16 %v2016_v43, %v2016_v43 }
 0x1cb   :  { %v2019_v47 = vpack.c.bf16 %v2017_v46, %v2017_v46 }
 0x1cd   :  { %2187 = vmatprep.mubr.bf16.mxu0 %v2019_v47 }
 0x1ce   :  { %2188 = vmatmul.mubr.bf16.vlgmr.msra.gmra.mxu0 %v2018_v48 }
 0x28e   :  { %v2499_v50 = vpop.f32.mrf.mxu0 }
 0x290   :  { %v2500_v51 = vpop.f32.mrf.mxu0 }
 0x291   :  { %v2501_v53 = vadd.f32 %v2500_v51, %v2499_v50 }
 0x292   :  { %v2502_v54 = vpop.f32.mrf.mxu0 }
 0x293   :  { %v2190_v55 = vadd.f32 %v2501_v53, %v2466_v52 }
 0x294   :  { %v2503_v56 = vpop.f32.mrf.mxu0 }
 0x295   :  { %2195 = vst [vmem:[#allocation2] sm:$0x3] %v2190_v55 }
 0x296   :  { %2920 = shalt.err (!%p2917_p4)
}
 0x297   :  { %2205 = dma.vmem_to_hbm [thread:$0]  %s2203_s30, 32, %s3838_s5, [#allocation3]  }
 0x298   :  { %2929 = dma.done.wait [#allocation3], 32  }
 0x299   :  { %2930 = vsyncadd [#allocation3], 4294967264 }
 0x29a   :  { %2209 = vsyncpa [#allocation3], 1 }

</bundles_post_ra>
